<compile_context>
chip_gen: v5e
topology: v5e:2x2
jax: 0.10.0
libtpu: 0.0.40
codegen_flags: <defaults>
</compile_context>

<pallas_src>
import functools
import math

import jax
import jax.numpy as jnp
from jax import lax
from jax.experimental import pallas as pl
from jax.experimental.pallas import tpu as pltpu

CP = 128          # padded channel count (= lane width)
TARGET_M = 512    # target output pixels per fat-K MXU matmul


# ----------------------------------------------------------------------------
# Geometry of the canonical layout
# ----------------------------------------------------------------------------
def _geometry(H, W, target_m=TARGET_M):
    Hp, Wp = H + 2, W + 2
    Np = Hp * Wp
    # rows per chunk: ~target_m flat pixels, whole image rows, and a multiple
    # of (8 / gcd(Wp, 8)) so m_chunk = rows * Wp is a multiple of 8.
    mult = 8 // math.gcd(Wp, 8)
    rows = max(1, int(round(target_m / Wp)))
    rows = ((rows + mult - 1) // mult) * mult
    rows_cap = ((Hp + mult - 1) // mult) * mult
    rows = min(rows, rows_cap)
    m_chunk = rows * Wp
    n_chunks = -(-Hp // rows)
    Np_pad = n_chunks * m_chunk
    padF = ((Wp + 1 + 7) // 8) * 8      # front apron (>= Wp+1, 8-aligned)
    padB = ((Wp + 1 + 7) // 8) * 8      # back apron  (>= Wp+1, 8-aligned)
    Ne = padF + Np_pad + padB
    return dict(H=H, W=W, Hp=Hp, Wp=Wp, Np=Np, Np_pad=Np_pad, padF=padF,
                padB=padB, Ne=Ne, rows_per_chunk=rows, m_chunk=m_chunk,
                n_chunks=n_chunks)


# ----------------------------------------------------------------------------
# Fused Pallas kernel: conv_in -> nums_rb ResnetBlocks -> conv_out
# ----------------------------------------------------------------------------
def _adapter_kernel(x_ref, temb_ref, w_ref, b_ref, o_ref,
                    ybuf, h1, h2, slab, *, geom, nums_rb):
    H, W = geom["H"], geom["W"]
    Wp = geom["Wp"]
    padF = geom["padF"]
    Ne = geom["Ne"]
    Np_pad = geom["Np_pad"]
    rows_per_chunk = geom["rows_per_chunk"]
    m_chunk = geom["m_chunk"]
    n_chunks = geom["n_chunks"]
    shift = padF - Wp - 1
    inv_wp = 1.0 / Wp

    temb = temb_ref[...]                                   # (1, CP) f32

    # ---- one-time init ------------------------------------------------------
    # Stage the bf16 input once as f32 (single aligned full-block pass): this
    # is conv_in's tap source.  Its halo / apron / tail rows are zero by layout.
    h2[...] = x_ref[...].astype(jnp.float32)
    # The chunk loops only write [padF, padF + Np_pad); zero just the aprons of
    # the other resident buffers once (no whole-buffer zero fills).
    back0 = padF + Np_pad
    nback = Ne - back0
    zf = jnp.zeros((padF, CP), jnp.float32)
    zb = jnp.zeros((nback, CP), jnp.float32)
    ybuf[0:padF, :] = zf
    ybuf[back0:Ne, :] = zb
    h1[0:padF, :] = zf
    h1[back0:Ne, :] = zb

    def _keep_mask(ci):
        """(m_chunk, 1) bool: True on interior pixels of this chunk."""
        j = lax.broadcasted_iota(jnp.int32, (m_chunk, 1), 0)
        # local row / col without vector integer division: float reciprocal
        # followed by an exact integer fixup.
        jr = (j.astype(jnp.float32) * inv_wp).astype(jnp.int32)
        c = j - jr * Wp
        jr = jnp.where(c < 0, jr - 1, jr)
        c = jnp.where(c < 0, c + Wp, c)
        jr = jnp.where(c >= Wp, jr + 1, jr)
        c = jnp.where(c >= Wp, c - Wp, c)
        r = jr + ci * rows_per_chunk
        return (r >= 1) & (r <= H) & (c >= 1) & (c <= W)

    def _conv(src, dst, idx, *, relu, residual, temb_into):
        """dst[interior] <- act(conv3x3(src) + b[idx]) (+ residual); halo -> 0.
        Optionally also writes (result + temb, masked) into `temb_into`,
        fusing the next block's `y + temb` pass for free."""
        bias = b_ref[idx]                                  # (1, CP) f32

        def body(ci, carry):
            m0 = pl.multiple_of(ci * m_chunk, 8)
            # in-kernel im2col: 9 shifted taps -> one fat-K bf16 slab
            for k in range(9):
                dy, dx = divmod(k, 3)
                off = m0 + (shift + dy * Wp + dx)
                slab[:, k * CP:(k + 1) * CP] = (
                    src[pl.ds(off, m_chunk), :].astype(slab.dtype))
            acc = jnp.dot(slab[...], w_ref[idx],
                          preferred_element_type=jnp.float32) + bias
            if relu:
                acc = jnp.maximum(acc, 0.0)
            rows = pl.ds(padF + m0, m_chunk)
            if residual is not None:
                acc = acc + residual[rows, :]              # read-before-write
            keep = _keep_mask(ci)
            dst[rows, :] = jnp.where(keep, acc, 0.0)
            if temb_into is not None:
                temb_into[rows, :] = jnp.where(keep, acc + temb, 0.0)
            return carry

        lax.fori_loop(0, n_chunks, body, 0)

    # conv_in : staged x (h2) -> ybuf ; also builds h1 = ybuf + temb (block 0)
    _conv(h2, ybuf, 0, relu=False, residual=None, temb_into=h1)

    # fused ResnetBlocks (sk=True).  Block loop unrolled (static weight index
    # into the stacked weights); chunk loops stay rolled.
    for blk in range(nums_rb):
        _conv(h1, h2, 1 + 2 * blk, relu=True, residual=None, temb_into=None)
        _conv(h2, ybuf, 2 + 2 * blk, relu=False, residual=ybuf, temb_into=h1)

    # conv_out : ybuf -> h2, then one aligned full-block bf16 store.
    _conv(ybuf, h2, 1 + 2 * nums_rb, relu=False, residual=None, temb_into=None)
    o_ref[...] = h2[...].astype(o_ref.dtype)


# ----------------------------------------------------------------------------
# Pallas wrapper
# ----------------------------------------------------------------------------
def _vmem_limit_bytes():
    # Generation-aware scoped-VMEM budget (~75% of physical) with a safe
    # fallback if the query is unavailable.
    try:
        cap = getattr(pltpu.get_tpu_info(), "vmem_capacity_bytes", None)
        if cap:
            return int(cap) * 3 // 4
    except Exception:
        pass
    return 48 * 1024 * 1024


def adapter_core(x_can, temb_p, w_stack, b_stack, geom):
    B, Ne, _ = x_can.shape
    n_convs = w_stack.shape[0]
    nums_rb = (n_convs - 2) // 2
    kernel = functools.partial(_adapter_kernel, geom=geom, nums_rb=nums_rb)
    return pl.pallas_call(
        kernel,
        out_shape=jax.ShapeDtypeStruct((B, Ne, CP), jnp.bfloat16),
        grid=(B,),
        in_specs=[
            pl.BlockSpec((None, Ne, CP), lambda b: (b, 0, 0)),         # activation
            pl.BlockSpec((None, 1, CP), lambda b: (b, 0, 0)),          # temb
            pl.BlockSpec((n_convs, 9 * CP, CP), lambda b: (0, 0, 0)),  # weights
            pl.BlockSpec((n_convs, 1, CP), lambda b: (0, 0, 0)),       # biases
        ],
        out_specs=pl.BlockSpec((None, Ne, CP), lambda b: (b, 0, 0)),
        scratch_shapes=[
            pltpu.VMEM((Ne, CP), jnp.float32),                   # ybuf (f32 residual stream)
            pltpu.VMEM((Ne, CP), jnp.float32),                   # h1 = y + temb
            pltpu.VMEM((Ne, CP), jnp.float32),                   # h2 = relu(conv1) / staging
            pltpu.VMEM((geom["m_chunk"], 9 * CP), jnp.bfloat16),  # fat-K im2col slab
        ],
        compiler_params=pltpu.CompilerParams(
            dimension_semantics=("parallel",),
            vmem_limit_bytes=_vmem_limit_bytes()),
    )(x_can, temb_p, w_stack, b_stack)


# ----------------------------------------------------------------------------
# Layout helpers (plain JAX glue: pure reshapes / pads / transposes)
# ----------------------------------------------------------------------------
def to_canonical(x_nhwc, geom):
    """(B,H,W,C) f32 -> (B, Ne, CP) bf16 canonical layout (zero halo + aprons)."""
    B, H, W, C = x_nhwc.shape
    x = jnp.pad(x_nhwc, ((0, 0), (1, 1), (1, 1), (0, CP - C)))   # halo + lane pad
    x = x.reshape(B, geom["Np"], CP)
    back = geom["Ne"] - geom["padF"] - geom["Np"]
    x = jnp.pad(x, ((0, 0), (geom["padF"], back), (0, 0)))       # aprons + tail
    return x.astype(jnp.bfloat16)


def from_canonical(x_can, geom, C):
    """(B, Ne, CP) -> (B, H, W, C): drop aprons, halo ring and channel padding."""
    B = x_can.shape[0]
    Hp, Wp = geom["Hp"], geom["Wp"]
    x = x_can[:, geom["padF"]:geom["padF"] + geom["Np"], :]
    x = x.reshape(B, Hp, Wp, CP)
    return x[:, 1:Hp - 1, 1:Wp - 1, :C]


def get_timestep_embedding(timesteps, embedding_dim):
    half_dim = embedding_dim // 2
    scale = math.log(10000) / (half_dim - 1)
    freqs = jnp.exp(jnp.arange(half_dim, dtype=jnp.float32) * -scale)
    arg = timesteps.astype(jnp.float32)[:, None] * freqs[None, :]
    return jnp.concatenate([jnp.sin(arg), jnp.cos(arg)], axis=1)   # dim 96 is even


def pixel_unshuffle(x, r):  # NCHW
    B, C, H, W = x.shape
    x = x.reshape(B, C, H // r, r, W // r, r)
    x = jnp.transpose(x, (0, 1, 3, 5, 2, 4))
    return x.reshape(B, C * r * r, H // r, W // r)


def pixel_shuffle(x, r):  # NCHW
    B, Crr, H, W = x.shape
    C = Crr // (r * r)
    x = x.reshape(B, C, r, r, H, W)
    x = jnp.transpose(x, (0, 1, 4, 2, 5, 3))
    return x.reshape(B, C, H * r, W * r)


# ----------------------------------------------------------------------------
# One-time parameter preprocessing (hoisted out of the per-call path)
# ----------------------------------------------------------------------------
def _fold_conv(w_oihw, b):
    """OIHW (Cout,Cin,3,3) -> folded, lane-padded bf16 weight (9*CP, CP) + bias."""
    cout, cin = w_oihw.shape[0], w_oihw.shape[1]
    w = jnp.transpose(w_oihw, (2, 3, 1, 0))                      # (3,3,Cin,Cout)
    w = jnp.pad(w, ((0, 0), (0, 0), (0, CP - cin), (0, CP - cout)))
    w = w.reshape(9 * CP, CP).astype(jnp.bfloat16)
    bp = jnp.pad(b, (0, CP - cout)).reshape(1, CP).astype(jnp.float32)
    return w, bp


def prepare_params(params):
    folded = [_fold_conv(params["conv_in_w"], params["conv_in_b"])]
    for blk in params["body"]:
        folded.append(_fold_conv(blk["w1"], blk["b1"]))
        folded.append(_fold_conv(blk["w2"], blk["b2"]))
    folded.append(_fold_conv(params["conv_out_w"], params["conv_out_b"]))
    return {
        "w_stack": jnp.stack([w for w, _ in folded]),    # (n_convs, 9*CP, CP) bf16
        "b_stack": jnp.stack([b for _, b in folded]),    # (n_convs, 1, CP)   f32
        "temb_w1_t": params["temb_w1"].T.astype(jnp.float32),
        "temb_b1": params["temb_b1"].astype(jnp.float32),
        "temb_w2_t": params["temb_w2"].T.astype(jnp.float32),
        "temb_b2": params["temb_b2"].astype(jnp.float32),
    }


# ----------------------------------------------------------------------------
# Adapter forward (Pallas)
# ----------------------------------------------------------------------------
def adapter_forward(prep, x_nchw, t, *, add_temb=True, res_adap=True):
    B = x_nchw.shape[0]
    assert x_nchw.shape[2] % 4 == 0 and x_nchw.shape[3] % 4 == 0

    # temb MLP: two 96x96 matmuls — plain JAX (a dedicated pallas_call here is
    # pure launch/DMA overhead).
    if add_temb:
        emb = get_timestep_embedding(t, 96)
        h = emb @ prep["temb_w1_t"] + prep["temb_b1"]
        h = h * jax.nn.sigmoid(h)                      # nonlinearity: x*sigmoid(x)
        temb = h @ prep["temb_w2_t"] + prep["temb_b2"]
    else:
        temb = jnp.zeros((1, 96), jnp.float32)
    temb_p = jnp.pad(temb, ((0, 0), (0, CP - 96)))
    temb_p = jnp.broadcast_to(temb_p[:, None, :], (B, 1, CP)).astype(jnp.float32)

    ori_x = x_nchw
    y = pixel_unshuffle(x_nchw, 4)                     # (B, 48, H/4, W/4) NCHW
    y = jnp.transpose(y, (0, 2, 3, 1))                 # NHWC (channels -> lanes)
    H, W = y.shape[1], y.shape[2]
    geom = _geometry(H, W)

    y = to_canonical(y, geom)                          # (B, Ne, 128) bf16
    y = adapter_core(y, temb_p, prep["w_stack"], prep["b_stack"], geom)
    y = from_canonical(y, geom, 48).astype(jnp.float32)

    y = jnp.transpose(y, (0, 3, 1, 2))                 # back to NCHW
    y = pixel_shuffle(y, 4)
    if res_adap:
        y = y + ori_x
    return y


# ----------------------------------------------------------------------------
# Pure-JAX fp32 reference (for the in-script correctness check)
# ----------------------------------------------------------------------------
def _conv3x3_ref(x_nhwc, w_oihw, b):
    w_hwio = jnp.transpose(w_oihw, (2, 3, 1, 0))
    y = jax.lax.conv_general_dilated(
        x_nhwc, w_hwio, (1, 1), "SAME",
        dimension_numbers=("NHWC", "HWIO", "NHWC"),
        precision=jax.lax.Precision.HIGHEST)
    return y + b[None, None, None, :]


def adapter_forward_ref(params, x_nchw, t, *, add_temb=True, res_adap=True):
    if add_temb:
        emb = get_timestep_embedding(t, 96)
        h = emb @ params["temb_w1"].T + params["temb_b1"]
        h = h * jax.nn.sigmoid(h)
        temb = h @ params["temb_w2"].T + params["temb_b2"]
    else:
        temb = jnp.zeros((1, 96), jnp.float32)
    ori_x = x_nchw
    y = pixel_unshuffle(x_nchw, 4)
    y = jnp.transpose(y, (0, 2, 3, 1))
    y = _conv3x3_ref(y, params["conv_in_w"], params["conv_in_b"])
    for blk in params["body"]:
        h = y + temb[:, None, None, :]
        h = _conv3x3_ref(h, blk["w1"], blk["b1"])
        h = jax.nn.relu(h)
        h = _conv3x3_ref(h, blk["w2"], blk["b2"])
        y = h + y
    y = _conv3x3_ref(y, params["conv_out_w"], params["conv_out_b"])
    y = jnp.transpose(y, (0, 3, 1, 2))
    y = pixel_shuffle(y, 4)
    if res_adap:
        y = y + ori_x
    return y


# ----------------------------------------------------------------------------
# Deterministic parameter construction
# ----------------------------------------------------------------------------
def make_params(key, nums_rb):
    scale = 0.02

    def conv_p(k, cin, cout):
        k1, k2 = jax.random.split(k)
        w = jax.random.normal(k1, (cout, cin, 3, 3), jnp.float32) * scale
        b = jax.random.normal(k2, (cout,), jnp.float32) * scale
        return w, b

    keys = jax.random.split(key, 4 + nums_rb)
    p = {}
    p["conv_in_w"], p["conv_in_b"] = conv_p(keys[0], 48, 96)
    p["conv_out_w"], p["conv_out_b"] = conv_p(keys[1], 96, 48)

    kt1, kt2, kt3, kt4 = jax.random.split(keys[2], 4)
    p["temb_w1"] = jax.random.normal(kt1, (96, 96), jnp.float32) * scale
    p["temb_b1"] = jax.random.normal(kt2, (96,), jnp.float32) * scale
    p["temb_w2"] = jax.random.normal(kt3, (96, 96), jnp.float32) * scale
    p["temb_b2"] = jax.random.normal(kt4, (96,), jnp.float32) * scale

    body = []
    for i in range(nums_rb):
        k1, k2 = jax.random.split(keys[4 + i])
        w1, b1 = conv_p(k1, 96, 96)
        w2, b2 = conv_p(k2, 96, 96)
        body.append({"w1": w1, "b1": b1, "w2": w2, "b2": b2})
    p["body"] = body
    return p


# ----------------------------------------------------------------------------
if __name__ == "__main__":
    nums_rb = 3          # module default is 20; kept small for the demo run
    B, C, H, W = 2, 3, 16, 16   # PixelUnshuffle(4): 3 -> 48 channels, 16 -> 4 spatial

    key = jax.random.PRNGKey(0)
    kp, kx = jax.random.split(key)
    params = make_params(kp, nums_rb)
    prep = prepare_params(params)    # one-time weight folding / stacking / bf16

    x = jax.random.normal(kx, (B, C, H, W), jnp.float32)   # NCHW, like PyTorch
    t = jnp.array([10, 500], dtype=jnp.int32)              # timesteps, shape (B,)

    fwd = jax.jit(functools.partial(adapter_forward, add_temb=True, res_adap=True))
    out = jax.block_until_ready(fwd(prep, x, t))

    ref = jax.block_until_ready(
        adapter_forward_ref(params, x, t, add_temb=True, res_adap=True))

    assert out.shape == (B, C, H, W), out.shape
    max_diff = float(jnp.max(jnp.abs(out - ref)))
    # bf16 weights / matmul inputs on the MXU, f32 accumulation + f32 residual
    # stream in VMEM, fp32 reference.
    assert max_diff < 5e-2, f"mismatch vs reference: max diff = {max_diff}"

    print("KERNEL_OK")
</pallas_src>

<mosaic_0001>
module attributes {stable_mosaic.version = 11 : i64} {
  func.func @_adapter_kernel(%arg0: i32, %arg1: memref<1x64x128xbf16, #tpu.memory_space<vmem>>, %arg2: memref<1x1x128xf32, #tpu.memory_space<vmem>>, %arg3: memref<8x1152x128xbf16, #tpu.memory_space<vmem>>, %arg4: memref<8x1x128xf32, #tpu.memory_space<vmem>>, %arg5: memref<1x64x128xbf16, #tpu.memory_space<vmem>>, %arg6: memref<64x128xf32, #tpu.memory_space<vmem>>, %arg7: memref<64x128xf32, #tpu.memory_space<vmem>>, %arg8: memref<64x128xf32, #tpu.memory_space<vmem>>, %arg9: memref<48x1152xbf16, #tpu.memory_space<vmem>>) attributes {dimension_semantics = [#tpu.dimension_semantics<parallel>], iteration_bounds = array<i64: 2>, scalar_prefetch = 0 : i64, scratch_operands = 4 : i64, tpu.core_type = #tpu.core_type<tc>, window_params = [{transform_indices = @transform_0, window_bounds = array<i64: 1, 64, 128>}, {transform_indices = @transform_1, window_bounds = array<i64: 1, 1, 128>}, {pipeline_mode = #tpu.pipeline_mode<synchronous>, transform_indices = @transform_2, window_bounds = array<i64: 8, 1152, 128>}, {pipeline_mode = #tpu.pipeline_mode<synchronous>, transform_indices = @transform_3, window_bounds = array<i64: 8, 1, 128>}, {transform_indices = @transform_4, window_bounds = array<i64: 1, 64, 128>}]} {
    %c0 = arith.constant 0 : index
    %c0_0 = arith.constant 0 : index
    %c0_1 = arith.constant 0 : index
    %0 = vector.load %arg2[%c0, %c0_0, %c0_1] : memref<1x1x128xf32, #tpu.memory_space<vmem>>, vector<1x1x128xf32>
    %1 = vector.shape_cast %0 : vector<1x1x128xf32> to vector<1x128xf32>
    %c0_2 = arith.constant 0 : index
    %c0_3 = arith.constant 0 : index
    %c0_4 = arith.constant 0 : index
    %2 = vector.load %arg1[%c0_2, %c0_3, %c0_4] : memref<1x64x128xbf16, #tpu.memory_space<vmem>>, vector<1x64x128xbf16>
    %3 = vector.shape_cast %2 : vector<1x64x128xbf16> to vector<64x128xbf16>
    %4 = arith.extf %3 : vector<64x128xbf16> to vector<64x128xf32>
    %c0_5 = arith.constant 0 : index
    %c0_6 = arith.constant 0 : index
    %5 = vector.load %arg8[%c0_5, %c0_6] : memref<64x128xf32, #tpu.memory_space<vmem>>, vector<64x128xf32>
    tpu.vector_store %arg8[%c0_5, %c0_6], %4 {strides = array<i32>} : memref<64x128xf32, #tpu.memory_space<vmem>>, vector<64x128xf32>,
    %cst = arith.constant 0.000000e+00 : f32
    %6 = vector.broadcast %cst : f32 to vector<8x128xf32>
    %cst_7 = arith.constant 0.000000e+00 : f32
    %7 = vector.broadcast %cst_7 : f32 to vector<8x128xf32>
    %c0_8 = arith.constant 0 : index
    %c0_9 = arith.constant 0 : index
    %8 = vector.load %arg6[%c0_8, %c0_9] : memref<64x128xf32, #tpu.memory_space<vmem>>, vector<8x128xf32>
    tpu.vector_store %arg6[%c0_8, %c0_9], %6 {strides = array<i32>} : memref<64x128xf32, #tpu.memory_space<vmem>>, vector<8x128xf32>,
    %c56 = arith.constant 56 : index
    %c0_10 = arith.constant 0 : index
    %9 = vector.load %arg6[%c56, %c0_10] : memref<64x128xf32, #tpu.memory_space<vmem>>, vector<8x128xf32>
    tpu.vector_store %arg6[%c56, %c0_10], %7 {strides = array<i32>} : memref<64x128xf32, #tpu.memory_space<vmem>>, vector<8x128xf32>,
    %c0_11 = arith.constant 0 : index
    %c0_12 = arith.constant 0 : index
    %10 = vector.load %arg7[%c0_11, %c0_12] : memref<64x128xf32, #tpu.memory_space<vmem>>, vector<8x128xf32>
    tpu.vector_store %arg7[%c0_11, %c0_12], %6 {strides = array<i32>} : memref<64x128xf32, #tpu.memory_space<vmem>>, vector<8x128xf32>,
    %c56_13 = arith.constant 56 : index
    %c0_14 = arith.constant 0 : index
    %11 = vector.load %arg7[%c56_13, %c0_14] : memref<64x128xf32, #tpu.memory_space<vmem>>, vector<8x128xf32>
    tpu.vector_store %arg7[%c56_13, %c0_14], %7 {strides = array<i32>} : memref<64x128xf32, #tpu.memory_space<vmem>>, vector<8x128xf32>,
    %c0_15 = arith.constant 0 : index
    %c0_16 = arith.constant 0 : index
    %c0_17 = arith.constant 0 : index
    %12 = vector.load %arg4[%c0_15, %c0_16, %c0_17] : memref<8x1x128xf32, #tpu.memory_space<vmem>>, vector<1x1x128xf32>
    %13 = vector.shape_cast %12 : vector<1x1x128xf32> to vector<1x128xf32>
    %c0_i32 = arith.constant 0 : i32
    %c48_i32 = arith.constant 48 : i32
    %14 = arith.muli %c0_i32, %c48_i32 : i32
    %15 = tpu.assume_multiple %14, 8 : i32
    %c1_i32 = arith.constant 1 : i32
    %16 = arith.addi %15, %c1_i32 : i32
    %17 = arith.index_cast %16 : i32 to index
    %c0_18 = arith.constant 0 : index
    %18 = vector.load %arg8[%17, %c0_18] : memref<64x128xf32, #tpu.memory_space<vmem>>, vector<48x128xf32>
    %19 = arith.truncf %18 : vector<48x128xf32> to vector<48x128xbf16>
    %c0_19 = arith.constant 0 : index
    %c0_20 = arith.constant 0 : index
    %20 = vector.load %arg9[%c0_19, %c0_20] : memref<48x1152xbf16, #tpu.memory_space<vmem>>, vector<48x128xbf16>
    tpu.vector_store %arg9[%c0_19, %c0_20], %19 {strides = array<i32>} : memref<48x1152xbf16, #tpu.memory_space<vmem>>, vector<48x128xbf16>,
    %c2_i32 = arith.constant 2 : i32
    %21 = arith.addi %15, %c2_i32 : i32
    %22 = arith.index_cast %21 : i32 to index
    %c0_21 = arith.constant 0 : index
    %23 = vector.load %arg8[%22, %c0_21] : memref<64x128xf32, #tpu.memory_space<vmem>>, vector<48x128xf32>
    %24 = arith.truncf %23 : vector<48x128xf32> to vector<48x128xbf16>
    %c0_22 = arith.constant 0 : index
    %c128 = arith.constant 128 : index
    %25 = vector.load %arg9[%c0_22, %c128] : memref<48x1152xbf16, #tpu.memory_space<vmem>>, vector<48x128xbf16>
    tpu.vector_store %arg9[%c0_22, %c128], %24 {strides = array<i32>} : memref<48x1152xbf16, #tpu.memory_space<vmem>>, vector<48x128xbf16>,
    %c3_i32 = arith.constant 3 : i32
    %26 = arith.addi %15, %c3_i32 : i32
    %27 = arith.index_cast %26 : i32 to index
    %c0_23 = arith.constant 0 : index
    %28 = vector.load %arg8[%27, %c0_23] : memref<64x128xf32, #tpu.memory_space<vmem>>, vector<48x128xf32>
    %29 = arith.truncf %28 : vector<48x128xf32> to vector<48x128xbf16>
    %c0_24 = arith.constant 0 : index
    %c256 = arith.constant 256 : index
    %30 = vector.load %arg9[%c0_24, %c256] : memref<48x1152xbf16, #tpu.memory_space<vmem>>, vector<48x128xbf16>
    tpu.vector_store %arg9[%c0_24, %c256], %29 {strides = array<i32>} : memref<48x1152xbf16, #tpu.memory_space<vmem>>, vector<48x128xbf16>,
    %c7_i32 = arith.constant 7 : i32
    %31 = arith.addi %15, %c7_i32 : i32
    %32 = arith.index_cast %31 : i32 to index
    %c0_25 = arith.constant 0 : index
    %33 = vector.load %arg8[%32, %c0_25] : memref<64x128xf32, #tpu.memory_space<vmem>>, vector<48x128xf32>
    %34 = arith.truncf %33 : vector<48x128xf32> to vector<48x128xbf16>
    %c0_26 = arith.constant 0 : index
    %c384 = arith.constant 384 : index
    %35 = vector.load %arg9[%c0_26, %c384] : memref<48x1152xbf16, #tpu.memory_space<vmem>>, vector<48x128xbf16>
    tpu.vector_store %arg9[%c0_26, %c384], %34 {strides = array<i32>} : memref<48x1152xbf16, #tpu.memory_space<vmem>>, vector<48x128xbf16>,
    %c8_i32 = arith.constant 8 : i32
    %36 = arith.addi %15, %c8_i32 : i32
    %37 = arith.index_cast %36 : i32 to index
    %c0_27 = arith.constant 0 : index
    %38 = vector.load %arg8[%37, %c0_27] : memref<64x128xf32, #tpu.memory_space<vmem>>, vector<48x128xf32>
    %39 = arith.truncf %38 : vector<48x128xf32> to vector<48x128xbf16>
    %c0_28 = arith.constant 0 : index
    %c512 = arith.constant 512 : index
    %40 = vector.load %arg9[%c0_28, %c512] : memref<48x1152xbf16, #tpu.memory_space<vmem>>, vector<48x128xbf16>
    tpu.vector_store %arg9[%c0_28, %c512], %39 {strides = array<i32>} : memref<48x1152xbf16, #tpu.memory_space<vmem>>, vector<48x128xbf16>,
    %c9_i32 = arith.constant 9 : i32
    %41 = arith.addi %15, %c9_i32 : i32
    %42 = arith.index_cast %41 : i32 to index
    %c0_29 = arith.constant 0 : index
    %43 = vector.load %arg8[%42, %c0_29] : memref<64x128xf32, #tpu.memory_space<vmem>>, vector<48x128xf32>
    %44 = arith.truncf %43 : vector<48x128xf32> to vector<48x128xbf16>
    %c0_30 = arith.constant 0 : index
    %c640 = arith.constant 640 : index
    %45 = vector.load %arg9[%c0_30, %c640] : memref<48x1152xbf16, #tpu.memory_space<vmem>>, vector<48x128xbf16>
    tpu.vector_store %arg9[%c0_30, %c640], %44 {strides = array<i32>} : memref<48x1152xbf16, #tpu.memory_space<vmem>>, vector<48x128xbf16>,
    %c13_i32 = arith.constant 13 : i32
    %46 = arith.addi %15, %c13_i32 : i32
    %47 = arith.index_cast %46 : i32 to index
    %c0_31 = arith.constant 0 : index
    %48 = vector.load %arg8[%47, %c0_31] : memref<64x128xf32, #tpu.memory_space<vmem>>, vector<48x128xf32>
    %49 = arith.truncf %48 : vector<48x128xf32> to vector<48x128xbf16>
    %c0_32 = arith.constant 0 : index
    %c768 = arith.constant 768 : index
    %50 = vector.load %arg9[%c0_32, %c768] : memref<48x1152xbf16, #tpu.memory_space<vmem>>, vector<48x128xbf16>
    tpu.vector_store %arg9[%c0_32, %c768], %49 {strides = array<i32>} : memref<48x1152xbf16, #tpu.memory_space<vmem>>, vector<48x128xbf16>,
    %c14_i32 = arith.constant 14 : i32
    %51 = arith.addi %15, %c14_i32 : i32
    %52 = arith.index_cast %51 : i32 to index
    %c0_33 = arith.constant 0 : index
    %53 = vector.load %arg8[%52, %c0_33] : memref<64x128xf32, #tpu.memory_space<vmem>>, vector<48x128xf32>
    %54 = arith.truncf %53 : vector<48x128xf32> to vector<48x128xbf16>
    %c0_34 = arith.constant 0 : index
    %c896 = arith.constant 896 : index
    %55 = vector.load %arg9[%c0_34, %c896] : memref<48x1152xbf16, #tpu.memory_space<vmem>>, vector<48x128xbf16>
    tpu.vector_store %arg9[%c0_34, %c896], %54 {strides = array<i32>} : memref<48x1152xbf16, #tpu.memory_space<vmem>>, vector<48x128xbf16>,
    %c15_i32 = arith.constant 15 : i32
    %56 = arith.addi %15, %c15_i32 : i32
    %57 = arith.index_cast %56 : i32 to index
    %c0_35 = arith.constant 0 : index
    %58 = vector.load %arg8[%57, %c0_35] : memref<64x128xf32, #tpu.memory_space<vmem>>, vector<48x128xf32>
    %59 = arith.truncf %58 : vector<48x128xf32> to vector<48x128xbf16>
    %c0_36 = arith.constant 0 : index
    %c1024 = arith.constant 1024 : index
    %60 = vector.load %arg9[%c0_36, %c1024] : memref<48x1152xbf16, #tpu.memory_space<vmem>>, vector<48x128xbf16>
    tpu.vector_store %arg9[%c0_36, %c1024], %59 {strides = array<i32>} : memref<48x1152xbf16, #tpu.memory_space<vmem>>, vector<48x128xbf16>,
    %c0_37 = arith.constant 0 : index
    %c0_38 = arith.constant 0 : index
    %61 = vector.load %arg9[%c0_37, %c0_38] : memref<48x1152xbf16, #tpu.memory_space<vmem>>, vector<48x1152xbf16>
    %c0_39 = arith.constant 0 : index
    %c0_40 = arith.constant 0 : index
    %c0_41 = arith.constant 0 : index
    %62 = vector.load %arg3[%c0_39, %c0_40, %c0_41] : memref<8x1152x128xbf16, #tpu.memory_space<vmem>>, vector<1x1152x128xbf16>
    %63 = vector.shape_cast %62 : vector<1x1152x128xbf16> to vector<1152x128xbf16>
    %cst_42 = arith.constant dense<0.000000e+00> : vector<48x128xf32>
    %64 = tpu.matmul %61, %63, %cst_42 {dimension_numbers = #tpu.dot_dimension_numbers<[1], [0], [0], [1], [0, 0, 1, 1], [], []>} : vector<48x1152xbf16>, vector<1152x128xbf16>, vector<48x128xf32> -> vector<48x128xf32>
    %65 = vector.broadcast %13 : vector<1x128xf32> to vector<48x128xf32>
    %66 = arith.addf %64, %65 : vector<48x128xf32>
    %c8_i32_43 = arith.constant 8 : i32
    %67 = arith.addi %c8_i32_43, %15 : i32
    %68 = tpu.iota {dimensions = array<i32: 0>} : vector<48x1xi32>
    %69 = arith.sitofp %68 : vector<48x1xi32> to vector<48x1xf32>
    %cst_44 = arith.constant 0.166666672 : f32
    %70 = vector.broadcast %cst_44 : f32 to vector<48x1xf32>
    %71 = arith.mulf %69, %70 : vector<48x1xf32>
    %72 = arith.fptosi %71 : vector<48x1xf32> to vector<48x1xi32>
    %c6_i32 = arith.constant 6 : i32
    %73 = vector.broadcast %c6_i32 : i32 to vector<48x1xi32>
    %74 = arith.muli %72, %73 : vector<48x1xi32>
    %75 = arith.subi %68, %74 : vector<48x1xi32>
    %c0_i32_45 = arith.constant 0 : i32
    %76 = vector.broadcast %c0_i32_45 : i32 to vector<48x1xi32>
    %77 = arith.cmpi slt, %75, %76 : vector<48x1xi32>
    %c1_i32_46 = arith.constant 1 : i32
    %78 = vector.broadcast %c1_i32_46 : i32 to vector<48x1xi32>
    %79 = arith.subi %72, %78 : vector<48x1xi32>
    %80 = arith.select %77, %79, %72 : vector<48x1xi1>, vector<48x1xi32>
    %c0_i32_47 = arith.constant 0 : i32
    %81 = vector.broadcast %c0_i32_47 : i32 to vector<48x1xi32>
    %82 = arith.cmpi slt, %75, %81 : vector<48x1xi32>
    %c6_i32_48 = arith.constant 6 : i32
    %83 = vector.broadcast %c6_i32_48 : i32 to vector<48x1xi32>
    %84 = arith.addi %75, %83 : vector<48x1xi32>
    %85 = arith.select %82, %84, %75 : vector<48x1xi1>, vector<48x1xi32>
    %c6_i32_49 = arith.constant 6 : i32
    %86 = vector.broadcast %c6_i32_49 : i32 to vector<48x1xi32>
    %87 = arith.cmpi sge, %85, %86 : vector<48x1xi32>
    %c1_i32_50 = arith.constant 1 : i32
    %88 = vector.broadcast %c1_i32_50 : i32 to vector<48x1xi32>
    %89 = arith.addi %80, %88 : vector<48x1xi32>
    %90 = arith.select %87, %89, %80 : vector<48x1xi1>, vector<48x1xi32>
    %c6_i32_51 = arith.constant 6 : i32
    %91 = vector.broadcast %c6_i32_51 : i32 to vector<48x1xi32>
    %92 = arith.cmpi sge, %85, %91 : vector<48x1xi32>
    %c6_i32_52 = arith.constant 6 : i32
    %93 = vector.broadcast %c6_i32_52 : i32 to vector<48x1xi32>
    %94 = arith.subi %85, %93 : vector<48x1xi32>
    %95 = arith.select %92, %94, %85 : vector<48x1xi1>, vector<48x1xi32>
    %c8_i32_53 = arith.constant 8 : i32
    %96 = arith.muli %c0_i32, %c8_i32_53 : i32
    %97 = vector.broadcast %96 : i32 to vector<48x1xi32>
    %98 = arith.addi %90, %97 : vector<48x1xi32>
    %c1_i32_54 = arith.constant 1 : i32
    %99 = vector.broadcast %c1_i32_54 : i32 to vector<48x1xi32>
    %100 = arith.cmpi sge, %98, %99 : vector<48x1xi32>
    %c4_i32 = arith.constant 4 : i32
    %101 = vector.broadcast %c4_i32 : i32 to vector<48x1xi32>
    %102 = arith.cmpi sle, %98, %101 : vector<48x1xi32>
    %103 = arith.andi %100, %102 : vector<48x1xi1>
    %c1_i32_55 = arith.constant 1 : i32
    %104 = vector.broadcast %c1_i32_55 : i32 to vector<48x1xi32>
    %105 = arith.cmpi sge, %95, %104 : vector<48x1xi32>
    %106 = arith.andi %103, %105 : vector<48x1xi1>
    %c4_i32_56 = arith.constant 4 : i32
    %107 = vector.broadcast %c4_i32_56 : i32 to vector<48x1xi32>
    %108 = arith.cmpi sle, %95, %107 : vector<48x1xi32>
    %109 = arith.andi %106, %108 : vector<48x1xi1>
    %cst_57 = arith.constant 0.000000e+00 : f32
    %110 = vector.shape_cast %109 : vector<48x1xi1> to vector<48x1xi1>
    %111 = vector.broadcast %110 : vector<48x1xi1> to vector<48x128xi1>
    %112 = vector.broadcast %cst_57 : f32 to vector<48x128xf32>
    %113 = arith.select %111, %66, %112 : vector<48x128xi1>, vector<48x128xf32>
    %114 = arith.index_cast %67 : i32 to index
    %c0_58 = arith.constant 0 : index
    %115 = vector.load %arg6[%114, %c0_58] : memref<64x128xf32, #tpu.memory_space<vmem>>, vector<48x128xf32>
    tpu.vector_store %arg6[%114, %c0_58], %113 {strides = array<i32>} : memref<64x128xf32, #tpu.memory_space<vmem>>, vector<48x128xf32>,
    %116 = vector.broadcast %1 : vector<1x128xf32> to vector<48x128xf32>
    %117 = arith.addf %66, %116 : vector<48x128xf32>
    %cst_59 = arith.constant 0.000000e+00 : f32
    %118 = vector.shape_cast %109 : vector<48x1xi1> to vector<48x1xi1>
    %119 = vector.broadcast %118 : vector<48x1xi1> to vector<48x128xi1>
    %120 = vector.broadcast %cst_59 : f32 to vector<48x128xf32>
    %121 = arith.select %119, %117, %120 : vector<48x128xi1>, vector<48x128xf32>
    %122 = arith.index_cast %67 : i32 to index
    %c0_60 = arith.constant 0 : index
    %123 = vector.load %arg7[%122, %c0_60] : memref<64x128xf32, #tpu.memory_space<vmem>>, vector<48x128xf32>
    tpu.vector_store %arg7[%122, %c0_60], %121 {strides = array<i32>} : memref<64x128xf32, #tpu.memory_space<vmem>>, vector<48x128xf32>,
    %c1_i32_61 = arith.constant 1 : i32
    %c1 = arith.constant 1 : index
    %c0_62 = arith.constant 0 : index
    %c0_63 = arith.constant 0 : index
    %124 = vector.load %arg4[%c1, %c0_62, %c0_63] : memref<8x1x128xf32, #tpu.memory_space<vmem>>, vector<1x1x128xf32>
    %125 = vector.shape_cast %124 : vector<1x1x128xf32> to vector<1x128xf32>
    %c0_i32_64 = arith.constant 0 : i32
    %c48_i32_65 = arith.constant 48 : i32
    %126 = arith.muli %c0_i32_64, %c48_i32_65 : i32
    %127 = tpu.assume_multiple %126, 8 : i32
    %c1_i32_66 = arith.constant 1 : i32
    %128 = arith.addi %127, %c1_i32_66 : i32
    %129 = arith.index_cast %128 : i32 to index
    %c0_67 = arith.constant 0 : index
    %130 = vector.load %arg7[%129, %c0_67] : memref<64x128xf32, #tpu.memory_space<vmem>>, vector<48x128xf32>
    %131 = arith.truncf %130 : vector<48x128xf32> to vector<48x128xbf16>
    %c0_68 = arith.constant 0 : index
    %c0_69 = arith.constant 0 : index
    %132 = vector.load %arg9[%c0_68, %c0_69] : memref<48x1152xbf16, #tpu.memory_space<vmem>>, vector<48x128xbf16>
    tpu.vector_store %arg9[%c0_68, %c0_69], %131 {strides = array<i32>} : memref<48x1152xbf16, #tpu.memory_space<vmem>>, vector<48x128xbf16>,
    %c2_i32_70 = arith.constant 2 : i32
    %133 = arith.addi %127, %c2_i32_70 : i32
    %134 = arith.index_cast %133 : i32 to index
    %c0_71 = arith.constant 0 : index
    %135 = vector.load %arg7[%134, %c0_71] : memref<64x128xf32, #tpu.memory_space<vmem>>, vector<48x128xf32>
    %136 = arith.truncf %135 : vector<48x128xf32> to vector<48x128xbf16>
    %c0_72 = arith.constant 0 : index
    %c128_73 = arith.constant 128 : index
    %137 = vector.load %arg9[%c0_72, %c128_73] : memref<48x1152xbf16, #tpu.memory_space<vmem>>, vector<48x128xbf16>
    tpu.vector_store %arg9[%c0_72, %c128_73], %136 {strides = array<i32>} : memref<48x1152xbf16, #tpu.memory_space<vmem>>, vector<48x128xbf16>,
    %c3_i32_74 = arith.constant 3 : i32
    %138 = arith.addi %127, %c3_i32_74 : i32
    %139 = arith.index_cast %138 : i32 to index
    %c0_75 = arith.constant 0 : index
    %140 = vector.load %arg7[%139, %c0_75] : memref<64x128xf32, #tpu.memory_space<vmem>>, vector<48x128xf32>
    %141 = arith.truncf %140 : vector<48x128xf32> to vector<48x128xbf16>
    %c0_76 = arith.constant 0 : index
    %c256_77 = arith.constant 256 : index
    %142 = vector.load %arg9[%c0_76, %c256_77] : memref<48x1152xbf16, #tpu.memory_space<vmem>>, vector<48x128xbf16>
    tpu.vector_store %arg9[%c0_76, %c256_77], %141 {strides = array<i32>} : memref<48x1152xbf16, #tpu.memory_space<vmem>>, vector<48x128xbf16>,
    %c7_i32_78 = arith.constant 7 : i32
    %143 = arith.addi %127, %c7_i32_78 : i32
    %144 = arith.index_cast %143 : i32 to index
    %c0_79 = arith.constant 0 : index
    %145 = vector.load %arg7[%144, %c0_79] : memref<64x128xf32, #tpu.memory_space<vmem>>, vector<48x128xf32>
    %146 = arith.truncf %145 : vector<48x128xf32> to vector<48x128xbf16>
    %c0_80 = arith.constant 0 : index
    %c384_81 = arith.constant 384 : index
    %147 = vector.load %arg9[%c0_80, %c384_81] : memref<48x1152xbf16, #tpu.memory_space<vmem>>, vector<48x128xbf16>
    tpu.vector_store %arg9[%c0_80, %c384_81], %146 {strides = array<i32>} : memref<48x1152xbf16, #tpu.memory_space<vmem>>, vector<48x128xbf16>,
    %c8_i32_82 = arith.constant 8 : i32
    %148 = arith.addi %127, %c8_i32_82 : i32
    %149 = arith.index_cast %148 : i32 to index
    %c0_83 = arith.constant 0 : index
    %150 = vector.load %arg7[%149, %c0_83] : memref<64x128xf32, #tpu.memory_space<vmem>>, vector<48x128xf32>
    %151 = arith.truncf %150 : vector<48x128xf32> to vector<48x128xbf16>
    %c0_84 = arith.constant 0 : index
    %c512_85 = arith.constant 512 : index
    %152 = vector.load %arg9[%c0_84, %c512_85] : memref<48x1152xbf16, #tpu.memory_space<vmem>>, vector<48x128xbf16>
    tpu.vector_store %arg9[%c0_84, %c512_85], %151 {strides = array<i32>} : memref<48x1152xbf16, #tpu.memory_space<vmem>>, vector<48x128xbf16>,
    %c9_i32_86 = arith.constant 9 : i32
    %153 = arith.addi %127, %c9_i32_86 : i32
    %154 = arith.index_cast %153 : i32 to index
    %c0_87 = arith.constant 0 : index
    %155 = vector.load %arg7[%154, %c0_87] : memref<64x128xf32, #tpu.memory_space<vmem>>, vector<48x128xf32>
    %156 = arith.truncf %155 : vector<48x128xf32> to vector<48x128xbf16>
    %c0_88 = arith.constant 0 : index
    %c640_89 = arith.constant 640 : index
    %157 = vector.load %arg9[%c0_88, %c640_89] : memref<48x1152xbf16, #tpu.memory_space<vmem>>, vector<48x128xbf16>
    tpu.vector_store %arg9[%c0_88, %c640_89], %156 {strides = array<i32>} : memref<48x1152xbf16, #tpu.memory_space<vmem>>, vector<48x128xbf16>,
    %c13_i32_90 = arith.constant 13 : i32
    %158 = arith.addi %127, %c13_i32_90 : i32
    %159 = arith.index_cast %158 : i32 to index
    %c0_91 = arith.constant 0 : index
    %160 = vector.load %arg7[%159, %c0_91] : memref<64x128xf32, #tpu.memory_space<vmem>>, vector<48x128xf32>
    %161 = arith.truncf %160 : vector<48x128xf32> to vector<48x128xbf16>
    %c0_92 = arith.constant 0 : index
    %c768_93 = arith.constant 768 : index
    %162 = vector.load %arg9[%c0_92, %c768_93] : memref<48x1152xbf16, #tpu.memory_space<vmem>>, vector<48x128xbf16>
    tpu.vector_store %arg9[%c0_92, %c768_93], %161 {strides = array<i32>} : memref<48x1152xbf16, #tpu.memory_space<vmem>>, vector<48x128xbf16>,
    %c14_i32_94 = arith.constant 14 : i32
    %163 = arith.addi %127, %c14_i32_94 : i32
    %164 = arith.index_cast %163 : i32 to index
    %c0_95 = arith.constant 0 : index
    %165 = vector.load %arg7[%164, %c0_95] : memref<64x128xf32, #tpu.memory_space<vmem>>, vector<48x128xf32>
    %166 = arith.truncf %165 : vector<48x128xf32> to vector<48x128xbf16>
    %c0_96 = arith.constant 0 : index
    %c896_97 = arith.constant 896 : index
    %167 = vector.load %arg9[%c0_96, %c896_97] : memref<48x1152xbf16, #tpu.memory_space<vmem>>, vector<48x128xbf16>
    tpu.vector_store %arg9[%c0_96, %c896_97], %166 {strides = array<i32>} : memref<48x1152xbf16, #tpu.memory_space<vmem>>, vector<48x128xbf16>,
    %c15_i32_98 = arith.constant 15 : i32
    %168 = arith.addi %127, %c15_i32_98 : i32
    %169 = arith.index_cast %168 : i32 to index
    %c0_99 = arith.constant 0 : index
    %170 = vector.load %arg7[%169, %c0_99] : memref<64x128xf32, #tpu.memory_space<vmem>>, vector<48x128xf32>
    %171 = arith.truncf %170 : vector<48x128xf32> to vector<48x128xbf16>
    %c0_100 = arith.constant 0 : index
    %c1024_101 = arith.constant 1024 : index
    %172 = vector.load %arg9[%c0_100, %c1024_101] : memref<48x1152xbf16, #tpu.memory_space<vmem>>, vector<48x128xbf16>
    tpu.vector_store %arg9[%c0_100, %c1024_101], %171 {strides = array<i32>} : memref<48x1152xbf16, #tpu.memory_space<vmem>>, vector<48x128xbf16>,
    %c0_102 = arith.constant 0 : index
    %c0_103 = arith.constant 0 : index
    %173 = vector.load %arg9[%c0_102, %c0_103] : memref<48x1152xbf16, #tpu.memory_space<vmem>>, vector<48x1152xbf16>
    %c1_104 = arith.constant 1 : index
    %c0_105 = arith.constant 0 : index
    %c0_106 = arith.constant 0 : index
    %174 = vector.load %arg3[%c1_104, %c0_105, %c0_106] : memref<8x1152x128xbf16, #tpu.memory_space<vmem>>, vector<1x1152x128xbf16>
    %175 = vector.shape_cast %174 : vector<1x1152x128xbf16> to vector<1152x128xbf16>
    %cst_107 = arith.constant dense<0.000000e+00> : vector<48x128xf32>
    %176 = tpu.matmul %173, %175, %cst_107 {dimension_numbers = #tpu.dot_dimension_numbers<[1], [0], [0], [1], [0, 0, 1, 1], [], []>} : vector<48x1152xbf16>, vector<1152x128xbf16>, vector<48x128xf32> -> vector<48x128xf32>
    %177 = vector.broadcast %125 : vector<1x128xf32> to vector<48x128xf32>
    %178 = arith.addf %176, %177 : vector<48x128xf32>
    %cst_108 = arith.constant 0.000000e+00 : f32
    %179 = vector.broadcast %cst_108 : f32 to vector<48x128xf32>
    %180 = arith.maximumf %178, %179 : vector<48x128xf32>
    %c8_i32_109 = arith.constant 8 : i32
    %181 = arith.addi %c8_i32_109, %127 : i32
    %182 = tpu.iota {dimensions = array<i32: 0>} : vector<48x1xi32>
    %183 = arith.sitofp %182 : vector<48x1xi32> to vector<48x1xf32>
    %cst_110 = arith.constant 0.166666672 : f32
    %184 = vector.broadcast %cst_110 : f32 to vector<48x1xf32>
    %185 = arith.mulf %183, %184 : vector<48x1xf32>
    %186 = arith.fptosi %185 : vector<48x1xf32> to vector<48x1xi32>
    %c6_i32_111 = arith.constant 6 : i32
    %187 = vector.broadcast %c6_i32_111 : i32 to vector<48x1xi32>
    %188 = arith.muli %186, %187 : vector<48x1xi32>
    %189 = arith.subi %182, %188 : vector<48x1xi32>
    %c0_i32_112 = arith.constant 0 : i32
    %190 = vector.broadcast %c0_i32_112 : i32 to vector<48x1xi32>
    %191 = arith.cmpi slt, %189, %190 : vector<48x1xi32>
    %c1_i32_113 = arith.constant 1 : i32
    %192 = vector.broadcast %c1_i32_113 : i32 to vector<48x1xi32>
    %193 = arith.subi %186, %192 : vector<48x1xi32>
    %194 = arith.select %191, %193, %186 : vector<48x1xi1>, vector<48x1xi32>
    %c0_i32_114 = arith.constant 0 : i32
    %195 = vector.broadcast %c0_i32_114 : i32 to vector<48x1xi32>
    %196 = arith.cmpi slt, %189, %195 : vector<48x1xi32>
    %c6_i32_115 = arith.constant 6 : i32
    %197 = vector.broadcast %c6_i32_115 : i32 to vector<48x1xi32>
    %198 = arith.addi %189, %197 : vector<48x1xi32>
    %199 = arith.select %196, %198, %189 : vector<48x1xi1>, vector<48x1xi32>
    %c6_i32_116 = arith.constant 6 : i32
    %200 = vector.broadcast %c6_i32_116 : i32 to vector<48x1xi32>
    %201 = arith.cmpi sge, %199, %200 : vector<48x1xi32>
    %c1_i32_117 = arith.constant 1 : i32
    %202 = vector.broadcast %c1_i32_117 : i32 to vector<48x1xi32>
    %203 = arith.addi %194, %202 : vector<48x1xi32>
    %204 = arith.select %201, %203, %194 : vector<48x1xi1>, vector<48x1xi32>
    %c6_i32_118 = arith.constant 6 : i32
    %205 = vector.broadcast %c6_i32_118 : i32 to vector<48x1xi32>
    %206 = arith.cmpi sge, %199, %205 : vector<48x1xi32>
    %c6_i32_119 = arith.constant 6 : i32
    %207 = vector.broadcast %c6_i32_119 : i32 to vector<48x1xi32>
    %208 = arith.subi %199, %207 : vector<48x1xi32>
    %209 = arith.select %206, %208, %199 : vector<48x1xi1>, vector<48x1xi32>
    %c8_i32_120 = arith.constant 8 : i32
    %210 = arith.muli %c0_i32_64, %c8_i32_120 : i32
    %211 = vector.broadcast %210 : i32 to vector<48x1xi32>
    %212 = arith.addi %204, %211 : vector<48x1xi32>
    %c1_i32_121 = arith.constant 1 : i32
    %213 = vector.broadcast %c1_i32_121 : i32 to vector<48x1xi32>
    %214 = arith.cmpi sge, %212, %213 : vector<48x1xi32>
    %c4_i32_122 = arith.constant 4 : i32
    %215 = vector.broadcast %c4_i32_122 : i32 to vector<48x1xi32>
    %216 = arith.cmpi sle, %212, %215 : vector<48x1xi32>
    %217 = arith.andi %214, %216 : vector<48x1xi1>
    %c1_i32_123 = arith.constant 1 : i32
    %218 = vector.broadcast %c1_i32_123 : i32 to vector<48x1xi32>
    %219 = arith.cmpi sge, %209, %218 : vector<48x1xi32>
    %220 = arith.andi %217, %219 : vector<48x1xi1>
    %c4_i32_124 = arith.constant 4 : i32
    %221 = vector.broadcast %c4_i32_124 : i32 to vector<48x1xi32>
    %222 = arith.cmpi sle, %209, %221 : vector<48x1xi32>
    %223 = arith.andi %220, %222 : vector<48x1xi1>
    %cst_125 = arith.constant 0.000000e+00 : f32
    %224 = vector.shape_cast %223 : vector<48x1xi1> to vector<48x1xi1>
    %225 = vector.broadcast %224 : vector<48x1xi1> to vector<48x128xi1>
    %226 = vector.broadcast %cst_125 : f32 to vector<48x128xf32>
    %227 = arith.select %225, %180, %226 : vector<48x128xi1>, vector<48x128xf32>
    %228 = arith.index_cast %181 : i32 to index
    %c0_126 = arith.constant 0 : index
    %229 = vector.load %arg8[%228, %c0_126] : memref<64x128xf32, #tpu.memory_space<vmem>>, vector<48x128xf32>
    tpu.vector_store %arg8[%228, %c0_126], %227 {strides = array<i32>} : memref<64x128xf32, #tpu.memory_space<vmem>>, vector<48x128xf32>,
    %c1_i32_127 = arith.constant 1 : i32
    %c2 = arith.constant 2 : index
    %c0_128 = arith.constant 0 : index
    %c0_129 = arith.constant 0 : index
    %230 = vector.load %arg4[%c2, %c0_128, %c0_129] : memref<8x1x128xf32, #tpu.memory_space<vmem>>, vector<1x1x128xf32>
    %231 = vector.shape_cast %230 : vector<1x1x128xf32> to vector<1x128xf32>
    %c0_i32_130 = arith.constant 0 : i32
    %c48_i32_131 = arith.constant 48 : i32
    %232 = arith.muli %c0_i32_130, %c48_i32_131 : i32
    %233 = tpu.assume_multiple %232, 8 : i32
    %c1_i32_132 = arith.constant 1 : i32
    %234 = arith.addi %233, %c1_i32_132 : i32
    %235 = arith.index_cast %234 : i32 to index
    %c0_133 = arith.constant 0 : index
    %236 = vector.load %arg8[%235, %c0_133] : memref<64x128xf32, #tpu.memory_space<vmem>>, vector<48x128xf32>
    %237 = arith.truncf %236 : vector<48x128xf32> to vector<48x128xbf16>
    %c0_134 = arith.constant 0 : index
    %c0_135 = arith.constant 0 : index
    %238 = vector.load %arg9[%c0_134, %c0_135] : memref<48x1152xbf16, #tpu.memory_space<vmem>>, vector<48x128xbf16>
    tpu.vector_store %arg9[%c0_134, %c0_135], %237 {strides = array<i32>} : memref<48x1152xbf16, #tpu.memory_space<vmem>>, vector<48x128xbf16>,
    %c2_i32_136 = arith.constant 2 : i32
    %239 = arith.addi %233, %c2_i32_136 : i32
    %240 = arith.index_cast %239 : i32 to index
    %c0_137 = arith.constant 0 : index
    %241 = vector.load %arg8[%240, %c0_137] : memref<64x128xf32, #tpu.memory_space<vmem>>, vector<48x128xf32>
    %242 = arith.truncf %241 : vector<48x128xf32> to vector<48x128xbf16>
    %c0_138 = arith.constant 0 : index
    %c128_139 = arith.constant 128 : index
    %243 = vector.load %arg9[%c0_138, %c128_139] : memref<48x1152xbf16, #tpu.memory_space<vmem>>, vector<48x128xbf16>
    tpu.vector_store %arg9[%c0_138, %c128_139], %242 {strides = array<i32>} : memref<48x1152xbf16, #tpu.memory_space<vmem>>, vector<48x128xbf16>,
    %c3_i32_140 = arith.constant 3 : i32
    %244 = arith.addi %233, %c3_i32_140 : i32
    %245 = arith.index_cast %244 : i32 to index
    %c0_141 = arith.constant 0 : index
    %246 = vector.load %arg8[%245, %c0_141] : memref<64x128xf32, #tpu.memory_space<vmem>>, vector<48x128xf32>
    %247 = arith.truncf %246 : vector<48x128xf32> to vector<48x128xbf16>
    %c0_142 = arith.constant 0 : index
    %c256_143 = arith.constant 256 : index
    %248 = vector.load %arg9[%c0_142, %c256_143] : memref<48x1152xbf16, #tpu.memory_space<vmem>>, vector<48x128xbf16>
    tpu.vector_store %arg9[%c0_142, %c256_143], %247 {strides = array<i32>} : memref<48x1152xbf16, #tpu.memory_space<vmem>>, vector<48x128xbf16>,
    %c7_i32_144 = arith.constant 7 : i32
    %249 = arith.addi %233, %c7_i32_144 : i32
    %250 = arith.index_cast %249 : i32 to index
    %c0_145 = arith.constant 0 : index
    %251 = vector.load %arg8[%250, %c0_145] : memref<64x128xf32, #tpu.memory_space<vmem>>, vector<48x128xf32>
    %252 = arith.truncf %251 : vector<48x128xf32> to vector<48x128xbf16>
    %c0_146 = arith.constant 0 : index
    %c384_147 = arith.constant 384 : index
    %253 = vector.load %arg9[%c0_146, %c384_147] : memref<48x1152xbf16, #tpu.memory_space<vmem>>, vector<48x128xbf16>
    tpu.vector_store %arg9[%c0_146, %c384_147], %252 {strides = array<i32>} : memref<48x1152xbf16, #tpu.memory_space<vmem>>, vector<48x128xbf16>,
    %c8_i32_148 = arith.constant 8 : i32
    %254 = arith.addi %233, %c8_i32_148 : i32
    %255 = arith.index_cast %254 : i32 to index
    %c0_149 = arith.constant 0 : index
    %256 = vector.load %arg8[%255, %c0_149] : memref<64x128xf32, #tpu.memory_space<vmem>>, vector<48x128xf32>
    %257 = arith.truncf %256 : vector<48x128xf32> to vector<48x128xbf16>
    %c0_150 = arith.constant 0 : index
    %c512_151 = arith.constant 512 : index
    %258 = vector.load %arg9[%c0_150, %c512_151] : memref<48x1152xbf16, #tpu.memory_space<vmem>>, vector<48x128xbf16>
    tpu.vector_store %arg9[%c0_150, %c512_151], %257 {strides = array<i32>} : memref<48x1152xbf16, #tpu.memory_space<vmem>>, vector<48x128xbf16>,
    %c9_i32_152 = arith.constant 9 : i32
    %259 = arith.addi %233, %c9_i32_152 : i32
    %260 = arith.index_cast %259 : i32 to index
    %c0_153 = arith.constant 0 : index
    %261 = vector.load %arg8[%260, %c0_153] : memref<64x128xf32, #tpu.memory_space<vmem>>, vector<48x128xf32>
    %262 = arith.truncf %261 : vector<48x128xf32> to vector<48x128xbf16>
    %c0_154 = arith.constant 0 : index
    %c640_155 = arith.constant 640 : index
    %263 = vector.load %arg9[%c0_154, %c640_155] : memref<48x1152xbf16, #tpu.memory_space<vmem>>, vector<48x128xbf16>
    tpu.vector_store %arg9[%c0_154, %c640_155], %262 {strides = array<i32>} : memref<48x1152xbf16, #tpu.memory_space<vmem>>, vector<48x128xbf16>,
    %c13_i32_156 = arith.constant 13 : i32
    %264 = arith.addi %233, %c13_i32_156 : i32
    %265 = arith.index_cast %264 : i32 to index
    %c0_157 = arith.constant 0 : index
    %266 = vector.load %arg8[%265, %c0_157] : memref<64x128xf32, #tpu.memory_space<vmem>>, vector<48x128xf32>
    %267 = arith.truncf %266 : vector<48x128xf32> to vector<48x128xbf16>
    %c0_158 = arith.constant 0 : index
    %c768_159 = arith.constant 768 : index
    %268 = vector.load %arg9[%c0_158, %c768_159] : memref<48x1152xbf16, #tpu.memory_space<vmem>>, vector<48x128xbf16>
    tpu.vector_store %arg9[%c0_158, %c768_159], %267 {strides = array<i32>} : memref<48x1152xbf16, #tpu.memory_space<vmem>>, vector<48x128xbf16>,
    %c14_i32_160 = arith.constant 14 : i32
    %269 = arith.addi %233, %c14_i32_160 : i32
    %270 = arith.index_cast %269 : i32 to index
    %c0_161 = arith.constant 0 : index
    %271 = vector.load %arg8[%270, %c0_161] : memref<64x128xf32, #tpu.memory_space<vmem>>, vector<48x128xf32>
    %272 = arith.truncf %271 : vector<48x128xf32> to vector<48x128xbf16>
    %c0_162 = arith.constant 0 : index
    %c896_163 = arith.constant 896 : index
    %273 = vector.load %arg9[%c0_162, %c896_163] : memref<48x1152xbf16, #tpu.memory_space<vmem>>, vector<48x128xbf16>
    tpu.vector_store %arg9[%c0_162, %c896_163], %272 {strides = array<i32>} : memref<48x1152xbf16, #tpu.memory_space<vmem>>, vector<48x128xbf16>,
    %c15_i32_164 = arith.constant 15 : i32
    %274 = arith.addi %233, %c15_i32_164 : i32
    %275 = arith.index_cast %274 : i32 to index
    %c0_165 = arith.constant 0 : index
    %276 = vector.load %arg8[%275, %c0_165] : memref<64x128xf32, #tpu.memory_space<vmem>>, vector<48x128xf32>
    %277 = arith.truncf %276 : vector<48x128xf32> to vector<48x128xbf16>
    %c0_166 = arith.constant 0 : index
    %c1024_167 = arith.constant 1024 : index
    %278 = vector.load %arg9[%c0_166, %c1024_167] : memref<48x1152xbf16, #tpu.memory_space<vmem>>, vector<48x128xbf16>
    tpu.vector_store %arg9[%c0_166, %c1024_167], %277 {strides = array<i32>} : memref<48x1152xbf16, #tpu.memory_space<vmem>>, vector<48x128xbf16>,
    %c0_168 = arith.constant 0 : index
    %c0_169 = arith.constant 0 : index
    %279 = vector.load %arg9[%c0_168, %c0_169] : memref<48x1152xbf16, #tpu.memory_space<vmem>>, vector<48x1152xbf16>
    %c2_170 = arith.constant 2 : index
    %c0_171 = arith.constant 0 : index
    %c0_172 = arith.constant 0 : index
    %280 = vector.load %arg3[%c2_170, %c0_171, %c0_172] : memref<8x1152x128xbf16, #tpu.memory_space<vmem>>, vector<1x1152x128xbf16>
    %281 = vector.shape_cast %280 : vector<1x1152x128xbf16> to vector<1152x128xbf16>
    %cst_173 = arith.constant dense<0.000000e+00> : vector<48x128xf32>
    %282 = tpu.matmul %279, %281, %cst_173 {dimension_numbers = #tpu.dot_dimension_numbers<[1], [0], [0], [1], [0, 0, 1, 1], [], []>} : vector<48x1152xbf16>, vector<1152x128xbf16>, vector<48x128xf32> -> vector<48x128xf32>
    %283 = vector.broadcast %231 : vector<1x128xf32> to vector<48x128xf32>
    %284 = arith.addf %282, %283 : vector<48x128xf32>
    %c8_i32_174 = arith.constant 8 : i32
    %285 = arith.addi %c8_i32_174, %233 : i32
    %286 = arith.index_cast %285 : i32 to index
    %c0_175 = arith.constant 0 : index
    %287 = vector.load %arg6[%286, %c0_175] : memref<64x128xf32, #tpu.memory_space<vmem>>, vector<48x128xf32>
    %288 = arith.addf %284, %287 : vector<48x128xf32>
    %289 = tpu.iota {dimensions = array<i32: 0>} : vector<48x1xi32>
    %290 = arith.sitofp %289 : vector<48x1xi32> to vector<48x1xf32>
    %cst_176 = arith.constant 0.166666672 : f32
    %291 = vector.broadcast %cst_176 : f32 to vector<48x1xf32>
    %292 = arith.mulf %290, %291 : vector<48x1xf32>
    %293 = arith.fptosi %292 : vector<48x1xf32> to vector<48x1xi32>
    %c6_i32_177 = arith.constant 6 : i32
    %294 = vector.broadcast %c6_i32_177 : i32 to vector<48x1xi32>
    %295 = arith.muli %293, %294 : vector<48x1xi32>
    %296 = arith.subi %289, %295 : vector<48x1xi32>
    %c0_i32_178 = arith.constant 0 : i32
    %297 = vector.broadcast %c0_i32_178 : i32 to vector<48x1xi32>
    %298 = arith.cmpi slt, %296, %297 : vector<48x1xi32>
    %c1_i32_179 = arith.constant 1 : i32
    %299 = vector.broadcast %c1_i32_179 : i32 to vector<48x1xi32>
    %300 = arith.subi %293, %299 : vector<48x1xi32>
    %301 = arith.select %298, %300, %293 : vector<48x1xi1>, vector<48x1xi32>
    %c0_i32_180 = arith.constant 0 : i32
    %302 = vector.broadcast %c0_i32_180 : i32 to vector<48x1xi32>
    %303 = arith.cmpi slt, %296, %302 : vector<48x1xi32>
    %c6_i32_181 = arith.constant 6 : i32
    %304 = vector.broadcast %c6_i32_181 : i32 to vector<48x1xi32>
    %305 = arith.addi %296, %304 : vector<48x1xi32>
    %306 = arith.select %303, %305, %296 : vector<48x1xi1>, vector<48x1xi32>
    %c6_i32_182 = arith.constant 6 : i32
    %307 = vector.broadcast %c6_i32_182 : i32 to vector<48x1xi32>
    %308 = arith.cmpi sge, %306, %307 : vector<48x1xi32>
    %c1_i32_183 = arith.constant 1 : i32
    %309 = vector.broadcast %c1_i32_183 : i32 to vector<48x1xi32>
    %310 = arith.addi %301, %309 : vector<48x1xi32>
    %311 = arith.select %308, %310, %301 : vector<48x1xi1>, vector<48x1xi32>
    %c6_i32_184 = arith.constant 6 : i32
    %312 = vector.broadcast %c6_i32_184 : i32 to vector<48x1xi32>
    %313 = arith.cmpi sge, %306, %312 : vector<48x1xi32>
    %c6_i32_185 = arith.constant 6 : i32
    %314 = vector.broadcast %c6_i32_185 : i32 to vector<48x1xi32>
    %315 = arith.subi %306, %314 : vector<48x1xi32>
    %316 = arith.select %313, %315, %306 : vector<48x1xi1>, vector<48x1xi32>
    %c8_i32_186 = arith.constant 8 : i32
    %317 = arith.muli %c0_i32_130, %c8_i32_186 : i32
    %318 = vector.broadcast %317 : i32 to vector<48x1xi32>
    %319 = arith.addi %311, %318 : vector<48x1xi32>
    %c1_i32_187 = arith.constant 1 : i32
    %320 = vector.broadcast %c1_i32_187 : i32 to vector<48x1xi32>
    %321 = arith.cmpi sge, %319, %320 : vector<48x1xi32>
    %c4_i32_188 = arith.constant 4 : i32
    %322 = vector.broadcast %c4_i32_188 : i32 to vector<48x1xi32>
    %323 = arith.cmpi sle, %319, %322 : vector<48x1xi32>
    %324 = arith.andi %321, %323 : vector<48x1xi1>
    %c1_i32_189 = arith.constant 1 : i32
    %325 = vector.broadcast %c1_i32_189 : i32 to vector<48x1xi32>
    %326 = arith.cmpi sge, %316, %325 : vector<48x1xi32>
    %327 = arith.andi %324, %326 : vector<48x1xi1>
    %c4_i32_190 = arith.constant 4 : i32
    %328 = vector.broadcast %c4_i32_190 : i32 to vector<48x1xi32>
    %329 = arith.cmpi sle, %316, %328 : vector<48x1xi32>
    %330 = arith.andi %327, %329 : vector<48x1xi1>
    %cst_191 = arith.constant 0.000000e+00 : f32
    %331 = vector.shape_cast %330 : vector<48x1xi1> to vector<48x1xi1>
    %332 = vector.broadcast %331 : vector<48x1xi1> to vector<48x128xi1>
    %333 = vector.broadcast %cst_191 : f32 to vector<48x128xf32>
    %334 = arith.select %332, %288, %333 : vector<48x128xi1>, vector<48x128xf32>
    %335 = arith.index_cast %285 : i32 to index
    %c0_192 = arith.constant 0 : index
    %336 = vector.load %arg6[%335, %c0_192] : memref<64x128xf32, #tpu.memory_space<vmem>>, vector<48x128xf32>
    tpu.vector_store %arg6[%335, %c0_192], %334 {strides = array<i32>} : memref<64x128xf32, #tpu.memory_space<vmem>>, vector<48x128xf32>,
    %337 = vector.broadcast %1 : vector<1x128xf32> to vector<48x128xf32>
    %338 = arith.addf %288, %337 : vector<48x128xf32>
    %cst_193 = arith.constant 0.000000e+00 : f32
    %339 = vector.shape_cast %330 : vector<48x1xi1> to vector<48x1xi1>
    %340 = vector.broadcast %339 : vector<48x1xi1> to vector<48x128xi1>
    %341 = vector.broadcast %cst_193 : f32 to vector<48x128xf32>
    %342 = arith.select %340, %338, %341 : vector<48x128xi1>, vector<48x128xf32>
    %343 = arith.index_cast %285 : i32 to index
    %c0_194 = arith.constant 0 : index
    %344 = vector.load %arg7[%343, %c0_194] : memref<64x128xf32, #tpu.memory_space<vmem>>, vector<48x128xf32>
    tpu.vector_store %arg7[%343, %c0_194], %342 {strides = array<i32>} : memref<64x128xf32, #tpu.memory_space<vmem>>, vector<48x128xf32>,
    %c1_i32_195 = arith.constant 1 : i32
    %c3 = arith.constant 3 : index
    %c0_196 = arith.constant 0 : index
    %c0_197 = arith.constant 0 : index
    %345 = vector.load %arg4[%c3, %c0_196, %c0_197] : memref<8x1x128xf32, #tpu.memory_space<vmem>>, vector<1x1x128xf32>
    %346 = vector.shape_cast %345 : vector<1x1x128xf32> to vector<1x128xf32>
    %c0_i32_198 = arith.constant 0 : i32
    %c48_i32_199 = arith.constant 48 : i32
    %347 = arith.muli %c0_i32_198, %c48_i32_199 : i32
    %348 = tpu.assume_multiple %347, 8 : i32
    %c1_i32_200 = arith.constant 1 : i32
    %349 = arith.addi %348, %c1_i32_200 : i32
    %350 = arith.index_cast %349 : i32 to index
    %c0_201 = arith.constant 0 : index
    %351 = vector.load %arg7[%350, %c0_201] : memref<64x128xf32, #tpu.memory_space<vmem>>, vector<48x128xf32>
    %352 = arith.truncf %351 : vector<48x128xf32> to vector<48x128xbf16>
    %c0_202 = arith.constant 0 : index
    %c0_203 = arith.constant 0 : index
    %353 = vector.load %arg9[%c0_202, %c0_203] : memref<48x1152xbf16, #tpu.memory_space<vmem>>, vector<48x128xbf16>
    tpu.vector_store %arg9[%c0_202, %c0_203], %352 {strides = array<i32>} : memref<48x1152xbf16, #tpu.memory_space<vmem>>, vector<48x128xbf16>,
    %c2_i32_204 = arith.constant 2 : i32
    %354 = arith.addi %348, %c2_i32_204 : i32
    %355 = arith.index_cast %354 : i32 to index
    %c0_205 = arith.constant 0 : index
    %356 = vector.load %arg7[%355, %c0_205] : memref<64x128xf32, #tpu.memory_space<vmem>>, vector<48x128xf32>
    %357 = arith.truncf %356 : vector<48x128xf32> to vector<48x128xbf16>
    %c0_206 = arith.constant 0 : index
    %c128_207 = arith.constant 128 : index
    %358 = vector.load %arg9[%c0_206, %c128_207] : memref<48x1152xbf16, #tpu.memory_space<vmem>>, vector<48x128xbf16>
    tpu.vector_store %arg9[%c0_206, %c128_207], %357 {strides = array<i32>} : memref<48x1152xbf16, #tpu.memory_space<vmem>>, vector<48x128xbf16>,
    %c3_i32_208 = arith.constant 3 : i32
    %359 = arith.addi %348, %c3_i32_208 : i32
    %360 = arith.index_cast %359 : i32 to index
    %c0_209 = arith.constant 0 : index
    %361 = vector.load %arg7[%360, %c0_209] : memref<64x128xf32, #tpu.memory_space<vmem>>, vector<48x128xf32>
    %362 = arith.truncf %361 : vector<48x128xf32> to vector<48x128xbf16>
    %c0_210 = arith.constant 0 : index
    %c256_211 = arith.constant 256 : index
    %363 = vector.load %arg9[%c0_210, %c256_211] : memref<48x1152xbf16, #tpu.memory_space<vmem>>, vector<48x128xbf16>
    tpu.vector_store %arg9[%c0_210, %c256_211], %362 {strides = array<i32>} : memref<48x1152xbf16, #tpu.memory_space<vmem>>, vector<48x128xbf16>,
    %c7_i32_212 = arith.constant 7 : i32
    %364 = arith.addi %348, %c7_i32_212 : i32
    %365 = arith.index_cast %364 : i32 to index
    %c0_213 = arith.constant 0 : index
    %366 = vector.load %arg7[%365, %c0_213] : memref<64x128xf32, #tpu.memory_space<vmem>>, vector<48x128xf32>
    %367 = arith.truncf %366 : vector<48x128xf32> to vector<48x128xbf16>
    %c0_214 = arith.constant 0 : index
    %c384_215 = arith.constant 384 : index
    %368 = vector.load %arg9[%c0_214, %c384_215] : memref<48x1152xbf16, #tpu.memory_space<vmem>>, vector<48x128xbf16>
    tpu.vector_store %arg9[%c0_214, %c384_215], %367 {strides = array<i32>} : memref<48x1152xbf16, #tpu.memory_space<vmem>>, vector<48x128xbf16>,
    %c8_i32_216 = arith.constant 8 : i32
    %369 = arith.addi %348, %c8_i32_216 : i32
    %370 = arith.index_cast %369 : i32 to index
    %c0_217 = arith.constant 0 : index
    %371 = vector.load %arg7[%370, %c0_217] : memref<64x128xf32, #tpu.memory_space<vmem>>, vector<48x128xf32>
    %372 = arith.truncf %371 : vector<48x128xf32> to vector<48x128xbf16>
    %c0_218 = arith.constant 0 : index
    %c512_219 = arith.constant 512 : index
    %373 = vector.load %arg9[%c0_218, %c512_219] : memref<48x1152xbf16, #tpu.memory_space<vmem>>, vector<48x128xbf16>
    tpu.vector_store %arg9[%c0_218, %c512_219], %372 {strides = array<i32>} : memref<48x1152xbf16, #tpu.memory_space<vmem>>, vector<48x128xbf16>,
    %c9_i32_220 = arith.constant 9 : i32
    %374 = arith.addi %348, %c9_i32_220 : i32
    %375 = arith.index_cast %374 : i32 to index
    %c0_221 = arith.constant 0 : index
    %376 = vector.load %arg7[%375, %c0_221] : memref<64x128xf32, #tpu.memory_space<vmem>>, vector<48x128xf32>
    %377 = arith.truncf %376 : vector<48x128xf32> to vector<48x128xbf16>
    %c0_222 = arith.constant 0 : index
    %c640_223 = arith.constant 640 : index
    %378 = vector.load %arg9[%c0_222, %c640_223] : memref<48x1152xbf16, #tpu.memory_space<vmem>>, vector<48x128xbf16>
    tpu.vector_store %arg9[%c0_222, %c640_223], %377 {strides = array<i32>} : memref<48x1152xbf16, #tpu.memory_space<vmem>>, vector<48x128xbf16>,
    %c13_i32_224 = arith.constant 13 : i32
    %379 = arith.addi %348, %c13_i32_224 : i32
    %380 = arith.index_cast %379 : i32 to index
    %c0_225 = arith.constant 0 : index
    %381 = vector.load %arg7[%380, %c0_225] : memref<64x128xf32, #tpu.memory_space<vmem>>, vector<48x128xf32>
    %382 = arith.truncf %381 : vector<48x128xf32> to vector<48x128xbf16>
    %c0_226 = arith.constant 0 : index
    %c768_227 = arith.constant 768 : index
    %383 = vector.load %arg9[%c0_226, %c768_227] : memref<48x1152xbf16, #tpu.memory_space<vmem>>, vector<48x128xbf16>
    tpu.vector_store %arg9[%c0_226, %c768_227], %382 {strides = array<i32>} : memref<48x1152xbf16, #tpu.memory_space<vmem>>, vector<48x128xbf16>,
    %c14_i32_228 = arith.constant 14 : i32
    %384 = arith.addi %348, %c14_i32_228 : i32
    %385 = arith.index_cast %384 : i32 to index
    %c0_229 = arith.constant 0 : index
    %386 = vector.load %arg7[%385, %c0_229] : memref<64x128xf32, #tpu.memory_space<vmem>>, vector<48x128xf32>
    %387 = arith.truncf %386 : vector<48x128xf32> to vector<48x128xbf16>
    %c0_230 = arith.constant 0 : index
    %c896_231 = arith.constant 896 : index
    %388 = vector.load %arg9[%c0_230, %c896_231] : memref<48x1152xbf16, #tpu.memory_space<vmem>>, vector<48x128xbf16>
    tpu.vector_store %arg9[%c0_230, %c896_231], %387 {strides = array<i32>} : memref<48x1152xbf16, #tpu.memory_space<vmem>>, vector<48x128xbf16>,
    %c15_i32_232 = arith.constant 15 : i32
    %389 = arith.addi %348, %c15_i32_232 : i32
    %390 = arith.index_cast %389 : i32 to index
    %c0_233 = arith.constant 0 : index
    %391 = vector.load %arg7[%390, %c0_233] : memref<64x128xf32, #tpu.memory_space<vmem>>, vector<48x128xf32>
    %392 = arith.truncf %391 : vector<48x128xf32> to vector<48x128xbf16>
    %c0_234 = arith.constant 0 : index
    %c1024_235 = arith.constant 1024 : index
    %393 = vector.load %arg9[%c0_234, %c1024_235] : memref<48x1152xbf16, #tpu.memory_space<vmem>>, vector<48x128xbf16>
    tpu.vector_store %arg9[%c0_234, %c1024_235], %392 {strides = array<i32>} : memref<48x1152xbf16, #tpu.memory_space<vmem>>, vector<48x128xbf16>,
    %c0_236 = arith.constant 0 : index
    %c0_237 = arith.constant 0 : index
    %394 = vector.load %arg9[%c0_236, %c0_237] : memref<48x1152xbf16, #tpu.memory_space<vmem>>, vector<48x1152xbf16>
    %c3_238 = arith.constant 3 : index
    %c0_239 = arith.constant 0 : index
    %c0_240 = arith.constant 0 : index
    %395 = vector.load %arg3[%c3_238, %c0_239, %c0_240] : memref<8x1152x128xbf16, #tpu.memory_space<vmem>>, vector<1x1152x128xbf16>
    %396 = vector.shape_cast %395 : vector<1x1152x128xbf16> to vector<1152x128xbf16>
    %cst_241 = arith.constant dense<0.000000e+00> : vector<48x128xf32>
    %397 = tpu.matmul %394, %396, %cst_241 {dimension_numbers = #tpu.dot_dimension_numbers<[1], [0], [0], [1], [0, 0, 1, 1], [], []>} : vector<48x1152xbf16>, vector<1152x128xbf16>, vector<48x128xf32> -> vector<48x128xf32>
    %398 = vector.broadcast %346 : vector<1x128xf32> to vector<48x128xf32>
    %399 = arith.addf %397, %398 : vector<48x128xf32>
    %cst_242 = arith.constant 0.000000e+00 : f32
    %400 = vector.broadcast %cst_242 : f32 to vector<48x128xf32>
    %401 = arith.maximumf %399, %400 : vector<48x128xf32>
    %c8_i32_243 = arith.constant 8 : i32
    %402 = arith.addi %c8_i32_243, %348 : i32
    %403 = tpu.iota {dimensions = array<i32: 0>} : vector<48x1xi32>
    %404 = arith.sitofp %403 : vector<48x1xi32> to vector<48x1xf32>
    %cst_244 = arith.constant 0.166666672 : f32
    %405 = vector.broadcast %cst_244 : f32 to vector<48x1xf32>
    %406 = arith.mulf %404, %405 : vector<48x1xf32>
    %407 = arith.fptosi %406 : vector<48x1xf32> to vector<48x1xi32>
    %c6_i32_245 = arith.constant 6 : i32
    %408 = vector.broadcast %c6_i32_245 : i32 to vector<48x1xi32>
    %409 = arith.muli %407, %408 : vector<48x1xi32>
    %410 = arith.subi %403, %409 : vector<48x1xi32>
    %c0_i32_246 = arith.constant 0 : i32
    %411 = vector.broadcast %c0_i32_246 : i32 to vector<48x1xi32>
    %412 = arith.cmpi slt, %410, %411 : vector<48x1xi32>
    %c1_i32_247 = arith.constant 1 : i32
    %413 = vector.broadcast %c1_i32_247 : i32 to vector<48x1xi32>
    %414 = arith.subi %407, %413 : vector<48x1xi32>
    %415 = arith.select %412, %414, %407 : vector<48x1xi1>, vector<48x1xi32>
    %c0_i32_248 = arith.constant 0 : i32
    %416 = vector.broadcast %c0_i32_248 : i32 to vector<48x1xi32>
    %417 = arith.cmpi slt, %410, %416 : vector<48x1xi32>
    %c6_i32_249 = arith.constant 6 : i32
    %418 = vector.broadcast %c6_i32_249 : i32 to vector<48x1xi32>
    %419 = arith.addi %410, %418 : vector<48x1xi32>
    %420 = arith.select %417, %419, %410 : vector<48x1xi1>, vector<48x1xi32>
    %c6_i32_250 = arith.constant 6 : i32
    %421 = vector.broadcast %c6_i32_250 : i32 to vector<48x1xi32>
    %422 = arith.cmpi sge, %420, %421 : vector<48x1xi32>
    %c1_i32_251 = arith.constant 1 : i32
    %423 = vector.broadcast %c1_i32_251 : i32 to vector<48x1xi32>
    %424 = arith.addi %415, %423 : vector<48x1xi32>
    %425 = arith.select %422, %424, %415 : vector<48x1xi1>, vector<48x1xi32>
    %c6_i32_252 = arith.constant 6 : i32
    %426 = vector.broadcast %c6_i32_252 : i32 to vector<48x1xi32>
    %427 = arith.cmpi sge, %420, %426 : vector<48x1xi32>
    %c6_i32_253 = arith.constant 6 : i32
    %428 = vector.broadcast %c6_i32_253 : i32 to vector<48x1xi32>
    %429 = arith.subi %420, %428 : vector<48x1xi32>
    %430 = arith.select %427, %429, %420 : vector<48x1xi1>, vector<48x1xi32>
    %c8_i32_254 = arith.constant 8 : i32
    %431 = arith.muli %c0_i32_198, %c8_i32_254 : i32
    %432 = vector.broadcast %431 : i32 to vector<48x1xi32>
    %433 = arith.addi %425, %432 : vector<48x1xi32>
    %c1_i32_255 = arith.constant 1 : i32
    %434 = vector.broadcast %c1_i32_255 : i32 to vector<48x1xi32>
    %435 = arith.cmpi sge, %433, %434 : vector<48x1xi32>
    %c4_i32_256 = arith.constant 4 : i32
    %436 = vector.broadcast %c4_i32_256 : i32 to vector<48x1xi32>
    %437 = arith.cmpi sle, %433, %436 : vector<48x1xi32>
    %438 = arith.andi %435, %437 : vector<48x1xi1>
    %c1_i32_257 = arith.constant 1 : i32
    %439 = vector.broadcast %c1_i32_257 : i32 to vector<48x1xi32>
    %440 = arith.cmpi sge, %430, %439 : vector<48x1xi32>
    %441 = arith.andi %438, %440 : vector<48x1xi1>
    %c4_i32_258 = arith.constant 4 : i32
    %442 = vector.broadcast %c4_i32_258 : i32 to vector<48x1xi32>
    %443 = arith.cmpi sle, %430, %442 : vector<48x1xi32>
    %444 = arith.andi %441, %443 : vector<48x1xi1>
    %cst_259 = arith.constant 0.000000e+00 : f32
    %445 = vector.shape_cast %444 : vector<48x1xi1> to vector<48x1xi1>
    %446 = vector.broadcast %445 : vector<48x1xi1> to vector<48x128xi1>
    %447 = vector.broadcast %cst_259 : f32 to vector<48x128xf32>
    %448 = arith.select %446, %401, %447 : vector<48x128xi1>, vector<48x128xf32>
    %449 = arith.index_cast %402 : i32 to index
    %c0_260 = arith.constant 0 : index
    %450 = vector.load %arg8[%449, %c0_260] : memref<64x128xf32, #tpu.memory_space<vmem>>, vector<48x128xf32>
    tpu.vector_store %arg8[%449, %c0_260], %448 {strides = array<i32>} : memref<64x128xf32, #tpu.memory_space<vmem>>, vector<48x128xf32>,
    %c1_i32_261 = arith.constant 1 : i32
    %c4 = arith.constant 4 : index
    %c0_262 = arith.constant 0 : index
    %c0_263 = arith.constant 0 : index
    %451 = vector.load %arg4[%c4, %c0_262, %c0_263] : memref<8x1x128xf32, #tpu.memory_space<vmem>>, vector<1x1x128xf32>
    %452 = vector.shape_cast %451 : vector<1x1x128xf32> to vector<1x128xf32>
    %c0_i32_264 = arith.constant 0 : i32
    %c48_i32_265 = arith.constant 48 : i32
    %453 = arith.muli %c0_i32_264, %c48_i32_265 : i32
    %454 = tpu.assume_multiple %453, 8 : i32
    %c1_i32_266 = arith.constant 1 : i32
    %455 = arith.addi %454, %c1_i32_266 : i32
    %456 = arith.index_cast %455 : i32 to index
    %c0_267 = arith.constant 0 : index
    %457 = vector.load %arg8[%456, %c0_267] : memref<64x128xf32, #tpu.memory_space<vmem>>, vector<48x128xf32>
    %458 = arith.truncf %457 : vector<48x128xf32> to vector<48x128xbf16>
    %c0_268 = arith.constant 0 : index
    %c0_269 = arith.constant 0 : index
    %459 = vector.load %arg9[%c0_268, %c0_269] : memref<48x1152xbf16, #tpu.memory_space<vmem>>, vector<48x128xbf16>
    tpu.vector_store %arg9[%c0_268, %c0_269], %458 {strides = array<i32>} : memref<48x1152xbf16, #tpu.memory_space<vmem>>, vector<48x128xbf16>,
    %c2_i32_270 = arith.constant 2 : i32
    %460 = arith.addi %454, %c2_i32_270 : i32
    %461 = arith.index_cast %460 : i32 to index
    %c0_271 = arith.constant 0 : index
    %462 = vector.load %arg8[%461, %c0_271] : memref<64x128xf32, #tpu.memory_space<vmem>>, vector<48x128xf32>
    %463 = arith.truncf %462 : vector<48x128xf32> to vector<48x128xbf16>
    %c0_272 = arith.constant 0 : index
    %c128_273 = arith.constant 128 : index
    %464 = vector.load %arg9[%c0_272, %c128_273] : memref<48x1152xbf16, #tpu.memory_space<vmem>>, vector<48x128xbf16>
    tpu.vector_store %arg9[%c0_272, %c128_273], %463 {strides = array<i32>} : memref<48x1152xbf16, #tpu.memory_space<vmem>>, vector<48x128xbf16>,
    %c3_i32_274 = arith.constant 3 : i32
    %465 = arith.addi %454, %c3_i32_274 : i32
    %466 = arith.index_cast %465 : i32 to index
    %c0_275 = arith.constant 0 : index
    %467 = vector.load %arg8[%466, %c0_275] : memref<64x128xf32, #tpu.memory_space<vmem>>, vector<48x128xf32>
    %468 = arith.truncf %467 : vector<48x128xf32> to vector<48x128xbf16>
    %c0_276 = arith.constant 0 : index
    %c256_277 = arith.constant 256 : index
    %469 = vector.load %arg9[%c0_276, %c256_277] : memref<48x1152xbf16, #tpu.memory_space<vmem>>, vector<48x128xbf16>
    tpu.vector_store %arg9[%c0_276, %c256_277], %468 {strides = array<i32>} : memref<48x1152xbf16, #tpu.memory_space<vmem>>, vector<48x128xbf16>,
    %c7_i32_278 = arith.constant 7 : i32
    %470 = arith.addi %454, %c7_i32_278 : i32
    %471 = arith.index_cast %470 : i32 to index
    %c0_279 = arith.constant 0 : index
    %472 = vector.load %arg8[%471, %c0_279] : memref<64x128xf32, #tpu.memory_space<vmem>>, vector<48x128xf32>
    %473 = arith.truncf %472 : vector<48x128xf32> to vector<48x128xbf16>
    %c0_280 = arith.constant 0 : index
    %c384_281 = arith.constant 384 : index
    %474 = vector.load %arg9[%c0_280, %c384_281] : memref<48x1152xbf16, #tpu.memory_space<vmem>>, vector<48x128xbf16>
    tpu.vector_store %arg9[%c0_280, %c384_281], %473 {strides = array<i32>} : memref<48x1152xbf16, #tpu.memory_space<vmem>>, vector<48x128xbf16>,
    %c8_i32_282 = arith.constant 8 : i32
    %475 = arith.addi %454, %c8_i32_282 : i32
    %476 = arith.index_cast %475 : i32 to index
    %c0_283 = arith.constant 0 : index
    %477 = vector.load %arg8[%476, %c0_283] : memref<64x128xf32, #tpu.memory_space<vmem>>, vector<48x128xf32>
    %478 = arith.truncf %477 : vector<48x128xf32> to vector<48x128xbf16>
    %c0_284 = arith.constant 0 : index
    %c512_285 = arith.constant 512 : index
    %479 = vector.load %arg9[%c0_284, %c512_285] : memref<48x1152xbf16, #tpu.memory_space<vmem>>, vector<48x128xbf16>
    tpu.vector_store %arg9[%c0_284, %c512_285], %478 {strides = array<i32>} : memref<48x1152xbf16, #tpu.memory_space<vmem>>, vector<48x128xbf16>,
    %c9_i32_286 = arith.constant 9 : i32
    %480 = arith.addi %454, %c9_i32_286 : i32
    %481 = arith.index_cast %480 : i32 to index
    %c0_287 = arith.constant 0 : index
    %482 = vector.load %arg8[%481, %c0_287] : memref<64x128xf32, #tpu.memory_space<vmem>>, vector<48x128xf32>
    %483 = arith.truncf %482 : vector<48x128xf32> to vector<48x128xbf16>
    %c0_288 = arith.constant 0 : index
    %c640_289 = arith.constant 640 : index
    %484 = vector.load %arg9[%c0_288, %c640_289] : memref<48x1152xbf16, #tpu.memory_space<vmem>>, vector<48x128xbf16>
    tpu.vector_store %arg9[%c0_288, %c640_289], %483 {strides = array<i32>} : memref<48x1152xbf16, #tpu.memory_space<vmem>>, vector<48x128xbf16>,
    %c13_i32_290 = arith.constant 13 : i32
    %485 = arith.addi %454, %c13_i32_290 : i32
    %486 = arith.index_cast %485 : i32 to index
    %c0_291 = arith.constant 0 : index
    %487 = vector.load %arg8[%486, %c0_291] : memref<64x128xf32, #tpu.memory_space<vmem>>, vector<48x128xf32>
    %488 = arith.truncf %487 : vector<48x128xf32> to vector<48x128xbf16>
    %c0_292 = arith.constant 0 : index
    %c768_293 = arith.constant 768 : index
    %489 = vector.load %arg9[%c0_292, %c768_293] : memref<48x1152xbf16, #tpu.memory_space<vmem>>, vector<48x128xbf16>
    tpu.vector_store %arg9[%c0_292, %c768_293], %488 {strides = array<i32>} : memref<48x1152xbf16, #tpu.memory_space<vmem>>, vector<48x128xbf16>,
    %c14_i32_294 = arith.constant 14 : i32
    %490 = arith.addi %454, %c14_i32_294 : i32
    %491 = arith.index_cast %490 : i32 to index
    %c0_295 = arith.constant 0 : index
    %492 = vector.load %arg8[%491, %c0_295] : memref<64x128xf32, #tpu.memory_space<vmem>>, vector<48x128xf32>
    %493 = arith.truncf %492 : vector<48x128xf32> to vector<48x128xbf16>
    %c0_296 = arith.constant 0 : index
    %c896_297 = arith.constant 896 : index
    %494 = vector.load %arg9[%c0_296, %c896_297] : memref<48x1152xbf16, #tpu.memory_space<vmem>>, vector<48x128xbf16>
    tpu.vector_store %arg9[%c0_296, %c896_297], %493 {strides = array<i32>} : memref<48x1152xbf16, #tpu.memory_space<vmem>>, vector<48x128xbf16>,
    %c15_i32_298 = arith.constant 15 : i32
    %495 = arith.addi %454, %c15_i32_298 : i32
    %496 = arith.index_cast %495 : i32 to index
    %c0_299 = arith.constant 0 : index
    %497 = vector.load %arg8[%496, %c0_299] : memref<64x128xf32, #tpu.memory_space<vmem>>, vector<48x128xf32>
    %498 = arith.truncf %497 : vector<48x128xf32> to vector<48x128xbf16>
    %c0_300 = arith.constant 0 : index
    %c1024_301 = arith.constant 1024 : index
    %499 = vector.load %arg9[%c0_300, %c1024_301] : memref<48x1152xbf16, #tpu.memory_space<vmem>>, vector<48x128xbf16>
    tpu.vector_store %arg9[%c0_300, %c1024_301], %498 {strides = array<i32>} : memref<48x1152xbf16, #tpu.memory_space<vmem>>, vector<48x128xbf16>,
    %c0_302 = arith.constant 0 : index
    %c0_303 = arith.constant 0 : index
    %500 = vector.load %arg9[%c0_302, %c0_303] : memref<48x1152xbf16, #tpu.memory_space<vmem>>, vector<48x1152xbf16>
    %c4_304 = arith.constant 4 : index
    %c0_305 = arith.constant 0 : index
    %c0_306 = arith.constant 0 : index
    %501 = vector.load %arg3[%c4_304, %c0_305, %c0_306] : memref<8x1152x128xbf16, #tpu.memory_space<vmem>>, vector<1x1152x128xbf16>
    %502 = vector.shape_cast %501 : vector<1x1152x128xbf16> to vector<1152x128xbf16>
    %cst_307 = arith.constant dense<0.000000e+00> : vector<48x128xf32>
    %503 = tpu.matmul %500, %502, %cst_307 {dimension_numbers = #tpu.dot_dimension_numbers<[1], [0], [0], [1], [0, 0, 1, 1], [], []>} : vector<48x1152xbf16>, vector<1152x128xbf16>, vector<48x128xf32> -> vector<48x128xf32>
    %504 = vector.broadcast %452 : vector<1x128xf32> to vector<48x128xf32>
    %505 = arith.addf %503, %504 : vector<48x128xf32>
    %c8_i32_308 = arith.constant 8 : i32
    %506 = arith.addi %c8_i32_308, %454 : i32
    %507 = arith.index_cast %506 : i32 to index
    %c0_309 = arith.constant 0 : index
    %508 = vector.load %arg6[%507, %c0_309] : memref<64x128xf32, #tpu.memory_space<vmem>>, vector<48x128xf32>
    %509 = arith.addf %505, %508 : vector<48x128xf32>
    %510 = tpu.iota {dimensions = array<i32: 0>} : vector<48x1xi32>
    %511 = arith.sitofp %510 : vector<48x1xi32> to vector<48x1xf32>
    %cst_310 = arith.constant 0.166666672 : f32
    %512 = vector.broadcast %cst_310 : f32 to vector<48x1xf32>
    %513 = arith.mulf %511, %512 : vector<48x1xf32>
    %514 = arith.fptosi %513 : vector<48x1xf32> to vector<48x1xi32>
    %c6_i32_311 = arith.constant 6 : i32
    %515 = vector.broadcast %c6_i32_311 : i32 to vector<48x1xi32>
    %516 = arith.muli %514, %515 : vector<48x1xi32>
    %517 = arith.subi %510, %516 : vector<48x1xi32>
    %c0_i32_312 = arith.constant 0 : i32
    %518 = vector.broadcast %c0_i32_312 : i32 to vector<48x1xi32>
    %519 = arith.cmpi slt, %517, %518 : vector<48x1xi32>
    %c1_i32_313 = arith.constant 1 : i32
    %520 = vector.broadcast %c1_i32_313 : i32 to vector<48x1xi32>
    %521 = arith.subi %514, %520 : vector<48x1xi32>
    %522 = arith.select %519, %521, %514 : vector<48x1xi1>, vector<48x1xi32>
    %c0_i32_314 = arith.constant 0 : i32
    %523 = vector.broadcast %c0_i32_314 : i32 to vector<48x1xi32>
    %524 = arith.cmpi slt, %517, %523 : vector<48x1xi32>
    %c6_i32_315 = arith.constant 6 : i32
    %525 = vector.broadcast %c6_i32_315 : i32 to vector<48x1xi32>
    %526 = arith.addi %517, %525 : vector<48x1xi32>
    %527 = arith.select %524, %526, %517 : vector<48x1xi1>, vector<48x1xi32>
    %c6_i32_316 = arith.constant 6 : i32
    %528 = vector.broadcast %c6_i32_316 : i32 to vector<48x1xi32>
    %529 = arith.cmpi sge, %527, %528 : vector<48x1xi32>
    %c1_i32_317 = arith.constant 1 : i32
    %530 = vector.broadcast %c1_i32_317 : i32 to vector<48x1xi32>
    %531 = arith.addi %522, %530 : vector<48x1xi32>
    %532 = arith.select %529, %531, %522 : vector<48x1xi1>, vector<48x1xi32>
    %c6_i32_318 = arith.constant 6 : i32
    %533 = vector.broadcast %c6_i32_318 : i32 to vector<48x1xi32>
    %534 = arith.cmpi sge, %527, %533 : vector<48x1xi32>
    %c6_i32_319 = arith.constant 6 : i32
    %535 = vector.broadcast %c6_i32_319 : i32 to vector<48x1xi32>
    %536 = arith.subi %527, %535 : vector<48x1xi32>
    %537 = arith.select %534, %536, %527 : vector<48x1xi1>, vector<48x1xi32>
    %c8_i32_320 = arith.constant 8 : i32
    %538 = arith.muli %c0_i32_264, %c8_i32_320 : i32
    %539 = vector.broadcast %538 : i32 to vector<48x1xi32>
    %540 = arith.addi %532, %539 : vector<48x1xi32>
    %c1_i32_321 = arith.constant 1 : i32
    %541 = vector.broadcast %c1_i32_321 : i32 to vector<48x1xi32>
    %542 = arith.cmpi sge, %540, %541 : vector<48x1xi32>
    %c4_i32_322 = arith.constant 4 : i32
    %543 = vector.broadcast %c4_i32_322 : i32 to vector<48x1xi32>
    %544 = arith.cmpi sle, %540, %543 : vector<48x1xi32>
    %545 = arith.andi %542, %544 : vector<48x1xi1>
    %c1_i32_323 = arith.constant 1 : i32
    %546 = vector.broadcast %c1_i32_323 : i32 to vector<48x1xi32>
    %547 = arith.cmpi sge, %537, %546 : vector<48x1xi32>
    %548 = arith.andi %545, %547 : vector<48x1xi1>
    %c4_i32_324 = arith.constant 4 : i32
    %549 = vector.broadcast %c4_i32_324 : i32 to vector<48x1xi32>
    %550 = arith.cmpi sle, %537, %549 : vector<48x1xi32>
    %551 = arith.andi %548, %550 : vector<48x1xi1>
    %cst_325 = arith.constant 0.000000e+00 : f32
    %552 = vector.shape_cast %551 : vector<48x1xi1> to vector<48x1xi1>
    %553 = vector.broadcast %552 : vector<48x1xi1> to vector<48x128xi1>
    %554 = vector.broadcast %cst_325 : f32 to vector<48x128xf32>
    %555 = arith.select %553, %509, %554 : vector<48x128xi1>, vector<48x128xf32>
    %556 = arith.index_cast %506 : i32 to index
    %c0_326 = arith.constant 0 : index
    %557 = vector.load %arg6[%556, %c0_326] : memref<64x128xf32, #tpu.memory_space<vmem>>, vector<48x128xf32>
    tpu.vector_store %arg6[%556, %c0_326], %555 {strides = array<i32>} : memref<64x128xf32, #tpu.memory_space<vmem>>, vector<48x128xf32>,
    %558 = vector.broadcast %1 : vector<1x128xf32> to vector<48x128xf32>
    %559 = arith.addf %509, %558 : vector<48x128xf32>
    %cst_327 = arith.constant 0.000000e+00 : f32
    %560 = vector.shape_cast %551 : vector<48x1xi1> to vector<48x1xi1>
    %561 = vector.broadcast %560 : vector<48x1xi1> to vector<48x128xi1>
    %562 = vector.broadcast %cst_327 : f32 to vector<48x128xf32>
    %563 = arith.select %561, %559, %562 : vector<48x128xi1>, vector<48x128xf32>
    %564 = arith.index_cast %506 : i32 to index
    %c0_328 = arith.constant 0 : index
    %565 = vector.load %arg7[%564, %c0_328] : memref<64x128xf32, #tpu.memory_space<vmem>>, vector<48x128xf32>
    tpu.vector_store %arg7[%564, %c0_328], %563 {strides = array<i32>} : memref<64x128xf32, #tpu.memory_space<vmem>>, vector<48x128xf32>,
    %c1_i32_329 = arith.constant 1 : i32
    %c5 = arith.constant 5 : index
    %c0_330 = arith.constant 0 : index
    %c0_331 = arith.constant 0 : index
    %566 = vector.load %arg4[%c5, %c0_330, %c0_331] : memref<8x1x128xf32, #tpu.memory_space<vmem>>, vector<1x1x128xf32>
    %567 = vector.shape_cast %566 : vector<1x1x128xf32> to vector<1x128xf32>
    %c0_i32_332 = arith.constant 0 : i32
    %c48_i32_333 = arith.constant 48 : i32
    %568 = arith.muli %c0_i32_332, %c48_i32_333 : i32
    %569 = tpu.assume_multiple %568, 8 : i32
    %c1_i32_334 = arith.constant 1 : i32
    %570 = arith.addi %569, %c1_i32_334 : i32
    %571 = arith.index_cast %570 : i32 to index
    %c0_335 = arith.constant 0 : index
    %572 = vector.load %arg7[%571, %c0_335] : memref<64x128xf32, #tpu.memory_space<vmem>>, vector<48x128xf32>
    %573 = arith.truncf %572 : vector<48x128xf32> to vector<48x128xbf16>
    %c0_336 = arith.constant 0 : index
    %c0_337 = arith.constant 0 : index
    %574 = vector.load %arg9[%c0_336, %c0_337] : memref<48x1152xbf16, #tpu.memory_space<vmem>>, vector<48x128xbf16>
    tpu.vector_store %arg9[%c0_336, %c0_337], %573 {strides = array<i32>} : memref<48x1152xbf16, #tpu.memory_space<vmem>>, vector<48x128xbf16>,
    %c2_i32_338 = arith.constant 2 : i32
    %575 = arith.addi %569, %c2_i32_338 : i32
    %576 = arith.index_cast %575 : i32 to index
    %c0_339 = arith.constant 0 : index
    %577 = vector.load %arg7[%576, %c0_339] : memref<64x128xf32, #tpu.memory_space<vmem>>, vector<48x128xf32>
    %578 = arith.truncf %577 : vector<48x128xf32> to vector<48x128xbf16>
    %c0_340 = arith.constant 0 : index
    %c128_341 = arith.constant 128 : index
    %579 = vector.load %arg9[%c0_340, %c128_341] : memref<48x1152xbf16, #tpu.memory_space<vmem>>, vector<48x128xbf16>
    tpu.vector_store %arg9[%c0_340, %c128_341], %578 {strides = array<i32>} : memref<48x1152xbf16, #tpu.memory_space<vmem>>, vector<48x128xbf16>,
    %c3_i32_342 = arith.constant 3 : i32
    %580 = arith.addi %569, %c3_i32_342 : i32
    %581 = arith.index_cast %580 : i32 to index
    %c0_343 = arith.constant 0 : index
    %582 = vector.load %arg7[%581, %c0_343] : memref<64x128xf32, #tpu.memory_space<vmem>>, vector<48x128xf32>
    %583 = arith.truncf %582 : vector<48x128xf32> to vector<48x128xbf16>
    %c0_344 = arith.constant 0 : index
    %c256_345 = arith.constant 256 : index
    %584 = vector.load %arg9[%c0_344, %c256_345] : memref<48x1152xbf16, #tpu.memory_space<vmem>>, vector<48x128xbf16>
    tpu.vector_store %arg9[%c0_344, %c256_345], %583 {strides = array<i32>} : memref<48x1152xbf16, #tpu.memory_space<vmem>>, vector<48x128xbf16>,
    %c7_i32_346 = arith.constant 7 : i32
    %585 = arith.addi %569, %c7_i32_346 : i32
    %586 = arith.index_cast %585 : i32 to index
    %c0_347 = arith.constant 0 : index
    %587 = vector.load %arg7[%586, %c0_347] : memref<64x128xf32, #tpu.memory_space<vmem>>, vector<48x128xf32>
    %588 = arith.truncf %587 : vector<48x128xf32> to vector<48x128xbf16>
    %c0_348 = arith.constant 0 : index
    %c384_349 = arith.constant 384 : index
    %589 = vector.load %arg9[%c0_348, %c384_349] : memref<48x1152xbf16, #tpu.memory_space<vmem>>, vector<48x128xbf16>
    tpu.vector_store %arg9[%c0_348, %c384_349], %588 {strides = array<i32>} : memref<48x1152xbf16, #tpu.memory_space<vmem>>, vector<48x128xbf16>,
    %c8_i32_350 = arith.constant 8 : i32
    %590 = arith.addi %569, %c8_i32_350 : i32
    %591 = arith.index_cast %590 : i32 to index
    %c0_351 = arith.constant 0 : index
    %592 = vector.load %arg7[%591, %c0_351] : memref<64x128xf32, #tpu.memory_space<vmem>>, vector<48x128xf32>
    %593 = arith.truncf %592 : vector<48x128xf32> to vector<48x128xbf16>
    %c0_352 = arith.constant 0 : index
    %c512_353 = arith.constant 512 : index
    %594 = vector.load %arg9[%c0_352, %c512_353] : memref<48x1152xbf16, #tpu.memory_space<vmem>>, vector<48x128xbf16>
    tpu.vector_store %arg9[%c0_352, %c512_353], %593 {strides = array<i32>} : memref<48x1152xbf16, #tpu.memory_space<vmem>>, vector<48x128xbf16>,
    %c9_i32_354 = arith.constant 9 : i32
    %595 = arith.addi %569, %c9_i32_354 : i32
    %596 = arith.index_cast %595 : i32 to index
    %c0_355 = arith.constant 0 : index
    %597 = vector.load %arg7[%596, %c0_355] : memref<64x128xf32, #tpu.memory_space<vmem>>, vector<48x128xf32>
    %598 = arith.truncf %597 : vector<48x128xf32> to vector<48x128xbf16>
    %c0_356 = arith.constant 0 : index
    %c640_357 = arith.constant 640 : index
    %599 = vector.load %arg9[%c0_356, %c640_357] : memref<48x1152xbf16, #tpu.memory_space<vmem>>, vector<48x128xbf16>
    tpu.vector_store %arg9[%c0_356, %c640_357], %598 {strides = array<i32>} : memref<48x1152xbf16, #tpu.memory_space<vmem>>, vector<48x128xbf16>,
    %c13_i32_358 = arith.constant 13 : i32
    %600 = arith.addi %569, %c13_i32_358 : i32
    %601 = arith.index_cast %600 : i32 to index
    %c0_359 = arith.constant 0 : index
    %602 = vector.load %arg7[%601, %c0_359] : memref<64x128xf32, #tpu.memory_space<vmem>>, vector<48x128xf32>
    %603 = arith.truncf %602 : vector<48x128xf32> to vector<48x128xbf16>
    %c0_360 = arith.constant 0 : index
    %c768_361 = arith.constant 768 : index
    %604 = vector.load %arg9[%c0_360, %c768_361] : memref<48x1152xbf16, #tpu.memory_space<vmem>>, vector<48x128xbf16>
    tpu.vector_store %arg9[%c0_360, %c768_361], %603 {strides = array<i32>} : memref<48x1152xbf16, #tpu.memory_space<vmem>>, vector<48x128xbf16>,
    %c14_i32_362 = arith.constant 14 : i32
    %605 = arith.addi %569, %c14_i32_362 : i32
    %606 = arith.index_cast %605 : i32 to index
    %c0_363 = arith.constant 0 : index
    %607 = vector.load %arg7[%606, %c0_363] : memref<64x128xf32, #tpu.memory_space<vmem>>, vector<48x128xf32>
    %608 = arith.truncf %607 : vector<48x128xf32> to vector<48x128xbf16>
    %c0_364 = arith.constant 0 : index
    %c896_365 = arith.constant 896 : index
    %609 = vector.load %arg9[%c0_364, %c896_365] : memref<48x1152xbf16, #tpu.memory_space<vmem>>, vector<48x128xbf16>
    tpu.vector_store %arg9[%c0_364, %c896_365], %608 {strides = array<i32>} : memref<48x1152xbf16, #tpu.memory_space<vmem>>, vector<48x128xbf16>,
    %c15_i32_366 = arith.constant 15 : i32
    %610 = arith.addi %569, %c15_i32_366 : i32
    %611 = arith.index_cast %610 : i32 to index
    %c0_367 = arith.constant 0 : index
    %612 = vector.load %arg7[%611, %c0_367] : memref<64x128xf32, #tpu.memory_space<vmem>>, vector<48x128xf32>
    %613 = arith.truncf %612 : vector<48x128xf32> to vector<48x128xbf16>
    %c0_368 = arith.constant 0 : index
    %c1024_369 = arith.constant 1024 : index
    %614 = vector.load %arg9[%c0_368, %c1024_369] : memref<48x1152xbf16, #tpu.memory_space<vmem>>, vector<48x128xbf16>
    tpu.vector_store %arg9[%c0_368, %c1024_369], %613 {strides = array<i32>} : memref<48x1152xbf16, #tpu.memory_space<vmem>>, vector<48x128xbf16>,
    %c0_370 = arith.constant 0 : index
    %c0_371 = arith.constant 0 : index
    %615 = vector.load %arg9[%c0_370, %c0_371] : memref<48x1152xbf16, #tpu.memory_space<vmem>>, vector<48x1152xbf16>
    %c5_372 = arith.constant 5 : index
    %c0_373 = arith.constant 0 : index
    %c0_374 = arith.constant 0 : index
    %616 = vector.load %arg3[%c5_372, %c0_373, %c0_374] : memref<8x1152x128xbf16, #tpu.memory_space<vmem>>, vector<1x1152x128xbf16>
    %617 = vector.shape_cast %616 : vector<1x1152x128xbf16> to vector<1152x128xbf16>
    %cst_375 = arith.constant dense<0.000000e+00> : vector<48x128xf32>
    %618 = tpu.matmul %615, %617, %cst_375 {dimension_numbers = #tpu.dot_dimension_numbers<[1], [0], [0], [1], [0, 0, 1, 1], [], []>} : vector<48x1152xbf16>, vector<1152x128xbf16>, vector<48x128xf32> -> vector<48x128xf32>
    %619 = vector.broadcast %567 : vector<1x128xf32> to vector<48x128xf32>
    %620 = arith.addf %618, %619 : vector<48x128xf32>
    %cst_376 = arith.constant 0.000000e+00 : f32
    %621 = vector.broadcast %cst_376 : f32 to vector<48x128xf32>
    %622 = arith.maximumf %620, %621 : vector<48x128xf32>
    %c8_i32_377 = arith.constant 8 : i32
    %623 = arith.addi %c8_i32_377, %569 : i32
    %624 = tpu.iota {dimensions = array<i32: 0>} : vector<48x1xi32>
    %625 = arith.sitofp %624 : vector<48x1xi32> to vector<48x1xf32>
    %cst_378 = arith.constant 0.166666672 : f32
    %626 = vector.broadcast %cst_378 : f32 to vector<48x1xf32>
    %627 = arith.mulf %625, %626 : vector<48x1xf32>
    %628 = arith.fptosi %627 : vector<48x1xf32> to vector<48x1xi32>
    %c6_i32_379 = arith.constant 6 : i32
    %629 = vector.broadcast %c6_i32_379 : i32 to vector<48x1xi32>
    %630 = arith.muli %628, %629 : vector<48x1xi32>
    %631 = arith.subi %624, %630 : vector<48x1xi32>
    %c0_i32_380 = arith.constant 0 : i32
    %632 = vector.broadcast %c0_i32_380 : i32 to vector<48x1xi32>
    %633 = arith.cmpi slt, %631, %632 : vector<48x1xi32>
    %c1_i32_381 = arith.constant 1 : i32
    %634 = vector.broadcast %c1_i32_381 : i32 to vector<48x1xi32>
    %635 = arith.subi %628, %634 : vector<48x1xi32>
    %636 = arith.select %633, %635, %628 : vector<48x1xi1>, vector<48x1xi32>
    %c0_i32_382 = arith.constant 0 : i32
    %637 = vector.broadcast %c0_i32_382 : i32 to vector<48x1xi32>
    %638 = arith.cmpi slt, %631, %637 : vector<48x1xi32>
    %c6_i32_383 = arith.constant 6 : i32
    %639 = vector.broadcast %c6_i32_383 : i32 to vector<48x1xi32>
    %640 = arith.addi %631, %639 : vector<48x1xi32>
    %641 = arith.select %638, %640, %631 : vector<48x1xi1>, vector<48x1xi32>
    %c6_i32_384 = arith.constant 6 : i32
    %642 = vector.broadcast %c6_i32_384 : i32 to vector<48x1xi32>
    %643 = arith.cmpi sge, %641, %642 : vector<48x1xi32>
    %c1_i32_385 = arith.constant 1 : i32
    %644 = vector.broadcast %c1_i32_385 : i32 to vector<48x1xi32>
    %645 = arith.addi %636, %644 : vector<48x1xi32>
    %646 = arith.select %643, %645, %636 : vector<48x1xi1>, vector<48x1xi32>
    %c6_i32_386 = arith.constant 6 : i32
    %647 = vector.broadcast %c6_i32_386 : i32 to vector<48x1xi32>
    %648 = arith.cmpi sge, %641, %647 : vector<48x1xi32>
    %c6_i32_387 = arith.constant 6 : i32
    %649 = vector.broadcast %c6_i32_387 : i32 to vector<48x1xi32>
    %650 = arith.subi %641, %649 : vector<48x1xi32>
    %651 = arith.select %648, %650, %641 : vector<48x1xi1>, vector<48x1xi32>
    %c8_i32_388 = arith.constant 8 : i32
    %652 = arith.muli %c0_i32_332, %c8_i32_388 : i32
    %653 = vector.broadcast %652 : i32 to vector<48x1xi32>
    %654 = arith.addi %646, %653 : vector<48x1xi32>
    %c1_i32_389 = arith.constant 1 : i32
    %655 = vector.broadcast %c1_i32_389 : i32 to vector<48x1xi32>
    %656 = arith.cmpi sge, %654, %655 : vector<48x1xi32>
    %c4_i32_390 = arith.constant 4 : i32
    %657 = vector.broadcast %c4_i32_390 : i32 to vector<48x1xi32>
    %658 = arith.cmpi sle, %654, %657 : vector<48x1xi32>
    %659 = arith.andi %656, %658 : vector<48x1xi1>
    %c1_i32_391 = arith.constant 1 : i32
    %660 = vector.broadcast %c1_i32_391 : i32 to vector<48x1xi32>
    %661 = arith.cmpi sge, %651, %660 : vector<48x1xi32>
    %662 = arith.andi %659, %661 : vector<48x1xi1>
    %c4_i32_392 = arith.constant 4 : i32
    %663 = vector.broadcast %c4_i32_392 : i32 to vector<48x1xi32>
    %664 = arith.cmpi sle, %651, %663 : vector<48x1xi32>
    %665 = arith.andi %662, %664 : vector<48x1xi1>
    %cst_393 = arith.constant 0.000000e+00 : f32
    %666 = vector.shape_cast %665 : vector<48x1xi1> to vector<48x1xi1>
    %667 = vector.broadcast %666 : vector<48x1xi1> to vector<48x128xi1>
    %668 = vector.broadcast %cst_393 : f32 to vector<48x128xf32>
    %669 = arith.select %667, %622, %668 : vector<48x128xi1>, vector<48x128xf32>
    %670 = arith.index_cast %623 : i32 to index
    %c0_394 = arith.constant 0 : index
    %671 = vector.load %arg8[%670, %c0_394] : memref<64x128xf32, #tpu.memory_space<vmem>>, vector<48x128xf32>
    tpu.vector_store %arg8[%670, %c0_394], %669 {strides = array<i32>} : memref<64x128xf32, #tpu.memory_space<vmem>>, vector<48x128xf32>,
    %c1_i32_395 = arith.constant 1 : i32
    %c6 = arith.constant 6 : index
    %c0_396 = arith.constant 0 : index
    %c0_397 = arith.constant 0 : index
    %672 = vector.load %arg4[%c6, %c0_396, %c0_397] : memref<8x1x128xf32, #tpu.memory_space<vmem>>, vector<1x1x128xf32>
    %673 = vector.shape_cast %672 : vector<1x1x128xf32> to vector<1x128xf32>
    %c0_i32_398 = arith.constant 0 : i32
    %c48_i32_399 = arith.constant 48 : i32
    %674 = arith.muli %c0_i32_398, %c48_i32_399 : i32
    %675 = tpu.assume_multiple %674, 8 : i32
    %c1_i32_400 = arith.constant 1 : i32
    %676 = arith.addi %675, %c1_i32_400 : i32
    %677 = arith.index_cast %676 : i32 to index
    %c0_401 = arith.constant 0 : index
    %678 = vector.load %arg8[%677, %c0_401] : memref<64x128xf32, #tpu.memory_space<vmem>>, vector<48x128xf32>
    %679 = arith.truncf %678 : vector<48x128xf32> to vector<48x128xbf16>
    %c0_402 = arith.constant 0 : index
    %c0_403 = arith.constant 0 : index
    %680 = vector.load %arg9[%c0_402, %c0_403] : memref<48x1152xbf16, #tpu.memory_space<vmem>>, vector<48x128xbf16>
    tpu.vector_store %arg9[%c0_402, %c0_403], %679 {strides = array<i32>} : memref<48x1152xbf16, #tpu.memory_space<vmem>>, vector<48x128xbf16>,
    %c2_i32_404 = arith.constant 2 : i32
    %681 = arith.addi %675, %c2_i32_404 : i32
    %682 = arith.index_cast %681 : i32 to index
    %c0_405 = arith.constant 0 : index
    %683 = vector.load %arg8[%682, %c0_405] : memref<64x128xf32, #tpu.memory_space<vmem>>, vector<48x128xf32>
    %684 = arith.truncf %683 : vector<48x128xf32> to vector<48x128xbf16>
    %c0_406 = arith.constant 0 : index
    %c128_407 = arith.constant 128 : index
    %685 = vector.load %arg9[%c0_406, %c128_407] : memref<48x1152xbf16, #tpu.memory_space<vmem>>, vector<48x128xbf16>
    tpu.vector_store %arg9[%c0_406, %c128_407], %684 {strides = array<i32>} : memref<48x1152xbf16, #tpu.memory_space<vmem>>, vector<48x128xbf16>,
    %c3_i32_408 = arith.constant 3 : i32
    %686 = arith.addi %675, %c3_i32_408 : i32
    %687 = arith.index_cast %686 : i32 to index
    %c0_409 = arith.constant 0 : index
    %688 = vector.load %arg8[%687, %c0_409] : memref<64x128xf32, #tpu.memory_space<vmem>>, vector<48x128xf32>
    %689 = arith.truncf %688 : vector<48x128xf32> to vector<48x128xbf16>
    %c0_410 = arith.constant 0 : index
    %c256_411 = arith.constant 256 : index
    %690 = vector.load %arg9[%c0_410, %c256_411] : memref<48x1152xbf16, #tpu.memory_space<vmem>>, vector<48x128xbf16>
    tpu.vector_store %arg9[%c0_410, %c256_411], %689 {strides = array<i32>} : memref<48x1152xbf16, #tpu.memory_space<vmem>>, vector<48x128xbf16>,
    %c7_i32_412 = arith.constant 7 : i32
    %691 = arith.addi %675, %c7_i32_412 : i32
    %692 = arith.index_cast %691 : i32 to index
    %c0_413 = arith.constant 0 : index
    %693 = vector.load %arg8[%692, %c0_413] : memref<64x128xf32, #tpu.memory_space<vmem>>, vector<48x128xf32>
    %694 = arith.truncf %693 : vector<48x128xf32> to vector<48x128xbf16>
    %c0_414 = arith.constant 0 : index
    %c384_415 = arith.constant 384 : index
    %695 = vector.load %arg9[%c0_414, %c384_415] : memref<48x1152xbf16, #tpu.memory_space<vmem>>, vector<48x128xbf16>
    tpu.vector_store %arg9[%c0_414, %c384_415], %694 {strides = array<i32>} : memref<48x1152xbf16, #tpu.memory_space<vmem>>, vector<48x128xbf16>,
    %c8_i32_416 = arith.constant 8 : i32
    %696 = arith.addi %675, %c8_i32_416 : i32
    %697 = arith.index_cast %696 : i32 to index
    %c0_417 = arith.constant 0 : index
    %698 = vector.load %arg8[%697, %c0_417] : memref<64x128xf32, #tpu.memory_space<vmem>>, vector<48x128xf32>
    %699 = arith.truncf %698 : vector<48x128xf32> to vector<48x128xbf16>
    %c0_418 = arith.constant 0 : index
    %c512_419 = arith.constant 512 : index
    %700 = vector.load %arg9[%c0_418, %c512_419] : memref<48x1152xbf16, #tpu.memory_space<vmem>>, vector<48x128xbf16>
    tpu.vector_store %arg9[%c0_418, %c512_419], %699 {strides = array<i32>} : memref<48x1152xbf16, #tpu.memory_space<vmem>>, vector<48x128xbf16>,
    %c9_i32_420 = arith.constant 9 : i32
    %701 = arith.addi %675, %c9_i32_420 : i32
    %702 = arith.index_cast %701 : i32 to index
    %c0_421 = arith.constant 0 : index
    %703 = vector.load %arg8[%702, %c0_421] : memref<64x128xf32, #tpu.memory_space<vmem>>, vector<48x128xf32>
    %704 = arith.truncf %703 : vector<48x128xf32> to vector<48x128xbf16>
    %c0_422 = arith.constant 0 : index
    %c640_423 = arith.constant 640 : index
    %705 = vector.load %arg9[%c0_422, %c640_423] : memref<48x1152xbf16, #tpu.memory_space<vmem>>, vector<48x128xbf16>
    tpu.vector_store %arg9[%c0_422, %c640_423], %704 {strides = array<i32>} : memref<48x1152xbf16, #tpu.memory_space<vmem>>, vector<48x128xbf16>,
    %c13_i32_424 = arith.constant 13 : i32
    %706 = arith.addi %675, %c13_i32_424 : i32
    %707 = arith.index_cast %706 : i32 to index
    %c0_425 = arith.constant 0 : index
    %708 = vector.load %arg8[%707, %c0_425] : memref<64x128xf32, #tpu.memory_space<vmem>>, vector<48x128xf32>
    %709 = arith.truncf %708 : vector<48x128xf32> to vector<48x128xbf16>
    %c0_426 = arith.constant 0 : index
    %c768_427 = arith.constant 768 : index
    %710 = vector.load %arg9[%c0_426, %c768_427] : memref<48x1152xbf16, #tpu.memory_space<vmem>>, vector<48x128xbf16>
    tpu.vector_store %arg9[%c0_426, %c768_427], %709 {strides = array<i32>} : memref<48x1152xbf16, #tpu.memory_space<vmem>>, vector<48x128xbf16>,
    %c14_i32_428 = arith.constant 14 : i32
    %711 = arith.addi %675, %c14_i32_428 : i32
    %712 = arith.index_cast %711 : i32 to index
    %c0_429 = arith.constant 0 : index
    %713 = vector.load %arg8[%712, %c0_429] : memref<64x128xf32, #tpu.memory_space<vmem>>, vector<48x128xf32>
    %714 = arith.truncf %713 : vector<48x128xf32> to vector<48x128xbf16>
    %c0_430 = arith.constant 0 : index
    %c896_431 = arith.constant 896 : index
    %715 = vector.load %arg9[%c0_430, %c896_431] : memref<48x1152xbf16, #tpu.memory_space<vmem>>, vector<48x128xbf16>
    tpu.vector_store %arg9[%c0_430, %c896_431], %714 {strides = array<i32>} : memref<48x1152xbf16, #tpu.memory_space<vmem>>, vector<48x128xbf16>,
    %c15_i32_432 = arith.constant 15 : i32
    %716 = arith.addi %675, %c15_i32_432 : i32
    %717 = arith.index_cast %716 : i32 to index
    %c0_433 = arith.constant 0 : index
    %718 = vector.load %arg8[%717, %c0_433] : memref<64x128xf32, #tpu.memory_space<vmem>>, vector<48x128xf32>
    %719 = arith.truncf %718 : vector<48x128xf32> to vector<48x128xbf16>
    %c0_434 = arith.constant 0 : index
    %c1024_435 = arith.constant 1024 : index
    %720 = vector.load %arg9[%c0_434, %c1024_435] : memref<48x1152xbf16, #tpu.memory_space<vmem>>, vector<48x128xbf16>
    tpu.vector_store %arg9[%c0_434, %c1024_435], %719 {strides = array<i32>} : memref<48x1152xbf16, #tpu.memory_space<vmem>>, vector<48x128xbf16>,
    %c0_436 = arith.constant 0 : index
    %c0_437 = arith.constant 0 : index
    %721 = vector.load %arg9[%c0_436, %c0_437] : memref<48x1152xbf16, #tpu.memory_space<vmem>>, vector<48x1152xbf16>
    %c6_438 = arith.constant 6 : index
    %c0_439 = arith.constant 0 : index
    %c0_440 = arith.constant 0 : index
    %722 = vector.load %arg3[%c6_438, %c0_439, %c0_440] : memref<8x1152x128xbf16, #tpu.memory_space<vmem>>, vector<1x1152x128xbf16>
    %723 = vector.shape_cast %722 : vector<1x1152x128xbf16> to vector<1152x128xbf16>
    %cst_441 = arith.constant dense<0.000000e+00> : vector<48x128xf32>
    %724 = tpu.matmul %721, %723, %cst_441 {dimension_numbers = #tpu.dot_dimension_numbers<[1], [0], [0], [1], [0, 0, 1, 1], [], []>} : vector<48x1152xbf16>, vector<1152x128xbf16>, vector<48x128xf32> -> vector<48x128xf32>
    %725 = vector.broadcast %673 : vector<1x128xf32> to vector<48x128xf32>
    %726 = arith.addf %724, %725 : vector<48x128xf32>
    %c8_i32_442 = arith.constant 8 : i32
    %727 = arith.addi %c8_i32_442, %675 : i32
    %728 = arith.index_cast %727 : i32 to index
    %c0_443 = arith.constant 0 : index
    %729 = vector.load %arg6[%728, %c0_443] : memref<64x128xf32, #tpu.memory_space<vmem>>, vector<48x128xf32>
    %730 = arith.addf %726, %729 : vector<48x128xf32>
    %731 = tpu.iota {dimensions = array<i32: 0>} : vector<48x1xi32>
    %732 = arith.sitofp %731 : vector<48x1xi32> to vector<48x1xf32>
    %cst_444 = arith.constant 0.166666672 : f32
    %733 = vector.broadcast %cst_444 : f32 to vector<48x1xf32>
    %734 = arith.mulf %732, %733 : vector<48x1xf32>
    %735 = arith.fptosi %734 : vector<48x1xf32> to vector<48x1xi32>
    %c6_i32_445 = arith.constant 6 : i32
    %736 = vector.broadcast %c6_i32_445 : i32 to vector<48x1xi32>
    %737 = arith.muli %735, %736 : vector<48x1xi32>
    %738 = arith.subi %731, %737 : vector<48x1xi32>
    %c0_i32_446 = arith.constant 0 : i32
    %739 = vector.broadcast %c0_i32_446 : i32 to vector<48x1xi32>
    %740 = arith.cmpi slt, %738, %739 : vector<48x1xi32>
    %c1_i32_447 = arith.constant 1 : i32
    %741 = vector.broadcast %c1_i32_447 : i32 to vector<48x1xi32>
    %742 = arith.subi %735, %741 : vector<48x1xi32>
    %743 = arith.select %740, %742, %735 : vector<48x1xi1>, vector<48x1xi32>
    %c0_i32_448 = arith.constant 0 : i32
    %744 = vector.broadcast %c0_i32_448 : i32 to vector<48x1xi32>
    %745 = arith.cmpi slt, %738, %744 : vector<48x1xi32>
    %c6_i32_449 = arith.constant 6 : i32
    %746 = vector.broadcast %c6_i32_449 : i32 to vector<48x1xi32>
    %747 = arith.addi %738, %746 : vector<48x1xi32>
    %748 = arith.select %745, %747, %738 : vector<48x1xi1>, vector<48x1xi32>
    %c6_i32_450 = arith.constant 6 : i32
    %749 = vector.broadcast %c6_i32_450 : i32 to vector<48x1xi32>
    %750 = arith.cmpi sge, %748, %749 : vector<48x1xi32>
    %c1_i32_451 = arith.constant 1 : i32
    %751 = vector.broadcast %c1_i32_451 : i32 to vector<48x1xi32>
    %752 = arith.addi %743, %751 : vector<48x1xi32>
    %753 = arith.select %750, %752, %743 : vector<48x1xi1>, vector<48x1xi32>
    %c6_i32_452 = arith.constant 6 : i32
    %754 = vector.broadcast %c6_i32_452 : i32 to vector<48x1xi32>
    %755 = arith.cmpi sge, %748, %754 : vector<48x1xi32>
    %c6_i32_453 = arith.constant 6 : i32
    %756 = vector.broadcast %c6_i32_453 : i32 to vector<48x1xi32>
    %757 = arith.subi %748, %756 : vector<48x1xi32>
    %758 = arith.select %755, %757, %748 : vector<48x1xi1>, vector<48x1xi32>
    %c8_i32_454 = arith.constant 8 : i32
    %759 = arith.muli %c0_i32_398, %c8_i32_454 : i32
    %760 = vector.broadcast %759 : i32 to vector<48x1xi32>
    %761 = arith.addi %753, %760 : vector<48x1xi32>
    %c1_i32_455 = arith.constant 1 : i32
    %762 = vector.broadcast %c1_i32_455 : i32 to vector<48x1xi32>
    %763 = arith.cmpi sge, %761, %762 : vector<48x1xi32>
    %c4_i32_456 = arith.constant 4 : i32
    %764 = vector.broadcast %c4_i32_456 : i32 to vector<48x1xi32>
    %765 = arith.cmpi sle, %761, %764 : vector<48x1xi32>
    %766 = arith.andi %763, %765 : vector<48x1xi1>
    %c1_i32_457 = arith.constant 1 : i32
    %767 = vector.broadcast %c1_i32_457 : i32 to vector<48x1xi32>
    %768 = arith.cmpi sge, %758, %767 : vector<48x1xi32>
    %769 = arith.andi %766, %768 : vector<48x1xi1>
    %c4_i32_458 = arith.constant 4 : i32
    %770 = vector.broadcast %c4_i32_458 : i32 to vector<48x1xi32>
    %771 = arith.cmpi sle, %758, %770 : vector<48x1xi32>
    %772 = arith.andi %769, %771 : vector<48x1xi1>
    %cst_459 = arith.constant 0.000000e+00 : f32
    %773 = vector.shape_cast %772 : vector<48x1xi1> to vector<48x1xi1>
    %774 = vector.broadcast %773 : vector<48x1xi1> to vector<48x128xi1>
    %775 = vector.broadcast %cst_459 : f32 to vector<48x128xf32>
    %776 = arith.select %774, %730, %775 : vector<48x128xi1>, vector<48x128xf32>
    %777 = arith.index_cast %727 : i32 to index
    %c0_460 = arith.constant 0 : index
    %778 = vector.load %arg6[%777, %c0_460] : memref<64x128xf32, #tpu.memory_space<vmem>>, vector<48x128xf32>
    tpu.vector_store %arg6[%777, %c0_460], %776 {strides = array<i32>} : memref<64x128xf32, #tpu.memory_space<vmem>>, vector<48x128xf32>,
    %779 = vector.broadcast %1 : vector<1x128xf32> to vector<48x128xf32>
    %780 = arith.addf %730, %779 : vector<48x128xf32>
    %cst_461 = arith.constant 0.000000e+00 : f32
    %781 = vector.shape_cast %772 : vector<48x1xi1> to vector<48x1xi1>
    %782 = vector.broadcast %781 : vector<48x1xi1> to vector<48x128xi1>
    %783 = vector.broadcast %cst_461 : f32 to vector<48x128xf32>
    %784 = arith.select %782, %780, %783 : vector<48x128xi1>, vector<48x128xf32>
    %785 = arith.index_cast %727 : i32 to index
    %c0_462 = arith.constant 0 : index
    %786 = vector.load %arg7[%785, %c0_462] : memref<64x128xf32, #tpu.memory_space<vmem>>, vector<48x128xf32>
    tpu.vector_store %arg7[%785, %c0_462], %784 {strides = array<i32>} : memref<64x128xf32, #tpu.memory_space<vmem>>, vector<48x128xf32>,
    %c1_i32_463 = arith.constant 1 : i32
    %c7 = arith.constant 7 : index
    %c0_464 = arith.constant 0 : index
    %c0_465 = arith.constant 0 : index
    %787 = vector.load %arg4[%c7, %c0_464, %c0_465] : memref<8x1x128xf32, #tpu.memory_space<vmem>>, vector<1x1x128xf32>
    %788 = vector.shape_cast %787 : vector<1x1x128xf32> to vector<1x128xf32>
    %c0_i32_466 = arith.constant 0 : i32
    %c48_i32_467 = arith.constant 48 : i32
    %789 = arith.muli %c0_i32_466, %c48_i32_467 : i32
    %790 = tpu.assume_multiple %789, 8 : i32
    %c1_i32_468 = arith.constant 1 : i32
    %791 = arith.addi %790, %c1_i32_468 : i32
    %792 = arith.index_cast %791 : i32 to index
    %c0_469 = arith.constant 0 : index
    %793 = vector.load %arg6[%792, %c0_469] : memref<64x128xf32, #tpu.memory_space<vmem>>, vector<48x128xf32>
    %794 = arith.truncf %793 : vector<48x128xf32> to vector<48x128xbf16>
    %c0_470 = arith.constant 0 : index
    %c0_471 = arith.constant 0 : index
    %795 = vector.load %arg9[%c0_470, %c0_471] : memref<48x1152xbf16, #tpu.memory_space<vmem>>, vector<48x128xbf16>
    tpu.vector_store %arg9[%c0_470, %c0_471], %794 {strides = array<i32>} : memref<48x1152xbf16, #tpu.memory_space<vmem>>, vector<48x128xbf16>,
    %c2_i32_472 = arith.constant 2 : i32
    %796 = arith.addi %790, %c2_i32_472 : i32
    %797 = arith.index_cast %796 : i32 to index
    %c0_473 = arith.constant 0 : index
    %798 = vector.load %arg6[%797, %c0_473] : memref<64x128xf32, #tpu.memory_space<vmem>>, vector<48x128xf32>
    %799 = arith.truncf %798 : vector<48x128xf32> to vector<48x128xbf16>
    %c0_474 = arith.constant 0 : index
    %c128_475 = arith.constant 128 : index
    %800 = vector.load %arg9[%c0_474, %c128_475] : memref<48x1152xbf16, #tpu.memory_space<vmem>>, vector<48x128xbf16>
    tpu.vector_store %arg9[%c0_474, %c128_475], %799 {strides = array<i32>} : memref<48x1152xbf16, #tpu.memory_space<vmem>>, vector<48x128xbf16>,
    %c3_i32_476 = arith.constant 3 : i32
    %801 = arith.addi %790, %c3_i32_476 : i32
    %802 = arith.index_cast %801 : i32 to index
    %c0_477 = arith.constant 0 : index
    %803 = vector.load %arg6[%802, %c0_477] : memref<64x128xf32, #tpu.memory_space<vmem>>, vector<48x128xf32>
    %804 = arith.truncf %803 : vector<48x128xf32> to vector<48x128xbf16>
    %c0_478 = arith.constant 0 : index
    %c256_479 = arith.constant 256 : index
    %805 = vector.load %arg9[%c0_478, %c256_479] : memref<48x1152xbf16, #tpu.memory_space<vmem>>, vector<48x128xbf16>
    tpu.vector_store %arg9[%c0_478, %c256_479], %804 {strides = array<i32>} : memref<48x1152xbf16, #tpu.memory_space<vmem>>, vector<48x128xbf16>,
    %c7_i32_480 = arith.constant 7 : i32
    %806 = arith.addi %790, %c7_i32_480 : i32
    %807 = arith.index_cast %806 : i32 to index
    %c0_481 = arith.constant 0 : index
    %808 = vector.load %arg6[%807, %c0_481] : memref<64x128xf32, #tpu.memory_space<vmem>>, vector<48x128xf32>
    %809 = arith.truncf %808 : vector<48x128xf32> to vector<48x128xbf16>
    %c0_482 = arith.constant 0 : index
    %c384_483 = arith.constant 384 : index
    %810 = vector.load %arg9[%c0_482, %c384_483] : memref<48x1152xbf16, #tpu.memory_space<vmem>>, vector<48x128xbf16>
    tpu.vector_store %arg9[%c0_482, %c384_483], %809 {strides = array<i32>} : memref<48x1152xbf16, #tpu.memory_space<vmem>>, vector<48x128xbf16>,
    %c8_i32_484 = arith.constant 8 : i32
    %811 = arith.addi %790, %c8_i32_484 : i32
    %812 = arith.index_cast %811 : i32 to index
    %c0_485 = arith.constant 0 : index
    %813 = vector.load %arg6[%812, %c0_485] : memref<64x128xf32, #tpu.memory_space<vmem>>, vector<48x128xf32>
    %814 = arith.truncf %813 : vector<48x128xf32> to vector<48x128xbf16>
    %c0_486 = arith.constant 0 : index
    %c512_487 = arith.constant 512 : index
    %815 = vector.load %arg9[%c0_486, %c512_487] : memref<48x1152xbf16, #tpu.memory_space<vmem>>, vector<48x128xbf16>
    tpu.vector_store %arg9[%c0_486, %c512_487], %814 {strides = array<i32>} : memref<48x1152xbf16, #tpu.memory_space<vmem>>, vector<48x128xbf16>,
    %c9_i32_488 = arith.constant 9 : i32
    %816 = arith.addi %790, %c9_i32_488 : i32
    %817 = arith.index_cast %816 : i32 to index
    %c0_489 = arith.constant 0 : index
    %818 = vector.load %arg6[%817, %c0_489] : memref<64x128xf32, #tpu.memory_space<vmem>>, vector<48x128xf32>
    %819 = arith.truncf %818 : vector<48x128xf32> to vector<48x128xbf16>
    %c0_490 = arith.constant 0 : index
    %c640_491 = arith.constant 640 : index
    %820 = vector.load %arg9[%c0_490, %c640_491] : memref<48x1152xbf16, #tpu.memory_space<vmem>>, vector<48x128xbf16>
    tpu.vector_store %arg9[%c0_490, %c640_491], %819 {strides = array<i32>} : memref<48x1152xbf16, #tpu.memory_space<vmem>>, vector<48x128xbf16>,
    %c13_i32_492 = arith.constant 13 : i32
    %821 = arith.addi %790, %c13_i32_492 : i32
    %822 = arith.index_cast %821 : i32 to index
    %c0_493 = arith.constant 0 : index
    %823 = vector.load %arg6[%822, %c0_493] : memref<64x128xf32, #tpu.memory_space<vmem>>, vector<48x128xf32>
    %824 = arith.truncf %823 : vector<48x128xf32> to vector<48x128xbf16>
    %c0_494 = arith.constant 0 : index
    %c768_495 = arith.constant 768 : index
    %825 = vector.load %arg9[%c0_494, %c768_495] : memref<48x1152xbf16, #tpu.memory_space<vmem>>, vector<48x128xbf16>
    tpu.vector_store %arg9[%c0_494, %c768_495], %824 {strides = array<i32>} : memref<48x1152xbf16, #tpu.memory_space<vmem>>, vector<48x128xbf16>,
    %c14_i32_496 = arith.constant 14 : i32
    %826 = arith.addi %790, %c14_i32_496 : i32
    %827 = arith.index_cast %826 : i32 to index
    %c0_497 = arith.constant 0 : index
    %828 = vector.load %arg6[%827, %c0_497] : memref<64x128xf32, #tpu.memory_space<vmem>>, vector<48x128xf32>
    %829 = arith.truncf %828 : vector<48x128xf32> to vector<48x128xbf16>
    %c0_498 = arith.constant 0 : index
    %c896_499 = arith.constant 896 : index
    %830 = vector.load %arg9[%c0_498, %c896_499] : memref<48x1152xbf16, #tpu.memory_space<vmem>>, vector<48x128xbf16>
    tpu.vector_store %arg9[%c0_498, %c896_499], %829 {strides = array<i32>} : memref<48x1152xbf16, #tpu.memory_space<vmem>>, vector<48x128xbf16>,
    %c15_i32_500 = arith.constant 15 : i32
    %831 = arith.addi %790, %c15_i32_500 : i32
    %832 = arith.index_cast %831 : i32 to index
    %c0_501 = arith.constant 0 : index
    %833 = vector.load %arg6[%832, %c0_501] : memref<64x128xf32, #tpu.memory_space<vmem>>, vector<48x128xf32>
    %834 = arith.truncf %833 : vector<48x128xf32> to vector<48x128xbf16>
    %c0_502 = arith.constant 0 : index
    %c1024_503 = arith.constant 1024 : index
    %835 = vector.load %arg9[%c0_502, %c1024_503] : memref<48x1152xbf16, #tpu.memory_space<vmem>>, vector<48x128xbf16>
    tpu.vector_store %arg9[%c0_502, %c1024_503], %834 {strides = array<i32>} : memref<48x1152xbf16, #tpu.memory_space<vmem>>, vector<48x128xbf16>,
    %c0_504 = arith.constant 0 : index
    %c0_505 = arith.constant 0 : index
    %836 = vector.load %arg9[%c0_504, %c0_505] : memref<48x1152xbf16, #tpu.memory_space<vmem>>, vector<48x1152xbf16>
    %c7_506 = arith.constant 7 : index
    %c0_507 = arith.constant 0 : index
    %c0_508 = arith.constant 0 : index
    %837 = vector.load %arg3[%c7_506, %c0_507, %c0_508] : memref<8x1152x128xbf16, #tpu.memory_space<vmem>>, vector<1x1152x128xbf16>
    %838 = vector.shape_cast %837 : vector<1x1152x128xbf16> to vector<1152x128xbf16>
    %cst_509 = arith.constant dense<0.000000e+00> : vector<48x128xf32>
    %839 = tpu.matmul %836, %838, %cst_509 {dimension_numbers = #tpu.dot_dimension_numbers<[1], [0], [0], [1], [0, 0, 1, 1], [], []>} : vector<48x1152xbf16>, vector<1152x128xbf16>, vector<48x128xf32> -> vector<48x128xf32>
    %840 = vector.broadcast %788 : vector<1x128xf32> to vector<48x128xf32>
    %841 = arith.addf %839, %840 : vector<48x128xf32>
    %c8_i32_510 = arith.constant 8 : i32
    %842 = arith.addi %c8_i32_510, %790 : i32
    %843 = tpu.iota {dimensions = array<i32: 0>} : vector<48x1xi32>
    %844 = arith.sitofp %843 : vector<48x1xi32> to vector<48x1xf32>
    %cst_511 = arith.constant 0.166666672 : f32
    %845 = vector.broadcast %cst_511 : f32 to vector<48x1xf32>
    %846 = arith.mulf %844, %845 : vector<48x1xf32>
    %847 = arith.fptosi %846 : vector<48x1xf32> to vector<48x1xi32>
    %c6_i32_512 = arith.constant 6 : i32
    %848 = vector.broadcast %c6_i32_512 : i32 to vector<48x1xi32>
    %849 = arith.muli %847, %848 : vector<48x1xi32>
    %850 = arith.subi %843, %849 : vector<48x1xi32>
    %c0_i32_513 = arith.constant 0 : i32
    %851 = vector.broadcast %c0_i32_513 : i32 to vector<48x1xi32>
    %852 = arith.cmpi slt, %850, %851 : vector<48x1xi32>
    %c1_i32_514 = arith.constant 1 : i32
    %853 = vector.broadcast %c1_i32_514 : i32 to vector<48x1xi32>
    %854 = arith.subi %847, %853 : vector<48x1xi32>
    %855 = arith.select %852, %854, %847 : vector<48x1xi1>, vector<48x1xi32>
    %c0_i32_515 = arith.constant 0 : i32
    %856 = vector.broadcast %c0_i32_515 : i32 to vector<48x1xi32>
    %857 = arith.cmpi slt, %850, %856 : vector<48x1xi32>
    %c6_i32_516 = arith.constant 6 : i32
    %858 = vector.broadcast %c6_i32_516 : i32 to vector<48x1xi32>
    %859 = arith.addi %850, %858 : vector<48x1xi32>
    %860 = arith.select %857, %859, %850 : vector<48x1xi1>, vector<48x1xi32>
    %c6_i32_517 = arith.constant 6 : i32
    %861 = vector.broadcast %c6_i32_517 : i32 to vector<48x1xi32>
    %862 = arith.cmpi sge, %860, %861 : vector<48x1xi32>
    %c1_i32_518 = arith.constant 1 : i32
    %863 = vector.broadcast %c1_i32_518 : i32 to vector<48x1xi32>
    %864 = arith.addi %855, %863 : vector<48x1xi32>
    %865 = arith.select %862, %864, %855 : vector<48x1xi1>, vector<48x1xi32>
    %c6_i32_519 = arith.constant 6 : i32
    %866 = vector.broadcast %c6_i32_519 : i32 to vector<48x1xi32>
    %867 = arith.cmpi sge, %860, %866 : vector<48x1xi32>
    %c6_i32_520 = arith.constant 6 : i32
    %868 = vector.broadcast %c6_i32_520 : i32 to vector<48x1xi32>
    %869 = arith.subi %860, %868 : vector<48x1xi32>
    %870 = arith.select %867, %869, %860 : vector<48x1xi1>, vector<48x1xi32>
    %c8_i32_521 = arith.constant 8 : i32
    %871 = arith.muli %c0_i32_466, %c8_i32_521 : i32
    %872 = vector.broadcast %871 : i32 to vector<48x1xi32>
    %873 = arith.addi %865, %872 : vector<48x1xi32>
    %c1_i32_522 = arith.constant 1 : i32
    %874 = vector.broadcast %c1_i32_522 : i32 to vector<48x1xi32>
    %875 = arith.cmpi sge, %873, %874 : vector<48x1xi32>
    %c4_i32_523 = arith.constant 4 : i32
    %876 = vector.broadcast %c4_i32_523 : i32 to vector<48x1xi32>
    %877 = arith.cmpi sle, %873, %876 : vector<48x1xi32>
    %878 = arith.andi %875, %877 : vector<48x1xi1>
    %c1_i32_524 = arith.constant 1 : i32
    %879 = vector.broadcast %c1_i32_524 : i32 to vector<48x1xi32>
    %880 = arith.cmpi sge, %870, %879 : vector<48x1xi32>
    %881 = arith.andi %878, %880 : vector<48x1xi1>
    %c4_i32_525 = arith.constant 4 : i32
    %882 = vector.broadcast %c4_i32_525 : i32 to vector<48x1xi32>
    %883 = arith.cmpi sle, %870, %882 : vector<48x1xi32>
    %884 = arith.andi %881, %883 : vector<48x1xi1>
    %cst_526 = arith.constant 0.000000e+00 : f32
    %885 = vector.shape_cast %884 : vector<48x1xi1> to vector<48x1xi1>
    %886 = vector.broadcast %885 : vector<48x1xi1> to vector<48x128xi1>
    %887 = vector.broadcast %cst_526 : f32 to vector<48x128xf32>
    %888 = arith.select %886, %841, %887 : vector<48x128xi1>, vector<48x128xf32>
    %889 = arith.index_cast %842 : i32 to index
    %c0_527 = arith.constant 0 : index
    %890 = vector.load %arg8[%889, %c0_527] : memref<64x128xf32, #tpu.memory_space<vmem>>, vector<48x128xf32>
    tpu.vector_store %arg8[%889, %c0_527], %888 {strides = array<i32>} : memref<64x128xf32, #tpu.memory_space<vmem>>, vector<48x128xf32>,
    %c1_i32_528 = arith.constant 1 : i32
    %c0_529 = arith.constant 0 : index
    %c0_530 = arith.constant 0 : index
    %891 = vector.load %arg8[%c0_529, %c0_530] : memref<64x128xf32, #tpu.memory_space<vmem>>, vector<64x128xf32>
    %892 = arith.truncf %891 : vector<64x128xf32> to vector<64x128xbf16>
    %c0_531 = arith.constant 0 : index
    %c0_532 = arith.constant 0 : index
    %c0_533 = arith.constant 0 : index
    %893 = vector.load %arg5[%c0_531, %c0_532, %c0_533] : memref<1x64x128xbf16, #tpu.memory_space<vmem>>, vector<1x64x128xbf16>
    %894 = vector.shape_cast %893 : vector<1x64x128xbf16> to vector<64x128xbf16>
    %895 = vector.shape_cast %892 : vector<64x128xbf16> to vector<1x64x128xbf16>
    tpu.vector_store %arg5[%c0_531, %c0_532, %c0_533], %895 {strides = array<i32>} : memref<1x64x128xbf16, #tpu.memory_space<vmem>>, vector<1x64x128xbf16>,
    return
  }
  func.func @transform_0(%arg0: i32) -> (i32, i32, i32) {
    %c0_i32 = arith.constant 0 : i32
    %c0_i32_0 = arith.constant 0 : i32
    %c0_i32_1 = arith.constant 0 : i32
    return %arg0, %c0_i32, %c0_i32_0 : i32, i32, i32
  }
  func.func @transform_1(%arg0: i32) -> (i32, i32, i32) {
    %c0_i32 = arith.constant 0 : i32
    %c0_i32_0 = arith.constant 0 : i32
    %c0_i32_1 = arith.constant 0 : i32
    return %arg0, %c0_i32, %c0_i32_0 : i32, i32, i32
  }
  func.func @transform_2(%arg0: i32) -> (i32, i32, i32) {
    %c0_i32 = arith.constant 0 : i32
    %c0_i32_0 = arith.constant 0 : i32
    %c0_i32_1 = arith.constant 0 : i32
    %c0_i32_2 = arith.constant 0 : i32
    return %c0_i32, %c0_i32_0, %c0_i32_1 : i32, i32, i32
  }
  func.func @transform_3(%arg0: i32) -> (i32, i32, i32) {
    %c0_i32 = arith.constant 0 : i32
    %c0_i32_0 = arith.constant 0 : i32
    %c0_i32_1 = arith.constant 0 : i32
    %c0_i32_2 = arith.constant 0 : i32
    return %c0_i32, %c0_i32_0, %c0_i32_1 : i32, i32, i32
  }
  func.func @transform_4(%arg0: i32) -> (i32, i32, i32) {
    %c0_i32 = arith.constant 0 : i32
    %c0_i32_0 = arith.constant 0 : i32
    %c0_i32_1 = arith.constant 0 : i32
    return %arg0, %c0_i32, %c0_i32_0 : i32, i32, i32
  }
}

</mosaic_0001>

<bundles_post_ra>
// kernel: adapter_forward.1
= control target key start
LH: loop header
LB: loop body
LE: loop exit
PB: predicated region body
PF: predicated region fallthrough
CT: control target
= control target key end

     0   :  { %9 = vsyncpa [#allocation7], 0  ;;  %s15391_s0 = inlined_call_operand.vmem [shape: bf16[2,64,128], index: 0, kind: input, shape index: {}]   ;;  %s15392_s1 = inlined_call_operand.vmem [shape: f32[2,1,128], index: 1, kind: input, shape index: {}]   ;;  %s15393_s2 = inlined_call_operand.hbm [shape: bf16[8,1152,128], index: 2, kind: input, shape index: {}]   ;;  %s15394_s3 = inlined_call_operand.hbm [shape: f32[8,1,128], index: 3, kind: input, shape index: {}]   ;;  %s15395_s4 = inlined_call_operand.vmem [shape: bf16[2,64,128], index: 4, kind: output, shape index: {}]  }
   0x1   :  { %10 = vsyncpa [#allocation9], 0  ;;  %s14063_s15 = smov 0  }
   0x2 LB: > { %s152_s18 = sshll.u32 %s15393_s2, 4  ;;  %s14072_s19 = sadd.s32 4294967295, %s14029_s15   ;;  %s14029_s15 = sphi %s14063_s15, %s16_s15   ;;  %s153_s18 = int_to_ptr.hbm [resolvable:$true] %s152_s18 }
   0x3   : > { %p9848_p0 = scmp.ge.s32.totalorder %s14029_s15, 1  ;;  %p141_p1 = scmp.lt.s32.totalorder %s14029_s15, 3 }
   0x4   : > { %p13922_p2 = scmp.eq.s32.totalorder %s14072_s19, 0  ;;  %s14031_s21 = smov [#allocation6]  }
   0x5   : > { %p14077_p3 = pnand %p9848_p0, %p141_p1  ;;  %s154_s22 = sshll.u32 %s14031_s21, 4  ;;  %s155_s22 = int_to_ptr.vmem [resolvable:$true] %s154_s22 }
   0x6   : > { %s166_s25 = sshll.u32 %s15394_s3, 4  ;;  %s14032_s26 = smov [#allocation8]   ;;  %s167_s25 = int_to_ptr.hbm [resolvable:$true] %s166_s25 }
   0x7   : > { %p13915_p4 = pneg %p14077_p3  ;;  %s168_s27 = sshll.u32 %s14032_s26, 4  ;;  %s169_s27 = int_to_ptr.vmem [resolvable:$true] %s168_s27 }
   0x8   : > { %s14033_s28 = smov 64   ;;  %s14034_s29 = smov 4  }
   0x9   : > { %p13916_p5 = pnand %p13922_p2, %p13915_p4  ;;  %s14035_s30 = smov 16  }
   0xa   : > { %s14036_s5 = smov 1   ;;  %198 = sbr.rel (%p14077_p3) target bundleno = 2155 (0x86b), region = 36 }
   0xb   : > { %13918 = dma.hbm_to_vmem [thread:$0]  (!%p13916_p5), %s153_s18, 73728, %s155_s22, [#allocation7], %s14033_s28, %s14033_s28, %s14034_s29  }
   0xc   : > { %13921 = dma.hbm_to_vmem [thread:$0]  (!%p13916_p5), %s167_s25, 128, %s169_s27, [#allocation9], %s14035_s30, %s14035_s30, %s14036_s5  }
   0xf   : > { %14020 = dma.done.wait (%p13922_p2), [#allocation7], 73728  }
  0x10   : > { %14022 = vsyncadd (%p13922_p2), [#allocation7], 4294893568 }
  0x11   : > { %14024 = dma.done.wait (%p13922_p2), [#allocation9], 128  }
  0x12   : > { %14026 = vsyncadd (%p13922_p2), [#allocation9], 4294967168  ;;  %p233_p6 = scmp.lt.s32.totalorder %s14072_s19, 1  ;;  %v13077_v0 = vld [vmem:[#allocation6 + $0x38] sm:$0xff]  ;;  %v13076_v4 = vld [vmem:[#allocation6 + $0x30] sm:$0xff] }
  0x13   : > { %v13093_v1 = vld [vmem:[#allocation6 + $0xb8] sm:$0xff]  ;;  %1203 = vmatpush.bf16.msra.mxu0 %v13077_v0  ;;  %v13092_v5 = vld [vmem:[#allocation6 + $0xb0] sm:$0xff]  ;;  %v13075_v8 = vld [vmem:[#allocation6 + $0x28] sm:$0xff] }
  0x14   : > { %v13085_v2 = vld [vmem:[#allocation6 + $0x78] sm:$0xff]  ;;  %s15428_s19 = smov (!%p233_p6, %s14072_s19), 1  ;;  %1251 = vmatpush.bf16.msra.mxu2 %v13093_v1  ;;  %v13084_v6 = vld [vmem:[#allocation6 + $0x70] sm:$0xff]  ;;  %v13091_v9 = vld [vmem:[#allocation6 + $0xa8] sm:$0xff] }
  0x15   : > { %v13101_v3 = vld [vmem:[#allocation6 + $0xf8] sm:$0xff]  ;;  %1227 = vmatpush.bf16.msra.mxu1 %v13085_v2  ;;  %v13100_v7 = vld [vmem:[#allocation6 + $0xf0] sm:$0xff]  ;;  %s13041_s6 = sshll.u32 %s15428_s19, 5  ;;  %v13083_v10 = vld [vmem:[#allocation6 + $0x68] sm:$0xff]  ;;  %s14112_s12 = scalar_lea.vmem %s15392_s1, %s15428_s19 }
  0x16   : > { %1275 = vmatpush.bf16.msra.mxu3 %v13101_v3  ;;  %v13099_v11 = vld [vmem:[#allocation6 + $0xe8] sm:$0xff]  ;;  %s237_s9 = scalar_lea.vmem %s15391_s0, %s13041_s6  ;;  %v13074_v12 = vld [vmem:[#allocation6 + $0x20] sm:$0xff]  ;;  %v13073_v19 = vld [vmem:[#allocation6 + $0x18] sm:$0xff]  ;;  %s15364_s16 = scalar_lea.vmem %s15395_s4, %s13041_s6 }
  0x17   : > { %1204 = vmatpush.bf16.msra.mxu0 %v13076_v4  ;;  %v13090_v13 = vld [vmem:[#allocation6 + $0xa0] sm:$0xff]  ;;  %v13836_v16 = vld [vmem:[%s237_s9] sm:$0xff]   ;;  %v13871_v17 = vld [vmem:[%s237_s9 + $0x8] sm:$0xff]  }
  0x18   : > { %1252 = vmatpush.bf16.msra.mxu2 %v13092_v5  ;;  %v13082_v14 = vld [vmem:[#allocation6 + $0x60] sm:$0xff]  ;;  %v13872_v18 = vld [vmem:[%s237_s9 + $0x10] sm:$0xff]   ;;  %v13837_v20 = vunpack.c.l.bf16 %v13836_v16  ;;  %v14114_v21 = vunpack.c.h.bf16 %v13836_v16  ;;  %v14116_v22 = vunpack.c.l.bf16 %v13871_v17  ;;  %v14118_v24 = vunpack.c.h.bf16 %v13871_v17  ;;  %v13072_v31 = vld [vmem:[#allocation6 + $0x10] sm:$0xff] }
  0x19   : > { %1228 = vmatpush.bf16.msra.mxu1 %v13084_v6  ;;  %v13098_v15 = vld [vmem:[#allocation6 + $0xe0] sm:$0xff]  ;;  %v13089_v23 = vld [vmem:[#allocation6 + $0x98] sm:$0xff]  ;;  %v14122_v27 = vunpack.c.l.bf16 %v13872_v18  ;;  %v14124_v29 = vunpack.c.h.bf16 %v13872_v18  ;;  %v13088_v32 = vld [vmem:[#allocation6 + $0x90] sm:$0xff] }
  0x1a   : > { %1276 = vmatpush.bf16.msra.mxu3 %v13100_v7  ;;  %v14120_v25 = vld [vmem:[%s237_s9 + $0x18] sm:$0xff]   ;;  %v13081_v26 = vld [vmem:[#allocation6 + $0x58] sm:$0xff]  ;;  %263 = vst [vmem:[#allocation4] sm:$0xff] %v13837_v20  ;;  %v13080_v33 = vld [vmem:[#allocation6 + $0x50] sm:$0xff] }
  0x1b   : > { %1205 = vmatpush.bf16.msra.mxu0 %v13075_v8  ;;  %v13097_v28 = vld [vmem:[#allocation6 + $0xd8] sm:$0xff]  ;;  %264 = vst [vmem:[#allocation4 + $0x8] sm:$0xff] %v14114_v21  ;;  %v14128_v30 = vunpack.c.l.bf16 %v14120_v25  ;;  %v13096_v34 = vld [vmem:[#allocation6 + $0xd0] sm:$0xff]  ;;  %v13071_v35 = vld [vmem:[#allocation6 + $0x8] sm:$0xff] }
  0x1c   : > { %1253 = vmatpush.bf16.msra.mxu2 %v13091_v9  ;;  %265 = vst [vmem:[#allocation4 + $0x10] sm:$0xff] %v14116_v22  ;;  %v13087_v36 = vld [vmem:[#allocation6 + $0x88] sm:$0xff]  ;;  %v13070_v52 = vld [vmem:[#allocation6] sm:$0xff]  ;;  %v13109_v60 = vld [vmem:[#allocation6 + $0x138] sm:$0xff] }
  0x1d   : > { %1229 = vmatpush.bf16.msra.mxu1 %v13083_v10  ;;  %266 = vst [vmem:[#allocation4 + $0x18] sm:$0xff] %v14118_v24  ;;  %v13079_v37 = vld [vmem:[#allocation6 + $0x48] sm:$0xff]  ;;  %v13086_v53 = vld [vmem:[#allocation6 + $0x80] sm:$0xff]  ;;  %v13125_v63 = vld [vmem:[#allocation6 + $0x1b8] sm:$0xff] }
  0x1e   : > { %1277 = vmatpush.bf16.msra.mxu3 %v13099_v11  ;;  %267 = vst [vmem:[#allocation4 + $0x20] sm:$0xff] %v14122_v27  ;;  %v13095_v38 = vld [vmem:[#allocation6 + $0xc8] sm:$0xff]  ;;  %v13078_v56 = vld [vmem:[#allocation6 + $0x40] sm:$0xff]  ;;  %v13117_v2 = vld [vmem:[#allocation6 + $0x178] sm:$0xff] }
  0x1f   : > { %1206 = vmatpush.bf16.msra.mxu0 %v13074_v12  ;;  %268 = vst [vmem:[#allocation4 + $0x28] sm:$0xff] %v14124_v29  ;;  %v13094_v57 = vld [vmem:[#allocation6 + $0xc0] sm:$0xff]  ;;  %v13133_v3 = vld [vmem:[#allocation6 + $0x1f8] sm:$0xff]  ;;  %v13108_v6 = vld [vmem:[#allocation6 + $0x130] sm:$0xff] }
  0x20   : > { %1254 = vmatpush.bf16.msra.mxu2 %v13090_v13  ;;  %269 = vst [vmem:[#allocation4 + $0x30] sm:$0xff] %v14128_v30  ;;  %v13124_v12 = vld [vmem:[#allocation6 + $0x1b0] sm:$0xff] }
  0x21   : > { %1230 = vmatpush.bf16.msra.mxu1 %v13082_v14  ;;  %v13116_v16 = vld [vmem:[#allocation6 + $0x170] sm:$0xff] }
  0x22   : > { %1278 = vmatpush.bf16.msra.mxu3 %v13098_v15  ;;  %v278_v39 = vld [vmem:[#allocation4 + $0x1] sm:$0xff] }
  0x23   : > { %1207 = vmatpush.bf16.msra.mxu0 %v13073_v19  ;;  %v318_v40 = vld [vmem:[#allocation4 + $0x3] sm:$0xff]  ;;  %v284_v43 = vpack.c.bf16 %v278_v39, %v278_v39  ;;  %v319_v44 = vld [vmem:[#allocation4 + $0xb] sm:$0xff] }
  0x24   : > { %1255 = vmatpush.bf16.msra.mxu2 %v13089_v23  ;;  %v298_v41 = vld [vmem:[#allocation4 + $0x2] sm:$0xff]  ;;  %v324_v45 = vpack.c.bf16 %v318_v40, %v318_v40  ;;  %v299_v46 = vld [vmem:[#allocation4 + $0xa] sm:$0xff]  ;;  %v325_v48 = vpack.c.bf16 %v319_v44, %v319_v44  ;;  %v320_v62 = vld [vmem:[#allocation4 + $0x13] sm:$0xff] }
  0x25   : > { %1231 = vmatpush.bf16.msra.mxu1 %v13081_v26  ;;  %v279_v42 = vld [vmem:[#allocation4 + $0x9] sm:$0xff]  ;;  %290 = vst [vmem:[#allocation5] sm:$0xf] %v284_v43  ;;  %v304_v50 = vpack.c.bf16 %v298_v41, %v298_v41  ;;  %v305_v54 = vpack.c.bf16 %v299_v46, %v299_v46  ;;  %v280_v55 = vld [vmem:[#allocation4 + $0x11] sm:$0xff]  ;;  %v281_v59 = vld [vmem:[#allocation4 + $0x19] sm:$0xff]  ;;  %v326_v7 = vpack.c.bf16 %v320_v62, %v320_v62 }
  0x26   : > { %1279 = vmatpush.bf16.msra.mxu3 %v13097_v28  ;;  %v14135_v47 = vpack.c.bf16 %v279_v42, %v279_v42  ;;  %v338_v49 = vld [vmem:[#allocation4 + $0x7] sm:$0xff]  ;;  %v339_v51 = vld [vmem:[#allocation4 + $0xf] sm:$0xff]  ;;  %330 = vst [vmem:[#allocation5 + $0x8] sm:$0xf] %v324_v45  ;;  %v14140_v0 = vpack.c.bf16 %v280_v55, %v280_v55  ;;  %v321_v1 = vld [vmem:[#allocation4 + $0x1b] sm:$0xff]  ;;  %v14142_v4 = vpack.c.bf16 %v281_v59, %v281_v59 }
  0x27   : > { %1208 = vmatpush.bf16.msra.mxu0 %v13072_v31  ;;  %v344_v58 = vpack.c.bf16 %v338_v49, %v338_v49  ;;  %331 = vst [vmem:[#allocation5 + $0x2c] sm:$0xf] %v325_v48  ;;  %v14138_v61 = vpack.c.bf16 %v339_v51, %v339_v51  ;;  %v300_v5 = vld [vmem:[#allocation4 + $0x12] sm:$0xff]  ;;  %v301_v8 = vld [vmem:[#allocation4 + $0x1a] sm:$0xff]  ;;  %v327_v10 = vpack.c.bf16 %v321_v1, %v321_v1  ;;  %v13132_v20 = vld [vmem:[#allocation6 + $0x1f0] sm:$0xff] }
  0x28   : > { %1256 = vmatpush.bf16.msra.mxu2 %v13088_v32  ;;  %291 = vst [vmem:[#allocation5 + $0x24] sm:$0xf] %v14135_v47  ;;  %v340_v11 = vld [vmem:[#allocation4 + $0x17] sm:$0xff]  ;;  %v306_v14 = vpack.c.bf16 %v300_v5, %v300_v5  ;;  %v341_v15 = vld [vmem:[#allocation4 + $0x1f] sm:$0xff]  ;;  %v307_v19 = vpack.c.bf16 %v301_v8, %v301_v8  ;;  %v283_v32 = vld [vmem:[#allocation4 + $0x29] sm:$0xff] }
  0x29   : > { %1232 = vmatpush.bf16.msra.mxu1 %v13080_v33  ;;  %310 = vst [vmem:[#allocation5 + $0x4] sm:$0xf] %v304_v50  ;;  %v282_v23 = vld [vmem:[#allocation4 + $0x21] sm:$0xff]  ;;  %v14147_v31 = vpack.c.bf16 %v340_v11, %v340_v11  ;;  %v323_v41 = vld [vmem:[#allocation4 + $0x2b] sm:$0xff]  ;;  %v14153_v44 = vpack.c.bf16 %v283_v32, %v283_v32  ;;  %v13106_v55 = vld [vmem:[#allocation6 + $0x120] sm:$0xff] }
  0x2a   : > { %1280 = vmatpush.bf16.msra.mxu3 %v13096_v34  ;;  %311 = vst [vmem:[#allocation5 + $0x28] sm:$0xf] %v305_v54  ;;  %v13107_v28 = vld [vmem:[#allocation6 + $0x128] sm:$0xff]  ;;  %v14151_v40 = vpack.c.bf16 %v282_v23, %v282_v23  ;;  %v303_v50 = vld [vmem:[#allocation4 + $0x2a] sm:$0xff]  ;;  %v419_v23 = vld [vmem:[#allocation4 + $0x16] sm:$0xff] }
  0x2b   : > { %1209 = vmatpush.bf16.msra.mxu0 %v13071_v35  ;;  %350 = vst [vmem:[#allocation5 + $0xc] sm:$0xf] %v344_v58  ;;  %v14149_v35 = vpack.c.bf16 %v341_v15, %v341_v15  ;;  %v13115_v39 = vld [vmem:[#allocation6 + $0x168] sm:$0xff]  ;;  %v343_v58 = vld [vmem:[#allocation4 + $0x2f] sm:$0xff]  ;;  %v309_v59 = vpack.c.bf16 %v303_v50, %v303_v50  ;;  %v13126_v50 = vld [vmem:[#allocation6 + $0x1c0] sm:$0xff] }
  0x2c   : > { %1257 = vmatpush.bf16.msra.mxu2 %v13087_v36  ;;  %v9861_v9 = vld [vmem:[#allocation5] sm:$0xf]  ;;  %351 = vst [vmem:[#allocation5 + $0x30] sm:$0xf] %v14138_v61  ;;  %v342_v54 = vld [vmem:[#allocation4 + $0x27] sm:$0xff]  ;;  %v13121_v1 = vld [vmem:[#allocation6 + $0x198] sm:$0xff] }
  0x2d   : > { %1233 = vmatpush.bf16.msra.mxu1 %v13079_v37  ;;  %292 = vst [vmem:[#allocation5 + $0x48] sm:$0xf] %v14140_v0  ;;  %v9869_v18 = vld [vmem:[#allocation5 + $0x8] sm:$0xf]  ;;  %v13123_v36 = vld [vmem:[#allocation6 + $0x1a8] sm:$0xff]  ;;  %v14159_v62 = vpack.c.bf16 %v342_v54, %v342_v54  ;;  %v13105_v5 = vld [vmem:[#allocation6 + $0x118] sm:$0xff] }
  0x2e   : > { %1281 = vmatpush.bf16.msra.mxu3 %v13095_v38  ;;  %293 = vst [vmem:[#allocation5 + $0x6c] sm:$0xf] %v14142_v4  ;;  %v13048_v26 = vld [vmem:[#allocation5 + $0x28] sm:$0xf0]  ;;  %v322_v37 = vld [vmem:[#allocation4 + $0x23] sm:$0xff] }
  0x2f   : > { %1210 = vmatpush.bf16.msra.mxu0 %v13070_v52  ;;  %v13047_v13 = vld [vmem:[#allocation5 + $0x20] sm:$0xf0]  ;;  %332 = vst [vmem:[#allocation5 + $0x50] sm:$0xf] %v326_v7  ;;  %v9870_v33 = vor.u32 %v13048_v26, %v9869_v18  ;;  %v328_v49 = vpack.c.bf16 %v322_v37, %v322_v37  ;;  %v13122_v52 = vld [vmem:[#allocation6 + $0x1a0] sm:$0xff]  ;;  %v364_v7 = vpack.c.bf16 %v14114_v21, %v14114_v21  ;;  %v418_v18 = vld [vmem:[#allocation4 + $0xe] sm:$0xff] }
  0x30   : > { %1258 = vmatpush.bf16.msra.mxu2 %v13086_v53  ;;  %v9862_v17 = vor.u32 %v13047_v13, %v9861_v9  ;;  %v13043_v34 = vld [vmem:[#allocation5 + $0x4] sm:$0xf]  ;;  %333 = vst [vmem:[#allocation5 + $0x74] sm:$0xf] %v327_v10  ;;  %v329_v53 = vpack.c.bf16 %v323_v41, %v323_v41  ;;  %v13129_v9 = vld [vmem:[#allocation6 + $0x1d8] sm:$0xff]  ;;  %v365_v10 = vpack.c.bf16 %v14116_v22, %v14116_v22  ;;  %v13120_v13 = vld [vmem:[#allocation6 + $0x190] sm:$0xff] }
  0x31   : > { %1234 = vmatpush.bf16.msra.mxu1 %v13078_v56  ;;  %v9863_v38 = vld [vmem:[#allocation5 + $0x24] sm:$0xf0]  ;;  %312 = vst [vmem:[#allocation5 + $0x4c] sm:$0xf] %v306_v14  ;;  %v13131_v48 = vld [vmem:[#allocation6 + $0x1e8] sm:$0xff]  ;;  %v13114_v56 = vld [vmem:[#allocation6 + $0x160] sm:$0xff] }
  0x32   : > { %1282 = vmatpush.bf16.msra.mxu3 %v13094_v57  ;;  %1211 = vmatmul.bf16.vlgmr.msra.gmra.mxu0 %v9862_v17  ;;  %v9866_v42 = vor.u32 %v13043_v34, %v9863_v38  ;;  %v13044_v43 = vld [vmem:[#allocation5 + $0xc] sm:$0xf]  ;;  %313 = vst [vmem:[#allocation5 + $0x70] sm:$0xf] %v307_v19  ;;  %v302_v45 = vld [vmem:[#allocation4 + $0x22] sm:$0xff]  ;;  %v399_v17 = vld [vmem:[#allocation4 + $0x15] sm:$0xff]  ;;  %v424_v34 = vpack.c.bf16 %v418_v18, %v418_v18 }
  0x33   : > { %1299 = vmatpush.bf16.msrb.mxu0 %v13109_v60  ;;  %1259 = vmatmul.bf16.vlgmr.msra.gmra.mxu2 %v9870_v33  ;;  %v9871_v46 = vld [vmem:[#allocation5 + $0x2c] sm:$0xf0]  ;;  %352 = vst [vmem:[#allocation5 + $0x54] sm:$0xf] %v14147_v31  ;;  %v308_v57 = vpack.c.bf16 %v302_v45, %v302_v45  ;;  %v13130_v60 = vld [vmem:[#allocation6 + $0x1e0] sm:$0xff]  ;;  %v405_v22 = vpack.c.bf16 %v399_v17, %v399_v17  ;;  %v13119_v37 = vld [vmem:[#allocation6 + $0x188] sm:$0xff] }
  0x34   : > { %1347 = vmatpush.bf16.msrb.mxu2 %v13125_v63  ;;  %1235 = vmatmul.bf16.vlgmr.msra.gmra.mxu1 %v9866_v42  ;;  %v9874_v51 = vor.u32 %v13044_v43, %v9871_v46  ;;  %353 = vst [vmem:[#allocation5 + $0x78] sm:$0xf] %v14149_v35  ;;  %v9897_v63 = vld [vmem:[#allocation5 + $0x48] sm:$0xf]  ;;  %v398_v14 = vld [vmem:[#allocation4 + $0xd] sm:$0xff]  ;;  %v425_v38 = vpack.c.bf16 %v419_v23, %v419_v23  ;;  %v13111_v41 = vld [vmem:[#allocation6 + $0x148] sm:$0xff] }
  0x35   : > { %1323 = vmatpush.bf16.msrb.mxu1 %v13117_v2  ;;  %294 = vst [vmem:[#allocation5 + $0x90] sm:$0xf] %v14151_v40  ;;  %v14161_v2 = vpack.c.bf16 %v343_v58, %v343_v58  ;;  %v404_v21 = vpack.c.bf16 %v398_v14, %v398_v14  ;;  %v13127_v43 = vld [vmem:[#allocation6 + $0x1c8] sm:$0xff]  ;;  %v13118_v45 = vld [vmem:[#allocation6 + $0x180] sm:$0xff]  ;;  %v13136_v23 = vld [vmem:[#allocation6 + $0x210] sm:$0xff] }
  0x36   : > { %1371 = vmatpush.bf16.msrb.mxu3 %v13133_v3  ;;  %295 = vst [vmem:[#allocation5 + $0xb4] sm:$0xf] %v14153_v44  ;;  %v13056_v3 = vld [vmem:[#allocation5 + $0x68] sm:$0xf0]  ;;  %v9905_v8 = vld [vmem:[#allocation5 + $0x50] sm:$0xf] }
  0x37   : > { %1300 = vmatpush.bf16.msrb.mxu0 %v13108_v6  ;;  %1283 = vmatmul.bf16.vlgmr.msra.gmra.mxu3 %v9874_v51  ;;  %334 = vst [vmem:[#allocation5 + $0x98] sm:$0xf] %v328_v49  ;;  %v13113_v6 = vld [vmem:[#allocation6 + $0x158] sm:$0xff]  ;;  %v9898_v15 = vor.u32 %v13056_v3, %v9897_v63  ;;  %v13102_v46 = vld [vmem:[#allocation6 + $0x100] sm:$0xff]  ;;  %v13139_v3 = vld [vmem:[#allocation6 + $0x228] sm:$0xff] }
  0x38   : > { %1348 = vmatpush.bf16.msrb.mxu2 %v13124_v12  ;;  %335 = vst [vmem:[#allocation5 + $0xbc] sm:$0xf] %v329_v53  ;;  %v13057_v11 = vld [vmem:[#allocation5 + $0x70] sm:$0xf0]  ;;  %v13104_v12 = vld [vmem:[#allocation6 + $0x110] sm:$0xff]  ;;  %v400_v51 = vld [vmem:[#allocation4 + $0x1d] sm:$0xff] }
  0x39   : > { %1324 = vmatpush.bf16.msrb.mxu1 %v13116_v16  ;;  %314 = vst [vmem:[#allocation5 + $0x94] sm:$0xf] %v308_v57  ;;  %v13052_v16 = vld [vmem:[#allocation5 + $0x4c] sm:$0xf]  ;;  %v9899_v19 = vld [vmem:[#allocation5 + $0x6c] sm:$0xf0]  ;;  %v9906_v26 = vor.u32 %v13057_v11, %v9905_v8 }
  0x3a   : > { %1372 = vmatpush.bf16.msrb.mxu3 %v13132_v20  ;;  %315 = vst [vmem:[#allocation5 + $0xb8] sm:$0xf] %v309_v59  ;;  %v13112_v20 = vld [vmem:[#allocation6 + $0x150] sm:$0xff]  ;;  %v13053_v32 = vld [vmem:[#allocation5 + $0x54] sm:$0xf] }
  0x3b   : > { %1301 = vmatpush.bf16.msrb.mxu0 %v13107_v28  ;;  %354 = vst [vmem:[#allocation5 + $0x9c] sm:$0xf] %v14159_v62  ;;  %v13128_v28 = vld [vmem:[#allocation6 + $0x1d0] sm:$0xff]  ;;  %v9907_v33 = vld [vmem:[#allocation5 + $0x74] sm:$0xf0]  ;;  %v13141_v49 = vld [vmem:[#allocation6 + $0x238] sm:$0xff] }
  0x3c   : > { %1349 = vmatpush.bf16.msrb.mxu2 %v13123_v36  ;;  %355 = vst [vmem:[#allocation5 + $0xc0] sm:$0xf] %v14161_v2  ;;  %v9902_v36 = vor.u32 %v13052_v16, %v9899_v19  ;;  %v9910_v42 = vor.u32 %v13053_v32, %v9907_v33  ;;  %v9933_v53 = vld [vmem:[#allocation5 + $0x90] sm:$0xf] }
  0x3d   : > { %1325 = vmatpush.bf16.msrb.mxu1 %v13115_v39  ;;  %370 = vst [vmem:[#allocation5 + $0x10] sm:$0xf] %v364_v7  ;;  %v13103_v39 = vld [vmem:[#allocation6 + $0x108] sm:$0xff]  ;;  %v402_v11 = vld [vmem:[#allocation4 + $0x2d] sm:$0xff] }
  0x3e   : > { %1373 = vmatpush.bf16.msrb.mxu3 %v13131_v48  ;;  %371 = vst [vmem:[#allocation5 + $0x34] sm:$0xf] %v365_v10  ;;  %v13110_v48 = vld [vmem:[#allocation6 + $0x140] sm:$0xff]  ;;  %v408_v14 = vpack.c.bf16 %v402_v11, %v402_v11 }
  0x3f   : > { %1302 = vmatpush.bf16.msrb.mxu0 %v13106_v55  ;;  %410 = vst [vmem:[#allocation5 + $0x18] sm:$0xf] %v404_v21  ;;  %v13065_v55 = vld [vmem:[#allocation5 + $0xb0] sm:$0xf0]  ;;  %v9941_v58 = vld [vmem:[#allocation5 + $0x98] sm:$0xf] }
  0x40   : > { %1350 = vmatpush.bf16.msrb.mxu2 %v13122_v52  ;;  %411 = vst [vmem:[#allocation5 + $0x3c] sm:$0xf] %v405_v22  ;;  %v401_v52 = vld [vmem:[#allocation4 + $0x25] sm:$0xff]  ;;  %v13066_v59 = vld [vmem:[#allocation5 + $0xb8] sm:$0xf0] }
  0x41   : > { %1326 = vmatpush.bf16.msrb.mxu1 %v13114_v56  ;;  %390 = vst [vmem:[#allocation5 + $0x14] sm:$0xf] %v14135_v47  ;;  %v366_v47 = vpack.c.bf16 %v14118_v24, %v14118_v24  ;;  %v407_v54 = vpack.c.bf16 %v401_v52, %v401_v52  ;;  %v420_v24 = vld [vmem:[#allocation4 + $0x1e] sm:$0xff]  ;;  %v421_v56 = vld [vmem:[#allocation4 + $0x26] sm:$0xff]  ;;  %v9935_v63 = vld [vmem:[#allocation5 + $0xb4] sm:$0xf0] }
  0x42   : > { %1374 = vmatpush.bf16.msrb.mxu3 %v13130_v60  ;;  %1216 = vmatmul.bf16.gmra.mxu0 %v9898_v15  ;;  %391 = vst [vmem:[#allocation5 + $0x38] sm:$0xf] %v14140_v0  ;;  %v367_v0 = vpack.c.bf16 %v14122_v27, %v14122_v27  ;;  %v13140_v27 = vld [vmem:[#allocation6 + $0x230] sm:$0xff]  ;;  %v427_v57 = vpack.c.bf16 %v421_v56, %v421_v56  ;;  %v13061_v60 = vld [vmem:[#allocation5 + $0x94] sm:$0xf] }
  0x43   : > { %1303 = vmatpush.bf16.msrb.mxu0 %v13105_v5  ;;  %1264 = vmatmul.bf16.gmra.mxu2 %v9906_v26  ;;  %430 = vst [vmem:[#allocation5 + $0x1c] sm:$0xf] %v424_v34  ;;  %v13850_v5 = vunpack.c.h.bf16 %v14120_v25  ;;  %v9943_v7 = vld [vmem:[#allocation5 + $0xbc] sm:$0xf0]  ;;  %v9938_v8 = vor.u32 %v13061_v60, %v9935_v63  ;;  %v13138_v25 = vld [vmem:[#allocation6 + $0x220] sm:$0xff] }
  0x44   : > { %1351 = vmatpush.bf16.msrb.mxu2 %v13121_v1  ;;  %1240 = vmatmul.bf16.gmra.mxu1 %v9902_v36  ;;  %431 = vst [vmem:[#allocation5 + $0x40] sm:$0xf] %v425_v38  ;;  %v9942_v1 = vor.u32 %v13066_v59, %v9941_v58  ;;  %v9877_v10 = vld [vmem:[#allocation5 + $0x10] sm:$0xf]  ;;  %v13135_v36 = vld [vmem:[#allocation6 + $0x208] sm:$0xff] }
  0x45   : > { %1327 = vmatpush.bf16.msrb.mxu1 %v13113_v6  ;;  %392 = vst [vmem:[#allocation5 + $0x5c] sm:$0xf] %v14142_v4  ;;  %v406_v4 = vpack.c.bf16 %v400_v51, %v400_v51  ;;  %v13062_v6 = vld [vmem:[#allocation5 + $0x9c] sm:$0xf] }
  0x46   : > { %1375 = vmatpush.bf16.msrb.mxu3 %v13129_v9  ;;  %393 = vst [vmem:[#allocation5 + $0x80] sm:$0xf] %v14151_v40  ;;  %v426_v40 = vpack.c.bf16 %v420_v24, %v420_v24  ;;  %v9946_v9 = vor.u32 %v13062_v6, %v9943_v7  ;;  %v9885_v18 = vld [vmem:[#allocation5 + $0x18] sm:$0xf] }
  0x47   : > { %1304 = vmatpush.bf16.msrb.mxu0 %v13104_v12  ;;  %1288 = vmatmul.bf16.gmra.mxu3 %v9910_v42  ;;  %394 = vst [vmem:[#allocation5 + $0xa4] sm:$0xf] %v14153_v44  ;;  %v9934_v44 = vor.u32 %v13065_v55, %v9933_v53  ;;  %v13050_v19 = vld [vmem:[#allocation5 + $0x38] sm:$0xf0] }
  0x48   : > { %1352 = vmatpush.bf16.msrb.mxu2 %v13120_v13  ;;  %372 = vst [vmem:[#allocation5 + $0x58] sm:$0xf] %v366_v47  ;;  %v13137_v13 = vld [vmem:[#allocation6 + $0x218] sm:$0xff]  ;;  %v9886_v26 = vor.u32 %v13050_v19, %v9885_v18  ;;  %v1419_v18 = vlaneseq }
  0x49   : > { %1328 = vmatpush.bf16.msrb.mxu1 %v13112_v20  ;;  %373 = vst [vmem:[#allocation5 + $0x7c] sm:$0xf] %v367_v0  ;;  %v13045_v20 = vld [vmem:[#allocation5 + $0x14] sm:$0xf]  ;;  %v9879_v22 = vld [vmem:[#allocation5 + $0x34] sm:$0xf0] }
  0x4a   : > { %1376 = vmatpush.bf16.msrb.mxu3 %v13128_v28  ;;  %412 = vst [vmem:[#allocation5 + $0x60] sm:$0xf] %v406_v4  ;;  %v13046_v28 = vld [vmem:[#allocation5 + $0x1c] sm:$0xf]  ;;  %v9882_v33 = vor.u32 %v13045_v20, %v9879_v22 }
  0x4b   : > { %1305 = vmatpush.bf16.msrb.mxu0 %v13103_v39  ;;  %413 = vst [vmem:[#allocation5 + $0x84] sm:$0xf] %v407_v54  ;;  %v9887_v32 = vld [vmem:[#allocation5 + $0x3c] sm:$0xf0] }
  0x4c   : > { %1353 = vmatpush.bf16.msrb.mxu2 %v13119_v37  ;;  %432 = vst [vmem:[#allocation5 + $0x64] sm:$0xf] %v426_v40  ;;  %v9890_v34 = vor.u32 %v13046_v28, %v9887_v32  ;;  %v13134_v37 = vld [vmem:[#allocation6 + $0x200] sm:$0xff]  ;;  %v13176_v28 = vld [vmem:[#allocation6 + $0x278] sm:$0xff] }
  0x4d   : > { %1329 = vmatpush.bf16.msrb.mxu1 %v13111_v41  ;;  %433 = vst [vmem:[#allocation5 + $0x88] sm:$0xf] %v427_v57 }
  0x4e   : > { %1377 = vmatpush.bf16.msrb.mxu3 %v13127_v43  ;;  %450 = vst [vmem:[#allocation5 + $0x20] sm:$0xf] %v14138_v61  ;;  %v368_v61 = vpack.c.bf16 %v14124_v29, %v14124_v29  ;;  %v13063_v55 = vld [vmem:[#allocation5 + $0xa4] sm:$0xf] }
  0x4f   : > { %1306 = vmatpush.bf16.msrb.mxu0 %v13102_v46  ;;  %451 = vst [vmem:[#allocation5 + $0x44] sm:$0xf] %v14147_v31  ;;  %v369_v31 = vpack.c.bf16 %v14128_v30, %v14128_v30  ;;  %v9913_v38 = vld [vmem:[#allocation5 + $0x58] sm:$0xf]  ;;  %v9915_v46 = vld [vmem:[#allocation5 + $0x7c] sm:$0xf0] }
  0x50   : > { %1354 = vmatpush.bf16.msrb.mxu2 %v13118_v45  ;;  %270 = vst [vmem:[#allocation4 + $0x38] sm:$0xff] %v13850_v5  ;;  %v13058_v39 = vld [vmem:[#allocation5 + $0x78] sm:$0xf0] }
  0x51   : > { %1330 = vmatpush.bf16.msrb.mxu1 %v13110_v48  ;;  %452 = vst [vmem:[#allocation5 + $0x68] sm:$0xf] %v14149_v35  ;;  %v13049_v35 = vld [vmem:[#allocation5 + $0x30] sm:$0xf0]  ;;  %v9921_v41 = vld [vmem:[#allocation5 + $0x60] sm:$0xf]  ;;  %v9914_v43 = vor.u32 %v13058_v39, %v9913_v38 }
  0x52   : > { %1378 = vmatpush.bf16.msrb.mxu3 %v13126_v50  ;;  %1221 = vmatmul.bf16.gmra.mxu0 %v9934_v44  ;;  %453 = vst [vmem:[#allocation5 + $0x8c] sm:$0xf] %v14159_v62  ;;  %v9878_v30 = vor.u32 %v13049_v35, %v9877_v10  ;;  %v13059_v42 = vld [vmem:[#allocation5 + $0x80] sm:$0xf0]  ;;  %v13054_v45 = vld [vmem:[#allocation5 + $0x5c] sm:$0xf] }
  0x53   : > { %1395 = vmatpush.bf16.msra.mxu0 %v13141_v49  ;;  %1269 = vmatmul.bf16.gmra.mxu2 %v9942_v1  ;;  %454 = vst [vmem:[#allocation5 + $0xb0] sm:$0xf] %v14161_v2  ;;  %v422_v2 = vld [vmem:[#allocation4 + $0x2e] sm:$0xff]  ;;  %v9922_v48 = vor.u32 %v13059_v42, %v9921_v41  ;;  %v13055_v49 = vld [vmem:[#allocation5 + $0x64] sm:$0xf]  ;;  %v9918_v0 = vor.u32 %v13054_v45, %v9915_v46 }
  0x54   : > { %1245 = vmatmul.bf16.gmra.mxu1 %v9938_v8  ;;  %374 = vst [vmem:[#allocation5 + $0xa0] sm:$0xf] %v368_v61  ;;  %v428_v21 = vpack.c.bf16 %v422_v2, %v422_v2  ;;  %v9923_v47 = vld [vmem:[#allocation5 + $0x84] sm:$0xf0] }
  0x55   : > { %375 = vst [vmem:[#allocation5 + $0xc4] sm:$0xf] %v369_v31  ;;  %v9926_v50 = vor.u32 %v13055_v49, %v9923_v47  ;;  %v9893_v60 = vld [vmem:[#allocation5 + $0x20] sm:$0xf]  ;;  %2525 = vmatpush.bf16.msra.mxu1 %v13176_v28  ;;  %v13175_v45 = vld [vmem:[#allocation6 + $0x270] sm:$0xff] }
  0x56   : > { %414 = vst [vmem:[#allocation5 + $0xa8] sm:$0xf] %v408_v14  ;;  %v13051_v63 = vld [vmem:[#allocation5 + $0x40] sm:$0xf0] }
  0x57   : > { %1396 = vmatpush.bf16.msra.mxu0 %v13140_v27  ;;  %1293 = vmatmul.bf16.gmra.mxu3 %v9946_v9  ;;  %v403_v12 = vld [vmem:[#allocation4 + $0x35] sm:$0xff]  ;;  %434 = vst [vmem:[#allocation5 + $0xac] sm:$0xf] %v428_v21  ;;  %v9894_v1 = vor.u32 %v13051_v63, %v9893_v60 }
  0x58   : > { %v409_v62 = vpack.c.bf16 %v403_v12, %v403_v12  ;;  %v383_v15 = vld [vmem:[#allocation4 + $0x31] sm:$0xff] }
  0x59   : > { %v423_v16 = vld [vmem:[#allocation4 + $0x36] sm:$0xff]  ;;  %v389_v17 = vpack.c.bf16 %v383_v15, %v383_v15  ;;  %v13060_v5 = vld [vmem:[#allocation5 + $0x88] sm:$0xf0]  ;;  %2526 = vmatpush.bf16.msra.mxu1 %v13175_v45 }
  0x5a   : > { %v429_v29 = vpack.c.bf16 %v423_v16, %v423_v16  ;;  %415 = vst [vmem:[#allocation5 + $0xcc] sm:$0xf] %v409_v62  ;;  %v443_v59 = vld [vmem:[#allocation4 + $0x37] sm:$0xff]  ;;  %v9965_v7 = vld [vmem:[#allocation5 + $0xb0] sm:$0xf] }
  0x5b   : > { %1397 = vmatpush.bf16.msra.mxu0 %v13139_v3  ;;  %395 = vst [vmem:[#allocation5 + $0xc8] sm:$0xf] %v389_v17  ;;  %v9949_v51 = vld [vmem:[#allocation5 + $0xa0] sm:$0xf]  ;;  %v449_v44 = vpack.c.bf16 %v443_v59, %v443_v59  ;;  %v9929_v3 = vld [vmem:[#allocation5 + $0x68] sm:$0xf] }
  0x5c   : > { %435 = vst [vmem:[#allocation5 + $0xd0] sm:$0xf] %v429_v29  ;;  %v13067_v52 = vld [vmem:[#allocation5 + $0xc0] sm:$0xf0]  ;;  %v9930_v6 = vor.u32 %v13060_v5, %v9929_v3 }
  0x5d   : > { %v9957_v53 = vld [vmem:[#allocation5 + $0xa8] sm:$0xf]  ;;  %v9950_v54 = vor.u32 %v13067_v52, %v9949_v51  ;;  %455 = vst [vmem:[#allocation5 + $0xd4] sm:$0xf] %v449_v44  ;;  %v13174_v51 = vld [vmem:[#allocation6 + $0x268] sm:$0xff] }
  0x5e   : > { %v13064_v27 = vld [vmem:[#allocation5 + $0xac] sm:$0xf]  ;;  %2527 = vmatpush.bf16.msra.mxu1 %v13174_v51  ;;  %v13182_v51 = vld [vmem:[#allocation6 + $0x2a8] sm:$0xff] }
  0x5f   : > { %1398 = vmatpush.bf16.msra.mxu0 %v13138_v25 }
  0x61   : > { %v13068_v4 = vld [vmem:[#allocation5 + $0xc8] sm:$0xf0] }
  0x62   : > { %1307 = vmatmul.bf16.vlgmr.msrb.gmra.mxu0 %v9878_v30  ;;  %v9951_v24 = vld [vmem:[#allocation5 + $0xc4] sm:$0xf0]  ;;  %v9958_v56 = vor.u32 %v13068_v4, %v9957_v53  ;;  %v14222_v30 = vshrl.u32 %v1419_v18, 7 }
  0x63   : > { %1399 = vmatpush.bf16.msra.mxu0 %v13137_v13  ;;  %1355 = vmatmul.bf16.vlgmr.msrb.gmra.mxu2 %v9886_v26  ;;  %v9959_v40 = vld [vmem:[#allocation5 + $0xcc] sm:$0xf0]  ;;  %v9954_v57 = vor.u32 %v13063_v55, %v9951_v24  ;;  %v13199_v18 = vld [vmem:[#allocation6 + $0x330] sm:$0xff] }
  0x64   : > { %1331 = vmatmul.bf16.vlgmr.msrb.gmra.mxu1 %v9882_v33  ;;  %v9962_v58 = vor.u32 %v13064_v27, %v9959_v40  ;;  %v13069_v8 = vld [vmem:[#allocation5 + $0xd0] sm:$0xf0]  ;;  %v1426_v22 = vcvt.s32.f32 %v14222_v30  ;;  %v14243_v53 = vadd.s32 16, %v14222_v30 }
  0x65   : > { %v9966_v9 = vor.u32 %v13069_v8, %v9965_v7  ;;  %v13184_v27 = vld [vmem:[#allocation6 + $0x2b8] sm:$0xff]  ;;  %v13183_v8 = vld [vmem:[#allocation6 + $0x2b0] sm:$0xff] }
  0x66   : > { %v1428_v24 = vcvt.s32.f32 %v14243_v53  ;;  %v13192_v40 = vld [vmem:[#allocation6 + $0x2f8] sm:$0xff]  ;;  %2549 = vmatpush.bf16.msra.mxu2 %v13184_v27 }
  0x67   : > { %1400 = vmatpush.bf16.msra.mxu0 %v13136_v23  ;;  %1379 = vmatmul.bf16.vlgmr.msrb.gmra.mxu3 %v9890_v34  ;;  %v1432_v23 = vmul.f32 0.16666667, %v1426_v22 }
  0x68   : > { %v1434_v59 = vmul.f32 0.16666667, %v1428_v24  ;;  %2573 = vmatpush.bf16.msra.mxu3 %v13192_v40  ;;  %v13173_v24 = vld [vmem:[#allocation6 + $0x260] sm:$0xff] }
  0x69   : > { %v13878_v32 = vceil.f32 %v1432_v23  ;;  %v13879_v33 = vfloor.f32 %v1432_v23  ;;  %vm13877_vm0 = vcmp.lt.s32.totalorder %v1432_v23, 0  ;;  %2528 = vmatpush.bf16.msra.mxu1 %v13173_v24  ;;  %v13196_v24 = vld [vmem:[#allocation6 + $0x318] sm:$0xff] }
  0x6a   : > { %v13888_v5 = vceil.f32 %v1434_v59  ;;  %vm13887_vm3 = vcmp.lt.s32.totalorder %v1434_v59, 0  ;;  %2550 = vmatpush.bf16.msra.mxu2 %v13183_v8  ;;  %v13197_v8 = vld [vmem:[#allocation6 + $0x320] sm:$0xff] }
  0x6b   : > { %1401 = vmatpush.bf16.msra.mxu0 %v13135_v36  ;;  %v1421_v36 = vadd.s32 8, %v14222_v30  ;;  %v13880_v38 = vsel %vm13877_vm0, %v13878_v32, %v13879_v33 }
  0x6c   : > { %v13881_v42 = vcvt.f32.s32 %v13880_v38 }
  0x6d   : > { %v1427_v41 = vcvt.s32.f32 %v1421_v36 }
  0x6e   : > { %v1444_v47 = vmul.u32 6, %v13881_v42  ;;  %v10255_v44 = vadd.s32 4294967295, %v13881_v42  ;;  %2551 = vmatpush.bf16.msra.mxu2 %v13182_v51 }
  0x6f   : > { %1402 = vmatpush.bf16.msra.mxu0 %v13134_v37 }
  0x72   : > { %1312 = vmatmul.bf16.gmra.mxu0 %v9914_v43  ;;  %v1433_v43 = vmul.f32 0.16666667, %v1427_v41 }
  0x73   : > { %1360 = vmatmul.bf16.gmra.mxu2 %v9922_v48 }
  0x74   : > { %1336 = vmatmul.bf16.gmra.mxu1 %v9918_v0  ;;  %v13883_v46 = vceil.f32 %v1433_v43  ;;  %vm13882_vm1 = vcmp.lt.s32.totalorder %v1433_v43, 0  ;;  %v13884_v49 = vfloor.f32 %v1433_v43 }
  0x76   : > { %v13885_v52 = vsel %vm13882_vm1, %v13883_v46, %v13884_v49  ;;  %v14274_v49 = vadd.s32 24, %v14222_v30 }
  0x77   : > { %1384 = vmatmul.bf16.gmra.mxu3 %v9926_v50  ;;  %v14248_v55 = vcvt.f32.s32 %v13885_v52  ;;  %v13190_v52 = vld [vmem:[#allocation6 + $0x2e8] sm:$0xff] }
  0x78   : > { %v1429_v27 = vcvt.s32.f32 %v14274_v49 }
  0x79   : > { %v1445_v3 = vmul.u32 6, %v14248_v55 }
  0x7b   : > { %v1451_v33 = vsub.s32 %v1421_v36, %v1445_v3 }
  0x7d   : > { %vm1457_vm5 = vcmp.lt.s32.totalorder %v1451_v33, 0 }
  0x82   : > { %1317 = vmatmul.bf16.gmra.mxu0 %v9950_v54  ;;  %v1450_v54 = vsub.s32 %v14222_v30, %v1444_v47 }
  0x83   : > { %1365 = vmatmul.bf16.gmra.mxu2 %v9958_v56  ;;  %v14251_v56 = vld [vmem:[#allocation8] ss:$0 sm:$0xff] }
  0x84   : > { %1341 = vmatmul.bf16.gmra.mxu1 %v9954_v57  ;;  %v14037_v57 = vmov 0.0   ;;  %vm1456_vm2 = vcmp.lt.s32.totalorder %v1450_v54, 0 }
  0x85   : > { %273 = vst [vmem:[#allocation3] sm:$0xff] %v14037_v57  ;;  %v1468_v28 = vsel %vm1456_vm2, %v10255_v44, %v13881_v42  ;;  %v10256_v42 = vadd.s32 4294967295, %v14248_v55  ;;  %v1435_v44 = vmul.f32 0.16666667, %v1429_v27 }
  0x86   : > { %271 = vst [vmem:[#allocation2] sm:$0xff] %v14037_v57  ;;  %v1492_v45 = vadd.s32 1, %v1468_v28 }
  0x87   : > { %1389 = vmatmul.bf16.gmra.mxu3 %v9962_v58  ;;  %v13200_v58 = vld [vmem:[#allocation6 + $0x338] sm:$0xff]  ;;  %272 = vst [vmem:[#allocation2 + $0x38] sm:$0xff] %v14037_v57  ;;  %vm13892_vm8 = vcmp.lt.s32.totalorder %v1435_v44, 0 }
  0x88   : > { %2597 = vmatpush.bf16.msrb.mxu0 %v13200_v58  ;;  %274 = vst [vmem:[#allocation3 + $0x38] sm:$0xff] %v14037_v57 }
  0x8c   : > { %2598 = vmatpush.bf16.msrb.mxu0 %v13199_v18 }
  0x92   : > { %1403 = vmatmul.bf16.vlgmr.msra.gmra.mxu0 %v9894_v1  ;;  %v1474_v1 = vadd.s32 6, %v1450_v54 }
  0x94   : > { %v1480_v32 = vsel %vm1456_vm2, %v1474_v1, %v1450_v54 }
  0x95   : > { %vm1486_vm4 = vcmp.ge.s32.totalorder %v1480_v32, 6  ;;  %v10261_v54 = vadd.s32 4294967290, %v1480_v32 }
  0x96   : > { %v1498_v58 = vsel %vm1486_vm4, %v1492_v45, %v1468_v28 }
  0x97   : > { %v1510_v18 = vsel %vm1486_vm4, %v10261_v54, %v1480_v32  ;;  %vm1516_vm6 = vcmp.ge.s32.totalorder %v1498_v58, 1  ;;  %vm1522_vm7 = vcmp.le.s32.totalorder %v1498_v58, 4  ;;  %v13188_v54 = vld [vmem:[#allocation6 + $0x2d8] sm:$0xff]  ;;  %v14330_v58 = vadd.s32 32, %v14222_v30 }
  0x98   : > { %vm1528_vm11 = vmand %vm1516_vm6, %vm1522_vm7  ;;  %vm1534_vm12 = vcmp.ge.s32.totalorder %v1510_v18, 1  ;;  %vm1546_vm14 = vcmp.le.s32.totalorder %v1510_v18, 4 }
  0x99   : > { %vm14320_vm13 = vmand %vm1528_vm11, %vm1534_vm12 }
  0x9a   : > { %vm14340_vm1 = vmand %vm14320_vm13, %vm1546_vm14 }
  0xa2   : > { %1408 = vmatmul.bf16.gmra.mxu0 %v9930_v6  ;;  %v13889_v6 = vfloor.f32 %v1434_v59  ;;  %v1469_v59 = vsel %vm1457_vm5, %v10256_v42, %v14248_v55 }
  0xa3   : > { %v1493_v55 = vadd.s32 1, %v1469_v59 }
  0xa4   : > { %v13890_v23 = vsel %vm13887_vm3, %v13888_v5, %v13889_v6  ;;  %v13181_v6 = vld [vmem:[#allocation6 + $0x2a0] sm:$0xff] }
  0xa5   : > { %v14264_v38 = vcvt.f32.s32 %v13890_v23  ;;  %2552 = vmatpush.bf16.msra.mxu2 %v13181_v6 }
  0xa7   : > { %v10257_v28 = vadd.s32 4294967295, %v14264_v38 }
  0xaf   : > { %v14188_v25 = vpop.f32.mrf.mxu0 }
  0xb0   : > { %v1213_v7 = vadd.f32 %v14251_v56, %v14188_v25 }
  0xb1   : > { %v14192_v31 = vpop.f32.mrf.mxu1 }
  0xb2   : > { %1413 = vmatmul.bf16.gmra.mxu0 %v9966_v9  ;;  %v13191_v9 = vld [vmem:[#allocation6 + $0x2f0] sm:$0xff]  ;;  %v1237_v25 = vadd.f32 %v14192_v31, %v1213_v7  ;;  %v1475_v31 = vadd.s32 6, %v1451_v33  ;;  %v13189_v7 = vld [vmem:[#allocation6 + $0x2e0] sm:$0xff] }
  0xb3   : > { %2574 = vmatpush.bf16.msra.mxu3 %v13191_v9 }
  0xb6   : > { %v14196_v11 = vpop.f32.mrf.mxu2 }
  0xb7   : > { %v14190_v61 = vpop.f32.mrf.mxu0  ;;  %v1261_v46 = vadd.f32 %v14196_v11, %v1237_v25  ;;  %v13198_v11 = vld [vmem:[#allocation6 + $0x328] sm:$0xff]  ;;  %2575 = vmatpush.bf16.msra.mxu3 %v13190_v52 }
  0xb8   : > { %v1215_v43 = vadd.f32 %v14251_v56, %v14190_v61  ;;  %v1446_v61 = vmul.u32 6, %v14264_v38  ;;  %2599 = vmatpush.bf16.msrb.mxu0 %v13198_v11 }
  0xb9   : > { %v14200_v35 = vpop.f32.mrf.mxu1 }
  0xba   : > { %v14198_v12 = vpop.f32.mrf.mxu3  ;;  %v1239_v40 = vadd.f32 %v14200_v35, %v1215_v43  ;;  %v1481_v35 = vsel %vm1457_vm5, %v1475_v31, %v1451_v33  ;;  %v1452_v9 = vsub.s32 %v14243_v53, %v1446_v61 }
  0xbb   : > { %2576 = vmatpush.bf16.msra.mxu3 %v13189_v7  ;;  %vm1487_vm9 = vcmp.ge.s32.totalorder %v1481_v35, 6 }
  0xbc   : > { %2600 = vmatpush.bf16.msrb.mxu0 %v13197_v8  ;;  %vm1458_vm10 = vcmp.lt.s32.totalorder %v1452_v9, 0  ;;  %v1476_v32 = vadd.s32 6, %v1452_v9  ;;  %v1499_v42 = vsel %vm1487_vm9, %v1493_v55, %v1469_v59 }
  0xbd   : > { %vm1517_vm15 = vcmp.ge.s32.totalorder %v1499_v42, 1  ;;  %vm1523_vm0 = vcmp.le.s32.totalorder %v1499_v42, 4 }
  0xbe   : > { %v14204_v14 = vpop.f32.mrf.mxu2  ;;  %v1482_v61 = vsel %vm1458_vm10, %v1476_v32, %v1452_v9  ;;  %vm14348_vm3 = vmand %vm1517_vm15, %vm1523_vm0  ;;  %v13171_v9 = vld [vmem:[#allocation6 + $0x250] sm:$0xff] }
  0xbf   : > { %v14194_v10 = vpop.f32.mrf.mxu0  ;;  %v1263_v1 = vadd.f32 %v14204_v14, %v1239_v40  ;;  %v13893_v14 = vceil.f32 %v1435_v44  ;;  %vm1488_vm2 = vcmp.ge.s32.totalorder %v1482_v61, 6  ;;  %2577 = vmatpush.bf16.msra.mxu3 %v13188_v54 }
  0xc0   : > { %v1218_v36 = vadd.f32 %v14251_v56, %v14194_v10  ;;  %v1285_v10 = vadd.f32 %v14198_v12, %v1261_v46  ;;  %2601 = vmatpush.bf16.msrb.mxu0 %v13196_v24 }
  0xc1   : > { %v14210_v2 = vpop.f32.mrf.mxu1 }
  0xc2   : > { %v14206_v62 = vpop.f32.mrf.mxu3  ;;  %v1242_v3 = vadd.f32 %v14210_v2, %v1218_v36  ;;  %v13894_v2 = vfloor.f32 %v1435_v44 }
  0xc3   : > { %v1287_v46 = vadd.f32 %v14206_v62, %v1263_v1 }
  0xc4   : > { %v13895_v25 = vsel %vm13892_vm8, %v13893_v14, %v13894_v2  ;;  %v13195_v2 = vld [vmem:[#allocation6 + $0x310] sm:$0xff] }
  0xc5   : > { %v14315_v51 = vcvt.f32.s32 %v13895_v25  ;;  %2602 = vmatpush.bf16.msrb.mxu0 %v13195_v2 }
  0xc6   : > { %v14212_v16 = vpop.f32.mrf.mxu2 }
  0xc7   : > { %v14202_v13 = vpop.f32.mrf.mxu0  ;;  %v1266_v53 = vadd.f32 %v14212_v16, %v1242_v3  ;;  %v10262_v16 = vadd.s32 4294967290, %v1481_v35  ;;  %v1430_v3 = vcvt.s32.f32 %v14330_v58 }
  0xc8   : > { %v1220_v43 = vadd.f32 %v14251_v56, %v14202_v13  ;;  %v1470_v13 = vsel %vm1458_vm10, %v10257_v28, %v14264_v38  ;;  %v13180_v38 = vld [vmem:[#allocation6 + $0x298] sm:$0xff] }
  0xc9   : > { %v14218_v29 = vpop.f32.mrf.mxu1  ;;  %v1511_v27 = vsel %vm1487_vm9, %v10262_v16, %v1481_v35  ;;  %v1494_v40 = vadd.s32 1, %v1470_v13  ;;  %2553 = vmatpush.bf16.msra.mxu2 %v13180_v38  ;;  %v1436_v28 = vmul.f32 0.16666667, %v1430_v3  ;;  %v14377_v16 = vadd.s32 40, %v14222_v30 }
  0xca   : > { %v14216_v21 = vpop.f32.mrf.mxu3  ;;  %vm1535_vm4 = vcmp.ge.s32.totalorder %v1511_v27, 1  ;;  %vm1547_vm6 = vcmp.le.s32.totalorder %v1511_v27, 4 }
  0xcb   : > { %v1500_v14 = vsel %vm1488_vm2, %v1494_v40, %v1470_v13  ;;  %vm14366_vm5 = vmand %vm14348_vm3, %vm1535_vm4  ;;  %vm13897_vm9 = vcmp.lt.s32.totalorder %v1436_v28, 0  ;;  %v13899_v42 = vfloor.f32 %v1436_v28 }
  0xcc   : > { %vm1518_vm7 = vcmp.ge.s32.totalorder %v1500_v14, 1  ;;  %vm1524_vm8 = vcmp.le.s32.totalorder %v1500_v14, 4  ;;  %vm14383_vm10 = vmand %vm14366_vm5, %vm1547_vm6 }
  0xcd   : > { %vm14392_vm12 = vmand %vm1518_vm7, %vm1524_vm8 }
  0xce   : > { %v14220_v19 = vpop.f32.mrf.mxu2 }
  0xcf   : > { %v14208_v15 = vpop.f32.mrf.mxu0 }
  0xd0   : > { %v1223_v36 = vadd.f32 %v14251_v56, %v14208_v15  ;;  %v1244_v15 = vadd.f32 %v14218_v29, %v1220_v43  ;;  %v10258_v43 = vadd.s32 4294967295, %v14315_v51 }
  0xd1   : > { %v14229_v34 = vpop.f32.mrf.mxu1 }
  0xd2   : > { %v14227_v26 = vpop.f32.mrf.mxu3  ;;  %v1247_v29 = vadd.f32 %v14229_v34, %v1223_v36  ;;  %v1268_v44 = vadd.f32 %v14220_v19, %v1244_v15  ;;  %v13179_v19 = vld [vmem:[#allocation6 + $0x290] sm:$0xff]  ;;  %v1431_v15 = vcvt.s32.f32 %v14377_v16 }
  0xd3   : > { %2554 = vmatpush.bf16.msra.mxu2 %v13179_v19 }
  0xd4   : > { %v1437_v27 = vmul.f32 0.16666667, %v1431_v15 }
  0xd6   : > { %v14234_v39 = vpop.f32.mrf.mxu2  ;;  %v13903_v34 = vceil.f32 %v1437_v27  ;;  %vm13902_vm0 = vcmp.lt.s32.totalorder %v1437_v27, 0 }
  0xd7   : > { %v14214_v17 = vpop.f32.mrf.mxu0  ;;  %v1271_v35 = vadd.f32 %v14234_v39, %v1247_v29 }
  0xd8   : > { %v1225_v18 = vadd.f32 %v14251_v56, %v14214_v17  ;;  %v13177_v17 = vld [vmem:[#allocation6 + $0x280] sm:$0xff] }
  0xd9   : > { %v14238_v0 = vpop.f32.mrf.mxu1 }
  0xda   : > { %v14236_v48 = vpop.f32.mrf.mxu3  ;;  %v14400_v38 = vadd.f32 %v14238_v0, %v1225_v18 }
  0xde   : > { %v14245_v4 = vpop.f32.mrf.mxu2 }
  0xdf   : > { %v14224_v20 = vpop.f32.mrf.mxu0 }
  0xe0   : > { %v1309_v12 = vadd.f32 %v14224_v20, %v1285_v10  ;;  %v13172_v20 = vld [vmem:[#allocation6 + $0x258] sm:$0xff]  ;;  %v14333_v10 = vld [vmem:[%s14112_s12] ss:$0 sm:$0xff] }
  0xe1   : > { %v14260_v22 = vpop.f32.mrf.mxu1  ;;  %2529 = vmatpush.bf16.msra.mxu1 %v13172_v20 }
  0xe2   : > { %v14253_v60 = vpop.f32.mrf.mxu3  ;;  %v1333_v45 = vadd.f32 %v14260_v22, %v1309_v12  ;;  %v1290_v22 = vadd.f32 %v14216_v21, %v1266_v53  ;;  %v13187_v12 = vld [vmem:[#allocation6 + $0x2d0] sm:$0xff] }
  0xe3   : > { %2578 = vmatpush.bf16.msra.mxu3 %v13187_v12 }
  0xe5   : > { %2530 = vmatpush.bf16.msra.mxu1 %v13171_v9 }
  0xe6   : > { %v14267_v41 = vpop.f32.mrf.mxu2 }
  0xe7   : > { %v14232_v37 = vpop.f32.mrf.mxu0  ;;  %v1357_v31 = vadd.f32 %v14267_v41, %v1333_v45 }
  0xe8   : > { %v1311_v41 = vadd.f32 %v14232_v37, %v1287_v46 }
  0xe9   : > { %v14291_v5 = vpop.f32.mrf.mxu1 }
  0xea   : > { %v14283_v57 = vpop.f32.mrf.mxu3  ;;  %v1335_v6 = vadd.f32 %v14291_v5, %v1311_v41  ;;  %v1295_v41 = vadd.f32 %v14236_v48, %v1271_v35 }
  0xeb   : > { %v1381_v37 = vadd.f32 %v14283_v57, %v1357_v31  ;;  %v10263_v57 = vadd.s32 4294967290, %v1482_v61 }
  0xed   : > { %v14371_v56 = vsel %vm1488_vm2, %v10263_v57, %v1482_v61  ;;  %v13904_v57 = vfloor.f32 %v1437_v27 }
  0xee   : > { %v14297_v23 = vpop.f32.mrf.mxu2  ;;  %vm1536_vm13 = vcmp.ge.s32.totalorder %v14371_v56, 1  ;;  %vm1548_vm15 = vcmp.le.s32.totalorder %v14371_v56, 4  ;;  %v13185_v56 = vld [vmem:[#allocation6 + $0x2c0] sm:$0xff] }
  0xef   : > { %v14240_v50 = vpop.f32.mrf.mxu0  ;;  %v1359_v53 = vadd.f32 %v14297_v23, %v1335_v6  ;;  %v13898_v23 = vceil.f32 %v1436_v28  ;;  %vm14412_vm14 = vmand %vm14392_vm12, %vm1536_vm13  ;;  %v13905_v28 = vsel %vm13902_vm0, %v13903_v34, %v13904_v57 }
  0xf0   : > { %v1314_v21 = vadd.f32 %v14240_v50, %v1290_v22  ;;  %v1447_v50 = vmul.u32 6, %v14315_v51  ;;  %v1292_v22 = vadd.f32 %v14227_v26, %v1268_v44  ;;  %v13194_v44 = vld [vmem:[#allocation6 + $0x308] sm:$0xff]  ;;  %vm14428_vm3 = vmand %vm14412_vm14, %vm1548_vm15 }
  0xf1   : > { %v1337_v11 = vpop.f32.mrf.mxu1  ;;  %2603 = vmatpush.bf16.msrb.mxu0 %v13194_v44 }
  0xf2   : > { %v14318_v52 = vpop.f32.mrf.mxu3  ;;  %v1338_v55 = vadd.f32 %v1337_v11, %v1314_v21  ;;  %v1453_v20 = vsub.s32 %v14274_v49, %v1447_v50  ;;  %v13170_v49 = vld [vmem:[#allocation6 + $0x248] sm:$0xff] }
  0xf3   : > { %v1383_v36 = vadd.f32 %v14318_v52, %v1359_v53  ;;  %2531 = vmatpush.bf16.msra.mxu1 %v13170_v49  ;;  %v13900_v52 = vsel %vm13897_vm9, %v13898_v23, %v13899_v42  ;;  %v13186_v50 = vld [vmem:[#allocation6 + $0x2c8] sm:$0xff] }
  0xf4   : > { %vm1459_vm11 = vcmp.lt.s32.totalorder %v1453_v20, 0  ;;  %v1477_v13 = vadd.s32 6, %v1453_v20  ;;  %v13901_v54 = vcvt.f32.s32 %v13900_v52  ;;  %2579 = vmatpush.bf16.msra.mxu3 %v13186_v50 }
  0xf5   : > { %v1471_v11 = vsel %vm1459_vm11, %v10258_v43, %v14315_v51  ;;  %v13178_v51 = vld [vmem:[#allocation6 + $0x288] sm:$0xff] }
  0xf6   : > { %v1361_v7 = vpop.f32.mrf.mxu2  ;;  %v14417_v0 = vsel %vm1459_vm11, %v1477_v13, %v1453_v20  ;;  %2555 = vmatpush.bf16.msra.mxu2 %v13178_v51 }
  0xf7   : > { %v14255_v63 = vpop.f32.mrf.mxu0  ;;  %v1362_v32 = vadd.f32 %v1361_v7, %v1338_v55  ;;  %vm1489_vm2 = vcmp.ge.s32.totalorder %v14417_v0, 6 }
  0xf8   : > { %v1316_v24 = vadd.f32 %v14255_v63, %v1292_v22  ;;  %v1448_v63 = vmul.u32 6, %v13901_v54  ;;  %v1273_v22 = vadd.f32 %v14245_v4, %v14400_v38  ;;  %2580 = vmatpush.bf16.msra.mxu3 %v13185_v56 }
  0xf9   : > { %v14388_v62 = vpop.f32.mrf.mxu1 }
  0xfa   : > { %v1385_v45 = vpop.f32.mrf.mxu3  ;;  %v1454_v9 = vsub.s32 %v14330_v58, %v1448_v63  ;;  %v1340_v42 = vadd.f32 %v14388_v62, %v1316_v24  ;;  %2556 = vmatpush.bf16.msra.mxu2 %v13177_v17  ;;  %v1297_v48 = vadd.f32 %v14253_v60, %v1273_v22 }
  0xfb   : > { %v1386_v21 = vadd.f32 %v1385_v45, %v1362_v32  ;;  %v13169_v32 = vld [vmem:[#allocation6 + $0x240] sm:$0xff]  ;;  %v10264_v45 = vadd.s32 4294967290, %v14417_v0 }
  0xfc   : > { %vm1460_vm4 = vcmp.lt.s32.totalorder %v1454_v9, 0  ;;  %v1478_v58 = vadd.s32 6, %v1454_v9  ;;  %2532 = vmatpush.bf16.msra.mxu1 %v13169_v32 }
  0xfe   : > { %v14405_v40 = vpop.f32.mrf.mxu2 }
  0xff   : > { %v14278_v47 = vpop.f32.mrf.mxu0  ;;  %v1364_v15 = vadd.f32 %v14405_v40, %v1340_v42 }
 0x100   : > { %v1319_v53 = vadd.f32 %v14278_v47, %v1295_v41  ;;  %v13193_v47 = vld [vmem:[#allocation6 + $0x300] sm:$0xff] }
 0x101   : > { %2604 = vmatpush.bf16.msrb.mxu0 %v13193_v47 }
 0x107   : > { %v14301_v33 = vpop.f32.mrf.mxu0 }
 0x108   : > { %v1321_v57 = vadd.f32 %v14301_v33, %v1297_v48  ;;  %v13208_v48 = vld [vmem:[#allocation6 + $0x378] sm:$0xff] }
 0x109   : > { %2621 = vmatpush.bf16.msrb.mxu1 %v13208_v48 }
 0x10f   : > { %v1404_v1 = vpop.f32.mrf.mxu0 }
 0x110   : > { %v1405_v8 = vadd.f32 %v1404_v1, %v1381_v37  ;;  %v10259_v1 = vadd.s32 4294967295, %v13901_v54 }
 0x112   : > { %v1570_v39 = vsel %vm14340_vm1, %v1405_v8, 0.0  ;;  %v1586_v5 = vadd.f32 %v14333_v10, %v1405_v8  ;;  %v1495_v8 = vadd.s32 1, %v1471_v11  ;;  %v1472_v23 = vsel %vm1460_vm4, %v10259_v1, %v13901_v54 }
 0x113   : > { %1577 = vst [vmem:[#allocation2 + $0x8] sm:$0xff] %v1570_v39  ;;  %v1387_v39 = vpop.f32.mrf.mxu3  ;;  %v1496_v52 = vadd.s32 1, %v1472_v23 }
 0x114   : > { %v1592_v25 = vsel %vm14340_vm1, %v1586_v5, 0.0  ;;  %v1501_v43 = vsel %vm1489_vm2, %v1495_v8, %v1471_v11  ;;  %v1388_v44 = vadd.f32 %v1387_v39, %v1364_v15 }
 0x115   : > { %1599 = vst [vmem:[#allocation3 + $0x8] sm:$0xff] %v1592_v25  ;;  %v1689_v46 = vpack.c.bf16 %v1592_v25, %v1592_v25  ;;  %v14434_v25 = vcvt.f32.s32 %v13905_v28  ;;  %vm1519_vm5 = vcmp.ge.s32.totalorder %v1501_v43, 1  ;;  %vm1525_vm7 = vcmp.le.s32.totalorder %v1501_v43, 4 }
 0x116   : > { %vm14465_vm9 = vmand %vm1519_vm5, %vm1525_vm7 }
 0x117   : > { %1695 = vst [vmem:[#allocation5 + $0x10] sm:$0xf] %v1689_v46  ;;  %v1406_v61 = vpop.f32.mrf.mxu0  ;;  %v1484_v46 = vsel %vm1460_vm4, %v1478_v58, %v1454_v9  ;;  %v1449_v13 = vmul.u32 6, %v14434_v25  ;;  %v10260_v34 = vadd.s32 4294967295, %v14434_v25 }
 0x118   : > { %v1407_v26 = vadd.f32 %v1406_v61, %v1383_v36  ;;  %v1342_v36 = vpop.f32.mrf.mxu1  ;;  %vm1490_vm6 = vcmp.ge.s32.totalorder %v1484_v46, 6 }
 0x119   : > { %v1455_v62 = vsub.s32 %v14377_v16, %v1449_v13  ;;  %v1343_v41 = vadd.f32 %v1342_v36, %v1319_v53  ;;  %v1502_v50 = vsel %vm1490_vm6, %v1496_v52, %v1472_v23 }
 0x11a   : > { %v1571_v29 = vsel %vm14383_vm10, %v1407_v26, 0.0  ;;  %v1587_v37 = vadd.f32 %v14333_v10, %v1407_v26  ;;  %v1366_v26 = vpop.f32.mrf.mxu2  ;;  %vm1520_vm12 = vcmp.ge.s32.totalorder %v1502_v50, 1  ;;  %vm1526_vm13 = vcmp.le.s32.totalorder %v1502_v50, 4 }
 0x11b   : > { %1578 = vst [vmem:[#allocation2 + $0x10] sm:$0xff] %v1571_v29  ;;  %v1367_v1 = vadd.f32 %v1366_v26, %v1343_v41  ;;  %vm1461_vm8 = vcmp.lt.s32.totalorder %v1455_v62, 0  ;;  %v1479_v60 = vadd.s32 6, %v1455_v62  ;;  %vm14491_vm4 = vmand %vm1520_vm12, %vm1526_vm13 }
 0x11c   : > { %v1608_v3 = vld [vmem:[#allocation3 + $0x1] sm:$0xff]  ;;  %v1593_v7 = vsel %vm14383_vm10, %v1587_v37, 0.0  ;;  %v10265_v37 = vadd.s32 4294967290, %v1484_v46  ;;  %v1473_v33 = vsel %vm1461_vm8, %v10260_v34, %v14434_v25 }
 0x11d   : > { %v1627_v35 = vld [vmem:[#allocation3 + $0x2] sm:$0xff]  ;;  %v1614_v19 = vpack.c.bf16 %v1608_v3, %v1608_v3  ;;  %1600 = vst [vmem:[#allocation3 + $0x10] sm:$0xff] %v1593_v7  ;;  %v1690_v5 = vpack.c.bf16 %v1593_v7, %v1593_v7 }
 0x11e   : > { %v1646_v6 = vld [vmem:[#allocation3 + $0x3] sm:$0xff]  ;;  %v1633_v12 = vpack.c.bf16 %v1627_v35, %v1627_v35  ;;  %v14471_v8 = vsel %vm1490_vm6, %v10265_v37, %v1484_v46  ;;  %v13224_v35 = vld [vmem:[#allocation6 + $0x3f8] sm:$0xff] }
 0x11f   : > { %v1652_v18 = vpack.c.bf16 %v1646_v6, %v1646_v6  ;;  %v1665_v55 = vld [vmem:[#allocation3 + $0x7] sm:$0xff]  ;;  %1620 = vst [vmem:[#allocation5] sm:$0xf] %v1614_v19  ;;  %v1409_v20 = vpop.f32.mrf.mxu0  ;;  %v1390_v6 = vpop.f32.mrf.mxu3  ;;  %v1485_v19 = vsel %vm1461_vm8, %v1479_v60, %v1455_v62  ;;  %vm1550_vm5 = vcmp.le.s32.totalorder %v14471_v8, 4  ;;  %2669 = vmatpush.bf16.msrb.mxu3 %v13224_v35 }
 0x120   : > { %v1671_v14 = vpack.c.bf16 %v1665_v55, %v1665_v55  ;;  %1639 = vst [vmem:[#allocation5 + $0x4] sm:$0xf] %v1633_v12  ;;  %v1410_v49 = vadd.f32 %v1409_v20, %v1386_v21  ;;  %v14456_v21 = vsel %vm1489_vm2, %v10264_v45, %v14417_v0  ;;  %v1497_v12 = vadd.s32 1, %v1473_v33  ;;  %v13223_v55 = vld [vmem:[#allocation6 + $0x3f0] sm:$0xff] }
 0x121   : > { %1658 = vst [vmem:[#allocation5 + $0x8] sm:$0xf] %v1652_v18  ;;  %vm1537_vm11 = vcmp.ge.s32.totalorder %v14456_v21, 1  ;;  %v1344_v18 = vpop.f32.mrf.mxu1  ;;  %vm1549_vm15 = vcmp.le.s32.totalorder %v14456_v21, 4  ;;  %vm1491_vm0 = vcmp.ge.s32.totalorder %v1485_v19, 6  ;;  %v1391_v58 = vadd.f32 %v1390_v6, %v1367_v1 }
 0x122   : > { %1677 = vst [vmem:[#allocation5 + $0xc] sm:$0xf] %v1671_v14  ;;  %v1572_v61 = vsel %vm14428_vm3, %v1410_v49, 0.0  ;;  %v1588_v30 = vadd.f32 %v14333_v10, %v1410_v49  ;;  %vm14482_vm14 = vmand %vm14465_vm9, %vm1537_vm11  ;;  %v10266_v14 = vadd.s32 4294967290, %v1485_v19  ;;  %vm1538_vm2 = vcmp.ge.s32.totalorder %v14471_v8, 1  ;;  %v1368_v45 = vpop.f32.mrf.mxu2  ;;  %v13232_v8 = vld [vmem:[#allocation6 + $0x438] sm:$0xff] }
 0x123   : > { %1696 = vst [vmem:[#allocation5 + $0x34] sm:$0xf] %v1690_v5  ;;  %v1503_v20 = vsel %vm1491_vm0, %v1497_v12, %v1473_v33  ;;  %v1345_v43 = vadd.f32 %v1344_v18, %v1321_v57  ;;  %vm14505_vm8 = vmand %vm14482_vm14, %vm1549_vm15  ;;  %2693 = vmatpush.bf16.msra.mxu0 %v13232_v8  ;;  %v13207_v12 = vld [vmem:[#allocation6 + $0x370] sm:$0xff]  ;;  %2670 = vmatpush.bf16.msrb.mxu3 %v13223_v55 }
 0x124   : > { %v1609_v4 = vld [vmem:[#allocation3 + $0x9] sm:$0xff]  ;;  %1579 = vst [vmem:[#allocation2 + $0x18] sm:$0xff] %v1572_v61  ;;  %v14451_v24 = vsel %vm14428_vm3, %v1588_v30, 0.0  ;;  %v1515_v15 = vsel %vm1491_vm0, %v10266_v14, %v1485_v19  ;;  %vm1521_vm6 = vcmp.ge.s32.totalorder %v1503_v20, 1  ;;  %vm1527_vm7 = vcmp.le.s32.totalorder %v1503_v20, 4  ;;  %vm14513_vm9 = vmand %vm14491_vm4, %vm1538_vm2  ;;  %2622 = vmatpush.bf16.msrb.mxu1 %v13207_v12  ;;  %v13230_v20 = vld [vmem:[#allocation6 + $0x428] sm:$0xff] }
 0x125   : > { %v1628_v38 = vld [vmem:[#allocation3 + $0xa] sm:$0xff]  ;;  %v1615_v11 = vpack.c.bf16 %v1609_v4, %v1609_v4  ;;  %1601 = vst [vmem:[#allocation3 + $0x18] sm:$0xff] %v14451_v24  ;;  %v1691_v46 = vpack.c.bf16 %v14451_v24, %v14451_v24  ;;  %vm1533_vm11 = vmand %vm1521_vm6, %vm1527_vm7  ;;  %vm1539_vm12 = vcmp.ge.s32.totalorder %v1515_v15, 1  ;;  %vm1551_vm15 = vcmp.le.s32.totalorder %v1515_v15, 4 }
 0x126   : > { %v1647_v54 = vld [vmem:[#allocation3 + $0xb] sm:$0xff]  ;;  %v1634_v27 = vpack.c.bf16 %v1628_v38, %v1628_v38  ;;  %v10269_v5 = vld [vmem:[#allocation5] sm:$0xf]  ;;  %vm14526_vm13 = vmand %vm14513_vm9, %vm1550_vm5 }
 0x127   : > { %v1653_v40 = vpack.c.bf16 %v1647_v54, %v1647_v54  ;;  %v1666_v16 = vld [vmem:[#allocation3 + $0xf] sm:$0xff]  ;;  %1621 = vst [vmem:[#allocation5 + $0x24] sm:$0xf] %v1615_v11  ;;  %v1411_v0 = vpop.f32.mrf.mxu0  ;;  %v13142_v49 = vld [vmem:[#allocation5 + $0x4] sm:$0xf]  ;;  %v1369_v54 = vadd.f32 %v1368_v45, %v1345_v43  ;;  %vm1545_vm14 = vmand %vm1533_vm11, %vm1539_vm12 }
 0x128   : > { %v1721_v29 = vld [vmem:[#allocation3 + $0xd] sm:$0xff]  ;;  %v1672_v63 = vpack.c.bf16 %v1666_v16, %v1666_v16  ;;  %1640 = vst [vmem:[#allocation5 + $0x28] sm:$0xf] %v1634_v27  ;;  %v14475_v9 = vadd.f32 %v1411_v0, %v1388_v44  ;;  %v10277_v4 = vld [vmem:[#allocation5 + $0x8] sm:$0xf]  ;;  %vm14537_vm0 = vmand %vm1545_vm14, %vm1551_vm15 }
 0x129   : > { %v1740_v51 = vld [vmem:[#allocation3 + $0xe] sm:$0xff]  ;;  %v1727_v3 = vpack.c.bf16 %v1721_v29, %v1721_v29  ;;  %1659 = vst [vmem:[#allocation5 + $0x2c] sm:$0xf] %v1653_v40 }
 0x12a   : > { %v1746_v7 = vpack.c.bf16 %v1740_v51, %v1740_v51  ;;  %1678 = vst [vmem:[#allocation5 + $0x30] sm:$0xf] %v1672_v63  ;;  %v1589_v13 = vadd.f32 %v14333_v10, %v14475_v9  ;;  %v13143_v27 = vld [vmem:[#allocation5 + $0xc] sm:$0xf]  ;;  %v1573_v44 = vsel %vm14505_vm8, %v14475_v9, 0.0  ;;  %v13204_v15 = vld [vmem:[#allocation6 + $0x358] sm:$0xff] }
 0x12b   : > { %1714 = vst [vmem:[#allocation5 + $0x14] sm:$0xf] %v1615_v11  ;;  %v13215_v18 = vld [vmem:[#allocation6 + $0x3b0] sm:$0xff] }
 0x12c   : > { %1733 = vst [vmem:[#allocation5 + $0x18] sm:$0xf] %v1727_v3  ;;  %v1610_v28 = vld [vmem:[#allocation3 + $0x11] sm:$0xff]  ;;  %v1595_v51 = vsel %vm14505_vm8, %v1589_v13, 0.0  ;;  %v13219_v8 = vld [vmem:[#allocation6 + $0x3d0] sm:$0xff] }
 0x12d   : > { %v1629_v53 = vld [vmem:[#allocation3 + $0x12] sm:$0xff]  ;;  %1752 = vst [vmem:[#allocation5 + $0x1c] sm:$0xf] %v1746_v7  ;;  %v1616_v32 = vpack.c.bf16 %v1610_v28, %v1610_v28  ;;  %v1692_v0 = vpack.c.bf16 %v1595_v51, %v1595_v51 }
 0x12e   : > { %v1648_v39 = vld [vmem:[#allocation3 + $0x13] sm:$0xff]  ;;  %v1635_v17 = vpack.c.bf16 %v1629_v53, %v1629_v53  ;;  %1771 = vst [vmem:[#allocation5 + $0x20] sm:$0xf] %v1672_v63  ;;  %v13146_v22 = vld [vmem:[#allocation5 + $0x20] sm:$0xf0]  ;;  %v1392_v63 = vpop.f32.mrf.mxu3 }
 0x12f   : > { %v1654_v56 = vpack.c.bf16 %v1648_v39, %v1648_v39  ;;  %v1667_v23 = vld [vmem:[#allocation3 + $0x17] sm:$0xff]  ;;  %1622 = vst [vmem:[#allocation5 + $0x48] sm:$0xf] %v1616_v32  ;;  %v1414_v61 = vpop.f32.mrf.mxu0  ;;  %v10270_v30 = vor.u32 %v13146_v22, %v10269_v5  ;;  %v10271_v52 = vld [vmem:[#allocation5 + $0x24] sm:$0xf0]  ;;  %v1393_v1 = vadd.f32 %v1392_v63, %v1369_v54  ;;  %v13206_v53 = vld [vmem:[#allocation6 + $0x368] sm:$0xff] }
 0x130   : > { %v1673_v47 = vpack.c.bf16 %v1667_v23, %v1667_v23  ;;  %v1722_v42 = vld [vmem:[#allocation3 + $0x15] sm:$0xff]  ;;  %1641 = vst [vmem:[#allocation5 + $0x4c] sm:$0xf] %v1635_v17  ;;  %v1415_v41 = vadd.f32 %v1414_v61, %v1391_v58  ;;  %v10274_v26 = vor.u32 %v13142_v49, %v10271_v52  ;;  %v13147_v38 = vld [vmem:[#allocation5 + $0x28] sm:$0xf0]  ;;  %v13214_v39 = vld [vmem:[#allocation6 + $0x3a8] sm:$0xff]  ;;  %2623 = vmatpush.bf16.msrb.mxu1 %v13206_v53 }
 0x131   : > { %v1741_v36 = vld [vmem:[#allocation3 + $0x16] sm:$0xff]  ;;  %v1728_v24 = vpack.c.bf16 %v1722_v42, %v1722_v42  ;;  %1660 = vst [vmem:[#allocation5 + $0x50] sm:$0xf] %v1654_v56  ;;  %2533 = vmatmul.bf16.vlgmr.msra.gmra.mxu1 %v10270_v30  ;;  %v10278_v21 = vor.u32 %v13147_v38, %v10277_v4  ;;  %v10279_v40 = vld [vmem:[#allocation5 + $0x2c] sm:$0xf0]  ;;  %v13231_v58 = vld [vmem:[#allocation6 + $0x430] sm:$0xff] }
 0x132   : > { %v1747_v16 = vpack.c.bf16 %v1741_v36, %v1741_v36  ;;  %1679 = vst [vmem:[#allocation5 + $0x54] sm:$0xf] %v1673_v47  ;;  %v1590_v29 = vadd.f32 %v14333_v10, %v1415_v41  ;;  %2557 = vmatmul.bf16.vlgmr.msra.gmra.mxu2 %v10274_v26  ;;  %v10282_v37 = vor.u32 %v13143_v27, %v10279_v40  ;;  %v13216_v3 = vld [vmem:[#allocation6 + $0x3b8] sm:$0xff]  ;;  %v1574_v60 = vsel %vm14526_vm13, %v1415_v41, 0.0  ;;  %v13222_v5 = vld [vmem:[#allocation6 + $0x3e8] sm:$0xff]  ;;  %v13213_v42 = vld [vmem:[#allocation6 + $0x3a0] sm:$0xff] }
 0x133   : > { %1697 = vst [vmem:[#allocation5 + $0x58] sm:$0xf] %v1691_v46  ;;  %2581 = vmatmul.bf16.vlgmr.msra.gmra.mxu3 %v10278_v21  ;;  %2645 = vmatpush.bf16.msrb.mxu2 %v13216_v3  ;;  %v13221_v36 = vld [vmem:[#allocation6 + $0x3e0] sm:$0xff]  ;;  %v13212_v41 = vld [vmem:[#allocation6 + $0x398] sm:$0xff] }
 0x134   : > { %1715 = vst [vmem:[#allocation5 + $0x38] sm:$0xf] %v1616_v32  ;;  %2605 = vmatmul.bf16.vlgmr.msrb.gmra.mxu0 %v10282_v37  ;;  %v1596_v34 = vsel %vm14526_vm13, %v1590_v29, 0.0  ;;  %2671 = vmatpush.bf16.msrb.mxu3 %v13222_v5  ;;  %v13229_v13 = vld [vmem:[#allocation6 + $0x420] sm:$0xff]  ;;  %v13220_v4 = vld [vmem:[#allocation6 + $0x3d8] sm:$0xff]  ;;  %v13218_v5 = vld [vmem:[#allocation6 + $0x3c8] sm:$0xff] }
 0x135   : > { %1734 = vst [vmem:[#allocation5 + $0x3c] sm:$0xf] %v1728_v24  ;;  %v1693_v33 = vpack.c.bf16 %v1596_v34, %v1596_v34  ;;  %2694 = vmatpush.bf16.msra.mxu0 %v13231_v58  ;;  %v13228_v29 = vld [vmem:[#allocation6 + $0x418] sm:$0xff]  ;;  %v13202_v58 = vld [vmem:[#allocation6 + $0x348] sm:$0xff] }
 0x136   : > { %1753 = vst [vmem:[#allocation5 + $0x40] sm:$0xf] %v1747_v16  ;;  %v10305_v11 = vld [vmem:[#allocation5 + $0x48] sm:$0xf] }
 0x137   : > { %1772 = vst [vmem:[#allocation5 + $0x44] sm:$0xf] %v1673_v47  ;;  %v1416_v57 = vpop.f32.mrf.mxu0  ;;  %2646 = vmatpush.bf16.msrb.mxu2 %v13215_v18  ;;  %v13151_v16 = vld [vmem:[#allocation5 + $0x4c] sm:$0xf]  ;;  %v13210_v18 = vld [vmem:[#allocation6 + $0x388] sm:$0xff] }
 0x138   : > { %1580 = vst [vmem:[#allocation2 + $0x20] sm:$0xff] %v1573_v44  ;;  %v1417_v6 = vadd.f32 %v1416_v57, %v1393_v1  ;;  %2672 = vmatpush.bf16.msrb.mxu3 %v13221_v36  ;;  %v10313_v63 = vld [vmem:[#allocation5 + $0x50] sm:$0xf]  ;;  %v13211_v44 = vld [vmem:[#allocation6 + $0x390] sm:$0xff] }
 0x139   : > { %1602 = vst [vmem:[#allocation3 + $0x20] sm:$0xff] %v1595_v51  ;;  %2695 = vmatpush.bf16.msra.mxu0 %v13230_v20  ;;  %v13203_v51 = vld [vmem:[#allocation6 + $0x350] sm:$0xff] }
 0x13a   : > { %1698 = vst [vmem:[#allocation5 + $0x7c] sm:$0xf] %v1692_v0  ;;  %v1591_v9 = vadd.f32 %v14333_v10, %v1417_v6  ;;  %v1575_v19 = vsel %vm14537_vm0, %v1417_v6, 0.0  ;;  %v13205_v10 = vld [vmem:[#allocation6 + $0x360] sm:$0xff]  ;;  %v13227_v57 = vld [vmem:[#allocation6 + $0x410] sm:$0xff] }
 0x13b   : > { %1581 = vst [vmem:[#allocation2 + $0x28] sm:$0xff] %v1574_v60  ;;  %2647 = vmatpush.bf16.msrb.mxu2 %v13214_v39  ;;  %2624 = vmatpush.bf16.msrb.mxu1 %v13205_v10  ;;  %v13226_v10 = vld [vmem:[#allocation6 + $0x408] sm:$0xff] }
 0x13c   : > { %1603 = vst [vmem:[#allocation3 + $0x28] sm:$0xff] %v1596_v34  ;;  %v1597_v14 = vsel %vm14537_vm0, %v1591_v9, 0.0  ;;  %2673 = vmatpush.bf16.msrb.mxu3 %v13220_v4  ;;  %v13152_v34 = vld [vmem:[#allocation5 + $0x54] sm:$0xf] }
 0x13d   : > { %1699 = vst [vmem:[#allocation5 + $0xa0] sm:$0xf] %v1693_v33  ;;  %v1694_v28 = vpack.c.bf16 %v1597_v14, %v1597_v14  ;;  %2696 = vmatpush.bf16.msra.mxu0 %v13229_v13 }
 0x13e   : > { %1582 = vst [vmem:[#allocation2 + $0x30] sm:$0xff] %v1575_v19 }
 0x13f   : > { %1604 = vst [vmem:[#allocation3 + $0x30] sm:$0xff] %v1597_v14  ;;  %2648 = vmatpush.bf16.msrb.mxu2 %v13213_v42  ;;  %2625 = vmatpush.bf16.msrb.mxu1 %v13204_v15  ;;  %v13217_v42 = vld [vmem:[#allocation6 + $0x3c0] sm:$0xff] }
 0x140   : > { %v1611_v32 = vld [vmem:[#allocation3 + $0x19] sm:$0xff]  ;;  %1700 = vst [vmem:[#allocation5 + $0xc4] sm:$0xf] %v1694_v28  ;;  %2674 = vmatpush.bf16.msrb.mxu3 %v13219_v8 }
 0x141   : > { %v1630_v17 = vld [vmem:[#allocation3 + $0x1a] sm:$0xff]  ;;  %v1617_v23 = vpack.c.bf16 %v1611_v32, %v1611_v32  ;;  %2697 = vmatpush.bf16.msra.mxu0 %v13228_v29 }
 0x142   : > { %v1649_v56 = vld [vmem:[#allocation3 + $0x1b] sm:$0xff]  ;;  %v1636_v25 = vpack.c.bf16 %v1630_v17, %v1630_v17 }
 0x143   : > { %v1655_v49 = vpack.c.bf16 %v1649_v56, %v1649_v56  ;;  %v1668_v43 = vld [vmem:[#allocation3 + $0x1f] sm:$0xff]  ;;  %1623 = vst [vmem:[#allocation5 + $0x6c] sm:$0xf] %v1617_v23  ;;  %v1669_v54 = vld [vmem:[#allocation3 + $0x27] sm:$0xff]  ;;  %2649 = vmatpush.bf16.msrb.mxu2 %v13212_v41  ;;  %2626 = vmatpush.bf16.msrb.mxu1 %v13203_v51  ;;  %v13236_v51 = vld [vmem:[#allocation6 + $0x458] sm:$0xff] }
 0x144   : > { %v1723_v45 = vld [vmem:[#allocation3 + $0x1d] sm:$0xff]  ;;  %v1674_v46 = vpack.c.bf16 %v1668_v43, %v1668_v43  ;;  %1642 = vst [vmem:[#allocation5 + $0x70] sm:$0xf] %v1636_v25  ;;  %v1724_v27 = vld [vmem:[#allocation3 + $0x25] sm:$0xff]  ;;  %v1675_v37 = vpack.c.bf16 %v1669_v54, %v1669_v54  ;;  %2675 = vmatpush.bf16.msrb.mxu3 %v13218_v5  ;;  %v10293_v8 = vld [vmem:[#allocation5 + $0x18] sm:$0xf] }
 0x145   : > { %v1742_v47 = vld [vmem:[#allocation3 + $0x1e] sm:$0xff]  ;;  %v1729_v22 = vpack.c.bf16 %v1723_v45, %v1723_v45  ;;  %1661 = vst [vmem:[#allocation5 + $0x74] sm:$0xf] %v1655_v49  ;;  %v1743_v40 = vld [vmem:[#allocation3 + $0x26] sm:$0xff]  ;;  %v1730_v3 = vpack.c.bf16 %v1724_v27, %v1724_v27  ;;  %2698 = vmatpush.bf16.msra.mxu0 %v13227_v57  ;;  %v13240_v45 = vld [vmem:[#allocation6 + $0x478] sm:$0xff] }
 0x146   : > { %v1612_v61 = vld [vmem:[#allocation3 + $0x21] sm:$0xff]  ;;  %v1748_v30 = vpack.c.bf16 %v1742_v47, %v1742_v47  ;;  %1680 = vst [vmem:[#allocation5 + $0x78] sm:$0xf] %v1674_v46  ;;  %v1613_v35 = vld [vmem:[#allocation3 + $0x29] sm:$0xff]  ;;  %v1749_v33 = vpack.c.bf16 %v1743_v40, %v1743_v40  ;;  %v1707_v32 = vld [vmem:[#allocation3 + $0x31] sm:$0xff] }
 0x147   : > { %v1631_v52 = vld [vmem:[#allocation3 + $0x22] sm:$0xff]  ;;  %1716 = vst [vmem:[#allocation5 + $0x5c] sm:$0xf] %v1617_v23  ;;  %v1618_v38 = vpack.c.bf16 %v1612_v61, %v1612_v61  ;;  %v1632_v9 = vld [vmem:[#allocation3 + $0x2a] sm:$0xff]  ;;  %2650 = vmatpush.bf16.msrb.mxu2 %v13211_v44  ;;  %v1619_v28 = vpack.c.bf16 %v1613_v35, %v1613_v35  ;;  %v13209_v17 = vld [vmem:[#allocation6 + $0x380] sm:$0xff]  ;;  %2627 = vmatpush.bf16.msrb.mxu1 %v13202_v58 }
 0x148   : > { %v1650_v26 = vld [vmem:[#allocation3 + $0x23] sm:$0xff]  ;;  %1735 = vst [vmem:[#allocation5 + $0x60] sm:$0xf] %v1729_v22  ;;  %v1637_v24 = vpack.c.bf16 %v1631_v52, %v1631_v52  ;;  %v1651_v55 = vld [vmem:[#allocation3 + $0x2b] sm:$0xff]  ;;  %v1638_v39 = vpack.c.bf16 %v1632_v9, %v1632_v9  ;;  %v13201_v25 = vld [vmem:[#allocation6 + $0x340] sm:$0xff]  ;;  %v1713_v47 = vpack.c.bf16 %v1707_v32, %v1707_v32  ;;  %2676 = vmatpush.bf16.msrb.mxu3 %v13217_v42 }
 0x149   : > { %1754 = vst [vmem:[#allocation5 + $0x64] sm:$0xf] %v1748_v30  ;;  %v1656_v21 = vpack.c.bf16 %v1650_v26, %v1650_v26  ;;  %v1670_v53 = vld [vmem:[#allocation3 + $0x2f] sm:$0xff]  ;;  %v1657_v20 = vpack.c.bf16 %v1651_v55, %v1651_v55  ;;  %2699 = vmatpush.bf16.msra.mxu0 %v13226_v10  ;;  %v13225_v43 = vld [vmem:[#allocation6 + $0x400] sm:$0xff]  ;;  %v13238_v41 = vld [vmem:[#allocation6 + $0x468] sm:$0xff] }
 0x14a   : > { %1773 = vst [vmem:[#allocation5 + $0x68] sm:$0xf] %v1674_v46  ;;  %v13155_v48 = vld [vmem:[#allocation5 + $0x68] sm:$0xf0]  ;;  %v1676_v56 = vpack.c.bf16 %v1670_v53, %v1670_v53  ;;  %v1726_v49 = vld [vmem:[#allocation3 + $0x35] sm:$0xff] }
 0x14b   : > { %1624 = vst [vmem:[#allocation5 + $0x90] sm:$0xf] %v1618_v38  ;;  %v10306_v1 = vor.u32 %v13155_v48, %v10305_v11  ;;  %v10307_v0 = vld [vmem:[#allocation5 + $0x6c] sm:$0xf0]  ;;  %2651 = vmatpush.bf16.msrb.mxu2 %v13210_v18  ;;  %v1745_v13 = vld [vmem:[#allocation3 + $0x36] sm:$0xff]  ;;  %v1732_v22 = vpack.c.bf16 %v1726_v49, %v1726_v49  ;;  %2628 = vmatpush.bf16.msrb.mxu1 %v13201_v25  ;;  %v13239_v52 = vld [vmem:[#allocation6 + $0x470] sm:$0xff] }
 0x14c   : > { %1643 = vst [vmem:[#allocation5 + $0x94] sm:$0xf] %v1637_v24  ;;  %v10310_v60 = vor.u32 %v13151_v16, %v10307_v0  ;;  %v13156_v6 = vld [vmem:[#allocation5 + $0x70] sm:$0xf0]  ;;  %v1751_v15 = vpack.c.bf16 %v1745_v13, %v1745_v13  ;;  %v13235_v44 = vld [vmem:[#allocation6 + $0x450] sm:$0xff]  ;;  %v13233_v18 = vld [vmem:[#allocation6 + $0x440] sm:$0xff] }
 0x14d   : > { %1662 = vst [vmem:[#allocation5 + $0x98] sm:$0xf] %v1656_v21  ;;  %2538 = vmatmul.bf16.gmra.mxu1 %v10306_v1  ;;  %v10314_v19 = vor.u32 %v13156_v6, %v10313_v63  ;;  %v10315_v12 = vld [vmem:[#allocation5 + $0x74] sm:$0xf0]  ;;  %v1725_v23 = vld [vmem:[#allocation3 + $0x2d] sm:$0xff]  ;;  %2700 = vmatpush.bf16.msra.mxu0 %v13225_v43 }
 0x14e   : > { %1681 = vst [vmem:[#allocation5 + $0x9c] sm:$0xf] %v1675_v37  ;;  %2562 = vmatmul.bf16.gmra.mxu2 %v10310_v60  ;;  %v10318_v14 = vor.u32 %v13152_v34, %v10315_v12  ;;  %v1744_v46 = vld [vmem:[#allocation3 + $0x2e] sm:$0xff]  ;;  %v1731_v36 = vpack.c.bf16 %v1725_v23, %v1725_v23  ;;  %v1764_v30 = vld [vmem:[#allocation3 + $0x37] sm:$0xff]  ;;  %v10295_v60 = vld [vmem:[#allocation5 + $0x3c] sm:$0xf0] }
 0x14f   : > { %1717 = vst [vmem:[#allocation5 + $0x80] sm:$0xf] %v1618_v38  ;;  %2586 = vmatmul.bf16.gmra.mxu3 %v10314_v19  ;;  %2652 = vmatpush.bf16.msrb.mxu2 %v13209_v17  ;;  %v1750_v61 = vpack.c.bf16 %v1744_v46, %v1744_v46  ;;  %v1770_v26 = vpack.c.bf16 %v1764_v30, %v1764_v30  ;;  %v13237_v63 = vld [vmem:[#allocation6 + $0x460] sm:$0xff]  ;;  %v13148_v1 = vld [vmem:[#allocation5 + $0x30] sm:$0xf0]  ;;  %v13234_v12 = vld [vmem:[#allocation6 + $0x448] sm:$0xff] }
 0x150   : > { %1736 = vst [vmem:[#allocation5 + $0x84] sm:$0xf] %v1730_v3  ;;  %2610 = vmatmul.bf16.gmra.mxu0 %v10318_v14  ;;  %2717 = vmatpush.bf16.msra.mxu1 %v13240_v45  ;;  %v10287_v0 = vld [vmem:[#allocation5 + $0x34] sm:$0xf0]  ;;  %v10285_v34 = vld [vmem:[#allocation5 + $0x10] sm:$0xf] }
 0x151   : > { %1755 = vst [vmem:[#allocation5 + $0x88] sm:$0xf] %v1749_v33  ;;  %v13149_v57 = vld [vmem:[#allocation5 + $0x38] sm:$0xf0]  ;;  %v10286_v3 = vor.u32 %v13148_v1, %v10285_v34  ;;  %v13144_v35 = vld [vmem:[#allocation5 + $0x14] sm:$0xf] }
 0x152   : > { %1774 = vst [vmem:[#allocation5 + $0x8c] sm:$0xf] %v1675_v37  ;;  %v10341_v4 = vld [vmem:[#allocation5 + $0x90] sm:$0xf]  ;;  %v10290_v6 = vor.u32 %v13144_v35, %v10287_v0  ;;  %v10294_v33 = vor.u32 %v13149_v57, %v10293_v8  ;;  %v13145_v9 = vld [vmem:[#allocation5 + $0x1c] sm:$0xf] }
 0x153   : > { %1625 = vst [vmem:[#allocation5 + $0xb4] sm:$0xf] %v1619_v28  ;;  %v13160_v24 = vld [vmem:[#allocation5 + $0x94] sm:$0xf]  ;;  %v10298_v19 = vor.u32 %v13145_v9, %v10295_v60  ;;  %v13157_v55 = vld [vmem:[#allocation5 + $0x78] sm:$0xf0] }
 0x154   : > { %1644 = vst [vmem:[#allocation5 + $0xb8] sm:$0xf] %v1638_v39  ;;  %2718 = vmatpush.bf16.msra.mxu1 %v13239_v52  ;;  %v10349_v27 = vld [vmem:[#allocation5 + $0x98] sm:$0xf]  ;;  %v13153_v10 = vld [vmem:[#allocation5 + $0x5c] sm:$0xf] }
 0x155   : > { %1663 = vst [vmem:[#allocation5 + $0xbc] sm:$0xf] %v1657_v20  ;;  %v13161_v29 = vld [vmem:[#allocation5 + $0x9c] sm:$0xf]  ;;  %v10321_v58 = vld [vmem:[#allocation5 + $0x58] sm:$0xf] }
 0x156   : > { %1682 = vst [vmem:[#allocation5 + $0xc0] sm:$0xf] %v1676_v56  ;;  %v10323_v14 = vld [vmem:[#allocation5 + $0x7c] sm:$0xf0]  ;;  %v10322_v53 = vor.u32 %v13157_v55, %v10321_v58  ;;  %v13154_v17 = vld [vmem:[#allocation5 + $0x64] sm:$0xf] }
 0x157   : > { %1718 = vst [vmem:[#allocation5 + $0xa4] sm:$0xf] %v1619_v28  ;;  %v13158_v28 = vld [vmem:[#allocation5 + $0x80] sm:$0xf0]  ;;  %v10326_v5 = vor.u32 %v13153_v10, %v10323_v14  ;;  %v10329_v20 = vld [vmem:[#allocation5 + $0x60] sm:$0xf] }
 0x158   : > { %1719 = vst [vmem:[#allocation5 + $0xc8] sm:$0xf] %v1713_v47  ;;  %2719 = vmatpush.bf16.msra.mxu1 %v13238_v41  ;;  %v10331_v39 = vld [vmem:[#allocation5 + $0x84] sm:$0xf0]  ;;  %v10330_v32 = vor.u32 %v13158_v28, %v10329_v20  ;;  %v13166_v23 = vld [vmem:[#allocation5 + $0xc0] sm:$0xf0] }
 0x159   : > { %1737 = vst [vmem:[#allocation5 + $0xa8] sm:$0xf] %v1731_v36  ;;  %v10357_v43 = vld [vmem:[#allocation5 + $0xa0] sm:$0xf]  ;;  %v13150_v30 = vld [vmem:[#allocation5 + $0x40] sm:$0xf0] }
 0x15a   : > { %1738 = vst [vmem:[#allocation5 + $0xcc] sm:$0xf] %v1732_v22  ;;  %v13164_v38 = vld [vmem:[#allocation5 + $0xb0] sm:$0xf0]  ;;  %v10358_v46 = vor.u32 %v13166_v23, %v10357_v43  ;;  %v10301_v52 = vld [vmem:[#allocation5 + $0x20] sm:$0xf] }
 0x15b   : > { %1756 = vst [vmem:[#allocation5 + $0xac] sm:$0xf] %v1750_v61  ;;  %v10342_v54 = vor.u32 %v13164_v38, %v10341_v4  ;;  %v10343_v11 = vld [vmem:[#allocation5 + $0xb4] sm:$0xf0]  ;;  %v13159_v41 = vld [vmem:[#allocation5 + $0x88] sm:$0xf0] }
 0x15c   : > { %1757 = vst [vmem:[#allocation5 + $0xd0] sm:$0xf] %v1751_v15  ;;  %v10346_v21 = vor.u32 %v13160_v24, %v10343_v11  ;;  %v13165_v40 = vld [vmem:[#allocation5 + $0xb8] sm:$0xf0]  ;;  %2720 = vmatpush.bf16.msra.mxu1 %v13237_v63  ;;  %v10302_v15 = vor.u32 %v13150_v30, %v10301_v52  ;;  %v13273_v58 = vld [vmem:[#allocation6 + $0x4a8] sm:$0xff]  ;;  %v13283_v10 = vld [vmem:[#allocation6 + $0x4f8] sm:$0xff] }
 0x15d   : > { %1775 = vst [vmem:[#allocation5 + $0xb0] sm:$0xf] %v1676_v56  ;;  %2543 = vmatmul.bf16.gmra.mxu1 %v10342_v54  ;;  %v10350_v16 = vor.u32 %v13165_v40, %v10349_v27  ;;  %v10351_v37 = vld [vmem:[#allocation5 + $0xbc] sm:$0xf0]  ;;  %v10334_v56 = vor.u32 %v13154_v17, %v10331_v39  ;;  %v14584_v28 = vld [vmem:[#allocation8 + $0x1] ss:$0 sm:$0xff]  ;;  %3695 = vmatpush.bf16.msra.mxu3 %v13283_v10 }
 0x15e   : > { %1776 = vst [vmem:[#allocation5 + $0xd4] sm:$0xf] %v1770_v26  ;;  %2567 = vmatmul.bf16.gmra.mxu2 %v10346_v21  ;;  %v10354_v48 = vor.u32 %v13161_v29, %v10351_v37  ;;  %v13162_v25 = vld [vmem:[#allocation5 + $0xa4] sm:$0xf]  ;;  %v10337_v26 = vld [vmem:[#allocation5 + $0x68] sm:$0xf] }
 0x15f   : > { %2591 = vmatmul.bf16.gmra.mxu3 %v10350_v16  ;;  %v10359_v49 = vld [vmem:[#allocation5 + $0xc4] sm:$0xf0]  ;;  %v10338_v4 = vor.u32 %v13159_v41, %v10337_v26  ;;  %v13291_v39 = vld [vmem:[#allocation6 + $0x538] sm:$0xff]  ;;  %v13272_v20 = vld [vmem:[#allocation6 + $0x4a0] sm:$0xff] }
 0x160   : > { %2615 = vmatmul.bf16.gmra.mxu0 %v10354_v48  ;;  %2721 = vmatpush.bf16.msra.mxu1 %v13236_v51  ;;  %v10365_v45 = vld [vmem:[#allocation5 + $0xa8] sm:$0xf]  ;;  %v10362_v13 = vor.u32 %v13162_v25, %v10359_v49  ;;  %v13280_v30 = vld [vmem:[#allocation6 + $0x4e0] sm:$0xff] }
 0x161   : > { %v13167_v47 = vld [vmem:[#allocation5 + $0xc8] sm:$0xf0]  ;;  %3719 = vmatpush.bf16.msrb.mxu0 %v13291_v39  ;;  %v13296_v41 = vld [vmem:[#allocation6 + $0x560] sm:$0xff] }
 0x162   : > { %v13163_v42 = vld [vmem:[#allocation5 + $0xac] sm:$0xf]  ;;  %v10366_v22 = vor.u32 %v13167_v47, %v10365_v45  ;;  %v13271_v47 = vld [vmem:[#allocation6 + $0x498] sm:$0xff] }
 0x163   : > { %v10367_v36 = vld [vmem:[#allocation5 + $0xcc] sm:$0xf0]  ;;  %v13282_v17 = vld [vmem:[#allocation6 + $0x4f0] sm:$0xff] }
 0x164   : > { %2722 = vmatpush.bf16.msra.mxu1 %v13235_v44  ;;  %v10370_v61 = vor.u32 %v13163_v42, %v10367_v36  ;;  %v10373_v54 = vld [vmem:[#allocation5 + $0xb0] sm:$0xf]  ;;  %v13298_v49 = vld [vmem:[#allocation6 + $0x570] sm:$0xff]  ;;  %3696 = vmatpush.bf16.msra.mxu3 %v13282_v17  ;;  %v13289_v42 = vld [vmem:[#allocation6 + $0x528] sm:$0xff] }
 0x165   : > { %v13168_v24 = vld [vmem:[#allocation5 + $0xd0] sm:$0xf0]  ;;  %v13278_v10 = vld [vmem:[#allocation6 + $0x4d0] sm:$0xff] }
 0x166   : > { %v10374_v11 = vor.u32 %v13168_v24, %v10373_v54  ;;  %v13294_v39 = vld [vmem:[#allocation6 + $0x550] sm:$0xff] }
 0x168   : > { %2723 = vmatpush.bf16.msra.mxu1 %v13234_v12 }
 0x16c   : > { %2724 = vmatpush.bf16.msra.mxu1 %v13233_v18 }
 0x16d   : > { %2629 = vmatmul.bf16.vlgmr.msrb.gmra.mxu1 %v10286_v3 }
 0x16e   : > { %2653 = vmatmul.bf16.vlgmr.msrb.gmra.mxu2 %v10290_v6  ;;  %v13275_v6 = vld [vmem:[#allocation6 + $0x4b8] sm:$0xff] }
 0x16f   : > { %2677 = vmatmul.bf16.vlgmr.msrb.gmra.mxu3 %v10294_v33  ;;  %3671 = vmatpush.bf16.msra.mxu2 %v13275_v6 }
 0x170   : > { %2701 = vmatmul.bf16.vlgmr.msra.gmra.mxu0 %v10298_v19  ;;  %v13274_v19 = vld [vmem:[#allocation6 + $0x4b0] sm:$0xff] }
 0x173   : > { %3672 = vmatpush.bf16.msra.mxu2 %v13274_v19 }
 0x177   : > { %3673 = vmatpush.bf16.msra.mxu2 %v13273_v58 }
 0x17b   : > { %3674 = vmatpush.bf16.msra.mxu2 %v13272_v20 }
 0x17d   : > { %2634 = vmatmul.bf16.gmra.mxu1 %v10322_v53 }
 0x17e   : > { %2658 = vmatmul.bf16.gmra.mxu2 %v10326_v5  ;;  %v13299_v5 = vld [vmem:[#allocation6 + $0x578] sm:$0xff] }
 0x17f   : > { %2682 = vmatmul.bf16.gmra.mxu3 %v10330_v32  ;;  %3743 = vmatpush.bf16.msrb.mxu1 %v13299_v5 }
 0x180   : > { %2706 = vmatmul.bf16.gmra.mxu0 %v10334_v56  ;;  %v13290_v56 = vld [vmem:[#allocation6 + $0x530] sm:$0xff]  ;;  %3675 = vmatpush.bf16.msra.mxu2 %v13271_v47 }
 0x181   : > { %3720 = vmatpush.bf16.msrb.mxu0 %v13290_v56 }
 0x183   : > { %3744 = vmatpush.bf16.msrb.mxu1 %v13298_v49 }
 0x185   : > { %3721 = vmatpush.bf16.msrb.mxu0 %v13289_v42 }
 0x18d   : > { %2639 = vmatmul.bf16.gmra.mxu1 %v10358_v46  ;;  %v13281_v46 = vld [vmem:[#allocation6 + $0x4e8] sm:$0xff] }
 0x18e   : > { %2663 = vmatmul.bf16.gmra.mxu2 %v10362_v13  ;;  %v13297_v13 = vld [vmem:[#allocation6 + $0x568] sm:$0xff]  ;;  %3697 = vmatpush.bf16.msra.mxu3 %v13281_v46 }
 0x18f   : > { %2687 = vmatmul.bf16.gmra.mxu3 %v10366_v22  ;;  %3745 = vmatpush.bf16.msrb.mxu1 %v13297_v13  ;;  %v13276_v13 = vld [vmem:[#allocation6 + $0x4c0] sm:$0xff] }
 0x190   : > { %2711 = vmatmul.bf16.gmra.mxu0 %v10370_v61 }
 0x192   : > { %3698 = vmatpush.bf16.msra.mxu3 %v13280_v30  ;;  %v13292_v30 = vld [vmem:[#allocation6 + $0x540] sm:$0xff] }
 0x193   : > { %3746 = vmatpush.bf16.msrb.mxu1 %v13296_v41 }
 0x19d   : > { %2725 = vmatmul.bf16.vlgmr.msra.gmra.mxu1 %v10302_v15  ;;  %v13288_v15 = vld [vmem:[#allocation6 + $0x520] sm:$0xff] }
 0x19e   : > { %3722 = vmatpush.bf16.msrb.mxu0 %v13288_v15 }
 0x1ad   : > { %2730 = vmatmul.bf16.gmra.mxu1 %v10338_v4 }
 0x1ae   : > { %v2534_v38 = vpop.f32.mrf.mxu1 }
 0x1af   : > { %v2535_v23 = vadd.f32 %v14584_v28, %v2534_v38 }
 0x1b1   : > { %v14548_v29 = vpop.f32.mrf.mxu0 }
 0x1b5   : > { %v2558_v27 = vpop.f32.mrf.mxu2 }
 0x1b6   : > { %v2536_v21 = vpop.f32.mrf.mxu1  ;;  %v2582_v16 = vpop.f32.mrf.mxu3  ;;  %v2559_v45 = vadd.f32 %v2558_v27, %v2535_v23  ;;  %v13279_v27 = vld [vmem:[#allocation6 + $0x4d8] sm:$0xff] }
 0x1b7   : > { %v2537_v52 = vadd.f32 %v14584_v28, %v2536_v21  ;;  %v13295_v21 = vld [vmem:[#allocation6 + $0x558] sm:$0xff]  ;;  %3699 = vmatpush.bf16.msra.mxu3 %v13279_v27 }
 0x1b8   : > { %v2583_v36 = vadd.f32 %v2582_v16, %v2559_v45  ;;  %v13287_v16 = vld [vmem:[#allocation6 + $0x518] sm:$0xff]  ;;  %3747 = vmatpush.bf16.msrb.mxu1 %v13295_v21  ;;  %v13293_v45 = vld [vmem:[#allocation6 + $0x548] sm:$0xff] }
 0x1b9   : > { %v14556_v44 = vpop.f32.mrf.mxu0  ;;  %3723 = vmatpush.bf16.msrb.mxu0 %v13287_v16 }
 0x1ba   : > { %v2607_v4 = vadd.f32 %v14548_v29, %v2583_v36  ;;  %v13268_v36 = vld [vmem:[#allocation6 + $0x480] sm:$0xff] }
 0x1bb   : > { %3700 = vmatpush.bf16.msra.mxu3 %v13278_v10 }
 0x1bc   : > { %3748 = vmatpush.bf16.msrb.mxu1 %v13294_v39 }
 0x1bd   : > { %2735 = vmatmul.bf16.gmra.mxu1 %v10374_v11  ;;  %v2560_v37 = vpop.f32.mrf.mxu2  ;;  %v13270_v11 = vld [vmem:[#allocation6 + $0x490] sm:$0xff] }
 0x1be   : > { %v14552_v63 = vpop.f32.mrf.mxu3  ;;  %v2561_v26 = vadd.f32 %v2560_v37, %v2537_v52  ;;  %3676 = vmatpush.bf16.msra.mxu2 %v13270_v11  ;;  %v13269_v37 = vld [vmem:[#allocation6 + $0x488] sm:$0xff] }
 0x1c0   : > { %v2585_v6 = vadd.f32 %v14552_v63, %v2561_v26  ;;  %3749 = vmatpush.bf16.msrb.mxu1 %v13293_v45 }
 0x1c2   : > { %v2609_v63 = vadd.f32 %v14556_v44, %v2585_v6  ;;  %3677 = vmatpush.bf16.msra.mxu2 %v13269_v37 }
 0x1c4   : > { %3750 = vmatpush.bf16.msrb.mxu1 %v13292_v30 }
 0x1c6   : > { %3678 = vmatpush.bf16.msra.mxu2 %v13268_v36 }
 0x1ca   : > { %v14546_v40 = vpop.f32.mrf.mxu1 }
 0x1cb   : > { %v2540_v29 = vadd.f32 %v14584_v28, %v14546_v40  ;;  %v13285_v40 = vld [vmem:[#allocation6 + $0x508] sm:$0xff] }
 0x1cd   : > { %v14564_v57 = vpop.f32.mrf.mxu0 }
 0x1d1   : > { %v14558_v1 = vpop.f32.mrf.mxu2 }
 0x1d2   : > { %v14550_v48 = vpop.f32.mrf.mxu1  ;;  %v14560_v0 = vpop.f32.mrf.mxu3  ;;  %v2564_v20 = vadd.f32 %v14558_v1, %v2540_v29 }
 0x1d3   : > { %v2542_v44 = vadd.f32 %v14584_v28, %v14550_v48  ;;  %v13307_v48 = vld [vmem:[#allocation6 + $0x5b8] sm:$0xff] }
 0x1d4   : > { %v2588_v47 = vadd.f32 %v14560_v0, %v2564_v20  ;;  %3767 = vmatpush.bf16.msrb.mxu2 %v13307_v48 }
 0x1d5   : > { %v14570_v8 = vpop.f32.mrf.mxu0 }
 0x1d6   : > { %v2612_v0 = vadd.f32 %v14564_v57, %v2588_v47 }
 0x1d9   : > { %v14566_v3 = vpop.f32.mrf.mxu2 }
 0x1da   : > { %v14554_v51 = vpop.f32.mrf.mxu1  ;;  %v14568_v60 = vpop.f32.mrf.mxu3  ;;  %v2566_v52 = vadd.f32 %v14566_v3, %v2542_v44 }
 0x1dd   : > { %v14578_v18 = vpop.f32.mrf.mxu0 }
 0x1e1   : > { %v14572_v33 = vpop.f32.mrf.mxu2 }
 0x1e2   : > { %v14562_v34 = vpop.f32.mrf.mxu1  ;;  %v14576_v12 = vpop.f32.mrf.mxu3 }
 0x1e3   : > { %v2547_v47 = vadd.f32 %v14584_v28, %v14562_v34 }
 0x1e5   : > { %v14591_v25 = vpop.f32.mrf.mxu0 }
 0x1e9   : > { %v14580_v55 = vpop.f32.mrf.mxu2 }
 0x1ea   : > { %v2630_v35 = vpop.f32.mrf.mxu1  ;;  %v14586_v53 = vpop.f32.mrf.mxu3 }
 0x1eb   : > { %v2631_v24 = vadd.f32 %v2630_v35, %v2607_v4  ;;  %v13286_v35 = vld [vmem:[#allocation6 + $0x510] sm:$0xff] }
 0x1ec   : > { %3724 = vmatpush.bf16.msrb.mxu0 %v13286_v35 }
 0x1ed   : > { %v2702_v38 = vpop.f32.mrf.mxu0 }
 0x1f0   : > { %3725 = vmatpush.bf16.msrb.mxu0 %v13285_v40 }
 0x1f1   : > { %v2654_v43 = vpop.f32.mrf.mxu2 }
 0x1f2   : > { %v14574_v9 = vpop.f32.mrf.mxu1  ;;  %v2678_v22 = vpop.f32.mrf.mxu3  ;;  %v2655_v19 = vadd.f32 %v2654_v43, %v2631_v24  ;;  %v13277_v43 = vld [vmem:[#allocation6 + $0x4c8] sm:$0xff]  ;;  %v2590_v24 = vadd.f32 %v14568_v60, %v2566_v52 }
 0x1f3   : > { %v2633_v56 = vadd.f32 %v14574_v9, %v2609_v63  ;;  %3701 = vmatpush.bf16.msra.mxu3 %v13277_v43  ;;  %v13284_v9 = vld [vmem:[#allocation6 + $0x500] sm:$0xff] }
 0x1f4   : > { %v2679_v17 = vadd.f32 %v2678_v22, %v2655_v19  ;;  %3726 = vmatpush.bf16.msrb.mxu0 %v13284_v9  ;;  %v2614_v37 = vadd.f32 %v14570_v8, %v2590_v24 }
 0x1f5   : > { %v2704_v23 = vpop.f32.mrf.mxu0 }
 0x1f6   : > { %v2703_v42 = vadd.f32 %v2702_v38, %v2679_v17 }
 0x1f7   : > { %3702 = vmatpush.bf16.msra.mxu3 %v13276_v13 }
 0x1f9   : > { %v2656_v54 = vpop.f32.mrf.mxu2 }
 0x1fa   : > { %v14582_v14 = vpop.f32.mrf.mxu1  ;;  %v2680_v5 = vpop.f32.mrf.mxu3  ;;  %v2657_v46 = vadd.f32 %v2656_v54, %v2633_v56 }
 0x1fb   : > { %v2636_v4 = vadd.f32 %v14582_v14, %v2612_v0  ;;  %v2545_v14 = vadd.f32 %v14584_v28, %v14554_v51 }
 0x1fc   : > { %v2681_v15 = vadd.f32 %v2680_v5, %v2657_v46 }
 0x1fd   : > { %v2707_v11 = vpop.f32.mrf.mxu0  ;;  %v2569_v19 = vadd.f32 %v14572_v33, %v2545_v14  ;;  %v13303_v14 = vld [vmem:[#allocation6 + $0x598] sm:$0xff] }
 0x1fe   : > { %v2705_v27 = vadd.f32 %v2704_v23, %v2681_v15  ;;  %v13306_v23 = vld [vmem:[#allocation6 + $0x5b0] sm:$0xff] }
 0x1ff   : > { %v2593_v33 = vadd.f32 %v14576_v12, %v2569_v19  ;;  %3768 = vmatpush.bf16.msrb.mxu2 %v13306_v23 }
 0x201   : > { %v2659_v49 = vpop.f32.mrf.mxu2  ;;  %v2617_v12 = vadd.f32 %v14578_v18, %v2593_v33 }
 0x202   : > { %v14588_v32 = vpop.f32.mrf.mxu1  ;;  %v2683_v26 = vpop.f32.mrf.mxu3  ;;  %v2660_v3 = vadd.f32 %v2659_v49, %v2636_v4 }
 0x203   : > { %v2638_v29 = vadd.f32 %v14588_v32, %v2614_v37  ;;  %v13305_v32 = vld [vmem:[#allocation6 + $0x5a8] sm:$0xff] }
 0x204   : > { %v2684_v21 = vadd.f32 %v2683_v26, %v2660_v3  ;;  %3769 = vmatpush.bf16.msrb.mxu2 %v13305_v32  ;;  %v13323_v26 = vld [vmem:[#allocation6 + $0x638] sm:$0xff]  ;;  %v13314_v3 = vld [vmem:[#allocation6 + $0x5f0] sm:$0xff]  ;;  %v13313_v37 = vld [vmem:[#allocation6 + $0x5e8] sm:$0xff] }
 0x205   : > { %3815 = vmatpush.bf16.msra.mxu0 %v13323_v26 }
 0x206   : > { %v2708_v8 = vadd.f32 %v2707_v11, %v2684_v21 }
 0x209   : > { %v2661_v16 = vpop.f32.mrf.mxu2 }
 0x20a   : > { %v14593_v61 = vpop.f32.mrf.mxu1  ;;  %v2685_v20 = vpop.f32.mrf.mxu3  ;;  %v2662_v49 = vadd.f32 %v2661_v16, %v2638_v29 }
 0x20c   : > { %v2686_v13 = vadd.f32 %v2685_v20, %v2662_v49 }
 0x211   : > { %v2664_v36 = vpop.f32.mrf.mxu2 }
 0x212   : > { %v14598_v58 = vpop.f32.mrf.mxu1  ;;  %v2688_v24 = vpop.f32.mrf.mxu3 }
 0x219   : > { %v2666_v29 = vpop.f32.mrf.mxu2 }
 0x21a   : > { %v2726_v1 = vpop.f32.mrf.mxu1 }
 0x21b   : > { %v2727_v22 = vadd.f32 %v2726_v1, %v2703_v42  ;;  %v2709_v42 = vpop.f32.mrf.mxu0  ;;  %v2571_v1 = vadd.f32 %v14580_v55, %v2547_v47 }
 0x21d   : > { %v2741_v41 = vmax.f32 %v2727_v22, 0.0  ;;  %v2641_v22 = vadd.f32 %v14593_v61, %v2617_v12  ;;  %v2595_v18 = vadd.f32 %v14586_v53, %v2571_v1  ;;  %v13304_v61 = vld [vmem:[#allocation6 + $0x5a0] sm:$0xff] }
 0x21e   : > { %3770 = vmatpush.bf16.msrb.mxu2 %v13304_v61 }
 0x21f   : > { %v2747_v38 = vsel %vm14340_vm1, %v2741_v41, 0.0  ;;  %v13315_v41 = vld [vmem:[#allocation6 + $0x5f8] sm:$0xff]  ;;  %v2665_v4 = vadd.f32 %v2664_v36, %v2641_v22  ;;  %v2619_v19 = vadd.f32 %v14591_v25, %v2595_v18 }
 0x220   : > { %2753 = vst [vmem:[#allocation4 + $0x8] sm:$0xff] %v2747_v38  ;;  %v2839_v54 = vpack.c.bf16 %v2747_v38, %v2747_v38  ;;  %v2710_v38 = vadd.f32 %v2709_v42, %v2686_v13  ;;  %3791 = vmatpush.bf16.msrb.mxu3 %v13315_v41  ;;  %v13312_v13 = vld [vmem:[#allocation6 + $0x5e0] sm:$0xff] }
 0x221   : > { %v2689_v53 = vadd.f32 %v2688_v24, %v2665_v4 }
 0x222   : > { %v2728_v57 = vpop.f32.mrf.mxu1  ;;  %2845 = vst [vmem:[#allocation5 + $0x10] sm:$0xf] %v2839_v54  ;;  %v13331_v54 = vld [vmem:[#allocation6 + $0x678] sm:$0xff]  ;;  %3771 = vmatpush.bf16.msrb.mxu2 %v13303_v14 }
 0x223   : > { %v2729_v6 = vadd.f32 %v2728_v57, %v2705_v27  ;;  %v13322_v27 = vld [vmem:[#allocation6 + $0x630] sm:$0xff]  ;;  %3839 = vmatpush.bf16.msra.mxu1 %v13331_v54  ;;  %v13319_v14 = vld [vmem:[#allocation6 + $0x618] sm:$0xff] }
 0x224   : > { %v13330_v57 = vld [vmem:[#allocation6 + $0x670] sm:$0xff]  ;;  %3792 = vmatpush.bf16.msrb.mxu3 %v13314_v3  ;;  %3816 = vmatpush.bf16.msra.mxu0 %v13322_v27 }
 0x225   : > { %v2742_v10 = vmax.f32 %v2729_v6, 0.0 }
 0x227   : > { %v2748_v60 = vsel %vm14383_vm10, %v2742_v10, 0.0  ;;  %v2761_v35 = vld [vmem:[#allocation4 + $0x1] sm:$0xff]  ;;  %v2712_v10 = vpop.f32.mrf.mxu0  ;;  %3840 = vmatpush.bf16.msra.mxu1 %v13330_v57  ;;  %v13311_v57 = vld [vmem:[#allocation6 + $0x5d8] sm:$0xff] }
 0x228   : > { %v2779_v39 = vld [vmem:[#allocation4 + $0x2] sm:$0xff]  ;;  %2754 = vst [vmem:[#allocation4 + $0x10] sm:$0xff] %v2748_v60  ;;  %v2767_v17 = vpack.c.bf16 %v2761_v35, %v2761_v35  ;;  %v2840_v45 = vpack.c.bf16 %v2748_v60, %v2748_v60  ;;  %3793 = vmatpush.bf16.msrb.mxu3 %v13313_v37 }
 0x229   : > { %v2797_v5 = vld [vmem:[#allocation4 + $0x3] sm:$0xff]  ;;  %v2785_v63 = vpack.c.bf16 %v2779_v39, %v2779_v39 }
 0x22a   : > { %v2803_v51 = vpack.c.bf16 %v2797_v5, %v2797_v5  ;;  %v2815_v56 = vld [vmem:[#allocation4 + $0x7] sm:$0xff]  ;;  %v2731_v40 = vpop.f32.mrf.mxu1  ;;  %2773 = vst [vmem:[#allocation5] sm:$0xf] %v2767_v17  ;;  %v2643_v5 = vadd.f32 %v14598_v58, %v2619_v19  ;;  %v13327_v19 = vld [vmem:[#allocation6 + $0x658] sm:$0xff] }
 0x22b   : > { %v2821_v43 = vpack.c.bf16 %v2815_v56, %v2815_v56  ;;  %v2732_v46 = vadd.f32 %v2731_v40, %v2708_v8  ;;  %2791 = vst [vmem:[#allocation5 + $0x4] sm:$0xf] %v2785_v63  ;;  %v13321_v60 = vld [vmem:[#allocation6 + $0x628] sm:$0xff]  ;;  %v13302_v39 = vld [vmem:[#allocation6 + $0x590] sm:$0xff]  ;;  %v2713_v40 = vadd.f32 %v2712_v10, %v2689_v53 }
 0x22c   : > { %2809 = vst [vmem:[#allocation5 + $0x8] sm:$0xf] %v2803_v51  ;;  %v13329_v35 = vld [vmem:[#allocation6 + $0x668] sm:$0xff]  ;;  %v2667_v58 = vadd.f32 %v2666_v29, %v2643_v5  ;;  %3817 = vmatpush.bf16.msra.mxu0 %v13321_v60  ;;  %3772 = vmatpush.bf16.msrb.mxu2 %v13302_v39  ;;  %v13310_v10 = vld [vmem:[#allocation6 + $0x5d0] sm:$0xff] }
 0x22d   : > { %v2743_v44 = vmax.f32 %v2732_v46, 0.0  ;;  %2827 = vst [vmem:[#allocation5 + $0xc] sm:$0xf] %v2821_v43  ;;  %3841 = vmatpush.bf16.msra.mxu1 %v13329_v35  ;;  %3794 = vmatpush.bf16.msrb.mxu3 %v13312_v13  ;;  %v13318_v35 = vld [vmem:[#allocation6 + $0x610] sm:$0xff] }
 0x22e   : > { %2846 = vst [vmem:[#allocation5 + $0x34] sm:$0xf] %v2840_v45  ;;  %v13326_v5 = vld [vmem:[#allocation6 + $0x650] sm:$0xff] }
 0x22f   : > { %v2749_v9 = vsel %vm14428_vm3, %v2743_v44, 0.0  ;;  %v2762_v34 = vld [vmem:[#allocation4 + $0x9] sm:$0xff]  ;;  %v2714_v24 = vpop.f32.mrf.mxu0 }
 0x230   : > { %v2780_v28 = vld [vmem:[#allocation4 + $0xa] sm:$0xff]  ;;  %2755 = vst [vmem:[#allocation4 + $0x18] sm:$0xff] %v2749_v9  ;;  %v2768_v52 = vpack.c.bf16 %v2762_v34, %v2762_v34  ;;  %v2841_v6 = vpack.c.bf16 %v2749_v9, %v2749_v9  ;;  %v13320_v34 = vld [vmem:[#allocation6 + $0x620] sm:$0xff] }
 0x231   : > { %v2798_v30 = vld [vmem:[#allocation4 + $0xb] sm:$0xff]  ;;  %v2786_v15 = vpack.c.bf16 %v2780_v28, %v2780_v28  ;;  %v10665_v17 = vld [vmem:[#allocation5] sm:$0xf]  ;;  %3818 = vmatpush.bf16.msra.mxu0 %v13320_v34  ;;  %3795 = vmatpush.bf16.msrb.mxu3 %v13311_v57 }
 0x232   : > { %v2804_v0 = vpack.c.bf16 %v2798_v30, %v2798_v30  ;;  %v2816_v55 = vld [vmem:[#allocation4 + $0xf] sm:$0xff]  ;;  %v2733_v11 = vpop.f32.mrf.mxu1  ;;  %2774 = vst [vmem:[#allocation5 + $0x24] sm:$0xf] %v2768_v52  ;;  %v13241_v56 = vld [vmem:[#allocation5 + $0x4] sm:$0xf]  ;;  %v2690_v30 = vpop.f32.mrf.mxu3 }
 0x233   : > { %v2822_v48 = vpack.c.bf16 %v2816_v55, %v2816_v55  ;;  %v2734_v16 = vadd.f32 %v2733_v11, %v2710_v38  ;;  %2792 = vst [vmem:[#allocation5 + $0x28] sm:$0xf] %v2786_v15  ;;  %v2869_v43 = vld [vmem:[#allocation4 + $0xd] sm:$0xff]  ;;  %v10673_v45 = vld [vmem:[#allocation5 + $0x8] sm:$0xf]  ;;  %v2691_v55 = vadd.f32 %v2690_v30, %v2667_v58 }
 0x234   : > { %2810 = vst [vmem:[#allocation5 + $0x2c] sm:$0xf] %v2804_v0  ;;  %v13242_v1 = vld [vmem:[#allocation5 + $0xc] sm:$0xf]  ;;  %v2875_v28 = vpack.c.bf16 %v2869_v43, %v2869_v43  ;;  %v13328_v0 = vld [vmem:[#allocation6 + $0x660] sm:$0xff] }
 0x235   : > { %v2744_v21 = vmax.f32 %v2734_v16, 0.0  ;;  %2828 = vst [vmem:[#allocation5 + $0x30] sm:$0xf] %v2822_v48  ;;  %v2887_v4 = vld [vmem:[#allocation4 + $0xe] sm:$0xff]  ;;  %3842 = vmatpush.bf16.msra.mxu1 %v13328_v0  ;;  %3819 = vmatpush.bf16.msra.mxu0 %v13319_v14 }
 0x236   : > { %2863 = vst [vmem:[#allocation5 + $0x14] sm:$0xf] %v2768_v52  ;;  %v2893_v39 = vpack.c.bf16 %v2887_v4, %v2887_v4  ;;  %3796 = vmatpush.bf16.msrb.mxu3 %v13310_v10 }
 0x237   : > { %v14634_v20 = vsel %vm14505_vm8, %v2744_v21, 0.0  ;;  %v2763_v63 = vld [vmem:[#allocation4 + $0x11] sm:$0xff]  ;;  %2847 = vst [vmem:[#allocation5 + $0x58] sm:$0xf] %v2841_v6  ;;  %v2715_v6 = vadd.f32 %v2714_v24, %v2691_v55  ;;  %v13301_v21 = vld [vmem:[#allocation6 + $0x588] sm:$0xff] }
 0x238   : > { %v2781_v25 = vld [vmem:[#allocation4 + $0x12] sm:$0xff]  ;;  %2756 = vst [vmem:[#allocation4 + $0x20] sm:$0xff] %v14634_v20  ;;  %v2769_v23 = vpack.c.bf16 %v2763_v63, %v2763_v63  ;;  %3773 = vmatpush.bf16.msrb.mxu2 %v13301_v21  ;;  %v2842_v34 = vpack.c.bf16 %v14634_v20, %v14634_v20 }
 0x239   : > { %v2799_v51 = vld [vmem:[#allocation4 + $0x13] sm:$0xff]  ;;  %v2787_v33 = vpack.c.bf16 %v2781_v25, %v2781_v25  ;;  %v13245_v32 = vld [vmem:[#allocation5 + $0x20] sm:$0xf0]  ;;  %2917 = vst [vmem:[#allocation5 + $0x20] sm:$0xf] %v2822_v48  ;;  %3843 = vmatpush.bf16.msra.mxu1 %v13327_v19  ;;  %3820 = vmatpush.bf16.msra.mxu0 %v13318_v35  ;;  %v13338_v19 = vld [vmem:[#allocation6 + $0x6b0] sm:$0xff] }
 0x23a   : > { %v2805_v49 = vpack.c.bf16 %v2799_v51, %v2799_v51  ;;  %v2817_v8 = vld [vmem:[#allocation4 + $0x17] sm:$0xff]  ;;  %v2736_v46 = vpop.f32.mrf.mxu1  ;;  %v10666_v42 = vor.u32 %v13245_v32, %v10665_v17  ;;  %v10667_v36 = vld [vmem:[#allocation5 + $0x24] sm:$0xf0]  ;;  %2775 = vst [vmem:[#allocation5 + $0x48] sm:$0xf] %v2769_v23  ;;  %v13309_v51 = vld [vmem:[#allocation6 + $0x5c8] sm:$0xff] }
 0x23b   : > { %v14637_v47 = vpack.c.bf16 %v2817_v8, %v2817_v8  ;;  %v2870_v12 = vld [vmem:[#allocation4 + $0x15] sm:$0xff]  ;;  %v2737_v44 = vadd.f32 %v2736_v46, %v2713_v40  ;;  %v10670_v22 = vor.u32 %v13241_v56, %v10667_v36  ;;  %v13246_v9 = vld [vmem:[#allocation5 + $0x28] sm:$0xf0]  ;;  %2793 = vst [vmem:[#allocation5 + $0x4c] sm:$0xf] %v2787_v33  ;;  %v13317_v56 = vld [vmem:[#allocation6 + $0x608] sm:$0xff]  ;;  %3797 = vmatpush.bf16.msrb.mxu3 %v13309_v51 }
 0x23c   : > { %3679 = vmatmul.bf16.vlgmr.msra.gmra.mxu2 %v10666_v42  ;;  %v10674_v52 = vor.u32 %v13246_v9, %v10673_v45  ;;  %v10675_v15 = vld [vmem:[#allocation5 + $0x2c] sm:$0xf0]  ;;  %2811 = vst [vmem:[#allocation5 + $0x50] sm:$0xf] %v2805_v49  ;;  %v2876_v18 = vpack.c.bf16 %v2870_v12, %v2870_v12  ;;  %v2888_v29 = vld [vmem:[#allocation4 + $0x16] sm:$0xff]  ;;  %v13325_v42 = vld [vmem:[#allocation6 + $0x648] sm:$0xff] }
 0x23d   : > { %v2745_v41 = vmax.f32 %v2737_v44, 0.0  ;;  %3703 = vmatmul.bf16.vlgmr.msra.gmra.mxu3 %v10670_v22  ;;  %v10678_v26 = vor.u32 %v13242_v1, %v10675_v15  ;;  %2829 = vst [vmem:[#allocation5 + $0x54] sm:$0xf] %v14637_v47  ;;  %v13300_v63 = vld [vmem:[#allocation6 + $0x580] sm:$0xff]  ;;  %v2894_v25 = vpack.c.bf16 %v2888_v29, %v2888_v29  ;;  %3844 = vmatpush.bf16.msra.mxu1 %v13326_v5 }
 0x23e   : > { %3727 = vmatmul.bf16.vlgmr.msrb.gmra.mxu0 %v10674_v52  ;;  %2864 = vst [vmem:[#allocation5 + $0x38] sm:$0xf] %v2769_v23  ;;  %3774 = vmatpush.bf16.msrb.mxu2 %v13300_v63  ;;  %v13308_v9 = vld [vmem:[#allocation6 + $0x5c0] sm:$0xff] }
 0x23f   : > { %v14642_v38 = vsel %vm14526_vm13, %v2745_v41, 0.0  ;;  %3751 = vmatmul.bf16.vlgmr.msrb.gmra.mxu1 %v10678_v26  ;;  %v2764_v48 = vld [vmem:[#allocation4 + $0x19] sm:$0xff]  ;;  %2881 = vst [vmem:[#allocation5 + $0x18] sm:$0xf] %v2875_v28  ;;  %3821 = vmatpush.bf16.msra.mxu0 %v13317_v56 }
 0x240   : > { %v2782_v54 = vld [vmem:[#allocation4 + $0x1a] sm:$0xff]  ;;  %2757 = vst [vmem:[#allocation4 + $0x28] sm:$0xff] %v14642_v38  ;;  %v14645_v11 = vpack.c.bf16 %v2764_v48, %v2764_v48  ;;  %3798 = vmatpush.bf16.msrb.mxu3 %v13308_v9 }
 0x241   : > { %v2800_v61 = vld [vmem:[#allocation4 + $0x1b] sm:$0xff]  ;;  %v2788_v3 = vpack.c.bf16 %v2782_v54, %v2782_v54  ;;  %2882 = vst [vmem:[#allocation5 + $0x3c] sm:$0xf] %v2876_v18  ;;  %v10701_v33 = vld [vmem:[#allocation5 + $0x48] sm:$0xf]  ;;  %3845 = vmatpush.bf16.msra.mxu1 %v13325_v42 }
 0x242   : > { %v2806_v27 = vpack.c.bf16 %v2800_v61, %v2800_v61  ;;  %v2818_v16 = vld [vmem:[#allocation4 + $0x1f] sm:$0xff]  ;;  %v2738_v37 = vpop.f32.mrf.mxu1  ;;  %2776 = vst [vmem:[#allocation5 + $0x6c] sm:$0xf] %v14645_v11  ;;  %v13250_v58 = vld [vmem:[#allocation5 + $0x4c] sm:$0xf] }
 0x243   : > { %v14647_v53 = vpack.c.bf16 %v2818_v16, %v2818_v16  ;;  %v2739_v60 = vadd.f32 %v2738_v37, %v2715_v6  ;;  %2794 = vst [vmem:[#allocation5 + $0x70] sm:$0xf] %v2788_v3  ;;  %v10709_v1 = vld [vmem:[#allocation5 + $0x50] sm:$0xf]  ;;  %v2871_v28 = vld [vmem:[#allocation4 + $0x1d] sm:$0xff] }
 0x244   : > { %2812 = vst [vmem:[#allocation5 + $0x74] sm:$0xf] %v2806_v27  ;;  %v13251_v22 = vld [vmem:[#allocation5 + $0x54] sm:$0xf]  ;;  %v13316_v15 = vld [vmem:[#allocation6 + $0x600] sm:$0xff]  ;;  %v2877_v18 = vpack.c.bf16 %v2871_v28, %v2871_v28 }
 0x245   : > { %v2746_v17 = vmax.f32 %v2739_v60, 0.0  ;;  %2830 = vst [vmem:[#allocation5 + $0x78] sm:$0xf] %v14647_v53  ;;  %v13324_v41 = vld [vmem:[#allocation6 + $0x640] sm:$0xff]  ;;  %3822 = vmatpush.bf16.msra.mxu0 %v13316_v15  ;;  %v13339_v16 = vld [vmem:[#allocation6 + $0x6b8] sm:$0xff]  ;;  %v13337_v60 = vld [vmem:[#allocation6 + $0x6a8] sm:$0xff] }
 0x246   : > { %2899 = vst [vmem:[#allocation5 + $0x1c] sm:$0xf] %v2893_v39  ;;  %3846 = vmatpush.bf16.msra.mxu1 %v13324_v41  ;;  %v2889_v57 = vld [vmem:[#allocation4 + $0x1e] sm:$0xff]  ;;  %3863 = vmatpush.bf16.msra.mxu2 %v13339_v16  ;;  %v13247_v28 = vld [vmem:[#allocation5 + $0x30] sm:$0xf0] }
 0x247   : > { %v14653_v23 = vsel %vm14537_vm0, %v2746_v17, 0.0  ;;  %v2765_v49 = vld [vmem:[#allocation4 + $0x21] sm:$0xff]  ;;  %2900 = vst [vmem:[#allocation5 + $0x40] sm:$0xf] %v2894_v25  ;;  %v2895_v37 = vpack.c.bf16 %v2889_v57, %v2889_v57 }
 0x248   : > { %v2783_v8 = vld [vmem:[#allocation4 + $0x22] sm:$0xff]  ;;  %2758 = vst [vmem:[#allocation4 + $0x30] sm:$0xff] %v14653_v23  ;;  %v2771_v40 = vpack.c.bf16 %v2765_v49, %v2765_v49  ;;  %v2844_v35 = vpack.c.bf16 %v14653_v23, %v14653_v23  ;;  %v13248_v15 = vld [vmem:[#allocation5 + $0x38] sm:$0xf0] }
 0x249   : > { %v2801_v43 = vld [vmem:[#allocation4 + $0x23] sm:$0xff]  ;;  %v2789_v32 = vpack.c.bf16 %v2783_v8, %v2783_v8  ;;  %v13254_v36 = vld [vmem:[#allocation5 + $0x68] sm:$0xf0]  ;;  %2848 = vst [vmem:[#allocation5 + $0x7c] sm:$0xf] %v2842_v34 }
 0x24a   : > { %v2807_v45 = vpack.c.bf16 %v2801_v43, %v2801_v43  ;;  %v2819_v46 = vld [vmem:[#allocation4 + $0x27] sm:$0xff]  ;;  %v10702_v12 = vor.u32 %v13254_v36, %v10701_v33  ;;  %v10703_v44 = vld [vmem:[#allocation5 + $0x6c] sm:$0xf0]  ;;  %2777 = vst [vmem:[#allocation5 + $0x90] sm:$0xf] %v2771_v40  ;;  %3864 = vmatpush.bf16.msra.mxu2 %v13338_v19 }
 0x24b   : > { %v14656_v13 = vpack.c.bf16 %v2819_v46, %v2819_v46  ;;  %v10706_v30 = vor.u32 %v13250_v58, %v10703_v44  ;;  %v13255_v52 = vld [vmem:[#allocation5 + $0x70] sm:$0xf0]  ;;  %2795 = vst [vmem:[#allocation5 + $0x94] sm:$0xf] %v2789_v32  ;;  %v2872_v20 = vld [vmem:[#allocation4 + $0x25] sm:$0xff]  ;;  %v13336_v44 = vld [vmem:[#allocation6 + $0x6a0] sm:$0xff] }
 0x24c   : > { %3684 = vmatmul.bf16.gmra.mxu2 %v10702_v12  ;;  %v10710_v0 = vor.u32 %v13255_v52, %v10709_v1  ;;  %v10711_v55 = vld [vmem:[#allocation5 + $0x74] sm:$0xf0]  ;;  %2813 = vst [vmem:[#allocation5 + $0x98] sm:$0xf] %v2807_v45  ;;  %v2890_v6 = vld [vmem:[#allocation4 + $0x26] sm:$0xff]  ;;  %v2878_v21 = vpack.c.bf16 %v2872_v20, %v2872_v20 }
 0x24d   : > { %3708 = vmatmul.bf16.gmra.mxu3 %v10706_v30  ;;  %v10714_v26 = vor.u32 %v13251_v22, %v10711_v55  ;;  %2831 = vst [vmem:[#allocation5 + $0x9c] sm:$0xf] %v14656_v13  ;;  %v2896_v10 = vpack.c.bf16 %v2890_v6, %v2890_v6  ;;  %v13335_v22 = vld [vmem:[#allocation6 + $0x698] sm:$0xff]  ;;  %v13334_v34 = vld [vmem:[#allocation6 + $0x690] sm:$0xff]  ;;  %v10683_v30 = vld [vmem:[#allocation5 + $0x34] sm:$0xf0] }
 0x24e   : > { %3732 = vmatmul.bf16.gmra.mxu0 %v10710_v0  ;;  %2865 = vst [vmem:[#allocation5 + $0x5c] sm:$0xf] %v14645_v11  ;;  %v2843_v11 = vpack.c.bf16 %v14642_v38, %v14642_v38  ;;  %3865 = vmatpush.bf16.msra.mxu2 %v13337_v60  ;;  %v10681_v52 = vld [vmem:[#allocation5 + $0x10] sm:$0xf]  ;;  %v13243_v55 = vld [vmem:[#allocation5 + $0x14] sm:$0xf] }
 0x24f   : > { %3756 = vmatmul.bf16.gmra.mxu1 %v10714_v26  ;;  %v2766_v4 = vld [vmem:[#allocation4 + $0x29] sm:$0xff]  ;;  %2866 = vst [vmem:[#allocation5 + $0x80] sm:$0xf] %v2771_v40  ;;  %v2856_v29 = vld [vmem:[#allocation4 + $0x31] sm:$0xff]  ;;  %v10682_v0 = vor.u32 %v13247_v28, %v10681_v52  ;;  %v10691_v41 = vld [vmem:[#allocation5 + $0x3c] sm:$0xf0]  ;;  %v10686_v26 = vor.u32 %v13243_v55, %v10683_v30 }
 0x250   : > { %v2784_v48 = vld [vmem:[#allocation4 + $0x2a] sm:$0xff]  ;;  %v2772_v61 = vpack.c.bf16 %v2766_v4, %v2766_v4  ;;  %2883 = vst [vmem:[#allocation5 + $0x60] sm:$0xf] %v2877_v18  ;;  %v2874_v5 = vld [vmem:[#allocation4 + $0x35] sm:$0xff]  ;;  %v2862_v63 = vpack.c.bf16 %v2856_v29, %v2856_v29 }
 0x251   : > { %v2802_v54 = vld [vmem:[#allocation4 + $0x2b] sm:$0xff]  ;;  %v2790_v24 = vpack.c.bf16 %v2784_v48, %v2784_v48  ;;  %2884 = vst [vmem:[#allocation5 + $0x84] sm:$0xf] %v2878_v21  ;;  %v2892_v33 = vld [vmem:[#allocation4 + $0x36] sm:$0xff]  ;;  %v2880_v43 = vpack.c.bf16 %v2874_v5, %v2874_v5 }
 0x252   : > { %v2808_v3 = vpack.c.bf16 %v2802_v54, %v2802_v54  ;;  %v2820_v27 = vld [vmem:[#allocation4 + $0x2f] sm:$0xff]  ;;  %2778 = vst [vmem:[#allocation5 + $0xb4] sm:$0xf] %v2772_v61  ;;  %v2898_v36 = vpack.c.bf16 %v2892_v33, %v2892_v33  ;;  %v2910_v12 = vld [vmem:[#allocation4 + $0x37] sm:$0xff]  ;;  %3866 = vmatpush.bf16.msra.mxu2 %v13336_v44  ;;  %v10697_v33 = vld [vmem:[#allocation5 + $0x20] sm:$0xf] }
 0x253   : > { %v2826_v14 = vpack.c.bf16 %v2820_v27, %v2820_v27  ;;  %2796 = vst [vmem:[#allocation5 + $0xb8] sm:$0xf] %v2790_v24  ;;  %v2873_v39 = vld [vmem:[#allocation4 + $0x2d] sm:$0xff]  ;;  %v10745_v40 = vld [vmem:[#allocation5 + $0x98] sm:$0xf]  ;;  %v2916_v9 = vpack.c.bf16 %v2910_v12, %v2910_v12 }
 0x254   : > { %2814 = vst [vmem:[#allocation5 + $0xbc] sm:$0xf] %v2808_v3  ;;  %v10737_v17 = vld [vmem:[#allocation5 + $0x90] sm:$0xf]  ;;  %v2879_v56 = vpack.c.bf16 %v2873_v39, %v2873_v39  ;;  %v13259_v38 = vld [vmem:[#allocation5 + $0x94] sm:$0xf] }
 0x255   : > { %2832 = vst [vmem:[#allocation5 + $0xc0] sm:$0xf] %v2826_v14  ;;  %v2891_v25 = vld [vmem:[#allocation4 + $0x2e] sm:$0xff]  ;;  %v13260_v46 = vld [vmem:[#allocation5 + $0x9c] sm:$0xf] }
 0x256   : > { %2901 = vst [vmem:[#allocation5 + $0x64] sm:$0xf] %v2895_v37  ;;  %v2897_v32 = vpack.c.bf16 %v2891_v25, %v2891_v25  ;;  %3867 = vmatpush.bf16.msra.mxu2 %v13335_v22  ;;  %v10689_v18 = vld [vmem:[#allocation5 + $0x18] sm:$0xf]  ;;  %v13244_v20 = vld [vmem:[#allocation5 + $0x1c] sm:$0xf] }
 0x257   : > { %2902 = vst [vmem:[#allocation5 + $0x88] sm:$0xf] %v2896_v10  ;;  %v13332_v4 = vld [vmem:[#allocation6 + $0x680] sm:$0xff]  ;;  %v10719_v54 = vld [vmem:[#allocation5 + $0x7c] sm:$0xf0] }
 0x258   : > { %2849 = vst [vmem:[#allocation5 + $0xa0] sm:$0xf] %v2843_v11  ;;  %v13256_v48 = vld [vmem:[#allocation5 + $0x78] sm:$0xf0]  ;;  %v13257_v24 = vld [vmem:[#allocation5 + $0x80] sm:$0xf0] }
 0x259   : > { %v13263_v51 = vld [vmem:[#allocation5 + $0xb0] sm:$0xf0]  ;;  %2850 = vst [vmem:[#allocation5 + $0xc4] sm:$0xf] %v2844_v35  ;;  %v13252_v27 = vld [vmem:[#allocation5 + $0x5c] sm:$0xf] }
 0x25a   : > { %v10738_v49 = vor.u32 %v13263_v51, %v10737_v17  ;;  %v10739_v8 = vld [vmem:[#allocation5 + $0xb4] sm:$0xf0]  ;;  %2867 = vst [vmem:[#allocation5 + $0xa4] sm:$0xf] %v2772_v61  ;;  %3868 = vmatpush.bf16.msra.mxu2 %v13334_v34  ;;  %v10722_v57 = vor.u32 %v13252_v27, %v10719_v54 }
 0x25b   : > { %v10742_v58 = vor.u32 %v13259_v38, %v10739_v8  ;;  %v13264_v23 = vld [vmem:[#allocation5 + $0xb8] sm:$0xf0]  ;;  %2868 = vst [vmem:[#allocation5 + $0xc8] sm:$0xf] %v2862_v63  ;;  %v10717_v61 = vld [vmem:[#allocation5 + $0x58] sm:$0xf] }
 0x25c   : > { %3689 = vmatmul.bf16.gmra.mxu2 %v10738_v49  ;;  %v10746_v45 = vor.u32 %v13264_v23, %v10745_v40  ;;  %v10747_v42 = vld [vmem:[#allocation5 + $0xbc] sm:$0xf0]  ;;  %2885 = vst [vmem:[#allocation5 + $0xa8] sm:$0xf] %v2879_v56  ;;  %v10718_v3 = vor.u32 %v13256_v48, %v10717_v61  ;;  %v14701_v54 = vld [vmem:[#allocation8 + $0x2] ss:$0 sm:$0xff] }
 0x25d   : > { %3713 = vmatmul.bf16.gmra.mxu3 %v10742_v58  ;;  %v10750_v1 = vor.u32 %v13260_v46, %v10747_v42  ;;  %2886 = vst [vmem:[#allocation5 + $0xcc] sm:$0xf] %v2880_v43  ;;  %v13253_v19 = vld [vmem:[#allocation5 + $0x64] sm:$0xf] }
 0x25e   : > { %3737 = vmatmul.bf16.gmra.mxu0 %v10746_v45  ;;  %2903 = vst [vmem:[#allocation5 + $0xac] sm:$0xf] %v2897_v32  ;;  %v10727_v16 = vld [vmem:[#allocation5 + $0x84] sm:$0xf0] }
 0x25f   : > { %3761 = vmatmul.bf16.gmra.mxu1 %v10750_v1  ;;  %2904 = vst [vmem:[#allocation5 + $0xd0] sm:$0xf] %v2898_v36  ;;  %v10730_v21 = vor.u32 %v13253_v19, %v10727_v16  ;;  %v10753_v29 = vld [vmem:[#allocation5 + $0xa0] sm:$0xf]  ;;  %v13398_v19 = vld [vmem:[#allocation6 + $0x7b8] sm:$0xff] }
 0x260   : > { %2918 = vst [vmem:[#allocation5 + $0x44] sm:$0xf] %v14637_v47  ;;  %v10690_v47 = vor.u32 %v13248_v15, %v10689_v18  ;;  %v13265_v37 = vld [vmem:[#allocation5 + $0xc0] sm:$0xf0] }
 0x261   : > { %2919 = vst [vmem:[#allocation5 + $0x68] sm:$0xf] %v14647_v53  ;;  %v10694_v53 = vor.u32 %v13244_v20, %v10691_v41  ;;  %v13261_v10 = vld [vmem:[#allocation5 + $0xa4] sm:$0xf]  ;;  %v10754_v39 = vor.u32 %v13265_v37, %v10753_v29  ;;  %v13371_v37 = vld [vmem:[#allocation6 + $0x6e0] sm:$0xff] }
 0x262   : > { %2920 = vst [vmem:[#allocation5 + $0x8c] sm:$0xf] %v14656_v13  ;;  %v13333_v13 = vld [vmem:[#allocation6 + $0x688] sm:$0xff]  ;;  %v10755_v11 = vld [vmem:[#allocation5 + $0xc4] sm:$0xf0] }
 0x263   : > { %2921 = vst [vmem:[#allocation5 + $0xb0] sm:$0xf] %v2826_v14  ;;  %3869 = vmatpush.bf16.msra.mxu2 %v13333_v13  ;;  %v10725_v14 = vld [vmem:[#allocation5 + $0x60] sm:$0xf]  ;;  %v10761_v60 = vld [vmem:[#allocation5 + $0xa8] sm:$0xf]  ;;  %v10758_v63 = vor.u32 %v13261_v10, %v10755_v11 }
 0x264   : > { %2922 = vst [vmem:[#allocation5 + $0xd4] sm:$0xf] %v2916_v9  ;;  %v10726_v6 = vor.u32 %v13257_v24, %v10725_v14  ;;  %v13266_v35 = vld [vmem:[#allocation5 + $0xc8] sm:$0xf0]  ;;  %v13372_v16 = vld [vmem:[#allocation6 + $0x6e8] sm:$0xff]  ;;  %v13390_v14 = vld [vmem:[#allocation6 + $0x778] sm:$0xff] }
 0x265   : > { %v13262_v5 = vld [vmem:[#allocation5 + $0xac] sm:$0xf]  ;;  %v10762_v25 = vor.u32 %v13266_v35, %v10761_v60  ;;  %4889 = vmatpush.bf16.msrb.mxu1 %v13390_v14 }
 0x266   : > { %v10763_v17 = vld [vmem:[#allocation5 + $0xcc] sm:$0xf0]  ;;  %v13373_v13 = vld [vmem:[#allocation6 + $0x6f0] sm:$0xff] }
 0x267   : > { %3870 = vmatpush.bf16.msra.mxu2 %v13332_v4  ;;  %v10766_v51 = vor.u32 %v13262_v5, %v10763_v17  ;;  %v13249_v56 = vld [vmem:[#allocation5 + $0x40] sm:$0xf0]  ;;  %v13389_v5 = vld [vmem:[#allocation6 + $0x770] sm:$0xff] }
 0x268   : > { %v10698_v49 = vor.u32 %v13249_v56, %v10697_v33  ;;  %v10733_v8 = vld [vmem:[#allocation5 + $0x68] sm:$0xf]  ;;  %v13380_v56 = vld [vmem:[#allocation6 + $0x728] sm:$0xff] }
 0x269   : > { %v13258_v38 = vld [vmem:[#allocation5 + $0x88] sm:$0xf0]  ;;  %4890 = vmatpush.bf16.msrb.mxu1 %v13389_v5  ;;  %v13388_v33 = vld [vmem:[#allocation6 + $0x768] sm:$0xff] }
 0x26a   : > { %v10734_v43 = vor.u32 %v13258_v38, %v10733_v8  ;;  %v10769_v58 = vld [vmem:[#allocation5 + $0xb0] sm:$0xf]  ;;  %v13397_v17 = vld [vmem:[#allocation6 + $0x7b0] sm:$0xff]  ;;  %v13396_v38 = vld [vmem:[#allocation6 + $0x7a8] sm:$0xff] }
 0x26b   : > { %v13267_v40 = vld [vmem:[#allocation5 + $0xd0] sm:$0xf0]  ;;  %v3887_v5 = vld [vmem:[#allocation2 + $0x8] sm:$0xff] }
 0x26c   : > { %3775 = vmatmul.bf16.vlgmr.msrb.gmra.mxu2 %v10682_v0  ;;  %v10770_v23 = vor.u32 %v13267_v40, %v10769_v58 }
 0x26d   : > { %3799 = vmatmul.bf16.vlgmr.msrb.gmra.mxu3 %v10686_v26  ;;  %v13374_v26 = vld [vmem:[#allocation6 + $0x6f8] sm:$0xff]  ;;  %4913 = vmatpush.bf16.msrb.mxu2 %v13398_v19 }
 0x26e   : > { %3823 = vmatmul.bf16.vlgmr.msra.gmra.mxu0 %v10690_v47  ;;  %4841 = vmatpush.bf16.msra.mxu3 %v13374_v26 }
 0x26f   : > { %3847 = vmatmul.bf16.vlgmr.msra.gmra.mxu1 %v10694_v53 }
 0x270   : > { %4891 = vmatpush.bf16.msrb.mxu1 %v13388_v33  ;;  %v13392_v33 = vld [vmem:[#allocation6 + $0x788] sm:$0xff] }
 0x271   : > { %4914 = vmatpush.bf16.msrb.mxu2 %v13397_v17  ;;  %v13367_v17 = vld [vmem:[#allocation6 + $0x6c0] sm:$0xff] }
 0x272   : > { %4842 = vmatpush.bf16.msra.mxu3 %v13373_v13 }
 0x275   : > { %4915 = vmatpush.bf16.msrb.mxu2 %v13396_v38 }
 0x276   : > { %4843 = vmatpush.bf16.msra.mxu3 %v13372_v16  ;;  %v13394_v16 = vld [vmem:[#allocation6 + $0x798] sm:$0xff] }
 0x27a   : > { %4844 = vmatpush.bf16.msra.mxu3 %v13371_v37 }
 0x27c   : > { %3780 = vmatmul.bf16.gmra.mxu2 %v10718_v3 }
 0x27d   : > { %3804 = vmatmul.bf16.gmra.mxu3 %v10722_v57  ;;  %v13382_v57 = vld [vmem:[#allocation6 + $0x738] sm:$0xff] }
 0x27e   : > { %3828 = vmatmul.bf16.gmra.mxu0 %v10726_v6 }
 0x27f   : > { %3852 = vmatmul.bf16.gmra.mxu1 %v10730_v21  ;;  %4865 = vmatpush.bf16.msrb.mxu0 %v13382_v57 }
 0x28c   : > { %3785 = vmatmul.bf16.gmra.mxu2 %v10754_v39  ;;  %v13381_v39 = vld [vmem:[#allocation6 + $0x730] sm:$0xff] }
 0x28d   : > { %3809 = vmatmul.bf16.gmra.mxu3 %v10758_v63  ;;  %4866 = vmatpush.bf16.msrb.mxu0 %v13381_v39 }
 0x28e   : > { %3833 = vmatmul.bf16.gmra.mxu0 %v10762_v25 }
 0x28f   : > { %3857 = vmatmul.bf16.gmra.mxu1 %v10766_v51  ;;  %v13370_v51 = vld [vmem:[#allocation6 + $0x6d8] sm:$0xff] }
 0x290   : > { %4845 = vmatpush.bf16.msra.mxu3 %v13370_v51 }
 0x291   : > { %4867 = vmatpush.bf16.msrb.mxu0 %v13380_v56  ;;  %v13384_v56 = vld [vmem:[#allocation6 + $0x748] sm:$0xff] }
 0x29c   : > { %3871 = vmatmul.bf16.vlgmr.msra.gmra.mxu2 %v10698_v49 }
 0x2ac   : > { %3876 = vmatmul.bf16.gmra.mxu2 %v10734_v43 }
 0x2bb   : > { %v3728_v36 = vpop.f32.mrf.mxu0 }
 0x2bc   : > { %3881 = vmatmul.bf16.gmra.mxu2 %v10770_v23  ;;  %v3752_v1 = vpop.f32.mrf.mxu1 }
 0x2bf   : > { %v3680_v32 = vpop.f32.mrf.mxu2 }
 0x2c0   : > { %v3704_v46 = vpop.f32.mrf.mxu3  ;;  %v3681_v24 = vadd.f32 %v14701_v54, %v3680_v32 }
 0x2c2   : > { %v3705_v6 = vadd.f32 %v3704_v46, %v3681_v24  ;;  %v13387_v46 = vld [vmem:[#allocation6 + $0x760] sm:$0xff] }
 0x2c3   : > { %v3730_v22 = vpop.f32.mrf.mxu0  ;;  %4892 = vmatpush.bf16.msrb.mxu1 %v13387_v46  ;;  %v13391_v46 = vld [vmem:[#allocation6 + $0x780] sm:$0xff] }
 0x2c4   : > { %v14675_v34 = vpop.f32.mrf.mxu1  ;;  %v3729_v11 = vadd.f32 %v3728_v36, %v3705_v6  ;;  %v13395_v36 = vld [vmem:[#allocation6 + $0x7a0] sm:$0xff] }
 0x2c5   : > { %4916 = vmatpush.bf16.msrb.mxu2 %v13395_v36 }
 0x2c6   : > { %v3753_v25 = vadd.f32 %v3752_v1, %v3729_v11  ;;  %v13377_v11 = vld [vmem:[#allocation6 + $0x710] sm:$0xff] }
 0x2c7   : > { %v3682_v45 = vpop.f32.mrf.mxu2 }
 0x2c8   : > { %v3706_v44 = vpop.f32.mrf.mxu3  ;;  %v3683_v29 = vadd.f32 %v14701_v54, %v3682_v45  ;;  %v13379_v45 = vld [vmem:[#allocation6 + $0x720] sm:$0xff] }
 0x2c9   : > { %4868 = vmatpush.bf16.msrb.mxu0 %v13379_v45  ;;  %4917 = vmatpush.bf16.msrb.mxu2 %v13394_v16  ;;  %v13383_v45 = vld [vmem:[#allocation6 + $0x740] sm:$0xff] }
 0x2ca   : > { %v3707_v63 = vadd.f32 %v3706_v44, %v3683_v29  ;;  %v13385_v29 = vld [vmem:[#allocation6 + $0x750] sm:$0xff] }
 0x2cb   : > { %v14679_v30 = vpop.f32.mrf.mxu0 }
 0x2cc   : > { %v14683_v15 = vpop.f32.mrf.mxu1  ;;  %v3731_v43 = vadd.f32 %v3730_v22, %v3707_v63  ;;  %v13378_v22 = vld [vmem:[#allocation6 + $0x718] sm:$0xff] }
 0x2cd   : > { %4869 = vmatpush.bf16.msrb.mxu0 %v13378_v22  ;;  %v3888_v22 = vld [vmem:[#allocation2 + $0x10] sm:$0xff] }
 0x2ce   : > { %v3755_v44 = vadd.f32 %v14675_v34, %v3731_v43 }
 0x2cf   : > { %v14669_v42 = vpop.f32.mrf.mxu2 }
 0x2d0   : > { %v14677_v28 = vpop.f32.mrf.mxu3  ;;  %v3686_v58 = vadd.f32 %v14701_v54, %v14669_v42  ;;  %v13386_v42 = vld [vmem:[#allocation6 + $0x758] sm:$0xff] }
 0x2d1   : > { %4893 = vmatpush.bf16.msrb.mxu1 %v13386_v42  ;;  %4870 = vmatpush.bf16.msrb.mxu0 %v13377_v11 }
 0x2d2   : > { %v3710_v1 = vadd.f32 %v14677_v28, %v3686_v58 }
 0x2d3   : > { %v14687_v41 = vpop.f32.mrf.mxu0 }
 0x2d4   : > { %v14689_v18 = vpop.f32.mrf.mxu1  ;;  %v3734_v57 = vadd.f32 %v14679_v30, %v3710_v1  ;;  %v13393_v30 = vld [vmem:[#allocation6 + $0x790] sm:$0xff] }
 0x2d5   : > { %4894 = vmatpush.bf16.msrb.mxu1 %v13385_v29  ;;  %4918 = vmatpush.bf16.msrb.mxu2 %v13393_v30 }
 0x2d7   : > { %v14671_v12 = vpop.f32.mrf.mxu2 }
 0x2d8   : > { %v14685_v0 = vpop.f32.mrf.mxu3  ;;  %v3688_v14 = vadd.f32 %v14701_v54, %v14671_v12  ;;  %v13376_v12 = vld [vmem:[#allocation6 + $0x708] sm:$0xff] }
 0x2d9   : > { %4871 = vmatpush.bf16.msrb.mxu0 %v13376_v12  ;;  %4895 = vmatpush.bf16.msrb.mxu1 %v13384_v56 }
 0x2da   : > { %4919 = vmatpush.bf16.msrb.mxu2 %v13392_v33 }
 0x2db   : > { %v14695_v53 = vpop.f32.mrf.mxu0 }
 0x2dc   : > { %v14697_v4 = vpop.f32.mrf.mxu1 }
 0x2dd   : > { %4896 = vmatpush.bf16.msrb.mxu1 %v13383_v45 }
 0x2de   : > { %4920 = vmatpush.bf16.msrb.mxu2 %v13391_v46 }
 0x2df   : > { %v14673_v9 = vpop.f32.mrf.mxu2 }
 0x2e0   : > { %v14691_v47 = vpop.f32.mrf.mxu3 }
 0x2e3   : > { %v14706_v3 = vpop.f32.mrf.mxu0 }
 0x2e4   : > { %v14710_v21 = vpop.f32.mrf.mxu1 }
 0x2e7   : > { %v14681_v52 = vpop.f32.mrf.mxu2 }
 0x2e8   : > { %v14703_v61 = vpop.f32.mrf.mxu3  ;;  %v3693_v16 = vadd.f32 %v14701_v54, %v14681_v52 }
 0x2ea   : > { %v3717_v52 = vadd.f32 %v14703_v61, %v3693_v16 }
 0x2eb   : > { %v3824_v60 = vpop.f32.mrf.mxu0 }
 0x2ec   : > { %v3848_v8 = vpop.f32.mrf.mxu1  ;;  %v3741_v33 = vadd.f32 %v14706_v3, %v3717_v52 }
 0x2ef   : > { %v3776_v55 = vpop.f32.mrf.mxu2 }
 0x2f0   : > { %v3800_v10 = vpop.f32.mrf.mxu3  ;;  %v3777_v49 = vadd.f32 %v3776_v55, %v3753_v25  ;;  %v13369_v55 = vld [vmem:[#allocation6 + $0x6d0] sm:$0xff] }
 0x2f1   : > { %4846 = vmatpush.bf16.msra.mxu3 %v13369_v55 }
 0x2f2   : > { %v3801_v23 = vadd.f32 %v3800_v10, %v3777_v49  ;;  %v13368_v10 = vld [vmem:[#allocation6 + $0x6c8] sm:$0xff] }
 0x2f3   : > { %v3826_v26 = vpop.f32.mrf.mxu0 }
 0x2f4   : > { %v3825_v13 = vadd.f32 %v3824_v60, %v3801_v23  ;;  %v3850_v28 = vpop.f32.mrf.mxu1  ;;  %v3758_v60 = vadd.f32 %v14683_v15, %v3734_v57  ;;  %v3691_v15 = vadd.f32 %v14701_v54, %v14673_v9  ;;  %v13375_v23 = vld [vmem:[#allocation6 + $0x700] sm:$0xff] }
 0x2f5   : > { %4847 = vmatpush.bf16.msra.mxu3 %v13368_v10  ;;  %4872 = vmatpush.bf16.msrb.mxu0 %v13375_v23 }
 0x2f6   : > { %v3849_v19 = vadd.f32 %v3848_v8, %v3825_v13  ;;  %v14734_v8 = vld [vmem:[%s14112_s12] ss:$0 sm:$0xff]  ;;  %v3715_v36 = vadd.f32 %v14691_v47, %v3691_v15 }
 0x2f7   : > { %v14693_v20 = vpop.f32.mrf.mxu2 }
 0x2f8   : > { %v3802_v40 = vpop.f32.mrf.mxu3  ;;  %v3779_v24 = vadd.f32 %v14693_v20, %v3755_v44  ;;  %v3712_v20 = vadd.f32 %v14685_v0, %v3688_v14  ;;  %v3739_v57 = vadd.f32 %v14695_v53, %v3715_v36  ;;  %v13414_v36 = vld [vmem:[#allocation6 + $0x838] sm:$0xff] }
 0x2f9   : > { %4848 = vmatpush.bf16.msra.mxu3 %v13367_v17  ;;  %v3889_v17 = vld [vmem:[#allocation2 + $0x18] sm:$0xff]  ;;  %4961 = vmatpush.bf16.msra.mxu0 %v13414_v36 }
 0x2fa   : > { %v3803_v34 = vadd.f32 %v3802_v40, %v3779_v24  ;;  %v3736_v0 = vadd.f32 %v14687_v41, %v3712_v20 }
 0x2fb   : > { %v3829_v49 = vpop.f32.mrf.mxu0 }
 0x2fc   : > { %v3827_v63 = vadd.f32 %v3826_v26, %v3803_v34  ;;  %v3853_v41 = vpop.f32.mrf.mxu1  ;;  %v3760_v1 = vadd.f32 %v14689_v18, %v3736_v0  ;;  %v13406_v26 = vld [vmem:[#allocation6 + $0x7f8] sm:$0xff] }
 0x2fd   : > { %4937 = vmatpush.bf16.msrb.mxu3 %v13406_v26  ;;  %v13430_v26 = vld [vmem:[#allocation6 + $0x8b8] sm:$0xff] }
 0x2fe   : > { %v3851_v40 = vadd.f32 %v3850_v28, %v3827_v63  ;;  %v13404_v63 = vld [vmem:[#allocation6 + $0x7e8] sm:$0xff]  ;;  %5009 = vmatpush.bf16.msra.mxu2 %v13430_v26 }
 0x2ff   : > { %v14699_v48 = vpop.f32.mrf.mxu2 }
 0x300   : > { %v3805_v6 = vpop.f32.mrf.mxu3  ;;  %v3782_v25 = vadd.f32 %v14699_v48, %v3758_v60  ;;  %v13405_v60 = vld [vmem:[#allocation6 + $0x7f0] sm:$0xff] }
 0x301   : > { %4938 = vmatpush.bf16.msrb.mxu3 %v13405_v60 }
 0x302   : > { %v3806_v48 = vadd.f32 %v3805_v6, %v3782_v25 }
 0x303   : > { %v3831_v14 = vpop.f32.mrf.mxu0 }
 0x304   : > { %v3830_v42 = vadd.f32 %v3829_v49, %v3806_v48  ;;  %v3855_v12 = vpop.f32.mrf.mxu1 }
 0x305   : > { %4939 = vmatpush.bf16.msrb.mxu3 %v13404_v63 }
 0x306   : > { %v3854_v34 = vadd.f32 %v3853_v41, %v3830_v42 }
 0x307   : > { %v14708_v27 = vpop.f32.mrf.mxu2 }
 0x308   : > { %v3807_v44 = vpop.f32.mrf.mxu3  ;;  %v3784_v13 = vadd.f32 %v14708_v27, %v3760_v1  ;;  %v13422_v1 = vld [vmem:[#allocation6 + $0x878] sm:$0xff] }
 0x309   : > { %4985 = vmatpush.bf16.msra.mxu1 %v13422_v1 }
 0x30a   : > { %v3808_v28 = vadd.f32 %v3807_v44, %v3784_v13  ;;  %v3890_v13 = vld [vmem:[#allocation2 + $0x20] sm:$0xff] }
 0x30b   : > { %v3834_v3 = vpop.f32.mrf.mxu0 }
 0x30c   : > { %v3832_v25 = vadd.f32 %v3831_v14, %v3808_v28  ;;  %v3858_v14 = vpop.f32.mrf.mxu1 }
 0x30f   : > { %v14713_v35 = vpop.f32.mrf.mxu2 }
 0x317   : > { %v14717_v32 = vpop.f32.mrf.mxu2 }
 0x31f   : > { %v3872_v37 = vpop.f32.mrf.mxu2 }
 0x320   : > { %v3873_v39 = vadd.f32 %v3872_v37, %v3849_v19 }
 0x322   : > { %v3893_v51 = vadd.f32 %v3887_v5, %v3873_v39  ;;  %v3763_v39 = vadd.f32 %v14697_v4, %v3739_v57 }
 0x324   : > { %v3899_v38 = vsel %vm14340_vm1, %v3893_v51, 0.0  ;;  %v3911_v43 = vadd.f32 %v14734_v8, %v3893_v51  ;;  %v3787_v61 = vadd.f32 %v14713_v35, %v3763_v39  ;;  %v3810_v51 = vpop.f32.mrf.mxu3  ;;  %v3856_v35 = vadd.f32 %v3855_v12, %v3832_v25  ;;  %v3891_v39 = vld [vmem:[#allocation2 + $0x28] sm:$0xff] }
 0x325   : > { %3905 = vst [vmem:[#allocation2 + $0x8] sm:$0xff] %v3899_v38 }
 0x326   : > { %v3917_v58 = vsel %vm14340_vm1, %v3911_v43, 0.0  ;;  %v3811_v0 = vadd.f32 %v3810_v51, %v3787_v61 }
 0x327   : > { %3923 = vst [vmem:[#allocation3 + $0x8] sm:$0xff] %v3917_v58  ;;  %v3874_v9 = vpop.f32.mrf.mxu2  ;;  %v4009_v10 = vpack.c.bf16 %v3917_v58, %v3917_v58 }
 0x328   : > { %v3875_v55 = vadd.f32 %v3874_v9, %v3851_v40  ;;  %v3765_v40 = vadd.f32 %v14710_v21, %v3741_v33  ;;  %v13413_v21 = vld [vmem:[#allocation6 + $0x830] sm:$0xff]  ;;  %v3835_v16 = vadd.f32 %v3834_v3, %v3811_v0 }
 0x329   : > { %4015 = vst [vmem:[#allocation5 + $0x10] sm:$0xf] %v4009_v10  ;;  %4962 = vmatpush.bf16.msra.mxu0 %v13413_v21  ;;  %v13401_v10 = vld [vmem:[#allocation6 + $0x7d0] sm:$0xff] }
 0x32a   : > { %v3894_v24 = vadd.f32 %v3888_v22, %v3875_v55  ;;  %v13403_v22 = vld [vmem:[#allocation6 + $0x7e0] sm:$0xff]  ;;  %v3789_v42 = vadd.f32 %v14717_v32, %v3765_v40 }
 0x32b   : > { %4940 = vmatpush.bf16.msrb.mxu3 %v13403_v22  ;;  %v13419_v40 = vld [vmem:[#allocation6 + $0x860] sm:$0xff] }
 0x32c   : > { %v3900_v18 = vsel %vm14383_vm10, %v3894_v24, 0.0  ;;  %v3912_v47 = vadd.f32 %v14734_v8, %v3894_v24  ;;  %v13421_v24 = vld [vmem:[#allocation6 + $0x870] sm:$0xff]  ;;  %v3812_v28 = vpop.f32.mrf.mxu3 }
 0x32d   : > { %3906 = vst [vmem:[#allocation2 + $0x10] sm:$0xff] %v3900_v18  ;;  %v13429_v18 = vld [vmem:[#allocation6 + $0x8b0] sm:$0xff]  ;;  %4986 = vmatpush.bf16.msra.mxu1 %v13421_v24 }
 0x32e   : > { %v3918_v27 = vsel %vm14383_vm10, %v3912_v47, 0.0  ;;  %v3931_v6 = vld [vmem:[#allocation3 + $0x1] sm:$0xff]  ;;  %v13402_v47 = vld [vmem:[#allocation6 + $0x7d8] sm:$0xff]  ;;  %5010 = vmatpush.bf16.msra.mxu2 %v13429_v18 }
 0x32f   : > { %v3949_v19 = vld [vmem:[#allocation3 + $0x2] sm:$0xff]  ;;  %3924 = vst [vmem:[#allocation3 + $0x10] sm:$0xff] %v3918_v27  ;;  %v3877_v53 = vpop.f32.mrf.mxu2  ;;  %v3937_v54 = vpack.c.bf16 %v3931_v6, %v3931_v6  ;;  %v4010_v58 = vpack.c.bf16 %v3918_v27, %v3918_v27  ;;  %v3813_v6 = vadd.f32 %v3812_v28, %v3789_v42  ;;  %4941 = vmatpush.bf16.msrb.mxu3 %v13402_v47  ;;  %v13410_v28 = vld [vmem:[#allocation6 + $0x818] sm:$0xff] }
 0x330   : > { %v3967_v37 = vld [vmem:[#allocation3 + $0x3] sm:$0xff]  ;;  %v3955_v11 = vpack.c.bf16 %v3949_v19, %v3949_v19  ;;  %v3878_v30 = vadd.f32 %v3877_v53, %v3854_v34  ;;  %v3859_v53 = vadd.f32 %v3858_v14, %v3835_v16 }
 0x331   : > { %v3973_v29 = vpack.c.bf16 %v3967_v37, %v3967_v37  ;;  %v3985_v20 = vld [vmem:[#allocation3 + $0x7] sm:$0xff]  ;;  %3943 = vst [vmem:[#allocation5] sm:$0xf] %v3937_v54 }
 0x332   : > { %v3991_v5 = vpack.c.bf16 %v3985_v20, %v3985_v20  ;;  %v3895_v56 = vadd.f32 %v3889_v17, %v3878_v30  ;;  %3961 = vst [vmem:[#allocation5 + $0x4] sm:$0xf] %v3955_v11  ;;  %v13412_v34 = vld [vmem:[#allocation6 + $0x828] sm:$0xff] }
 0x333   : > { %3979 = vst [vmem:[#allocation5 + $0x8] sm:$0xf] %v3973_v29  ;;  %v13420_v19 = vld [vmem:[#allocation6 + $0x868] sm:$0xff]  ;;  %4963 = vmatpush.bf16.msra.mxu0 %v13412_v34  ;;  %4942 = vmatpush.bf16.msrb.mxu3 %v13401_v10  ;;  %v13409_v10 = vld [vmem:[#allocation6 + $0x810] sm:$0xff] }
 0x334   : > { %v3901_v4 = vsel %vm14428_vm3, %v3895_v56, 0.0  ;;  %v3913_v49 = vadd.f32 %v14734_v8, %v3895_v56  ;;  %3997 = vst [vmem:[#allocation5 + $0xc] sm:$0xf] %v3991_v5  ;;  %v13428_v37 = vld [vmem:[#allocation6 + $0x8a8] sm:$0xff]  ;;  %4987 = vmatpush.bf16.msra.mxu1 %v13420_v19 }
 0x335   : > { %3907 = vst [vmem:[#allocation2 + $0x18] sm:$0xff] %v3901_v4  ;;  %v3836_v4 = vpop.f32.mrf.mxu0  ;;  %5011 = vmatpush.bf16.msra.mxu2 %v13428_v37  ;;  %v13400_v19 = vld [vmem:[#allocation6 + $0x7c8] sm:$0xff]  ;;  %v3892_v37 = vld [vmem:[#allocation2 + $0x30] sm:$0xff] }
 0x336   : > { %v14759_v15 = vsel %vm14428_vm3, %v3913_v49, 0.0  ;;  %v3932_v38 = vld [vmem:[#allocation3 + $0x9] sm:$0xff]  ;;  %4016 = vst [vmem:[#allocation5 + $0x34] sm:$0xf] %v4010_v58 }
 0x337   : > { %v3950_v43 = vld [vmem:[#allocation3 + $0xa] sm:$0xff]  ;;  %3925 = vst [vmem:[#allocation3 + $0x18] sm:$0xff] %v14759_v15  ;;  %v3879_v41 = vpop.f32.mrf.mxu2  ;;  %v3938_v9 = vpack.c.bf16 %v3932_v38, %v3932_v38  ;;  %v4011_v20 = vpack.c.bf16 %v14759_v15, %v14759_v15  ;;  %4943 = vmatpush.bf16.msrb.mxu3 %v13400_v19 }
 0x338   : > { %v3968_v48 = vld [vmem:[#allocation3 + $0xb] sm:$0xff]  ;;  %v3956_v23 = vpack.c.bf16 %v3950_v43, %v3950_v43  ;;  %v3880_v44 = vadd.f32 %v3879_v41, %v3856_v35  ;;  %v11061_v30 = vld [vmem:[#allocation5] sm:$0xf]  ;;  %v13411_v35 = vld [vmem:[#allocation6 + $0x820] sm:$0xff]  ;;  %v3837_v43 = vadd.f32 %v3836_v4, %v3813_v6  ;;  %4988 = vmatpush.bf16.msra.mxu1 %v13419_v40 }
 0x339   : > { %v3974_v45 = vpack.c.bf16 %v3968_v48, %v3968_v48  ;;  %v3986_v46 = vld [vmem:[#allocation3 + $0xf] sm:$0xff]  ;;  %3944 = vst [vmem:[#allocation5 + $0x24] sm:$0xf] %v3938_v9  ;;  %v13340_v5 = vld [vmem:[#allocation5 + $0x4] sm:$0xf]  ;;  %4964 = vmatpush.bf16.msra.mxu0 %v13411_v35 }
 0x33a   : > { %v14763_v55 = vpack.c.bf16 %v3986_v46, %v3986_v46  ;;  %v3896_v57 = vadd.f32 %v3890_v13, %v3880_v44  ;;  %3962 = vst [vmem:[#allocation5 + $0x28] sm:$0xf] %v3956_v23  ;;  %v11069_v56 = vld [vmem:[#allocation5 + $0x8] sm:$0xf]  ;;  %v4039_v38 = vld [vmem:[#allocation3 + $0xd] sm:$0xff]  ;;  %v13427_v23 = vld [vmem:[#allocation6 + $0x8a0] sm:$0xff]  ;;  %v3860_v44 = vpop.f32.mrf.mxu1 }
 0x33b   : > { %3980 = vst [vmem:[#allocation5 + $0x2c] sm:$0xf] %v3974_v45  ;;  %v13341_v15 = vld [vmem:[#allocation5 + $0xc] sm:$0xf]  ;;  %v4045_v1 = vpack.c.bf16 %v4039_v38, %v4039_v38  ;;  %v3861_v42 = vadd.f32 %v3860_v44, %v3837_v43  ;;  %5012 = vmatpush.bf16.msra.mxu2 %v13427_v23  ;;  %v13426_v6 = vld [vmem:[#allocation6 + $0x898] sm:$0xff]  ;;  %v13424_v38 = vld [vmem:[#allocation6 + $0x888] sm:$0xff] }
 0x33c   : > { %v3902_v27 = vsel %vm14505_vm8, %v3896_v57, 0.0  ;;  %v3914_v32 = vadd.f32 %v14734_v8, %v3896_v57  ;;  %3998 = vst [vmem:[#allocation5 + $0x30] sm:$0xf] %v14763_v55 }
 0x33d   : > { %3908 = vst [vmem:[#allocation2 + $0x20] sm:$0xff] %v3902_v27  ;;  %v13418_v27 = vld [vmem:[#allocation6 + $0x858] sm:$0xff]  ;;  %4965 = vmatpush.bf16.msra.mxu0 %v13410_v28 }
 0x33e   : > { %v14772_v52 = vsel %vm14505_vm8, %v3914_v32, 0.0  ;;  %v3933_v54 = vld [vmem:[#allocation3 + $0x11] sm:$0xff]  ;;  %4033 = vst [vmem:[#allocation5 + $0x14] sm:$0xf] %v3938_v9  ;;  %4989 = vmatpush.bf16.msra.mxu1 %v13418_v27 }
 0x33f   : > { %v3951_v11 = vld [vmem:[#allocation3 + $0x12] sm:$0xff]  ;;  %3926 = vst [vmem:[#allocation3 + $0x20] sm:$0xff] %v14772_v52  ;;  %v3882_v60 = vpop.f32.mrf.mxu2  ;;  %v3939_v12 = vpack.c.bf16 %v3933_v54, %v3933_v54  ;;  %5013 = vmatpush.bf16.msra.mxu2 %v13426_v6 }
 0x340   : > { %v3969_v29 = vld [vmem:[#allocation3 + $0x13] sm:$0xff]  ;;  %v3957_v17 = vpack.c.bf16 %v3951_v11, %v3951_v11  ;;  %v3883_v61 = vadd.f32 %v3882_v60, %v3859_v53  ;;  %v13344_v51 = vld [vmem:[#allocation5 + $0x20] sm:$0xf0]  ;;  %4017 = vst [vmem:[#allocation5 + $0x58] sm:$0xf] %v4011_v20  ;;  %v13417_v11 = vld [vmem:[#allocation6 + $0x850] sm:$0xff] }
 0x341   : > { %v3975_v63 = vpack.c.bf16 %v3969_v29, %v3969_v29  ;;  %v3987_v25 = vld [vmem:[#allocation3 + $0x17] sm:$0xff]  ;;  %v11062_v49 = vor.u32 %v13344_v51, %v11061_v30  ;;  %v11063_v0 = vld [vmem:[#allocation5 + $0x24] sm:$0xf0]  ;;  %3945 = vst [vmem:[#allocation5 + $0x48] sm:$0xf] %v3939_v12  ;;  %v4057_v53 = vld [vmem:[#allocation3 + $0xe] sm:$0xff]  ;;  %4966 = vmatpush.bf16.msra.mxu0 %v13409_v10 }
 0x342   : > { %v14777_v33 = vpack.c.bf16 %v3987_v25, %v3987_v25  ;;  %v3897_v48 = vadd.f32 %v3891_v39, %v3883_v61  ;;  %v11066_v58 = vor.u32 %v13340_v5, %v11063_v0  ;;  %v13345_v3 = vld [vmem:[#allocation5 + $0x28] sm:$0xf0]  ;;  %3963 = vst [vmem:[#allocation5 + $0x4c] sm:$0xf] %v3957_v17  ;;  %v4040_v26 = vld [vmem:[#allocation3 + $0x15] sm:$0xff]  ;;  %v4063_v5 = vpack.c.bf16 %v4057_v53, %v4057_v53  ;;  %v13416_v17 = vld [vmem:[#allocation6 + $0x848] sm:$0xff] }
 0x343   : > { %4849 = vmatmul.bf16.vlgmr.msra.gmra.mxu3 %v11062_v49  ;;  %v11070_v41 = vor.u32 %v13345_v3, %v11069_v56  ;;  %v11071_v9 = vld [vmem:[#allocation5 + $0x2c] sm:$0xf0]  ;;  %3981 = vst [vmem:[#allocation5 + $0x50] sm:$0xf] %v3975_v63  ;;  %v4046_v29 = vpack.c.bf16 %v4040_v26, %v4040_v26  ;;  %v13425_v20 = vld [vmem:[#allocation6 + $0x890] sm:$0xff]  ;;  %v13399_v30 = vld [vmem:[#allocation6 + $0x7c0] sm:$0xff]  ;;  %4990 = vmatpush.bf16.msra.mxu1 %v13417_v11 }
 0x344   : > { %v3903_v45 = vsel %vm14526_vm13, %v3897_v48, 0.0  ;;  %v3915_v46 = vadd.f32 %v14734_v8, %v3897_v48  ;;  %4873 = vmatmul.bf16.vlgmr.msrb.gmra.mxu0 %v11066_v58  ;;  %v11074_v36 = vor.u32 %v13341_v15, %v11071_v9  ;;  %3999 = vst [vmem:[#allocation5 + $0x54] sm:$0xf] %v14777_v33  ;;  %v4058_v63 = vld [vmem:[#allocation3 + $0x16] sm:$0xff]  ;;  %4944 = vmatpush.bf16.msrb.mxu3 %v13399_v30 }
 0x345   : > { %3909 = vst [vmem:[#allocation2 + $0x28] sm:$0xff] %v3903_v45  ;;  %4897 = vmatmul.bf16.vlgmr.msrb.gmra.mxu1 %v11070_v41  ;;  %5014 = vmatpush.bf16.msra.mxu2 %v13425_v20  ;;  %v13407_v9 = vld [vmem:[#allocation6 + $0x800] sm:$0xff]  ;;  %v4064_v23 = vpack.c.bf16 %v4058_v63, %v4058_v63  ;;  %v13438_v27 = vld [vmem:[#allocation6 + $0x8f8] sm:$0xff]  ;;  %v13436_v20 = vld [vmem:[#allocation6 + $0x8e8] sm:$0xff] }
 0x346   : > { %v14785_v22 = vsel %vm14526_vm13, %v3915_v46, 0.0  ;;  %4921 = vmatmul.bf16.vlgmr.msrb.gmra.mxu2 %v11074_v36  ;;  %v3934_v13 = vld [vmem:[#allocation3 + $0x19] sm:$0xff]  ;;  %4034 = vst [vmem:[#allocation5 + $0x38] sm:$0xf] %v3939_v12 }
 0x347   : > { %v3952_v21 = vld [vmem:[#allocation3 + $0x1a] sm:$0xff]  ;;  %3927 = vst [vmem:[#allocation3 + $0x28] sm:$0xff] %v14785_v22  ;;  %v3884_v16 = vpop.f32.mrf.mxu2  ;;  %v14788_v57 = vpack.c.bf16 %v3934_v13, %v3934_v13  ;;  %4991 = vmatpush.bf16.msra.mxu1 %v13416_v17 }
 0x348   : > { %v3970_v24 = vld [vmem:[#allocation3 + $0x1b] sm:$0xff]  ;;  %v3958_v18 = vpack.c.bf16 %v3952_v21, %v3952_v21  ;;  %v3885_v32 = vadd.f32 %v3884_v16, %v3861_v42  ;;  %4051 = vst [vmem:[#allocation5 + $0x18] sm:$0xf] %v4045_v1  ;;  %v11097_v61 = vld [vmem:[#allocation5 + $0x48] sm:$0xf]  ;;  %v4012_v1 = vpack.c.bf16 %v14772_v52, %v14772_v52  ;;  %5033 = vmatpush.bf16.msra.mxu3 %v13438_v27 }
 0x349   : > { %v3976_v47 = vpack.c.bf16 %v3970_v24, %v3970_v24  ;;  %v3988_v14 = vld [vmem:[#allocation3 + $0x1f] sm:$0xff]  ;;  %3946 = vst [vmem:[#allocation5 + $0x6c] sm:$0xf] %v14788_v57  ;;  %5015 = vmatpush.bf16.msra.mxu2 %v13424_v38 }
 0x34a   : > { %v14790_v34 = vpack.c.bf16 %v3988_v14, %v3988_v14  ;;  %v3898_v54 = vadd.f32 %v3892_v37, %v3885_v32  ;;  %3964 = vst [vmem:[#allocation5 + $0x70] sm:$0xf] %v3958_v18  ;;  %v13408_v12 = vld [vmem:[#allocation6 + $0x808] sm:$0xff]  ;;  %v11105_v48 = vld [vmem:[#allocation5 + $0x50] sm:$0xf]  ;;  %v13415_v36 = vld [vmem:[#allocation6 + $0x840] sm:$0xff] }
 0x34b   : > { %3982 = vst [vmem:[#allocation5 + $0x74] sm:$0xf] %v3976_v47  ;;  %v13350_v41 = vld [vmem:[#allocation5 + $0x54] sm:$0xf]  ;;  %4967 = vmatpush.bf16.msra.mxu0 %v13408_v12  ;;  %v13423_v42 = vld [vmem:[#allocation6 + $0x880] sm:$0xff]  ;;  %4992 = vmatpush.bf16.msra.mxu1 %v13415_v36  ;;  %v13437_v37 = vld [vmem:[#allocation6 + $0x8f0] sm:$0xff] }
 0x34c   : > { %v3904_v60 = vsel %vm14537_vm0, %v3898_v54, 0.0  ;;  %v3916_v39 = vadd.f32 %v14734_v8, %v3898_v54  ;;  %4000 = vst [vmem:[#allocation5 + $0x78] sm:$0xf] %v14790_v34  ;;  %v13349_v8 = vld [vmem:[#allocation5 + $0x4c] sm:$0xf]  ;;  %v4041_v21 = vld [vmem:[#allocation3 + $0x1d] sm:$0xff]  ;;  %5034 = vmatpush.bf16.msra.mxu3 %v13437_v37 }
 0x34d   : > { %3910 = vst [vmem:[#allocation2 + $0x30] sm:$0xff] %v3904_v60  ;;  %5016 = vmatpush.bf16.msra.mxu2 %v13423_v42  ;;  %v4059_v19 = vld [vmem:[#allocation3 + $0x1e] sm:$0xff]  ;;  %v4047_v10 = vpack.c.bf16 %v4041_v21, %v4041_v21  ;;  %v13346_v36 = vld [vmem:[#allocation5 + $0x30] sm:$0xf0] }
 0x34e   : > { %v14799_v25 = vsel %vm14537_vm0, %v3916_v39, 0.0  ;;  %v3935_v51 = vld [vmem:[#allocation3 + $0x21] sm:$0xff]  ;;  %4052 = vst [vmem:[#allocation5 + $0x3c] sm:$0xf] %v4046_v29  ;;  %v4065_v11 = vpack.c.bf16 %v4059_v19, %v4059_v19 }
 0x34f   : > { %v3953_v56 = vld [vmem:[#allocation3 + $0x22] sm:$0xff]  ;;  %3928 = vst [vmem:[#allocation3 + $0x30] sm:$0xff] %v14799_v25  ;;  %v3941_v49 = vpack.c.bf16 %v3935_v51, %v3935_v51  ;;  %4968 = vmatpush.bf16.msra.mxu0 %v13407_v9  ;;  %v4014_v30 = vpack.c.bf16 %v14799_v25, %v14799_v25 }
 0x350   : > { %v3971_v4 = vld [vmem:[#allocation3 + $0x23] sm:$0xff]  ;;  %v3959_v0 = vpack.c.bf16 %v3953_v56, %v3953_v56  ;;  %v13353_v43 = vld [vmem:[#allocation5 + $0x68] sm:$0xf0]  ;;  %4069 = vst [vmem:[#allocation5 + $0x1c] sm:$0xf] %v4063_v5  ;;  %5035 = vmatpush.bf16.msra.mxu3 %v13436_v20 }
 0x351   : > { %v3977_v15 = vpack.c.bf16 %v3971_v4, %v3971_v4  ;;  %v3989_v35 = vld [vmem:[#allocation3 + $0x27] sm:$0xff]  ;;  %v11098_v3 = vor.u32 %v13353_v43, %v11097_v61  ;;  %v11099_v40 = vld [vmem:[#allocation5 + $0x6c] sm:$0xf0]  ;;  %3947 = vst [vmem:[#allocation5 + $0x90] sm:$0xf] %v3941_v49 }
 0x352   : > { %v14802_v58 = vpack.c.bf16 %v3989_v35, %v3989_v35  ;;  %v11102_v45 = vor.u32 %v13349_v8, %v11099_v40  ;;  %v13354_v46 = vld [vmem:[#allocation5 + $0x70] sm:$0xf0]  ;;  %3965 = vst [vmem:[#allocation5 + $0x94] sm:$0xf] %v3959_v0  ;;  %v4042_v32 = vld [vmem:[#allocation3 + $0x25] sm:$0xff] }
 0x353   : > { %4854 = vmatmul.bf16.gmra.mxu3 %v11098_v3  ;;  %v11106_v44 = vor.u32 %v13354_v46, %v11105_v48  ;;  %v11107_v26 = vld [vmem:[#allocation5 + $0x74] sm:$0xf0]  ;;  %3983 = vst [vmem:[#allocation5 + $0x98] sm:$0xf] %v3977_v15  ;;  %v4060_v53 = vld [vmem:[#allocation3 + $0x26] sm:$0xff]  ;;  %v4048_v54 = vpack.c.bf16 %v4042_v32, %v4042_v32 }
 0x354   : > { %4878 = vmatmul.bf16.gmra.mxu0 %v11102_v45  ;;  %v11110_v13 = vor.u32 %v13350_v41, %v11107_v26  ;;  %4001 = vst [vmem:[#allocation5 + $0x9c] sm:$0xf] %v14802_v58  ;;  %v4066_v29 = vpack.c.bf16 %v4060_v53, %v4060_v53  ;;  %v13435_v41 = vld [vmem:[#allocation6 + $0x8e0] sm:$0xff]  ;;  %v13433_v46 = vld [vmem:[#allocation6 + $0x8d0] sm:$0xff] }
 0x355   : > { %4902 = vmatmul.bf16.gmra.mxu1 %v11106_v44  ;;  %4070 = vst [vmem:[#allocation5 + $0x40] sm:$0xf] %v4064_v23  ;;  %5036 = vmatpush.bf16.msra.mxu3 %v13435_v41  ;;  %v13434_v23 = vld [vmem:[#allocation6 + $0x8d8] sm:$0xff]  ;;  %v13347_v26 = vld [vmem:[#allocation5 + $0x38] sm:$0xf0] }
 0x356   : > { %4926 = vmatmul.bf16.gmra.mxu2 %v11110_v13  ;;  %v3936_v24 = vld [vmem:[#allocation3 + $0x29] sm:$0xff]  ;;  %4018 = vst [vmem:[#allocation5 + $0x7c] sm:$0xf] %v4012_v1  ;;  %v4026_v60 = vld [vmem:[#allocation3 + $0x31] sm:$0xff] }
 0x357   : > { %v3954_v16 = vld [vmem:[#allocation3 + $0x2a] sm:$0xff]  ;;  %v3942_v52 = vpack.c.bf16 %v3936_v24, %v3936_v24  ;;  %4035 = vst [vmem:[#allocation5 + $0x5c] sm:$0xf] %v14788_v57  ;;  %v4013_v57 = vpack.c.bf16 %v14785_v22, %v14785_v22  ;;  %v4044_v17 = vld [vmem:[#allocation3 + $0x35] sm:$0xff]  ;;  %v4032_v61 = vpack.c.bf16 %v4026_v60, %v4026_v60 }
 0x358   : > { %v3972_v18 = vld [vmem:[#allocation3 + $0x2b] sm:$0xff]  ;;  %v3960_v47 = vpack.c.bf16 %v3954_v16, %v3954_v16  ;;  %4036 = vst [vmem:[#allocation5 + $0x80] sm:$0xf] %v3941_v49  ;;  %v4062_v22 = vld [vmem:[#allocation3 + $0x36] sm:$0xff]  ;;  %v4050_v35 = vpack.c.bf16 %v4044_v17, %v4044_v17 }
 0x359   : > { %v3978_v14 = vpack.c.bf16 %v3972_v18, %v3972_v18  ;;  %v3990_v28 = vld [vmem:[#allocation3 + $0x2f] sm:$0xff]  ;;  %3948 = vst [vmem:[#allocation5 + $0xb4] sm:$0xf] %v3942_v52  ;;  %v4068_v40 = vpack.c.bf16 %v4062_v22, %v4062_v22  ;;  %v4080_v9 = vld [vmem:[#allocation3 + $0x37] sm:$0xff]  ;;  %5037 = vmatpush.bf16.msra.mxu3 %v13434_v23 }
 0x35a   : > { %v14808_v6 = vpack.c.bf16 %v3990_v28, %v3990_v28  ;;  %3966 = vst [vmem:[#allocation5 + $0xb8] sm:$0xf] %v3960_v47  ;;  %v11133_v39 = vld [vmem:[#allocation5 + $0x90] sm:$0xf]  ;;  %v13358_v12 = vld [vmem:[#allocation5 + $0x94] sm:$0xf]  ;;  %v4086_v45 = vpack.c.bf16 %v4080_v9, %v4080_v9 }
 0x35b   : > { %3984 = vst [vmem:[#allocation5 + $0xbc] sm:$0xf] %v3978_v14  ;;  %v4043_v5 = vld [vmem:[#allocation3 + $0x2d] sm:$0xff]  ;;  %v11141_v0 = vld [vmem:[#allocation5 + $0x98] sm:$0xf] }
 0x35c   : > { %4002 = vst [vmem:[#allocation5 + $0xc0] sm:$0xf] %v14808_v6  ;;  %v4061_v51 = vld [vmem:[#allocation3 + $0x2e] sm:$0xff]  ;;  %v4049_v8 = vpack.c.bf16 %v4043_v5, %v4043_v5  ;;  %v13359_v38 = vld [vmem:[#allocation5 + $0x9c] sm:$0xf] }
 0x35d   : > { %4053 = vst [vmem:[#allocation5 + $0x60] sm:$0xf] %v4047_v10  ;;  %v4067_v48 = vpack.c.bf16 %v4061_v51, %v4061_v51  ;;  %v11079_v1 = vld [vmem:[#allocation5 + $0x34] sm:$0xf0]  ;;  %v11077_v44 = vld [vmem:[#allocation5 + $0x10] sm:$0xf]  ;;  %5038 = vmatpush.bf16.msra.mxu3 %v13433_v46 }
 0x35e   : > { %4054 = vst [vmem:[#allocation5 + $0x84] sm:$0xf] %v4048_v54  ;;  %v11078_v42 = vor.u32 %v13346_v36, %v11077_v44  ;;  %v13342_v13 = vld [vmem:[#allocation5 + $0x14] sm:$0xf]  ;;  %v13431_v18 = vld [vmem:[#allocation6 + $0x8c0] sm:$0xff] }
 0x35f   : > { %4071 = vst [vmem:[#allocation5 + $0x64] sm:$0xf] %v4065_v11  ;;  %v11082_v21 = vor.u32 %v13342_v13, %v11079_v1  ;;  %v11115_v47 = vld [vmem:[#allocation5 + $0x7c] sm:$0xf0]  ;;  %v11113_v14 = vld [vmem:[#allocation5 + $0x58] sm:$0xf] }
 0x360   : > { %v13362_v63 = vld [vmem:[#allocation5 + $0xb0] sm:$0xf0]  ;;  %4072 = vst [vmem:[#allocation5 + $0x88] sm:$0xf] %v4066_v29  ;;  %v13351_v32 = vld [vmem:[#allocation5 + $0x5c] sm:$0xf] }
 0x361   : > { %v11134_v56 = vor.u32 %v13362_v63, %v11133_v39  ;;  %v11135_v4 = vld [vmem:[#allocation5 + $0xb4] sm:$0xf0]  ;;  %4019 = vst [vmem:[#allocation5 + $0xa0] sm:$0xf] %v4013_v57  ;;  %v11118_v19 = vor.u32 %v13351_v32, %v11115_v47 }
 0x362   : > { %v11138_v49 = vor.u32 %v13358_v12, %v11135_v4  ;;  %v13363_v15 = vld [vmem:[#allocation5 + $0xb8] sm:$0xf0]  ;;  %4020 = vst [vmem:[#allocation5 + $0xc4] sm:$0xf] %v4014_v30  ;;  %v14854_v47 = vld [vmem:[#allocation8 + $0x3] ss:$0 sm:$0xff] }
 0x363   : > { %4859 = vmatmul.bf16.gmra.mxu3 %v11134_v56  ;;  %v11142_v25 = vor.u32 %v13363_v15, %v11141_v0  ;;  %v11143_v43 = vld [vmem:[#allocation5 + $0xbc] sm:$0xf0]  ;;  %4037 = vst [vmem:[#allocation5 + $0xa4] sm:$0xf] %v3942_v52  ;;  %v13355_v52 = vld [vmem:[#allocation5 + $0x78] sm:$0xf0] }
 0x364   : > { %4883 = vmatmul.bf16.gmra.mxu0 %v11138_v49  ;;  %v11146_v3 = vor.u32 %v13359_v38, %v11143_v43  ;;  %4038 = vst [vmem:[#allocation5 + $0xc8] sm:$0xf] %v4032_v61  ;;  %v11114_v27 = vor.u32 %v13355_v52, %v11113_v14  ;;  %v11121_v37 = vld [vmem:[#allocation5 + $0x60] sm:$0xf] }
 0x365   : > { %4907 = vmatmul.bf16.gmra.mxu1 %v11142_v25  ;;  %4055 = vst [vmem:[#allocation5 + $0xa8] sm:$0xf] %v4049_v8  ;;  %v13356_v28 = vld [vmem:[#allocation5 + $0x80] sm:$0xf0] }
 0x366   : > { %4931 = vmatmul.bf16.gmra.mxu2 %v11146_v3  ;;  %4056 = vst [vmem:[#allocation5 + $0xcc] sm:$0xf] %v4050_v35  ;;  %v11122_v10 = vor.u32 %v13356_v28, %v11121_v37  ;;  %v13352_v53 = vld [vmem:[#allocation5 + $0x64] sm:$0xf]  ;;  %v13497_v37 = vld [vmem:[#allocation6 + $0x9f8] sm:$0xff] }
 0x367   : > { %4073 = vst [vmem:[#allocation5 + $0xac] sm:$0xf] %v4067_v48  ;;  %v13471_v14 = vld [vmem:[#allocation6 + $0x928] sm:$0xff] }
 0x368   : > { %4074 = vst [vmem:[#allocation5 + $0xd0] sm:$0xf] %v4068_v40  ;;  %v11149_v57 = vld [vmem:[#allocation5 + $0xa0] sm:$0xf] }
 0x369   : > { %4087 = vst [vmem:[#allocation5 + $0x20] sm:$0xf] %v14763_v55  ;;  %v11087_v55 = vld [vmem:[#allocation5 + $0x3c] sm:$0xf0]  ;;  %v13364_v11 = vld [vmem:[#allocation5 + $0xc0] sm:$0xf0] }
 0x36a   : > { %4088 = vst [vmem:[#allocation5 + $0x44] sm:$0xf] %v14777_v33  ;;  %v11085_v33 = vld [vmem:[#allocation5 + $0x18] sm:$0xf]  ;;  %v13360_v29 = vld [vmem:[#allocation5 + $0xa4] sm:$0xf]  ;;  %v11150_v30 = vor.u32 %v13364_v11, %v11149_v57 }
 0x36b   : > { %4089 = vst [vmem:[#allocation5 + $0x68] sm:$0xf] %v14790_v34  ;;  %v11086_v24 = vor.u32 %v13347_v26, %v11085_v33  ;;  %v13343_v34 = vld [vmem:[#allocation5 + $0x1c] sm:$0xf]  ;;  %v11151_v20 = vld [vmem:[#allocation5 + $0xc4] sm:$0xf0] }
 0x36c   : > { %4090 = vst [vmem:[#allocation5 + $0x8c] sm:$0xf] %v14802_v58  ;;  %v11090_v16 = vor.u32 %v13343_v34, %v11087_v55  ;;  %v13432_v58 = vld [vmem:[#allocation6 + $0x8c8] sm:$0xff]  ;;  %v11157_v60 = vld [vmem:[#allocation5 + $0xa8] sm:$0xf]  ;;  %v11154_v17 = vor.u32 %v13360_v29, %v11151_v20  ;;  %v13473_v33 = vld [vmem:[#allocation6 + $0x938] sm:$0xff] }
 0x36d   : > { %4091 = vst [vmem:[#allocation5 + $0xb0] sm:$0xf] %v14808_v6  ;;  %5039 = vmatpush.bf16.msra.mxu3 %v13432_v58  ;;  %v11123_v6 = vld [vmem:[#allocation5 + $0x84] sm:$0xf0]  ;;  %v13365_v39 = vld [vmem:[#allocation5 + $0xc8] sm:$0xf0]  ;;  %5987 = vmatpush.bf16.msrb.mxu0 %v13473_v33 }
 0x36e   : > { %4092 = vst [vmem:[#allocation5 + $0xd4] sm:$0xf] %v4086_v45  ;;  %v11126_v54 = vor.u32 %v13352_v53, %v11123_v6  ;;  %v13361_v5 = vld [vmem:[#allocation5 + $0xac] sm:$0xf]  ;;  %v11158_v63 = vor.u32 %v13365_v39, %v11157_v60  ;;  %v13481_v6 = vld [vmem:[#allocation6 + $0x978] sm:$0xff] }
 0x36f   : > { %v11159_v12 = vld [vmem:[#allocation5 + $0xcc] sm:$0xf0]  ;;  %v13472_v58 = vld [vmem:[#allocation6 + $0x930] sm:$0xff]  ;;  %6011 = vmatpush.bf16.msrb.mxu1 %v13481_v6 }
 0x370   : > { %v11162_v61 = vor.u32 %v13361_v5, %v11159_v12  ;;  %v11093_v56 = vld [vmem:[#allocation5 + $0x20] sm:$0xf]  ;;  %v13488_v11 = vld [vmem:[#allocation6 + $0x9b0] sm:$0xff]  ;;  %v13469_v5 = vld [vmem:[#allocation6 + $0x918] sm:$0xff] }
 0x371   : > { %5040 = vmatpush.bf16.msra.mxu3 %v13431_v18  ;;  %v13348_v51 = vld [vmem:[#allocation5 + $0x40] sm:$0xf0]  ;;  %5988 = vmatpush.bf16.msrb.mxu0 %v13472_v58  ;;  %v13496_v20 = vld [vmem:[#allocation6 + $0x9f0] sm:$0xff]  ;;  %v13485_v33 = vld [vmem:[#allocation6 + $0x998] sm:$0xff] }
 0x372   : > { %v11094_v4 = vor.u32 %v13348_v51, %v11093_v56  ;;  %v11129_v22 = vld [vmem:[#allocation5 + $0x68] sm:$0xf]  ;;  %v13479_v12 = vld [vmem:[#allocation6 + $0x968] sm:$0xff]  ;;  %v13478_v56 = vld [vmem:[#allocation6 + $0x960] sm:$0xff] }
 0x373   : > { %4945 = vmatmul.bf16.vlgmr.msrb.gmra.mxu3 %v11078_v42  ;;  %v13357_v8 = vld [vmem:[#allocation5 + $0x88] sm:$0xf0] }
 0x374   : > { %4969 = vmatmul.bf16.vlgmr.msra.gmra.mxu0 %v11082_v21  ;;  %v11130_v49 = vor.u32 %v13357_v8, %v11129_v22  ;;  %v11165_v0 = vld [vmem:[#allocation5 + $0xb0] sm:$0xf]  ;;  %v13486_v22 = vld [vmem:[#allocation6 + $0x9a0] sm:$0xff]  ;;  %v13492_v6 = vld [vmem:[#allocation6 + $0x9d0] sm:$0xff] }
 0x375   : > { %4993 = vmatmul.bf16.vlgmr.msra.gmra.mxu1 %v11086_v24  ;;  %v13366_v15 = vld [vmem:[#allocation5 + $0xd0] sm:$0xf0]  ;;  %5989 = vmatpush.bf16.msrb.mxu0 %v13471_v14  ;;  %v13476_v14 = vld [vmem:[#allocation6 + $0x950] sm:$0xff] }
 0x376   : > { %5017 = vmatmul.bf16.vlgmr.msra.gmra.mxu2 %v11090_v16  ;;  %v11166_v35 = vor.u32 %v13366_v15, %v11165_v0  ;;  %6059 = vmatpush.bf16.msrb.mxu3 %v13497_v37 }
 0x37a   : > { %6060 = vmatpush.bf16.msrb.mxu3 %v13496_v20  ;;  %v13491_v20 = vld [vmem:[#allocation6 + $0x9c8] sm:$0xff] }
 0x383   : > { %4950 = vmatmul.bf16.gmra.mxu3 %v11114_v27 }
 0x384   : > { %4974 = vmatmul.bf16.gmra.mxu0 %v11118_v19  ;;  %v13489_v19 = vld [vmem:[#allocation6 + $0x9b8] sm:$0xff] }
 0x385   : > { %4998 = vmatmul.bf16.gmra.mxu1 %v11122_v10  ;;  %v13470_v10 = vld [vmem:[#allocation6 + $0x920] sm:$0xff]  ;;  %6035 = vmatpush.bf16.msrb.mxu2 %v13489_v19 }
 0x386   : > { %5022 = vmatmul.bf16.gmra.mxu2 %v11126_v54  ;;  %v13480_v54 = vld [vmem:[#allocation6 + $0x970] sm:$0xff]  ;;  %5990 = vmatpush.bf16.msrb.mxu0 %v13470_v10 }
 0x387   : > { %6012 = vmatpush.bf16.msrb.mxu1 %v13480_v54 }
 0x389   : > { %6036 = vmatpush.bf16.msrb.mxu2 %v13488_v11 }
 0x38a   : > { %5991 = vmatpush.bf16.msrb.mxu0 %v13469_v5 }
 0x38b   : > { %6013 = vmatpush.bf16.msrb.mxu1 %v13479_v12 }
 0x38f   : > { %6014 = vmatpush.bf16.msrb.mxu1 %v13478_v56 }
 0x393   : > { %4955 = vmatmul.bf16.gmra.mxu3 %v11150_v30 }
 0x394   : > { %4979 = vmatmul.bf16.gmra.mxu0 %v11154_v17  ;;  %v13487_v17 = vld [vmem:[#allocation6 + $0x9a8] sm:$0xff] }
 0x395   : > { %5003 = vmatmul.bf16.gmra.mxu1 %v11158_v63  ;;  %v13495_v63 = vld [vmem:[#allocation6 + $0x9e8] sm:$0xff]  ;;  %6037 = vmatpush.bf16.msrb.mxu2 %v13487_v17 }
 0x396   : > { %5027 = vmatmul.bf16.gmra.mxu2 %v11162_v61  ;;  %6061 = vmatpush.bf16.msrb.mxu3 %v13495_v63 }
 0x399   : > { %6038 = vmatpush.bf16.msrb.mxu2 %v13486_v22 }
 0x39d   : > { %6039 = vmatpush.bf16.msrb.mxu2 %v13485_v33 }
 0x3a3   : > { %5041 = vmatmul.bf16.vlgmr.msra.gmra.mxu3 %v11094_v4 }
 0x3b3   : > { %5046 = vmatmul.bf16.gmra.mxu3 %v11130_v49  ;;  %v13494_v49 = vld [vmem:[#allocation6 + $0x9e0] sm:$0xff] }
 0x3b4   : > { %6062 = vmatpush.bf16.msrb.mxu3 %v13494_v49 }
 0x3c1   : > { %v4874_v43 = vpop.f32.mrf.mxu0 }
 0x3c2   : > { %v4898_v3 = vpop.f32.mrf.mxu1 }
 0x3c3   : > { %5051 = vmatmul.bf16.gmra.mxu3 %v11166_v35 }
 0x3c6   : > { %v4850_v25 = vpop.f32.mrf.mxu3 }
 0x3c7   : > { %v4851_v27 = vadd.f32 %v14854_v47, %v4850_v25 }
 0x3c9   : > { %v4922_v40 = vpop.f32.mrf.mxu2  ;;  %v4876_v9 = vpop.f32.mrf.mxu0  ;;  %v4875_v29 = vadd.f32 %v4874_v43, %v4851_v27  ;;  %v13468_v43 = vld [vmem:[#allocation6 + $0x910] sm:$0xff] }
 0x3ca   : > { %v14824_v23 = vpop.f32.mrf.mxu1  ;;  %5992 = vmatpush.bf16.msrb.mxu0 %v13468_v43 }
 0x3cb   : > { %v4899_v39 = vadd.f32 %v4898_v3, %v4875_v29  ;;  %v13477_v3 = vld [vmem:[#allocation6 + $0x958] sm:$0xff]  ;;  %v13475_v29 = vld [vmem:[#allocation6 + $0x948] sm:$0xff] }
 0x3cc   : > { %6015 = vmatpush.bf16.msrb.mxu1 %v13477_v3 }
 0x3cd   : > { %v4923_v4 = vadd.f32 %v4922_v40, %v4899_v39 }
 0x3ce   : > { %v4852_v38 = vpop.f32.mrf.mxu3 }
 0x3cf   : > { %v4853_v30 = vadd.f32 %v14854_v47, %v4852_v38 }
 0x3d0   : > { %6016 = vmatpush.bf16.msrb.mxu1 %v13476_v14 }
 0x3d1   : > { %v14828_v46 = vpop.f32.mrf.mxu2  ;;  %v14830_v36 = vpop.f32.mrf.mxu0  ;;  %v4877_v8 = vadd.f32 %v4876_v9, %v4853_v30  ;;  %v13493_v9 = vld [vmem:[#allocation6 + $0x9d8] sm:$0xff]  ;;  %v13466_v30 = vld [vmem:[#allocation6 + $0x900] sm:$0xff] }
 0x3d2   : > { %v14832_v1 = vpop.f32.mrf.mxu1  ;;  %6063 = vmatpush.bf16.msrb.mxu3 %v13493_v9 }
 0x3d3   : > { %v4901_v35 = vadd.f32 %v14824_v23, %v4877_v8 }
 0x3d4   : > { %6017 = vmatpush.bf16.msrb.mxu1 %v13475_v29 }
 0x3d5   : > { %v4925_v27 = vadd.f32 %v14828_v46, %v4901_v35 }
 0x3d6   : > { %v14820_v48 = vpop.f32.mrf.mxu3  ;;  %6064 = vmatpush.bf16.msrb.mxu3 %v13492_v6 }
 0x3d7   : > { %v4856_v25 = vadd.f32 %v14854_v47, %v14820_v48  ;;  %v13484_v48 = vld [vmem:[#allocation6 + $0x990] sm:$0xff] }
 0x3d8   : > { %6040 = vmatpush.bf16.msrb.mxu2 %v13484_v48 }
 0x3d9   : > { %v14836_v26 = vpop.f32.mrf.mxu2  ;;  %v14838_v42 = vpop.f32.mrf.mxu0  ;;  %v4880_v23 = vadd.f32 %v14830_v36, %v4856_v25  ;;  %v13483_v36 = vld [vmem:[#allocation6 + $0x988] sm:$0xff] }
 0x3da   : > { %v14840_v55 = vpop.f32.mrf.mxu1  ;;  %6065 = vmatpush.bf16.msrb.mxu3 %v13491_v20 }
 0x3db   : > { %v4904_v54 = vadd.f32 %v14832_v1, %v4880_v23 }
 0x3dc   : > { %6041 = vmatpush.bf16.msrb.mxu2 %v13483_v36 }
 0x3dd   : > { %v4928_v17 = vadd.f32 %v14836_v26, %v4904_v54 }
 0x3de   : > { %v14822_v41 = vpop.f32.mrf.mxu3 }
 0x3df   : > { %v4858_v11 = vadd.f32 %v14854_v47, %v14822_v41  ;;  %v13482_v41 = vld [vmem:[#allocation6 + $0x980] sm:$0xff] }
 0x3e0   : > { %6042 = vmatpush.bf16.msrb.mxu2 %v13482_v41 }
 0x3e1   : > { %v14842_v21 = vpop.f32.mrf.mxu2  ;;  %v14844_v24 = vpop.f32.mrf.mxu0  ;;  %v4882_v1 = vadd.f32 %v14838_v42, %v4858_v11  ;;  %v13505_v42 = vld [vmem:[#allocation6 + $0xa38] sm:$0xff] }
 0x3e2   : > { %v14848_v16 = vpop.f32.mrf.mxu1 }
 0x3e3   : > { %v4906_v49 = vadd.f32 %v14840_v55, %v4882_v1 }
 0x3e6   : > { %v14826_v45 = vpop.f32.mrf.mxu3 }
 0x3e9   : > { %v14850_v18 = vpop.f32.mrf.mxu2  ;;  %v14856_v28 = vpop.f32.mrf.mxu0 }
 0x3ea   : > { %v14859_v32 = vpop.f32.mrf.mxu1 }
 0x3ee   : > { %v14834_v44 = vpop.f32.mrf.mxu3 }
 0x3f1   : > { %v14863_v57 = vpop.f32.mrf.mxu2  ;;  %v4970_v60 = vpop.f32.mrf.mxu0 }
 0x3f2   : > { %v4994_v61 = vpop.f32.mrf.mxu1 }
 0x3f6   : > { %v4946_v13 = vpop.f32.mrf.mxu3 }
 0x3f7   : > { %v4947_v0 = vadd.f32 %v4946_v13, %v4923_v4  ;;  %v13467_v13 = vld [vmem:[#allocation6 + $0x908] sm:$0xff] }
 0x3f8   : > { %5993 = vmatpush.bf16.msrb.mxu0 %v13467_v13  ;;  %v4863_v13 = vadd.f32 %v14854_v47, %v14834_v44  ;;  %v13503_v44 = vld [vmem:[#allocation6 + $0xa28] sm:$0xff] }
 0x3f9   : > { %v5018_v15 = vpop.f32.mrf.mxu2  ;;  %v4972_v38 = vpop.f32.mrf.mxu0  ;;  %v4971_v40 = vadd.f32 %v4970_v60, %v4947_v0  ;;  %v4861_v0 = vadd.f32 %v14854_v47, %v14826_v45 }
 0x3fa   : > { %v4996_v19 = vpop.f32.mrf.mxu1 }
 0x3fb   : > { %v4995_v37 = vadd.f32 %v4994_v61, %v4971_v40  ;;  %v13490_v61 = vld [vmem:[#allocation6 + $0x9c0] sm:$0xff]  ;;  %v4885_v55 = vadd.f32 %v14844_v24, %v4861_v0 }
 0x3fc   : > { %5994 = vmatpush.bf16.msrb.mxu0 %v13466_v30  ;;  %6066 = vmatpush.bf16.msrb.mxu3 %v13490_v61  ;;  %v13521_v61 = vld [vmem:[#allocation6 + $0xab8] sm:$0xff] }
 0x3fd   : > { %v5019_v60 = vadd.f32 %v5018_v15, %v4995_v37  ;;  %v4909_v9 = vadd.f32 %v14848_v16, %v4885_v55  ;;  %v13504_v37 = vld [vmem:[#allocation6 + $0xa30] sm:$0xff]  ;;  %6131 = vmatpush.bf16.msra.mxu2 %v13521_v61  ;;  %v13501_v55 = vld [vmem:[#allocation6 + $0xa18] sm:$0xff] }
 0x3fe   : > { %v14846_v34 = vpop.f32.mrf.mxu3 }
 0x3ff   : > { %v4949_v10 = vadd.f32 %v14846_v34, %v4925_v27  ;;  %v13474_v34 = vld [vmem:[#allocation6 + $0x940] sm:$0xff]  ;;  %v4933_v47 = vadd.f32 %v14850_v18, %v4909_v9  ;;  %v13519_v9 = vld [vmem:[#allocation6 + $0xaa8] sm:$0xff] }
 0x400   : > { %6018 = vmatpush.bf16.msrb.mxu1 %v13474_v34  ;;  %6083 = vmatpush.bf16.msra.mxu0 %v13505_v42  ;;  %v13512_v42 = vld [vmem:[#allocation6 + $0xa70] sm:$0xff] }
 0x401   : > { %v5020_v46 = vpop.f32.mrf.mxu2  ;;  %v4973_v39 = vadd.f32 %v4972_v38, %v4949_v10  ;;  %v4975_v5 = vpop.f32.mrf.mxu0  ;;  %v4930_v38 = vadd.f32 %v14842_v21, %v4906_v49 }
 0x402   : > { %v4999_v22 = vpop.f32.mrf.mxu1 }
 0x403   : > { %v4997_v56 = vadd.f32 %v4996_v19, %v4973_v39 }
 0x404   : > { %6084 = vmatpush.bf16.msra.mxu0 %v13504_v37 }
 0x405   : > { %v5021_v15 = vadd.f32 %v5020_v46, %v4997_v56  ;;  %v4887_v46 = vadd.f32 %v14856_v28, %v4863_v13  ;;  %v13500_v13 = vld [vmem:[#allocation6 + $0xa10] sm:$0xff] }
 0x406   : > { %v14852_v52 = vpop.f32.mrf.mxu3 }
 0x407   : > { %v4952_v4 = vadd.f32 %v14852_v52, %v4928_v17 }
 0x408   : > { %6085 = vmatpush.bf16.msra.mxu0 %v13503_v44 }
 0x409   : > { %v4976_v35 = vadd.f32 %v4975_v5, %v4952_v4  ;;  %v5023_v52 = vpop.f32.mrf.mxu2  ;;  %v4977_v45 = vpop.f32.mrf.mxu0  ;;  %v4911_v5 = vadd.f32 %v14859_v32, %v4887_v46  ;;  %v13502_v32 = vld [vmem:[#allocation6 + $0xa20] sm:$0xff] }
 0x40a   : > { %v5001_v48 = vpop.f32.mrf.mxu1 }
 0x40b   : > { %v5000_v3 = vadd.f32 %v4999_v22, %v4976_v35  ;;  %v13529_v22 = vld [vmem:[#allocation6 + $0xaf8] sm:$0xff] }
 0x40c   : > { %6155 = vmatpush.bf16.msra.mxu3 %v13529_v22  ;;  %6086 = vmatpush.bf16.msra.mxu0 %v13502_v32 }
 0x40d   : > { %v5024_v10 = vadd.f32 %v5023_v52, %v5000_v3  ;;  %v4935_v52 = vadd.f32 %v14863_v57, %v4911_v5 }
 0x40e   : > { %v14861_v53 = vpop.f32.mrf.mxu3 }
 0x40f   : > { %v4954_v33 = vadd.f32 %v14861_v53, %v4930_v38  ;;  %v13528_v38 = vld [vmem:[#allocation6 + $0xaf0] sm:$0xff] }
 0x410   : > { %6156 = vmatpush.bf16.msra.mxu3 %v13528_v38  ;;  %6087 = vmatpush.bf16.msra.mxu0 %v13501_v55  ;;  %v13499_v38 = vld [vmem:[#allocation6 + $0xa08] sm:$0xff] }
 0x411   : > { %v4978_v16 = vadd.f32 %v4977_v45, %v4954_v33  ;;  %v5025_v36 = vpop.f32.mrf.mxu2  ;;  %v4980_v30 = vpop.f32.mrf.mxu0  ;;  %v13511_v33 = vld [vmem:[#allocation6 + $0xa68] sm:$0xff] }
 0x412   : > { %v5004_v49 = vpop.f32.mrf.mxu1 }
 0x413   : > { %v5002_v20 = vadd.f32 %v5001_v48, %v4978_v16 }
 0x414   : > { %6088 = vmatpush.bf16.msra.mxu0 %v13500_v13  ;;  %v13498_v13 = vld [vmem:[#allocation6 + $0xa00] sm:$0xff] }
 0x415   : > { %v5026_v56 = vadd.f32 %v5025_v36, %v5002_v20  ;;  %v13510_v20 = vld [vmem:[#allocation6 + $0xa60] sm:$0xff] }
 0x416   : > { %v14866_v51 = vpop.f32.mrf.mxu3 }
 0x418   : > { %6089 = vmatpush.bf16.msra.mxu0 %v13499_v38 }
 0x41c   : > { %6090 = vmatpush.bf16.msra.mxu0 %v13498_v13 }
 0x41e   : > { %v14871_v58 = vpop.f32.mrf.mxu3 }
 0x41f   : > { %v4959_v45 = vadd.f32 %v14871_v58, %v4935_v52  ;;  %v4982_v58 = vpop.f32.mrf.mxu0 }
 0x421   : > { %v4983_v16 = vadd.f32 %v4982_v58, %v4959_v45 }
 0x426   : > { %v5042_v12 = vpop.f32.mrf.mxu3 }
 0x427   : > { %v5043_v63 = vadd.f32 %v5042_v12, %v5019_v60  ;;  %v4957_v60 = vadd.f32 %v14866_v51, %v4933_v47  ;;  %v13513_v51 = vld [vmem:[#allocation6 + $0xa78] sm:$0xff] }
 0x428   : > { %6107 = vmatpush.bf16.msra.mxu1 %v13513_v51 }
 0x429   : > { %v5057_v8 = vmax.f32 %v5043_v63, 0.0  ;;  %v4981_v4 = vadd.f32 %v4980_v30, %v4957_v60 }
 0x42b   : > { %v14887_v26 = vsel %vm14340_vm1, %v5057_v8, 0.0 }
 0x42c   : > { %5069 = vst [vmem:[#allocation4 + $0x8] sm:$0xff] %v14887_v26  ;;  %v5155_v35 = vpack.c.bf16 %v14887_v26, %v14887_v26  ;;  %6108 = vmatpush.bf16.msra.mxu1 %v13512_v42  ;;  %v13527_v26 = vld [vmem:[#allocation6 + $0xae8] sm:$0xff]  ;;  %v13509_v42 = vld [vmem:[#allocation6 + $0xa58] sm:$0xff] }
 0x42d   : > { %6157 = vmatpush.bf16.msra.mxu3 %v13527_v26  ;;  %v13507_v26 = vld [vmem:[#allocation6 + $0xa48] sm:$0xff] }
 0x42e   : > { %v5044_v25 = vpop.f32.mrf.mxu3  ;;  %5161 = vst [vmem:[#allocation5 + $0x10] sm:$0xf] %v5155_v35 }
 0x42f   : > { %v5045_v43 = vadd.f32 %v5044_v25, %v5021_v15  ;;  %v13520_v15 = vld [vmem:[#allocation6 + $0xab0] sm:$0xff] }
 0x430   : > { %6132 = vmatpush.bf16.msra.mxu2 %v13520_v15  ;;  %6109 = vmatpush.bf16.msra.mxu1 %v13511_v33  ;;  %v13517_v15 = vld [vmem:[#allocation6 + $0xa98] sm:$0xff]  ;;  %v13516_v33 = vld [vmem:[#allocation6 + $0xa90] sm:$0xff] }
 0x431   : > { %v5058_v40 = vmax.f32 %v5045_v43, 0.0  ;;  %v5005_v43 = vadd.f32 %v5004_v49, %v4981_v4 }
 0x433   : > { %v14898_v14 = vsel %vm14383_vm10, %v5058_v40, 0.0  ;;  %v5077_v27 = vld [vmem:[#allocation4 + $0x1] sm:$0xff]  ;;  %v5028_v40 = vpop.f32.mrf.mxu2 }
 0x434   : > { %v5095_v23 = vld [vmem:[#allocation4 + $0x2] sm:$0xff]  ;;  %5070 = vst [vmem:[#allocation4 + $0x10] sm:$0xff] %v14898_v14  ;;  %v5083_v24 = vpack.c.bf16 %v5077_v27, %v5077_v27  ;;  %6133 = vmatpush.bf16.msra.mxu2 %v13519_v9  ;;  %v5156_v60 = vpack.c.bf16 %v14898_v14, %v14898_v14  ;;  %6110 = vmatpush.bf16.msra.mxu1 %v13510_v20 }
 0x435   : > { %v5113_v21 = vld [vmem:[#allocation4 + $0x3] sm:$0xff]  ;;  %v5101_v6 = vpack.c.bf16 %v5095_v23, %v5095_v23 }
 0x436   : > { %v5119_v19 = vpack.c.bf16 %v5113_v21, %v5113_v21  ;;  %v5131_v53 = vld [vmem:[#allocation4 + $0x7] sm:$0xff]  ;;  %v5047_v11 = vpop.f32.mrf.mxu3  ;;  %5089 = vst [vmem:[#allocation5] sm:$0xf] %v5083_v24 }
 0x437   : > { %v5137_v54 = vpack.c.bf16 %v5131_v53, %v5131_v53  ;;  %v5048_v29 = vadd.f32 %v5047_v11, %v5024_v10  ;;  %5107 = vst [vmem:[#allocation5 + $0x4] sm:$0xf] %v5101_v6  ;;  %v5029_v10 = vadd.f32 %v5028_v40, %v5005_v43  ;;  %v13508_v43 = vld [vmem:[#allocation6 + $0xa50] sm:$0xff] }
 0x438   : > { %5125 = vst [vmem:[#allocation5 + $0x8] sm:$0xf] %v5119_v19  ;;  %6111 = vmatpush.bf16.msra.mxu1 %v13509_v42  ;;  %v13524_v40 = vld [vmem:[#allocation6 + $0xad0] sm:$0xff] }
 0x439   : > { %v5059_v39 = vmax.f32 %v5048_v29, 0.0  ;;  %5143 = vst [vmem:[#allocation5 + $0xc] sm:$0xf] %v5137_v54 }
 0x43a   : > { %5162 = vst [vmem:[#allocation5 + $0x34] sm:$0xf] %v5156_v60 }
 0x43b   : > { %v14907_v12 = vsel %vm14428_vm3, %v5059_v39, 0.0  ;;  %v5078_v18 = vld [vmem:[#allocation4 + $0x9] sm:$0xff] }
 0x43c   : > { %v5096_v34 = vld [vmem:[#allocation4 + $0xa] sm:$0xff]  ;;  %5071 = vst [vmem:[#allocation4 + $0x18] sm:$0xff] %v14907_v12  ;;  %v5084_v17 = vpack.c.bf16 %v5078_v18, %v5078_v18  ;;  %v13518_v18 = vld [vmem:[#allocation6 + $0xaa0] sm:$0xff]  ;;  %v5157_v45 = vpack.c.bf16 %v14907_v12, %v14907_v12  ;;  %6112 = vmatpush.bf16.msra.mxu1 %v13508_v43 }
 0x43d   : > { %v5114_v28 = vld [vmem:[#allocation4 + $0xb] sm:$0xff]  ;;  %v5102_v1 = vpack.c.bf16 %v5096_v34, %v5096_v34  ;;  %v11457_v48 = vld [vmem:[#allocation5] sm:$0xf]  ;;  %v5006_v34 = vpop.f32.mrf.mxu1  ;;  %6134 = vmatpush.bf16.msra.mxu2 %v13518_v18 }
 0x43e   : > { %v5120_v63 = vpack.c.bf16 %v5114_v28, %v5114_v28  ;;  %v5132_v41 = vld [vmem:[#allocation4 + $0xf] sm:$0xff]  ;;  %v5049_v0 = vpop.f32.mrf.mxu3  ;;  %5090 = vst [vmem:[#allocation5 + $0x24] sm:$0xf] %v5084_v17  ;;  %v13439_v24 = vld [vmem:[#allocation5 + $0x4] sm:$0xf] }
 0x43f   : > { %v5138_v8 = vpack.c.bf16 %v5132_v41, %v5132_v41  ;;  %v5050_v25 = vadd.f32 %v5049_v0, %v5026_v56  ;;  %5108 = vst [vmem:[#allocation5 + $0x28] sm:$0xf] %v5102_v1  ;;  %v11465_v11 = vld [vmem:[#allocation5 + $0x8] sm:$0xf]  ;;  %v13526_v1 = vld [vmem:[#allocation6 + $0xae0] sm:$0xff] }
 0x440   : > { %5126 = vst [vmem:[#allocation5 + $0x2c] sm:$0xf] %v5120_v63  ;;  %v13440_v36 = vld [vmem:[#allocation5 + $0xc] sm:$0xf]  ;;  %v5007_v63 = vadd.f32 %v5006_v34, %v4983_v16  ;;  %6158 = vmatpush.bf16.msra.mxu3 %v13526_v1  ;;  %6113 = vmatpush.bf16.msra.mxu1 %v13507_v26 }
 0x441   : > { %v5060_v3 = vmax.f32 %v5050_v25, 0.0  ;;  %5144 = vst [vmem:[#allocation5 + $0x30] sm:$0xf] %v5138_v8  ;;  %v13525_v25 = vld [vmem:[#allocation6 + $0xad8] sm:$0xff]  ;;  %6135 = vmatpush.bf16.msra.mxu2 %v13517_v15 }
 0x442   : > { %5179 = vst [vmem:[#allocation5 + $0x14] sm:$0xf] %v5084_v17  ;;  %v13537_v15 = vld [vmem:[#allocation6 + $0xb38] sm:$0xff] }
 0x443   : > { %v14916_v57 = vsel %vm14505_vm8, %v5060_v3, 0.0  ;;  %v5079_v27 = vld [vmem:[#allocation4 + $0x11] sm:$0xff]  ;;  %5233 = vst [vmem:[#allocation5 + $0x20] sm:$0xf] %v5138_v8  ;;  %v5030_v8 = vpop.f32.mrf.mxu2 }
 0x444   : > { %v5097_v23 = vld [vmem:[#allocation4 + $0x12] sm:$0xff]  ;;  %5072 = vst [vmem:[#allocation4 + $0x20] sm:$0xff] %v14916_v57  ;;  %v5085_v6 = vpack.c.bf16 %v5079_v27, %v5079_v27  ;;  %v5031_v35 = vadd.f32 %v5030_v8, %v5007_v63  ;;  %6159 = vmatpush.bf16.msra.mxu3 %v13525_v25  ;;  %v13515_v27 = vld [vmem:[#allocation6 + $0xa88] sm:$0xff] }
 0x445   : > { %v5115_v21 = vld [vmem:[#allocation4 + $0x13] sm:$0xff]  ;;  %v5103_v19 = vpack.c.bf16 %v5097_v23, %v5097_v23  ;;  %v13443_v54 = vld [vmem:[#allocation5 + $0x20] sm:$0xf0]  ;;  %5163 = vst [vmem:[#allocation5 + $0x58] sm:$0xf] %v5157_v45  ;;  %6136 = vmatpush.bf16.msra.mxu2 %v13516_v33 }
 0x446   : > { %v5121_v53 = vpack.c.bf16 %v5115_v21, %v5115_v21  ;;  %v5133_v37 = vld [vmem:[#allocation4 + $0x17] sm:$0xff]  ;;  %v5052_v47 = vpop.f32.mrf.mxu3  ;;  %v11458_v46 = vor.u32 %v13443_v54, %v11457_v48  ;;  %v11459_v29 = vld [vmem:[#allocation5 + $0x24] sm:$0xf0]  ;;  %5091 = vst [vmem:[#allocation5 + $0x48] sm:$0xf] %v5085_v6  ;;  %v13523_v23 = vld [vmem:[#allocation6 + $0xac8] sm:$0xff] }
 0x447   : > { %v5139_v44 = vpack.c.bf16 %v5133_v37, %v5133_v37  ;;  %v5053_v39 = vadd.f32 %v5052_v47, %v5029_v10  ;;  %v11462_v30 = vor.u32 %v13439_v24, %v11459_v29  ;;  %v13444_v5 = vld [vmem:[#allocation5 + $0x28] sm:$0xf0]  ;;  %5109 = vst [vmem:[#allocation5 + $0x4c] sm:$0xf] %v5103_v19 }
 0x448   : > { %5995 = vmatmul.bf16.vlgmr.msrb.gmra.mxu0 %v11458_v46  ;;  %v11466_v28 = vor.u32 %v13444_v5, %v11465_v11  ;;  %v11467_v17 = vld [vmem:[#allocation5 + $0x2c] sm:$0xf0]  ;;  %5127 = vst [vmem:[#allocation5 + $0x50] sm:$0xf] %v5121_v53  ;;  %6160 = vmatpush.bf16.msra.mxu3 %v13524_v40  ;;  %v5186_v11 = vld [vmem:[#allocation4 + $0x15] sm:$0xff] }
 0x449   : > { %v5061_v41 = vmax.f32 %v5053_v39, 0.0  ;;  %6019 = vmatmul.bf16.vlgmr.msrb.gmra.mxu1 %v11462_v30  ;;  %v11470_v51 = vor.u32 %v13440_v36, %v11467_v17  ;;  %5145 = vst [vmem:[#allocation5 + $0x54] sm:$0xf] %v5139_v44  ;;  %v5185_v21 = vld [vmem:[#allocation4 + $0xd] sm:$0xff]  ;;  %v13506_v39 = vld [vmem:[#allocation6 + $0xa40] sm:$0xff]  ;;  %v5192_v30 = vpack.c.bf16 %v5186_v11, %v5186_v11  ;;  %6137 = vmatpush.bf16.msra.mxu2 %v13515_v27 }
 0x44a   : > { %6043 = vmatmul.bf16.vlgmr.msrb.gmra.mxu2 %v11466_v28  ;;  %5180 = vst [vmem:[#allocation5 + $0x38] sm:$0xf] %v5085_v6  ;;  %v5191_v19 = vpack.c.bf16 %v5185_v21, %v5185_v21  ;;  %v5204_v5 = vld [vmem:[#allocation4 + $0x16] sm:$0xff]  ;;  %6114 = vmatpush.bf16.msra.mxu1 %v13506_v39 }
 0x44b   : > { %v14923_v14 = vsel %vm14526_vm13, %v5061_v41, 0.0  ;;  %6067 = vmatmul.bf16.vlgmr.msrb.gmra.mxu3 %v11470_v51  ;;  %v5080_v61 = vld [vmem:[#allocation4 + $0x19] sm:$0xff]  ;;  %5234 = vst [vmem:[#allocation5 + $0x44] sm:$0xf] %v5139_v44  ;;  %v5203_v44 = vld [vmem:[#allocation4 + $0xe] sm:$0xff]  ;;  %v5210_v51 = vpack.c.bf16 %v5204_v5, %v5204_v5  ;;  %6179 = vmatpush.bf16.msrb.mxu0 %v13537_v15 }
 0x44c   : > { %v5098_v56 = vld [vmem:[#allocation4 + $0x1a] sm:$0xff]  ;;  %5073 = vst [vmem:[#allocation4 + $0x28] sm:$0xff] %v14923_v14  ;;  %v5086_v22 = vpack.c.bf16 %v5080_v61, %v5080_v61  ;;  %v5209_v17 = vpack.c.bf16 %v5203_v44, %v5203_v44  ;;  %6161 = vmatpush.bf16.msra.mxu3 %v13523_v23  ;;  %v5159_v45 = vpack.c.bf16 %v14923_v14, %v14923_v14 }
 0x44d   : > { %v5116_v4 = vld [vmem:[#allocation4 + $0x1b] sm:$0xff]  ;;  %v5104_v32 = vpack.c.bf16 %v5098_v56, %v5098_v56  ;;  %v11493_v58 = vld [vmem:[#allocation5 + $0x48] sm:$0xf]  ;;  %5197 = vst [vmem:[#allocation5 + $0x18] sm:$0xf] %v5191_v19  ;;  %v5158_v56 = vpack.c.bf16 %v14916_v57, %v14916_v57 }
 0x44e   : > { %v5122_v49 = vpack.c.bf16 %v5116_v4, %v5116_v4  ;;  %v5134_v0 = vld [vmem:[#allocation4 + $0x1f] sm:$0xff]  ;;  %v5054_v55 = vpop.f32.mrf.mxu3  ;;  %5092 = vst [vmem:[#allocation5 + $0x6c] sm:$0xf] %v5086_v22  ;;  %v13448_v53 = vld [vmem:[#allocation5 + $0x4c] sm:$0xf] }
 0x44f   : > { %v14926_v52 = vpack.c.bf16 %v5134_v0, %v5134_v0  ;;  %v5055_v3 = vadd.f32 %v5054_v55, %v5031_v35  ;;  %5110 = vst [vmem:[#allocation5 + $0x70] sm:$0xf] %v5104_v32  ;;  %v11501_v46 = vld [vmem:[#allocation5 + $0x50] sm:$0xf]  ;;  %v13514_v28 = vld [vmem:[#allocation6 + $0xa80] sm:$0xff]  ;;  %v13536_v57 = vld [vmem:[#allocation6 + $0xb30] sm:$0xff] }
 0x450   : > { %5128 = vst [vmem:[#allocation5 + $0x74] sm:$0xf] %v5122_v49  ;;  %v13449_v60 = vld [vmem:[#allocation5 + $0x54] sm:$0xf]  ;;  %v13522_v41 = vld [vmem:[#allocation6 + $0xac0] sm:$0xff]  ;;  %6138 = vmatpush.bf16.msra.mxu2 %v13514_v28  ;;  %6180 = vmatpush.bf16.msrb.mxu0 %v13536_v57 }
 0x451   : > { %v5062_v9 = vmax.f32 %v5055_v3, 0.0  ;;  %5146 = vst [vmem:[#allocation5 + $0x78] sm:$0xf] %v14926_v52  ;;  %6162 = vmatpush.bf16.msra.mxu3 %v13522_v41  ;;  %v5187_v25 = vld [vmem:[#allocation4 + $0x1d] sm:$0xff]  ;;  %v11473_v28 = vld [vmem:[#allocation5 + $0x10] sm:$0xf] }
 0x452   : > { %5181 = vst [vmem:[#allocation5 + $0x5c] sm:$0xf] %v5086_v22  ;;  %v5205_v38 = vld [vmem:[#allocation4 + $0x1e] sm:$0xff]  ;;  %v5193_v55 = vpack.c.bf16 %v5187_v25, %v5187_v25 }
 0x453   : > { %v14933_v12 = vsel %vm14537_vm0, %v5062_v9, 0.0  ;;  %v5081_v48 = vld [vmem:[#allocation4 + $0x21] sm:$0xff]  ;;  %5198 = vst [vmem:[#allocation5 + $0x3c] sm:$0xf] %v5192_v30  ;;  %v5211_v43 = vpack.c.bf16 %v5205_v38, %v5205_v38 }
 0x454   : > { %v5099_v24 = vld [vmem:[#allocation4 + $0x22] sm:$0xff]  ;;  %5074 = vst [vmem:[#allocation4 + $0x30] sm:$0xff] %v14933_v12  ;;  %v14936_v37 = vpack.c.bf16 %v5081_v48, %v5081_v48  ;;  %v5160_v13 = vpack.c.bf16 %v14933_v12, %v14933_v12  ;;  %v13534_v12 = vld [vmem:[#allocation6 + $0xb20] sm:$0xff] }
 0x455   : > { %v5117_v6 = vld [vmem:[#allocation4 + $0x23] sm:$0xff]  ;;  %v5105_v10 = vpack.c.bf16 %v5099_v24, %v5099_v24  ;;  %v13452_v47 = vld [vmem:[#allocation5 + $0x68] sm:$0xf0]  ;;  %5215 = vst [vmem:[#allocation5 + $0x1c] sm:$0xf] %v5209_v17 }
 0x456   : > { %v5123_v16 = vpack.c.bf16 %v5117_v6, %v5117_v6  ;;  %v5135_v54 = vld [vmem:[#allocation4 + $0x27] sm:$0xff]  ;;  %v11494_v36 = vor.u32 %v13452_v47, %v11493_v58  ;;  %v11495_v20 = vld [vmem:[#allocation5 + $0x6c] sm:$0xf0]  ;;  %5093 = vst [vmem:[#allocation5 + $0x90] sm:$0xf] %v14936_v37 }
 0x457   : > { %v14938_v29 = vpack.c.bf16 %v5135_v54, %v5135_v54  ;;  %v11498_v18 = vor.u32 %v13448_v53, %v11495_v20  ;;  %v13453_v34 = vld [vmem:[#allocation5 + $0x70] sm:$0xf0]  ;;  %5111 = vst [vmem:[#allocation5 + $0x94] sm:$0xf] %v5105_v10  ;;  %v13535_v3 = vld [vmem:[#allocation6 + $0xb28] sm:$0xff] }
 0x458   : > { %6000 = vmatmul.bf16.gmra.mxu0 %v11494_v36  ;;  %v11502_v1 = vor.u32 %v13453_v34, %v11501_v46  ;;  %v11503_v63 = vld [vmem:[#allocation5 + $0x74] sm:$0xf0]  ;;  %5129 = vst [vmem:[#allocation5 + $0x98] sm:$0xf] %v5123_v16  ;;  %v5188_v33 = vld [vmem:[#allocation4 + $0x25] sm:$0xff]  ;;  %v13533_v54 = vld [vmem:[#allocation6 + $0xb18] sm:$0xff] }
 0x459   : > { %6024 = vmatmul.bf16.gmra.mxu1 %v11498_v18  ;;  %v11506_v61 = vor.u32 %v13449_v60, %v11503_v63  ;;  %5147 = vst [vmem:[#allocation5 + $0x9c] sm:$0xf] %v14938_v29  ;;  %v5206_v40 = vld [vmem:[#allocation4 + $0x26] sm:$0xff]  ;;  %v5194_v9 = vpack.c.bf16 %v5188_v33, %v5188_v33  ;;  %6181 = vmatpush.bf16.msrb.mxu0 %v13535_v3  ;;  %v11475_v34 = vld [vmem:[#allocation5 + $0x34] sm:$0xf0] }
 0x45a   : > { %6048 = vmatmul.bf16.gmra.mxu2 %v11502_v1  ;;  %5216 = vst [vmem:[#allocation5 + $0x40] sm:$0xf] %v5210_v51  ;;  %v5212_v26 = vpack.c.bf16 %v5206_v40, %v5206_v40  ;;  %v13532_v18 = vld [vmem:[#allocation6 + $0xb10] sm:$0xff]  ;;  %v13446_v17 = vld [vmem:[#allocation5 + $0x38] sm:$0xf0] }
 0x45b   : > { %6072 = vmatmul.bf16.gmra.mxu3 %v11506_v61  ;;  %v5082_v4 = vld [vmem:[#allocation4 + $0x29] sm:$0xff]  ;;  %5164 = vst [vmem:[#allocation5 + $0x7c] sm:$0xf] %v5158_v56  ;;  %v5172_v16 = vld [vmem:[#allocation4 + $0x31] sm:$0xff]  ;;  %v13450_v57 = vld [vmem:[#allocation5 + $0x5c] sm:$0xf] }
 0x45c   : > { %v5100_v8 = vld [vmem:[#allocation4 + $0x2a] sm:$0xff]  ;;  %v5088_v32 = vpack.c.bf16 %v5082_v4, %v5082_v4  ;;  %5182 = vst [vmem:[#allocation5 + $0x80] sm:$0xf] %v14936_v37  ;;  %v5178_v11 = vpack.c.bf16 %v5172_v16, %v5172_v16  ;;  %v5190_v47 = vld [vmem:[#allocation4 + $0x35] sm:$0xff] }
 0x45d   : > { %v5118_v22 = vld [vmem:[#allocation4 + $0x2b] sm:$0xff]  ;;  %v5106_v49 = vpack.c.bf16 %v5100_v8, %v5100_v8  ;;  %5199 = vst [vmem:[#allocation5 + $0x60] sm:$0xf] %v5193_v55  ;;  %6182 = vmatpush.bf16.msrb.mxu0 %v13534_v12  ;;  %v5196_v36 = vpack.c.bf16 %v5190_v47, %v5190_v47  ;;  %v5208_v60 = vld [vmem:[#allocation4 + $0x36] sm:$0xff] }
 0x45e   : > { %v5124_v0 = vpack.c.bf16 %v5118_v22, %v5118_v22  ;;  %v5136_v42 = vld [vmem:[#allocation4 + $0x2f] sm:$0xff]  ;;  %5094 = vst [vmem:[#allocation5 + $0xb4] sm:$0xf] %v5088_v32  ;;  %v5214_v30 = vpack.c.bf16 %v5208_v60, %v5208_v60  ;;  %v5226_v5 = vld [vmem:[#allocation4 + $0x37] sm:$0xff]  ;;  %v13531_v22 = vld [vmem:[#allocation6 + $0xb08] sm:$0xff] }
 0x45f   : > { %v5142_v35 = vpack.c.bf16 %v5136_v42, %v5136_v42  ;;  %5112 = vst [vmem:[#allocation5 + $0xb8] sm:$0xf] %v5106_v49  ;;  %v11529_v27 = vld [vmem:[#allocation5 + $0x90] sm:$0xf]  ;;  %v13457_v58 = vld [vmem:[#allocation5 + $0x94] sm:$0xf] }
 0x460   : > { %5130 = vst [vmem:[#allocation5 + $0xbc] sm:$0xf] %v5124_v0  ;;  %v11537_v24 = vld [vmem:[#allocation5 + $0x98] sm:$0xf]  ;;  %v13458_v53 = vld [vmem:[#allocation5 + $0x9c] sm:$0xf] }
 0x461   : > { %5148 = vst [vmem:[#allocation5 + $0xc0] sm:$0xf] %v5142_v35  ;;  %v5189_v44 = vld [vmem:[#allocation4 + $0x2d] sm:$0xff]  ;;  %6183 = vmatpush.bf16.msrb.mxu0 %v13533_v54  ;;  %v11483_v41 = vld [vmem:[#allocation5 + $0x3c] sm:$0xf0] }
 0x462   : > { %5217 = vst [vmem:[#allocation5 + $0x64] sm:$0xf] %v5211_v43  ;;  %v5195_v46 = vpack.c.bf16 %v5189_v44, %v5189_v44  ;;  %v5207_v20 = vld [vmem:[#allocation4 + $0x2e] sm:$0xff]  ;;  %v11481_v61 = vld [vmem:[#allocation5 + $0x18] sm:$0xf] }
 0x463   : > { %5165 = vst [vmem:[#allocation5 + $0xa0] sm:$0xf] %v5159_v45  ;;  %v5213_v39 = vpack.c.bf16 %v5207_v20, %v5207_v20  ;;  %v13441_v63 = vld [vmem:[#allocation5 + $0x14] sm:$0xf]  ;;  %v11482_v56 = vor.u32 %v13446_v17, %v11481_v61  ;;  %v13442_v4 = vld [vmem:[#allocation5 + $0x1c] sm:$0xf] }
 0x464   : > { %5200 = vst [vmem:[#allocation5 + $0x84] sm:$0xf] %v5194_v9  ;;  %v11478_v51 = vor.u32 %v13441_v63, %v11475_v34  ;;  %v11486_v8 = vor.u32 %v13442_v4, %v11483_v41  ;;  %v13454_v49 = vld [vmem:[#allocation5 + $0x78] sm:$0xf0]  ;;  %v11511_v0 = vld [vmem:[#allocation5 + $0x7c] sm:$0xf0] }
 0x465   : > { %v13461_v23 = vld [vmem:[#allocation5 + $0xb0] sm:$0xf0]  ;;  %5218 = vst [vmem:[#allocation5 + $0x88] sm:$0xf] %v5212_v26  ;;  %6184 = vmatpush.bf16.msrb.mxu0 %v13532_v18  ;;  %v11509_v42 = vld [vmem:[#allocation5 + $0x58] sm:$0xf]  ;;  %v11514_v38 = vor.u32 %v13450_v57, %v11511_v0 }
 0x466   : > { %v11530_v21 = vor.u32 %v13461_v23, %v11529_v27  ;;  %v11531_v48 = vld [vmem:[#allocation5 + $0xb4] sm:$0xf0]  ;;  %5166 = vst [vmem:[#allocation5 + $0xc4] sm:$0xf] %v5160_v13  ;;  %v11517_v55 = vld [vmem:[#allocation5 + $0x60] sm:$0xf] }
 0x467   : > { %v11534_v14 = vor.u32 %v13457_v58, %v11531_v48  ;;  %v13462_v6 = vld [vmem:[#allocation5 + $0xb8] sm:$0xf0]  ;;  %5183 = vst [vmem:[#allocation5 + $0xa4] sm:$0xf] %v5088_v32  ;;  %v13570_v57 = vld [vmem:[#allocation6 + $0xb68] sm:$0xff] }
 0x468   : > { %6005 = vmatmul.bf16.gmra.mxu0 %v11530_v21  ;;  %v11538_v19 = vor.u32 %v13462_v6, %v11537_v24  ;;  %v11539_v37 = vld [vmem:[#allocation5 + $0xbc] sm:$0xf0]  ;;  %5235 = vst [vmem:[#allocation5 + $0x68] sm:$0xf] %v14926_v52  ;;  %v5232_v52 = vpack.c.bf16 %v5226_v5, %v5226_v5  ;;  %v13530_v32 = vld [vmem:[#allocation6 + $0xb00] sm:$0xff] }
 0x469   : > { %6029 = vmatmul.bf16.gmra.mxu1 %v11534_v14  ;;  %v11542_v10 = vor.u32 %v13458_v53, %v11539_v37  ;;  %5236 = vst [vmem:[#allocation5 + $0x8c] sm:$0xf] %v14938_v29  ;;  %v13445_v29 = vld [vmem:[#allocation5 + $0x30] sm:$0xf0]  ;;  %6185 = vmatpush.bf16.msrb.mxu0 %v13531_v22  ;;  %v13451_v45 = vld [vmem:[#allocation5 + $0x64] sm:$0xf] }
 0x46a   : > { %6053 = vmatmul.bf16.gmra.mxu2 %v11538_v19  ;;  %5237 = vst [vmem:[#allocation5 + $0xb0] sm:$0xf] %v5142_v35  ;;  %v11474_v1 = vor.u32 %v13445_v29, %v11473_v28  ;;  %v11510_v35 = vor.u32 %v13454_v49, %v11509_v42  ;;  %v11545_v26 = vld [vmem:[#allocation5 + $0xa0] sm:$0xf]  ;;  %v13447_v6 = vld [vmem:[#allocation5 + $0x40] sm:$0xf0] }
 0x46b   : > { %6077 = vmatmul.bf16.gmra.mxu3 %v11542_v10  ;;  %5184 = vst [vmem:[#allocation5 + $0xc8] sm:$0xf] %v5178_v11  ;;  %v13455_v15 = vld [vmem:[#allocation5 + $0x80] sm:$0xf0]  ;;  %v11489_v19 = vld [vmem:[#allocation5 + $0x20] sm:$0xf] }
 0x46c   : > { %5201 = vst [vmem:[#allocation5 + $0xa8] sm:$0xf] %v5195_v46  ;;  %v11519_v25 = vld [vmem:[#allocation5 + $0x84] sm:$0xf0]  ;;  %v11518_v43 = vor.u32 %v13455_v15, %v11517_v55  ;;  %v11490_v53 = vor.u32 %v13447_v6, %v11489_v19  ;;  %v14987_v15 = vld [vmem:[#allocation8 + $0x4] ss:$0 sm:$0xff] }
 0x46d   : > { %5202 = vst [vmem:[#allocation5 + $0xcc] sm:$0xf] %v5196_v36  ;;  %6186 = vmatpush.bf16.msrb.mxu0 %v13530_v32  ;;  %v11522_v3 = vor.u32 %v13451_v45, %v11519_v25  ;;  %v13463_v33 = vld [vmem:[#allocation5 + $0xc0] sm:$0xf0]  ;;  %v13571_v22 = vld [vmem:[#allocation6 + $0xb70] sm:$0xff]  ;;  %v13580_v25 = vld [vmem:[#allocation6 + $0xbb8] sm:$0xff] }
 0x46e   : > { %5219 = vst [vmem:[#allocation5 + $0xac] sm:$0xf] %v5213_v39  ;;  %v13459_v40 = vld [vmem:[#allocation5 + $0xa4] sm:$0xf]  ;;  %v11546_v23 = vor.u32 %v13463_v33, %v11545_v26  ;;  %7181 = vmatpush.bf16.msrb.mxu2 %v13580_v25 }
 0x46f   : > { %5220 = vst [vmem:[#allocation5 + $0xd0] sm:$0xf] %v5214_v30  ;;  %v11525_v10 = vld [vmem:[#allocation5 + $0x68] sm:$0xf]  ;;  %v13594_v19 = vld [vmem:[#allocation6 + $0xc28] sm:$0xff] }
 0x470   : > { %5238 = vst [vmem:[#allocation5 + $0xd4] sm:$0xf] %v5232_v52  ;;  %v13456_v37 = vld [vmem:[#allocation5 + $0x88] sm:$0xf0] }
 0x471   : > { %v11526_v12 = vor.u32 %v13456_v37, %v11525_v10  ;;  %v11561_v16 = vld [vmem:[#allocation5 + $0xb0] sm:$0xf] }
 0x472   : > { %v11547_v9 = vld [vmem:[#allocation5 + $0xc4] sm:$0xf0] }
 0x473   : > { %v11553_v13 = vld [vmem:[#allocation5 + $0xa8] sm:$0xf]  ;;  %v11550_v48 = vor.u32 %v13459_v40, %v11547_v9 }
 0x474   : > { %v13464_v27 = vld [vmem:[#allocation5 + $0xc8] sm:$0xf0] }
 0x475   : > { %v13460_v21 = vld [vmem:[#allocation5 + $0xac] sm:$0xf]  ;;  %v11554_v14 = vor.u32 %v13464_v27, %v11553_v13 }
 0x476   : > { %v11555_v58 = vld [vmem:[#allocation5 + $0xcc] sm:$0xf0]  ;;  %v13579_v27 = vld [vmem:[#allocation6 + $0xbb0] sm:$0xff] }
 0x477   : > { %v11558_v24 = vor.u32 %v13460_v21, %v11555_v58  ;;  %v13465_v54 = vld [vmem:[#allocation5 + $0xd0] sm:$0xf0]  ;;  %v13595_v21 = vld [vmem:[#allocation6 + $0xc30] sm:$0xff]  ;;  %7182 = vmatpush.bf16.msrb.mxu2 %v13579_v27 }
 0x478   : > { %6091 = vmatmul.bf16.vlgmr.msra.gmra.mxu0 %v11474_v1  ;;  %v11562_v44 = vor.u32 %v13465_v54, %v11561_v16 }
 0x479   : > { %6115 = vmatmul.bf16.vlgmr.msra.gmra.mxu1 %v11478_v51  ;;  %v13572_v51 = vld [vmem:[#allocation6 + $0xb78] sm:$0xff] }
 0x47a   : > { %6139 = vmatmul.bf16.vlgmr.msra.gmra.mxu2 %v11482_v56  ;;  %7157 = vmatpush.bf16.msrb.mxu1 %v13572_v51  ;;  %v13567_v51 = vld [vmem:[#allocation6 + $0xb50] sm:$0xff] }
 0x47b   : > { %6163 = vmatmul.bf16.vlgmr.msra.gmra.mxu3 %v11486_v8 }
 0x47e   : > { %7158 = vmatpush.bf16.msrb.mxu1 %v13571_v22 }
 0x482   : > { %7159 = vmatpush.bf16.msrb.mxu1 %v13570_v57  ;;  %v13592_v57 = vld [vmem:[#allocation6 + $0xc18] sm:$0xff] }
 0x488   : > { %6096 = vmatmul.bf16.gmra.mxu0 %v11510_v35 }
 0x489   : > { %6120 = vmatmul.bf16.gmra.mxu1 %v11514_v38  ;;  %v13588_v38 = vld [vmem:[#allocation6 + $0xbf8] sm:$0xff] }
 0x48a   : > { %6144 = vmatmul.bf16.gmra.mxu2 %v11518_v43  ;;  %v13596_v43 = vld [vmem:[#allocation6 + $0xc38] sm:$0xff]  ;;  %7205 = vmatpush.bf16.msrb.mxu3 %v13588_v38 }
 0x48b   : > { %6168 = vmatmul.bf16.gmra.mxu3 %v11522_v3  ;;  %v13569_v3 = vld [vmem:[#allocation6 + $0xb60] sm:$0xff]  ;;  %7229 = vmatpush.bf16.msra.mxu0 %v13596_v43 }
 0x48c   : > { %7160 = vmatpush.bf16.msrb.mxu1 %v13569_v3 }
 0x48f   : > { %7230 = vmatpush.bf16.msra.mxu0 %v13595_v21  ;;  %v13591_v21 = vld [vmem:[#allocation6 + $0xc10] sm:$0xff] }
 0x493   : > { %7231 = vmatpush.bf16.msra.mxu0 %v13594_v19  ;;  %v13590_v19 = vld [vmem:[#allocation6 + $0xc08] sm:$0xff] }
 0x498   : > { %6101 = vmatmul.bf16.gmra.mxu0 %v11546_v23  ;;  %v13587_v23 = vld [vmem:[#allocation6 + $0xbf0] sm:$0xff] }
 0x499   : > { %6125 = vmatmul.bf16.gmra.mxu1 %v11550_v48  ;;  %v13568_v48 = vld [vmem:[#allocation6 + $0xb58] sm:$0xff]  ;;  %7206 = vmatpush.bf16.msrb.mxu3 %v13587_v23 }
 0x49a   : > { %6149 = vmatmul.bf16.gmra.mxu2 %v11554_v14  ;;  %v13578_v14 = vld [vmem:[#allocation6 + $0xba8] sm:$0xff]  ;;  %7161 = vmatpush.bf16.msrb.mxu1 %v13568_v48 }
 0x49b   : > { %6173 = vmatmul.bf16.gmra.mxu3 %v11558_v24  ;;  %v13586_v24 = vld [vmem:[#allocation6 + $0xbe8] sm:$0xff]  ;;  %7183 = vmatpush.bf16.msrb.mxu2 %v13578_v14 }
 0x49d   : > { %7207 = vmatpush.bf16.msrb.mxu3 %v13586_v24 }
 0x49e   : > { %7162 = vmatpush.bf16.msrb.mxu1 %v13567_v51 }
 0x4a8   : > { %6187 = vmatmul.bf16.vlgmr.msrb.gmra.mxu0 %v11490_v53 }
 0x4b8   : > { %6192 = vmatmul.bf16.gmra.mxu0 %v11526_v12 }
 0x4c5   : > { %v5996_v11 = vpop.f32.mrf.mxu0 }
 0x4c6   : > { %v6020_v36 = vpop.f32.mrf.mxu1  ;;  %v5997_v55 = vadd.f32 %v14987_v15, %v5996_v11 }
 0x4c8   : > { %6197 = vmatmul.bf16.gmra.mxu0 %v11562_v44  ;;  %v6021_v33 = vadd.f32 %v6020_v36, %v5997_v55  ;;  %v13577_v44 = vld [vmem:[#allocation6 + $0xba0] sm:$0xff] }
 0x4c9   : > { %v13593_v36 = vld [vmem:[#allocation6 + $0xc20] sm:$0xff]  ;;  %7184 = vmatpush.bf16.msrb.mxu2 %v13577_v44 }
 0x4ca   : > { %7232 = vmatpush.bf16.msra.mxu0 %v13593_v36  ;;  %v13573_v44 = vld [vmem:[#allocation6 + $0xb80] sm:$0xff] }
 0x4cb   : > { %v13589_v36 = vld [vmem:[#allocation6 + $0xc00] sm:$0xff] }
 0x4cd   : > { %v5998_v47 = vpop.f32.mrf.mxu0  ;;  %v6044_v20 = vpop.f32.mrf.mxu2 }
 0x4ce   : > { %v6068_v60 = vpop.f32.mrf.mxu3  ;;  %v6022_v30 = vpop.f32.mrf.mxu1  ;;  %v6045_v26 = vadd.f32 %v6044_v20, %v6021_v33  ;;  %v5999_v58 = vadd.f32 %v14987_v15, %v5998_v47  ;;  %v13585_v47 = vld [vmem:[#allocation6 + $0xbe0] sm:$0xff]  ;;  %7233 = vmatpush.bf16.msra.mxu0 %v13592_v57  ;;  %v13566_v33 = vld [vmem:[#allocation6 + $0xb48] sm:$0xff] }
 0x4cf   : > { %7208 = vmatpush.bf16.msrb.mxu3 %v13585_v47  ;;  %7163 = vmatpush.bf16.msrb.mxu1 %v13566_v33  ;;  %v13581_v47 = vld [vmem:[#allocation6 + $0xbc0] sm:$0xff] }
 0x4d0   : > { %v6069_v6 = vadd.f32 %v6068_v60, %v6045_v26  ;;  %v6023_v37 = vadd.f32 %v6022_v30, %v5999_v58  ;;  %v13576_v30 = vld [vmem:[#allocation6 + $0xb98] sm:$0xff]  ;;  %v13583_v26 = vld [vmem:[#allocation6 + $0xbd0] sm:$0xff]  ;;  %v13574_v58 = vld [vmem:[#allocation6 + $0xb88] sm:$0xff] }
 0x4d1   : > { %7185 = vmatpush.bf16.msrb.mxu2 %v13576_v30  ;;  %v6204_v30 = vld [vmem:[#allocation2 + $0x10] sm:$0xff] }
 0x4d2   : > { %7234 = vmatpush.bf16.msra.mxu0 %v13591_v21 }
 0x4d5   : > { %v14951_v46 = vpop.f32.mrf.mxu0  ;;  %v6046_v5 = vpop.f32.mrf.mxu2 }
 0x4d6   : > { %v14957_v18 = vpop.f32.mrf.mxu3  ;;  %v14959_v29 = vpop.f32.mrf.mxu1  ;;  %v6047_v12 = vadd.f32 %v6046_v5, %v6023_v37  ;;  %v6002_v20 = vadd.f32 %v14987_v15, %v14951_v46  ;;  %7235 = vmatpush.bf16.msra.mxu0 %v13590_v19 }
 0x4d8   : > { %v6071_v22 = vadd.f32 %v14957_v18, %v6047_v12  ;;  %v6026_v25 = vadd.f32 %v14959_v29, %v6002_v20 }
 0x4da   : > { %7236 = vmatpush.bf16.msra.mxu0 %v13589_v36 }
 0x4dd   : > { %v14953_v39 = vpop.f32.mrf.mxu0  ;;  %v14961_v34 = vpop.f32.mrf.mxu2 }
 0x4de   : > { %v14965_v17 = vpop.f32.mrf.mxu3  ;;  %v14967_v1 = vpop.f32.mrf.mxu1  ;;  %v6050_v46 = vadd.f32 %v14961_v34, %v6026_v25  ;;  %v6004_v18 = vadd.f32 %v14987_v15, %v14953_v39  ;;  %v13565_v34 = vld [vmem:[#allocation6 + $0xb40] sm:$0xff] }
 0x4df   : > { %7164 = vmatpush.bf16.msrb.mxu1 %v13565_v34  ;;  %v6205_v34 = vld [vmem:[#allocation2 + $0x18] sm:$0xff] }
 0x4e0   : > { %v6074_v48 = vadd.f32 %v14965_v17, %v6050_v46  ;;  %v6028_v39 = vadd.f32 %v14967_v1, %v6004_v18 }
 0x4e5   : > { %v14955_v52 = vpop.f32.mrf.mxu0  ;;  %v14969_v63 = vpop.f32.mrf.mxu2 }
 0x4e6   : > { %v14971_v61 = vpop.f32.mrf.mxu3  ;;  %v14975_v4 = vpop.f32.mrf.mxu1  ;;  %v6052_v17 = vadd.f32 %v14969_v63, %v6028_v39  ;;  %v6007_v20 = vadd.f32 %v14987_v15, %v14955_v52  ;;  %v13604_v63 = vld [vmem:[#allocation6 + $0xc78] sm:$0xff] }
 0x4e7   : > { %7253 = vmatpush.bf16.msra.mxu1 %v13604_v63 }
 0x4ed   : > { %v14963_v28 = vpop.f32.mrf.mxu0  ;;  %v14977_v8 = vpop.f32.mrf.mxu2 }
 0x4ee   : > { %v14979_v32 = vpop.f32.mrf.mxu3  ;;  %v14983_v0 = vpop.f32.mrf.mxu1 }
 0x4f5   : > { %v6092_v41 = vpop.f32.mrf.mxu0  ;;  %v14985_v42 = vpop.f32.mrf.mxu2 }
 0x4f6   : > { %v14992_v45 = vpop.f32.mrf.mxu3  ;;  %v6116_v40 = vpop.f32.mrf.mxu1  ;;  %v6093_v10 = vadd.f32 %v6092_v41, %v6069_v6  ;;  %v13584_v41 = vld [vmem:[#allocation6 + $0xbd8] sm:$0xff]  ;;  %v13582_v6 = vld [vmem:[#allocation6 + $0xbc8] sm:$0xff] }
 0x4f7   : > { %7209 = vmatpush.bf16.msrb.mxu3 %v13584_v41  ;;  %v6076_v41 = vadd.f32 %v14971_v61, %v6052_v17 }
 0x4f8   : > { %v6117_v60 = vadd.f32 %v6116_v40, %v6093_v10  ;;  %v13575_v40 = vld [vmem:[#allocation6 + $0xb90] sm:$0xff]  ;;  %v15013_v10 = vld [vmem:[%s14112_s12] ss:$0 sm:$0xff] }
 0x4f9   : > { %7186 = vmatpush.bf16.msrb.mxu2 %v13575_v40 }
 0x4fb   : > { %7210 = vmatpush.bf16.msrb.mxu3 %v13583_v26 }
 0x4fd   : > { %v14973_v56 = vpop.f32.mrf.mxu0  ;;  %v6140_v9 = vpop.f32.mrf.mxu2  ;;  %7187 = vmatpush.bf16.msrb.mxu2 %v13574_v58 }
 0x4fe   : > { %v6164_v53 = vpop.f32.mrf.mxu3  ;;  %v6118_v16 = vpop.f32.mrf.mxu1  ;;  %v6141_v5 = vadd.f32 %v6140_v9, %v6117_v60  ;;  %v6095_v38 = vadd.f32 %v14973_v56, %v6071_v22  ;;  %v6203_v56 = vld [vmem:[#allocation2 + $0x8] sm:$0xff] }
 0x4ff   : > { %7211 = vmatpush.bf16.msrb.mxu3 %v13582_v6 }
 0x500   : > { %v6165_v43 = vadd.f32 %v6164_v53, %v6141_v5  ;;  %v6119_v9 = vadd.f32 %v6118_v16, %v6095_v38  ;;  %v6031_v38 = vadd.f32 %v14975_v4, %v6007_v20  ;;  %v6009_v4 = vadd.f32 %v14987_v15, %v14963_v28  ;;  %v13612_v20 = vld [vmem:[#allocation6 + $0xcb8] sm:$0xff] }
 0x501   : > { %7188 = vmatpush.bf16.msrb.mxu2 %v13573_v44 }
 0x502   : > { %v6033_v15 = vadd.f32 %v14983_v0, %v6009_v4  ;;  %v13618_v4 = vld [vmem:[#allocation6 + $0xce8] sm:$0xff] }
 0x503   : > { %7212 = vmatpush.bf16.msrb.mxu3 %v13581_v47 }
 0x505   : > { %v14981_v49 = vpop.f32.mrf.mxu0  ;;  %v6142_v54 = vpop.f32.mrf.mxu2  ;;  %7277 = vmatpush.bf16.msra.mxu2 %v13612_v20 }
 0x506   : > { %v6166_v55 = vpop.f32.mrf.mxu3  ;;  %v6121_v27 = vpop.f32.mrf.mxu1  ;;  %v6143_v14 = vadd.f32 %v6142_v54, %v6119_v9  ;;  %v6098_v53 = vadd.f32 %v14981_v49, %v6074_v48  ;;  %v13602_v48 = vld [vmem:[#allocation6 + $0xc68] sm:$0xff] }
 0x508   : > { %v6167_v16 = vadd.f32 %v6166_v55, %v6143_v14  ;;  %v6122_v60 = vadd.f32 %v6121_v27, %v6098_v53 }
 0x50d   : > { %v14989_v35 = vpop.f32.mrf.mxu0  ;;  %v6145_v23 = vpop.f32.mrf.mxu2 }
 0x50e   : > { %v6169_v1 = vpop.f32.mrf.mxu3  ;;  %v6146_v22 = vadd.f32 %v6145_v23, %v6122_v60  ;;  %v6123_v5 = vpop.f32.mrf.mxu1  ;;  %v6100_v55 = vadd.f32 %v14989_v35, %v6076_v41  ;;  %v13620_v60 = vld [vmem:[#allocation6 + $0xcf8] sm:$0xff]  ;;  %v13601_v41 = vld [vmem:[#allocation6 + $0xc60] sm:$0xff] }
 0x50f   : > { %7301 = vmatpush.bf16.msra.mxu3 %v13620_v60  ;;  %v13625_v60 = vld [vmem:[#allocation6 + $0xd20] sm:$0xff] }
 0x510   : > { %v6170_v61 = vadd.f32 %v6169_v1, %v6146_v22 }
 0x515   : > { %v14994_v13 = vpop.f32.mrf.mxu0  ;;  %v6147_v57 = vpop.f32.mrf.mxu2 }
 0x516   : > { %v6171_v58 = vpop.f32.mrf.mxu3  ;;  %v6126_v19 = vpop.f32.mrf.mxu1 }
 0x51d   : > { %v14997_v11 = vpop.f32.mrf.mxu0  ;;  %v6150_v39 = vpop.f32.mrf.mxu2 }
 0x525   : > { %v6188_v3 = vpop.f32.mrf.mxu0 }
 0x526   : > { %v6189_v29 = vadd.f32 %v6188_v3, %v6165_v43  ;;  %v6055_v43 = vadd.f32 %v14977_v8, %v6031_v38  ;;  %v6124_v8 = vadd.f32 %v6123_v5, %v6100_v55  ;;  %v6206_v5 = vld [vmem:[#allocation2 + $0x20] sm:$0xff] }
 0x528   : > { %v6209_v24 = vadd.f32 %v6203_v56, %v6189_v29  ;;  %v13603_v29 = vld [vmem:[#allocation6 + $0xc70] sm:$0xff]  ;;  %v6079_v14 = vadd.f32 %v14979_v32, %v6055_v43 }
 0x529   : > { %7254 = vmatpush.bf16.msra.mxu1 %v13603_v29 }
 0x52a   : > { %v6215_v37 = vsel %vm14340_vm1, %v6209_v24, 0.0  ;;  %v6227_v12 = vadd.f32 %v15013_v10, %v6209_v24  ;;  %v6148_v24 = vadd.f32 %v6147_v57, %v6124_v8  ;;  %v6103_v6 = vadd.f32 %v14994_v13, %v6079_v14  ;;  %v13611_v57 = vld [vmem:[#allocation6 + $0xcb0] sm:$0xff] }
 0x52b   : > { %6221 = vst [vmem:[#allocation2 + $0x8] sm:$0xff] %v6215_v37  ;;  %7278 = vmatpush.bf16.msra.mxu2 %v13611_v57 }
 0x52c   : > { %v15019_v54 = vsel %vm14340_vm1, %v6227_v12, 0.0  ;;  %v6057_v12 = vadd.f32 %v14985_v42, %v6033_v15  ;;  %v6172_v32 = vadd.f32 %v6171_v58, %v6148_v24  ;;  %v6127_v42 = vadd.f32 %v6126_v19, %v6103_v6 }
 0x52d   : > { %6239 = vst [vmem:[#allocation3 + $0x8] sm:$0xff] %v15019_v54  ;;  %v6190_v49 = vpop.f32.mrf.mxu0  ;;  %7255 = vmatpush.bf16.msra.mxu1 %v13602_v48  ;;  %v6325_v43 = vpack.c.bf16 %v15019_v54, %v15019_v54  ;;  %v6128_v54 = vpop.f32.mrf.mxu1 }
 0x52e   : > { %v6191_v51 = vadd.f32 %v6190_v49, %v6167_v16  ;;  %v6081_v22 = vadd.f32 %v14992_v45, %v6057_v12  ;;  %v6151_v38 = vadd.f32 %v6150_v39, %v6127_v42 }
 0x52f   : > { %6331 = vst [vmem:[#allocation5 + $0x10] sm:$0xf] %v6325_v43 }
 0x530   : > { %v6210_v25 = vadd.f32 %v6204_v30, %v6191_v51  ;;  %v13628_v30 = vld [vmem:[#allocation6 + $0xd38] sm:$0xff] }
 0x531   : > { %7325 = vmatpush.bf16.msrb.mxu0 %v13628_v30  ;;  %7256 = vmatpush.bf16.msra.mxu1 %v13601_v41 }
 0x532   : > { %v6216_v52 = vsel %vm14383_vm10, %v6210_v25, 0.0  ;;  %v6228_v46 = vadd.f32 %v15013_v10, %v6210_v25  ;;  %v13619_v25 = vld [vmem:[#allocation6 + $0xcf0] sm:$0xff] }
 0x533   : > { %6222 = vst [vmem:[#allocation2 + $0x10] sm:$0xff] %v6216_v52  ;;  %v13627_v52 = vld [vmem:[#allocation6 + $0xd30] sm:$0xff]  ;;  %7302 = vmatpush.bf16.msra.mxu3 %v13619_v25 }
 0x534   : > { %v15033_v3 = vsel %vm14383_vm10, %v6228_v46, 0.0  ;;  %v6247_v33 = vld [vmem:[#allocation3 + $0x1] sm:$0xff]  ;;  %v13600_v46 = vld [vmem:[#allocation6 + $0xc58] sm:$0xff] }
 0x535   : > { %v6265_v40 = vld [vmem:[#allocation3 + $0x2] sm:$0xff]  ;;  %6240 = vst [vmem:[#allocation3 + $0x10] sm:$0xff] %v15033_v3  ;;  %v6193_v35 = vpop.f32.mrf.mxu0  ;;  %v6253_v18 = vpack.c.bf16 %v6247_v33, %v6247_v33  ;;  %v6105_v33 = vadd.f32 %v14997_v11, %v6081_v22  ;;  %7326 = vmatpush.bf16.msrb.mxu0 %v13627_v52  ;;  %7257 = vmatpush.bf16.msra.mxu1 %v13600_v46 }
 0x536   : > { %v6283_v26 = vld [vmem:[#allocation3 + $0x3] sm:$0xff]  ;;  %v6271_v9 = vpack.c.bf16 %v6265_v40, %v6265_v40  ;;  %v6194_v21 = vadd.f32 %v6193_v35, %v6170_v61  ;;  %v6174_v61 = vpop.f32.mrf.mxu3 }
 0x537   : > { %v6289_v27 = vpack.c.bf16 %v6283_v26, %v6283_v26  ;;  %v6301_v23 = vld [vmem:[#allocation3 + $0x7] sm:$0xff]  ;;  %6259 = vst [vmem:[#allocation5] sm:$0xf] %v6253_v18  ;;  %7303 = vmatpush.bf16.msra.mxu3 %v13618_v4 }
 0x538   : > { %v6307_v56 = vpack.c.bf16 %v6301_v23, %v6301_v23  ;;  %v6211_v28 = vadd.f32 %v6205_v34, %v6194_v21  ;;  %6277 = vst [vmem:[#allocation5 + $0x4] sm:$0xf] %v6271_v9  ;;  %v13610_v26 = vld [vmem:[#allocation6 + $0xca8] sm:$0xff]  ;;  %v13599_v18 = vld [vmem:[#allocation6 + $0xc50] sm:$0xff]  ;;  %v6175_v9 = vadd.f32 %v6174_v61, %v6151_v38  ;;  %v6129_v21 = vadd.f32 %v6128_v54, %v6105_v33  ;;  %v13608_v61 = vld [vmem:[#allocation6 + $0xc98] sm:$0xff] }
 0x539   : > { %6295 = vst [vmem:[#allocation5 + $0x8] sm:$0xf] %v6289_v27  ;;  %v13626_v35 = vld [vmem:[#allocation6 + $0xd28] sm:$0xff]  ;;  %v6152_v27 = vpop.f32.mrf.mxu2  ;;  %7279 = vmatpush.bf16.msra.mxu2 %v13610_v26  ;;  %7258 = vmatpush.bf16.msra.mxu1 %v13599_v18  ;;  %v13616_v33 = vld [vmem:[#allocation6 + $0xcd8] sm:$0xff]  ;;  %v13607_v18 = vld [vmem:[#allocation6 + $0xc90] sm:$0xff] }
 0x53a   : > { %v6217_v53 = vsel %vm14428_vm3, %v6211_v28, 0.0  ;;  %v6229_v37 = vadd.f32 %v15013_v10, %v6211_v28  ;;  %6313 = vst [vmem:[#allocation5 + $0xc] sm:$0xf] %v6307_v56  ;;  %7327 = vmatpush.bf16.msrb.mxu0 %v13626_v35  ;;  %v13624_v26 = vld [vmem:[#allocation6 + $0xd18] sm:$0xff]  ;;  %v13598_v4 = vld [vmem:[#allocation6 + $0xc48] sm:$0xff]  ;;  %v13615_v54 = vld [vmem:[#allocation6 + $0xcd0] sm:$0xff] }
 0x53b   : > { %6223 = vst [vmem:[#allocation2 + $0x18] sm:$0xff] %v6217_v53  ;;  %v6153_v53 = vadd.f32 %v6152_v27, %v6129_v21  ;;  %v6208_v35 = vld [vmem:[#allocation2 + $0x30] sm:$0xff]  ;;  %v13606_v21 = vld [vmem:[#allocation6 + $0xc88] sm:$0xff] }
 0x53c   : > { %v15047_v17 = vsel %vm14428_vm3, %v6229_v37, 0.0  ;;  %v6248_v0 = vld [vmem:[#allocation3 + $0x9] sm:$0xff] }
 0x53d   : > { %v6266_v16 = vld [vmem:[#allocation3 + $0xa] sm:$0xff]  ;;  %6241 = vst [vmem:[#allocation3 + $0x18] sm:$0xff] %v15047_v17  ;;  %v6195_v1 = vpop.f32.mrf.mxu0  ;;  %v6254_v49 = vpack.c.bf16 %v6248_v0, %v6248_v0  ;;  %7259 = vmatpush.bf16.msra.mxu1 %v13598_v4  ;;  %v6327_v27 = vpack.c.bf16 %v15047_v17, %v15047_v17 }
 0x53e   : > { %v6284_v13 = vld [vmem:[#allocation3 + $0xb] sm:$0xff]  ;;  %v6272_v44 = vpack.c.bf16 %v6266_v16, %v6266_v16  ;;  %v6196_v51 = vadd.f32 %v6195_v1, %v6172_v32  ;;  %v11853_v58 = vld [vmem:[#allocation5] sm:$0xf]  ;;  %v13609_v16 = vld [vmem:[#allocation6 + $0xca0] sm:$0xff]  ;;  %v6176_v41 = vpop.f32.mrf.mxu3  ;;  %7328 = vmatpush.bf16.msrb.mxu0 %v13625_v60 }
 0x53f   : > { %v6290_v47 = vpack.c.bf16 %v6284_v13, %v6284_v13  ;;  %v6302_v36 = vld [vmem:[#allocation3 + $0xf] sm:$0xff]  ;;  %6260 = vst [vmem:[#allocation5 + $0x24] sm:$0xf] %v6254_v49  ;;  %v13538_v34 = vld [vmem:[#allocation5 + $0x4] sm:$0xf]  ;;  %7280 = vmatpush.bf16.msra.mxu2 %v13609_v16  ;;  %v6177_v22 = vadd.f32 %v6176_v41, %v6153_v53 }
 0x540   : > { %v15050_v63 = vpack.c.bf16 %v6302_v36, %v6302_v36  ;;  %v6212_v55 = vadd.f32 %v6206_v5, %v6196_v51  ;;  %6278 = vst [vmem:[#allocation5 + $0x28] sm:$0xf] %v6272_v44  ;;  %v11861_v19 = vld [vmem:[#allocation5 + $0x8] sm:$0xf]  ;;  %v6326_v36 = vpack.c.bf16 %v15033_v3, %v15033_v3 }
 0x541   : > { %6296 = vst [vmem:[#allocation5 + $0x2c] sm:$0xf] %v6290_v47  ;;  %v6207_v37 = vld [vmem:[#allocation2 + $0x28] sm:$0xff]  ;;  %v13617_v47 = vld [vmem:[#allocation6 + $0xce0] sm:$0xff] }
 0x542   : > { %v6218_v45 = vsel %vm14505_vm8, %v6212_v55, 0.0  ;;  %v6230_v40 = vadd.f32 %v15013_v10, %v6212_v55  ;;  %6314 = vst [vmem:[#allocation5 + $0x30] sm:$0xf] %v15050_v63  ;;  %v13539_v0 = vld [vmem:[#allocation5 + $0xc] sm:$0xf]  ;;  %7304 = vmatpush.bf16.msra.mxu3 %v13617_v47  ;;  %7329 = vmatpush.bf16.msrb.mxu0 %v13624_v26 }
 0x543   : > { %6224 = vst [vmem:[#allocation2 + $0x20] sm:$0xff] %v6218_v45  ;;  %7281 = vmatpush.bf16.msra.mxu2 %v13608_v61 }
 0x544   : > { %v15062_v11 = vsel %vm14505_vm8, %v6230_v40, 0.0  ;;  %v6249_v23 = vld [vmem:[#allocation3 + $0x11] sm:$0xff]  ;;  %6349 = vst [vmem:[#allocation5 + $0x14] sm:$0xf] %v6254_v49 }
 0x545   : > { %v6267_v29 = vld [vmem:[#allocation3 + $0x12] sm:$0xff]  ;;  %6242 = vst [vmem:[#allocation3 + $0x20] sm:$0xff] %v15062_v11  ;;  %v6198_v56 = vpop.f32.mrf.mxu0  ;;  %v6255_v48 = vpack.c.bf16 %v6249_v23, %v6249_v23  ;;  %v13623_v23 = vld [vmem:[#allocation6 + $0xd10] sm:$0xff] }
 0x546   : > { %v6285_v8 = vld [vmem:[#allocation3 + $0x13] sm:$0xff]  ;;  %v6273_v14 = vpack.c.bf16 %v6267_v29, %v6267_v29  ;;  %v6199_v15 = vadd.f32 %v6198_v56, %v6175_v9  ;;  %v13542_v6 = vld [vmem:[#allocation5 + $0x20] sm:$0xf0]  ;;  %6332 = vst [vmem:[#allocation5 + $0x34] sm:$0xf] %v6326_v36  ;;  %7305 = vmatpush.bf16.msra.mxu3 %v13616_v33  ;;  %7330 = vmatpush.bf16.msrb.mxu0 %v13623_v23 }
 0x547   : > { %v6291_v24 = vpack.c.bf16 %v6285_v8, %v6285_v8  ;;  %v6303_v28 = vld [vmem:[#allocation3 + $0x17] sm:$0xff]  ;;  %v11854_v12 = vor.u32 %v13542_v6, %v11853_v58  ;;  %v11855_v32 = vld [vmem:[#allocation5 + $0x24] sm:$0xf0]  ;;  %6261 = vst [vmem:[#allocation5 + $0x48] sm:$0xf] %v6255_v48  ;;  %7282 = vmatpush.bf16.msra.mxu2 %v13607_v18  ;;  %v13614_v58 = vld [vmem:[#allocation6 + $0xcc8] sm:$0xff] }
 0x548   : > { %v15065_v39 = vpack.c.bf16 %v6303_v28, %v6303_v28  ;;  %v6213_v13 = vadd.f32 %v6207_v37, %v6199_v15  ;;  %v11858_v1 = vor.u32 %v13538_v34, %v11855_v32  ;;  %v13543_v44 = vld [vmem:[#allocation5 + $0x28] sm:$0xf0]  ;;  %6279 = vst [vmem:[#allocation5 + $0x4c] sm:$0xf] %v6273_v14  ;;  %v13597_v56 = vld [vmem:[#allocation6 + $0xc40] sm:$0xff]  ;;  %v13622_v34 = vld [vmem:[#allocation6 + $0xd08] sm:$0xff] }
 0x549   : > { %7165 = vmatmul.bf16.vlgmr.msrb.gmra.mxu1 %v11854_v12  ;;  %v11862_v49 = vor.u32 %v13543_v44, %v11861_v19  ;;  %v11863_v20 = vld [vmem:[#allocation5 + $0x2c] sm:$0xf0]  ;;  %6297 = vst [vmem:[#allocation5 + $0x50] sm:$0xf] %v6291_v24  ;;  %v6356_v32 = vld [vmem:[#allocation3 + $0x15] sm:$0xff] }
 0x54a   : > { %v6219_v42 = vsel %vm14526_vm13, %v6213_v13, 0.0  ;;  %v6231_v51 = vadd.f32 %v15013_v10, %v6213_v13  ;;  %7189 = vmatmul.bf16.vlgmr.msrb.gmra.mxu2 %v11858_v1  ;;  %v11866_v30 = vor.u32 %v13539_v0, %v11863_v20  ;;  %6315 = vst [vmem:[#allocation5 + $0x54] sm:$0xf] %v15065_v39  ;;  %7306 = vmatpush.bf16.msra.mxu3 %v13615_v54  ;;  %v6373_v0 = vld [vmem:[#allocation3 + $0xe] sm:$0xff]  ;;  %v6374_v60 = vld [vmem:[#allocation3 + $0x16] sm:$0xff] }
 0x54b   : > { %6225 = vst [vmem:[#allocation2 + $0x28] sm:$0xff] %v6219_v42  ;;  %7213 = vmatmul.bf16.vlgmr.msrb.gmra.mxu3 %v11862_v49  ;;  %7260 = vmatpush.bf16.msra.mxu1 %v13597_v56  ;;  %v13605_v49 = vld [vmem:[#allocation6 + $0xc80] sm:$0xff]  ;;  %v6362_v20 = vpack.c.bf16 %v6356_v32, %v6356_v32  ;;  %v6379_v41 = vpack.c.bf16 %v6373_v0, %v6373_v0  ;;  %v13632_v0 = vld [vmem:[#allocation6 + $0xd58] sm:$0xff] }
 0x54c   : > { %v15075_v3 = vsel %vm14526_vm13, %v6231_v51, 0.0  ;;  %7237 = vmatmul.bf16.vlgmr.msra.gmra.mxu0 %v11866_v30  ;;  %v6250_v5 = vld [vmem:[#allocation3 + $0x19] sm:$0xff]  ;;  %6350 = vst [vmem:[#allocation5 + $0x38] sm:$0xf] %v6255_v48  ;;  %v6355_v48 = vld [vmem:[#allocation3 + $0xd] sm:$0xff]  ;;  %7283 = vmatpush.bf16.msra.mxu2 %v13606_v21 }
 0x54d   : > { %v6268_v57 = vld [vmem:[#allocation3 + $0x1a] sm:$0xff]  ;;  %6243 = vst [vmem:[#allocation3 + $0x28] sm:$0xff] %v15075_v3  ;;  %v6200_v38 = vpop.f32.mrf.mxu0  ;;  %v15078_v55 = vpack.c.bf16 %v6250_v5, %v6250_v5  ;;  %7331 = vmatpush.bf16.msrb.mxu0 %v13622_v34  ;;  %v6329_v34 = vpack.c.bf16 %v15075_v3, %v15075_v3 }
 0x54e   : > { %v6286_v25 = vld [vmem:[#allocation3 + $0x1b] sm:$0xff]  ;;  %v6274_v52 = vpack.c.bf16 %v6268_v57, %v6268_v57  ;;  %v6201_v45 = vadd.f32 %v6200_v38, %v6177_v22  ;;  %v11889_v14 = vld [vmem:[#allocation5 + $0x48] sm:$0xf]  ;;  %6333 = vst [vmem:[#allocation5 + $0x58] sm:$0xf] %v6327_v27  ;;  %7307 = vmatpush.bf16.msra.mxu3 %v13614_v58 }
 0x54f   : > { %v6292_v46 = vpack.c.bf16 %v6286_v25, %v6286_v25  ;;  %v6304_v43 = vld [vmem:[#allocation3 + $0x1f] sm:$0xff]  ;;  %6262 = vst [vmem:[#allocation5 + $0x6c] sm:$0xf] %v15078_v55  ;;  %v13547_v6 = vld [vmem:[#allocation5 + $0x4c] sm:$0xf]  ;;  %v6380_v25 = vpack.c.bf16 %v6374_v60, %v6374_v60 }
 0x550   : > { %v15080_v40 = vpack.c.bf16 %v6304_v43, %v6304_v43  ;;  %v6214_v9 = vadd.f32 %v6208_v35, %v6201_v45  ;;  %6280 = vst [vmem:[#allocation5 + $0x70] sm:$0xf] %v6274_v52  ;;  %v11897_v13 = vld [vmem:[#allocation5 + $0x50] sm:$0xf]  ;;  %v13613_v30 = vld [vmem:[#allocation6 + $0xcc0] sm:$0xff]  ;;  %v6328_v52 = vpack.c.bf16 %v15062_v11, %v15062_v11  ;;  %7284 = vmatpush.bf16.msra.mxu2 %v13605_v49  ;;  %v13635_v11 = vld [vmem:[#allocation6 + $0xd70] sm:$0xff] }
 0x551   : > { %6298 = vst [vmem:[#allocation5 + $0x74] sm:$0xf] %v6292_v46  ;;  %v13548_v36 = vld [vmem:[#allocation5 + $0x54] sm:$0xf]  ;;  %v13621_v57 = vld [vmem:[#allocation6 + $0xd00] sm:$0xff] }
 0x552   : > { %v6220_v29 = vsel %vm14537_vm0, %v6214_v9, 0.0  ;;  %v6232_v8 = vadd.f32 %v15013_v10, %v6214_v9  ;;  %6316 = vst [vmem:[#allocation5 + $0x78] sm:$0xf] %v15080_v40  ;;  %v6361_v10 = vpack.c.bf16 %v6355_v48, %v6355_v48  ;;  %7308 = vmatpush.bf16.msra.mxu3 %v13613_v30  ;;  %7332 = vmatpush.bf16.msrb.mxu0 %v13621_v57  ;;  %v13636_v35 = vld [vmem:[#allocation6 + $0xd78] sm:$0xff]  ;;  %v6357_v9 = vld [vmem:[#allocation3 + $0x1d] sm:$0xff] }
 0x553   : > { %6226 = vst [vmem:[#allocation2 + $0x30] sm:$0xff] %v6220_v29  ;;  %7349 = vmatpush.bf16.msrb.mxu1 %v13636_v35  ;;  %v6375_v54 = vld [vmem:[#allocation3 + $0x1e] sm:$0xff]  ;;  %v6363_v27 = vpack.c.bf16 %v6357_v9, %v6357_v9  ;;  %v13544_v30 = vld [vmem:[#allocation5 + $0x30] sm:$0xf0] }
 0x554   : > { %v15091_v17 = vsel %vm14537_vm0, %v6232_v8, 0.0  ;;  %v6251_v24 = vld [vmem:[#allocation3 + $0x21] sm:$0xff]  ;;  %6367 = vst [vmem:[#allocation5 + $0x18] sm:$0xf] %v6361_v10  ;;  %v6381_v23 = vpack.c.bf16 %v6375_v54, %v6375_v54 }
 0x555   : > { %v6269_v28 = vld [vmem:[#allocation3 + $0x22] sm:$0xff]  ;;  %6244 = vst [vmem:[#allocation3 + $0x30] sm:$0xff] %v15091_v17  ;;  %v15094_v19 = vpack.c.bf16 %v6251_v24, %v6251_v24  ;;  %v6330_v24 = vpack.c.bf16 %v15091_v17, %v15091_v17  ;;  %v13633_v17 = vld [vmem:[#allocation6 + $0xd60] sm:$0xff] }
 0x556   : > { %v6287_v15 = vld [vmem:[#allocation3 + $0x23] sm:$0xff]  ;;  %v6275_v53 = vpack.c.bf16 %v6269_v28, %v6269_v28  ;;  %v13551_v16 = vld [vmem:[#allocation5 + $0x68] sm:$0xf0]  ;;  %6368 = vst [vmem:[#allocation5 + $0x3c] sm:$0xf] %v6362_v20 }
 0x557   : > { %v6293_v37 = vpack.c.bf16 %v6287_v15, %v6287_v15  ;;  %v6305_v12 = vld [vmem:[#allocation3 + $0x27] sm:$0xff]  ;;  %v11890_v44 = vor.u32 %v13551_v16, %v11889_v14  ;;  %v11891_v47 = vld [vmem:[#allocation5 + $0x6c] sm:$0xf0]  ;;  %6263 = vst [vmem:[#allocation5 + $0x90] sm:$0xf] %v15094_v19  ;;  %7350 = vmatpush.bf16.msrb.mxu1 %v13635_v11 }
 0x558   : > { %v15096_v1 = vpack.c.bf16 %v6305_v12, %v6305_v12  ;;  %v11894_v42 = vor.u32 %v13547_v6, %v11891_v47  ;;  %v13552_v51 = vld [vmem:[#allocation5 + $0x70] sm:$0xf0]  ;;  %6281 = vst [vmem:[#allocation5 + $0x94] sm:$0xf] %v6275_v53  ;;  %v13634_v29 = vld [vmem:[#allocation6 + $0xd68] sm:$0xff] }
 0x559   : > { %7170 = vmatmul.bf16.gmra.mxu1 %v11890_v44  ;;  %v11898_v22 = vor.u32 %v13552_v51, %v11897_v13  ;;  %v11899_v5 = vld [vmem:[#allocation5 + $0x74] sm:$0xf0]  ;;  %6299 = vst [vmem:[#allocation5 + $0x98] sm:$0xf] %v6293_v37  ;;  %v6358_v8 = vld [vmem:[#allocation3 + $0x25] sm:$0xff] }
 0x55a   : > { %7194 = vmatmul.bf16.gmra.mxu2 %v11894_v42  ;;  %v11902_v38 = vor.u32 %v13548_v36, %v11899_v5  ;;  %6317 = vst [vmem:[#allocation5 + $0x9c] sm:$0xf] %v15096_v1  ;;  %v6376_v21 = vld [vmem:[#allocation3 + $0x26] sm:$0xff]  ;;  %v6364_v56 = vpack.c.bf16 %v6358_v8, %v6358_v8  ;;  %v13540_v5 = vld [vmem:[#allocation5 + $0x14] sm:$0xf] }
 0x55b   : > { %7218 = vmatmul.bf16.gmra.mxu3 %v11898_v22  ;;  %6385 = vst [vmem:[#allocation5 + $0x1c] sm:$0xf] %v6379_v41  ;;  %v6382_v58 = vpack.c.bf16 %v6376_v21, %v6376_v21  ;;  %7351 = vmatpush.bf16.msrb.mxu1 %v13634_v29  ;;  %v11871_v41 = vld [vmem:[#allocation5 + $0x34] sm:$0xf0] }
 0x55c   : > { %7242 = vmatmul.bf16.gmra.mxu0 %v11902_v38  ;;  %v6252_v46 = vld [vmem:[#allocation3 + $0x29] sm:$0xff]  ;;  %6386 = vst [vmem:[#allocation5 + $0x40] sm:$0xf] %v6380_v25  ;;  %v6342_v32 = vld [vmem:[#allocation3 + $0x31] sm:$0xff]  ;;  %v11874_v25 = vor.u32 %v13540_v5, %v11871_v41 }
 0x55d   : > { %v6270_v43 = vld [vmem:[#allocation3 + $0x2a] sm:$0xff]  ;;  %v6258_v33 = vpack.c.bf16 %v6252_v46, %v6252_v46  ;;  %6334 = vst [vmem:[#allocation5 + $0x7c] sm:$0xf] %v6328_v52  ;;  %v6348_v16 = vpack.c.bf16 %v6342_v32, %v6342_v32  ;;  %v6360_v44 = vld [vmem:[#allocation3 + $0x35] sm:$0xff] }
 0x55e   : > { %v6288_v61 = vld [vmem:[#allocation3 + $0x2b] sm:$0xff]  ;;  %v6276_v45 = vpack.c.bf16 %v6270_v43, %v6270_v43  ;;  %6351 = vst [vmem:[#allocation5 + $0x5c] sm:$0xf] %v15078_v55  ;;  %v6366_v36 = vpack.c.bf16 %v6360_v44, %v6360_v44  ;;  %v6378_v20 = vld [vmem:[#allocation3 + $0x36] sm:$0xff] }
 0x55f   : > { %v6294_v26 = vpack.c.bf16 %v6288_v61, %v6288_v61  ;;  %v6306_v4 = vld [vmem:[#allocation3 + $0x2f] sm:$0xff]  ;;  %6264 = vst [vmem:[#allocation5 + $0xb4] sm:$0xf] %v6258_v33  ;;  %7352 = vmatpush.bf16.msrb.mxu1 %v13633_v17  ;;  %v6384_v42 = vpack.c.bf16 %v6378_v20, %v6378_v20  ;;  %v13545_v22 = vld [vmem:[#allocation5 + $0x38] sm:$0xf0]  ;;  %v13630_v61 = vld [vmem:[#allocation6 + $0xd48] sm:$0xff] }
 0x560   : > { %v15102_v18 = vpack.c.bf16 %v6306_v4, %v6306_v4  ;;  %6282 = vst [vmem:[#allocation5 + $0xb8] sm:$0xf] %v6276_v45  ;;  %v11925_v48 = vld [vmem:[#allocation5 + $0x90] sm:$0xf]  ;;  %v13556_v15 = vld [vmem:[#allocation5 + $0x94] sm:$0xf] }
 0x561   : > { %6300 = vst [vmem:[#allocation5 + $0xbc] sm:$0xf] %v6294_v26  ;;  %v11933_v6 = vld [vmem:[#allocation5 + $0x98] sm:$0xf]  ;;  %v13557_v37 = vld [vmem:[#allocation5 + $0x9c] sm:$0xf] }
 0x562   : > { %6318 = vst [vmem:[#allocation5 + $0xc0] sm:$0xf] %v15102_v18  ;;  %v6359_v13 = vld [vmem:[#allocation3 + $0x2d] sm:$0xff]  ;;  %v11877_v38 = vld [vmem:[#allocation5 + $0x18] sm:$0xf] }
 0x563   : > { %6352 = vst [vmem:[#allocation5 + $0x80] sm:$0xf] %v15094_v19  ;;  %v6365_v47 = vpack.c.bf16 %v6359_v13, %v6359_v13  ;;  %v6377_v49 = vld [vmem:[#allocation3 + $0x2e] sm:$0xff]  ;;  %7353 = vmatpush.bf16.msrb.mxu1 %v13632_v0  ;;  %v11879_v57 = vld [vmem:[#allocation5 + $0x3c] sm:$0xf0]  ;;  %v11878_v52 = vor.u32 %v13545_v22, %v11877_v38 }
 0x564   : > { %6369 = vst [vmem:[#allocation5 + $0x60] sm:$0xf] %v6363_v27  ;;  %v6383_v60 = vpack.c.bf16 %v6377_v49, %v6377_v49  ;;  %v13541_v46 = vld [vmem:[#allocation5 + $0x1c] sm:$0xf]  ;;  %v11905_v4 = vld [vmem:[#allocation5 + $0x58] sm:$0xf] }
 0x565   : > { %6387 = vst [vmem:[#allocation5 + $0x64] sm:$0xf] %v6381_v23  ;;  %v11882_v43 = vor.u32 %v13541_v46, %v11879_v57  ;;  %v13553_v45 = vld [vmem:[#allocation5 + $0x78] sm:$0xf0] }
 0x566   : > { %v13560_v14 = vld [vmem:[#allocation5 + $0xb0] sm:$0xf0]  ;;  %6370 = vst [vmem:[#allocation5 + $0x84] sm:$0xf] %v6364_v56  ;;  %v13549_v11 = vld [vmem:[#allocation5 + $0x5c] sm:$0xf] }
 0x567   : > { %v11926_v28 = vor.u32 %v13560_v14, %v11925_v48  ;;  %v11927_v10 = vld [vmem:[#allocation5 + $0xb4] sm:$0xf0]  ;;  %6388 = vst [vmem:[#allocation5 + $0x88] sm:$0xf] %v6382_v58 }
 0x568   : > { %v11930_v55 = vor.u32 %v13556_v15, %v11927_v10  ;;  %v13561_v19 = vld [vmem:[#allocation5 + $0xb8] sm:$0xf0]  ;;  %6335 = vst [vmem:[#allocation5 + $0xa0] sm:$0xf] %v6329_v34 }
 0x569   : > { %7175 = vmatmul.bf16.gmra.mxu1 %v11926_v28  ;;  %v11934_v53 = vor.u32 %v13561_v19, %v11933_v6  ;;  %v11935_v12 = vld [vmem:[#allocation5 + $0xbc] sm:$0xf0]  ;;  %6336 = vst [vmem:[#allocation5 + $0xc4] sm:$0xf] %v6330_v24 }
 0x56a   : > { %7199 = vmatmul.bf16.gmra.mxu2 %v11930_v55  ;;  %v11938_v3 = vor.u32 %v13557_v37, %v11935_v12  ;;  %6353 = vst [vmem:[#allocation5 + $0xa4] sm:$0xf] %v6258_v33  ;;  %v13629_v33 = vld [vmem:[#allocation6 + $0xd40] sm:$0xff]  ;;  %v11907_v26 = vld [vmem:[#allocation5 + $0x7c] sm:$0xf0] }
 0x56b   : > { %7223 = vmatmul.bf16.gmra.mxu3 %v11934_v53  ;;  %6403 = vst [vmem:[#allocation5 + $0x20] sm:$0xf] %v15050_v63  ;;  %v6396_v63 = vld [vmem:[#allocation3 + $0x37] sm:$0xff]  ;;  %v11910_v54 = vor.u32 %v13549_v11, %v11907_v26  ;;  %v11913_v27 = vld [vmem:[#allocation5 + $0x60] sm:$0xf] }
 0x56c   : > { %7247 = vmatmul.bf16.gmra.mxu0 %v11938_v3  ;;  %6404 = vst [vmem:[#allocation5 + $0x44] sm:$0xf] %v15065_v39  ;;  %v13631_v39 = vld [vmem:[#allocation6 + $0xd50] sm:$0xff]  ;;  %v6402_v51 = vpack.c.bf16 %v6396_v63, %v6396_v63  ;;  %v13550_v29 = vld [vmem:[#allocation5 + $0x64] sm:$0xf]  ;;  %v13679_v11 = vld [vmem:[#allocation6 + $0xdf8] sm:$0xff] }
 0x56d   : > { %6405 = vst [vmem:[#allocation5 + $0x68] sm:$0xf] %v15080_v40  ;;  %v11869_v40 = vld [vmem:[#allocation5 + $0x10] sm:$0xf]  ;;  %7354 = vmatpush.bf16.msrb.mxu1 %v13631_v39  ;;  %v13554_v35 = vld [vmem:[#allocation5 + $0x80] sm:$0xf0]  ;;  %8327 = vmatpush.bf16.msrb.mxu3 %v13679_v11 }
 0x56e   : > { %6406 = vst [vmem:[#allocation5 + $0x8c] sm:$0xf] %v15096_v1  ;;  %v11870_v1 = vor.u32 %v13544_v30, %v11869_v40  ;;  %v11915_v9 = vld [vmem:[#allocation5 + $0x84] sm:$0xf0]  ;;  %v11914_v23 = vor.u32 %v13554_v35, %v11913_v27  ;;  %v15154_v35 = vld [vmem:[#allocation8 + $0x5] ss:$0 sm:$0xff] }
 0x56f   : > { %6354 = vst [vmem:[#allocation5 + $0xc8] sm:$0xf] %v6348_v16  ;;  %v11918_v8 = vor.u32 %v13550_v29, %v11915_v9  ;;  %v11941_v34 = vld [vmem:[#allocation5 + $0xa0] sm:$0xf]  ;;  %v13687_v9 = vld [vmem:[#allocation6 + $0xe38] sm:$0xff]  ;;  %v13668_v27 = vld [vmem:[#allocation6 + $0xda0] sm:$0xff] }
 0x570   : > { %6371 = vst [vmem:[#allocation5 + $0xa8] sm:$0xf] %v6365_v47  ;;  %v13562_v21 = vld [vmem:[#allocation5 + $0xc0] sm:$0xf0]  ;;  %8351 = vmatpush.bf16.msra.mxu0 %v13687_v9  ;;  %v13678_v29 = vld [vmem:[#allocation6 + $0xdf0] sm:$0xff] }
 0x571   : > { %6372 = vst [vmem:[#allocation5 + $0xcc] sm:$0xf] %v6366_v36  ;;  %7355 = vmatpush.bf16.msrb.mxu1 %v13630_v61  ;;  %v13558_v56 = vld [vmem:[#allocation5 + $0xa4] sm:$0xf]  ;;  %v11942_v24 = vor.u32 %v13562_v21, %v11941_v34  ;;  %8328 = vmatpush.bf16.msrb.mxu3 %v13678_v29  ;;  %v13674_v11 = vld [vmem:[#allocation6 + $0xdd0] sm:$0xff] }
 0x572   : > { %6389 = vst [vmem:[#allocation5 + $0xac] sm:$0xf] %v6383_v60  ;;  %v11885_v53 = vld [vmem:[#allocation5 + $0x20] sm:$0xf]  ;;  %v13690_v9 = vld [vmem:[#allocation6 + $0xe50] sm:$0xff] }
 0x573   : > { %6390 = vst [vmem:[#allocation5 + $0xd0] sm:$0xf] %v6384_v42  ;;  %v13546_v19 = vld [vmem:[#allocation5 + $0x40] sm:$0xf0] }
 0x574   : > { %6407 = vst [vmem:[#allocation5 + $0xb0] sm:$0xf] %v15102_v18  ;;  %v11906_v18 = vor.u32 %v13553_v45, %v11905_v4  ;;  %v11886_v37 = vor.u32 %v13546_v19, %v11885_v53  ;;  %v11921_v3 = vld [vmem:[#allocation5 + $0x68] sm:$0xf]  ;;  %v13669_v4 = vld [vmem:[#allocation6 + $0xda8] sm:$0xff]  ;;  %v13676_v19 = vld [vmem:[#allocation6 + $0xde0] sm:$0xff] }
 0x575   : > { %6408 = vst [vmem:[#allocation5 + $0xd4] sm:$0xf] %v6402_v51  ;;  %7356 = vmatpush.bf16.msrb.mxu1 %v13629_v33  ;;  %v13555_v12 = vld [vmem:[#allocation5 + $0x88] sm:$0xf0] }
 0x576   : > { %v11943_v58 = vld [vmem:[#allocation5 + $0xc4] sm:$0xf0]  ;;  %v11922_v17 = vor.u32 %v13555_v12, %v11921_v3  ;;  %v13692_v12 = vld [vmem:[#allocation6 + $0xe60] sm:$0xff] }
 0x577   : > { %v11949_v48 = vld [vmem:[#allocation5 + $0xa8] sm:$0xf]  ;;  %v11946_v10 = vor.u32 %v13558_v56, %v11943_v58 }
 0x578   : > { %v13563_v14 = vld [vmem:[#allocation5 + $0xc8] sm:$0xf0] }
 0x579   : > { %7261 = vmatmul.bf16.vlgmr.msra.gmra.mxu1 %v11870_v1  ;;  %v13559_v28 = vld [vmem:[#allocation5 + $0xac] sm:$0xf]  ;;  %v11950_v55 = vor.u32 %v13563_v14, %v11949_v48  ;;  %v13667_v14 = vld [vmem:[#allocation6 + $0xd98] sm:$0xff] }
 0x57a   : > { %7285 = vmatmul.bf16.vlgmr.msra.gmra.mxu2 %v11874_v25  ;;  %v11951_v15 = vld [vmem:[#allocation5 + $0xcc] sm:$0xf0]  ;;  %v13694_v58 = vld [vmem:[#allocation6 + $0xe70] sm:$0xff] }
 0x57b   : > { %7309 = vmatmul.bf16.vlgmr.msra.gmra.mxu3 %v11878_v52  ;;  %v11954_v6 = vor.u32 %v13559_v28, %v11951_v15  ;;  %v11957_v32 = vld [vmem:[#allocation5 + $0xb0] sm:$0xf]  ;;  %v13685_v28 = vld [vmem:[#allocation6 + $0xe28] sm:$0xff] }
 0x57c   : > { %7333 = vmatmul.bf16.vlgmr.msrb.gmra.mxu0 %v11882_v43  ;;  %v13564_v0 = vld [vmem:[#allocation5 + $0xd0] sm:$0xf0]  ;;  %v13670_v43 = vld [vmem:[#allocation6 + $0xdb0] sm:$0xff] }
 0x57d   : > { %v11958_v13 = vor.u32 %v13564_v0, %v11957_v32  ;;  %v13671_v25 = vld [vmem:[#allocation6 + $0xdb8] sm:$0xff] }
 0x57e   : > { %8303 = vmatpush.bf16.msrb.mxu2 %v13671_v25 }
 0x582   : > { %8304 = vmatpush.bf16.msrb.mxu2 %v13670_v43 }
 0x586   : > { %8305 = vmatpush.bf16.msrb.mxu2 %v13669_v4 }
 0x589   : > { %7266 = vmatmul.bf16.gmra.mxu1 %v11906_v18 }
 0x58a   : > { %7290 = vmatmul.bf16.gmra.mxu2 %v11910_v54  ;;  %v13695_v54 = vld [vmem:[#allocation6 + $0xe78] sm:$0xff] }
 0x58b   : > { %7314 = vmatmul.bf16.gmra.mxu3 %v11914_v23  ;;  %8375 = vmatpush.bf16.msra.mxu1 %v13695_v54 }
 0x58c   : > { %7338 = vmatmul.bf16.gmra.mxu0 %v11918_v8  ;;  %v13686_v8 = vld [vmem:[#allocation6 + $0xe30] sm:$0xff]  ;;  %8306 = vmatpush.bf16.msrb.mxu2 %v13668_v27 }
 0x58d   : > { %8352 = vmatpush.bf16.msra.mxu0 %v13686_v8 }
 0x58f   : > { %8376 = vmatpush.bf16.msra.mxu1 %v13694_v58 }
 0x590   : > { %8307 = vmatpush.bf16.msrb.mxu2 %v13667_v14 }
 0x591   : > { %8353 = vmatpush.bf16.msra.mxu0 %v13685_v28 }
 0x599   : > { %7271 = vmatmul.bf16.gmra.mxu1 %v11942_v24  ;;  %v13677_v24 = vld [vmem:[#allocation6 + $0xde8] sm:$0xff] }
 0x59a   : > { %7295 = vmatmul.bf16.gmra.mxu2 %v11946_v10  ;;  %v13693_v10 = vld [vmem:[#allocation6 + $0xe68] sm:$0xff]  ;;  %8329 = vmatpush.bf16.msrb.mxu3 %v13677_v24 }
 0x59b   : > { %7319 = vmatmul.bf16.gmra.mxu3 %v11950_v55  ;;  %8377 = vmatpush.bf16.msra.mxu1 %v13693_v10  ;;  %v13672_v10 = vld [vmem:[#allocation6 + $0xdc0] sm:$0xff] }
 0x59c   : > { %7343 = vmatmul.bf16.gmra.mxu0 %v11954_v6 }
 0x59e   : > { %8330 = vmatpush.bf16.msrb.mxu3 %v13676_v19  ;;  %v13688_v19 = vld [vmem:[#allocation6 + $0xe40] sm:$0xff] }
 0x59f   : > { %8378 = vmatpush.bf16.msra.mxu1 %v13692_v12 }
 0x5a9   : > { %7357 = vmatmul.bf16.vlgmr.msrb.gmra.mxu1 %v11886_v37  ;;  %v13684_v37 = vld [vmem:[#allocation6 + $0xe20] sm:$0xff] }
 0x5aa   : > { %8354 = vmatpush.bf16.msra.mxu0 %v13684_v37 }
 0x5b9   : > { %7362 = vmatmul.bf16.gmra.mxu1 %v11922_v17 }
 0x5c6   : > { %v7166_v16 = vpop.f32.mrf.mxu1 }
 0x5c7   : > { %v7167_v21 = vadd.f32 %v15154_v35, %v7166_v16 }
 0x5c9   : > { %7367 = vmatmul.bf16.gmra.mxu1 %v11958_v13  ;;  %v15118_v20 = vpop.f32.mrf.mxu0  ;;  %v13666_v13 = vld [vmem:[#allocation6 + $0xd90] sm:$0xff] }
 0x5ca   : > { %8308 = vmatpush.bf16.msrb.mxu2 %v13666_v13 }
 0x5cd   : > { %v7190_v47 = vpop.f32.mrf.mxu2 }
 0x5ce   : > { %v7168_v44 = vpop.f32.mrf.mxu1  ;;  %v7214_v49 = vpop.f32.mrf.mxu3  ;;  %v7191_v48 = vadd.f32 %v7190_v47, %v7167_v21  ;;  %v13675_v47 = vld [vmem:[#allocation6 + $0xdd8] sm:$0xff] }
 0x5cf   : > { %v7169_v53 = vadd.f32 %v15154_v35, %v7168_v44  ;;  %v13691_v44 = vld [vmem:[#allocation6 + $0xe58] sm:$0xff]  ;;  %8331 = vmatpush.bf16.msrb.mxu3 %v13675_v47 }
 0x5d0   : > { %v7215_v15 = vadd.f32 %v7214_v49, %v7191_v48  ;;  %v13683_v49 = vld [vmem:[#allocation6 + $0xe18] sm:$0xff]  ;;  %8379 = vmatpush.bf16.msra.mxu1 %v13691_v44  ;;  %v13689_v48 = vld [vmem:[#allocation6 + $0xe48] sm:$0xff] }
 0x5d1   : > { %v15126_v51 = vpop.f32.mrf.mxu0  ;;  %8355 = vmatpush.bf16.msra.mxu0 %v13683_v49 }
 0x5d2   : > { %v7239_v17 = vadd.f32 %v15118_v20, %v7215_v15  ;;  %v13664_v15 = vld [vmem:[#allocation6 + $0xd80] sm:$0xff] }
 0x5d3   : > { %8332 = vmatpush.bf16.msrb.mxu3 %v13674_v11 }
 0x5d4   : > { %8380 = vmatpush.bf16.msra.mxu1 %v13690_v9 }
 0x5d5   : > { %v7192_v60 = vpop.f32.mrf.mxu2 }
 0x5d6   : > { %v15116_v36 = vpop.f32.mrf.mxu1  ;;  %v15122_v63 = vpop.f32.mrf.mxu3  ;;  %v7193_v3 = vadd.f32 %v7192_v60, %v7169_v53  ;;  %v13665_v60 = vld [vmem:[#allocation6 + $0xd88] sm:$0xff] }
 0x5d7   : > { %v7172_v20 = vadd.f32 %v15154_v35, %v15116_v36  ;;  %8309 = vmatpush.bf16.msrb.mxu2 %v13665_v60  ;;  %v13681_v36 = vld [vmem:[#allocation6 + $0xe08] sm:$0xff] }
 0x5d8   : > { %v7217_v25 = vadd.f32 %v15122_v63, %v7193_v3  ;;  %8381 = vmatpush.bf16.msra.mxu1 %v13689_v48 }
 0x5d9   : > { %v15134_v22 = vpop.f32.mrf.mxu0 }
 0x5da   : > { %v7241_v63 = vadd.f32 %v15126_v51, %v7217_v25 }
 0x5db   : > { %8310 = vmatpush.bf16.msrb.mxu2 %v13664_v15 }
 0x5dc   : > { %8382 = vmatpush.bf16.msra.mxu1 %v13688_v19 }
 0x5dd   : > { %v15128_v30 = vpop.f32.mrf.mxu2 }
 0x5de   : > { %v15120_v42 = vpop.f32.mrf.mxu1  ;;  %v15130_v41 = vpop.f32.mrf.mxu3  ;;  %v7196_v27 = vadd.f32 %v15128_v30, %v7172_v20 }
 0x5df   : > { %v7174_v51 = vadd.f32 %v15154_v35, %v15120_v42  ;;  %v13703_v42 = vld [vmem:[#allocation6 + $0xeb8] sm:$0xff] }
 0x5e0   : > { %v7220_v14 = vadd.f32 %v15130_v41, %v7196_v27  ;;  %8399 = vmatpush.bf16.msra.mxu2 %v13703_v42  ;;  %v13700_v42 = vld [vmem:[#allocation6 + $0xea0] sm:$0xff] }
 0x5e1   : > { %v15140_v38 = vpop.f32.mrf.mxu0 }
 0x5e2   : > { %v7244_v41 = vadd.f32 %v15134_v22, %v7220_v14 }
 0x5e5   : > { %v15136_v1 = vpop.f32.mrf.mxu2 }
 0x5e6   : > { %v15124_v39 = vpop.f32.mrf.mxu1  ;;  %v15138_v57 = vpop.f32.mrf.mxu3  ;;  %v7198_v53 = vadd.f32 %v15136_v1, %v7174_v51 }
 0x5e9   : > { %v15148_v33 = vpop.f32.mrf.mxu0 }
 0x5ed   : > { %v15142_v52 = vpop.f32.mrf.mxu2 }
 0x5ee   : > { %v15132_v40 = vpop.f32.mrf.mxu1  ;;  %v15146_v61 = vpop.f32.mrf.mxu3 }
 0x5f1   : > { %v15161_v56 = vpop.f32.mrf.mxu0 }
 0x5f5   : > { %v15150_v45 = vpop.f32.mrf.mxu2 }
 0x5f6   : > { %v7262_v5 = vpop.f32.mrf.mxu1  ;;  %v15156_v18 = vpop.f32.mrf.mxu3 }
 0x5f7   : > { %v7263_v16 = vadd.f32 %v7262_v5, %v7239_v17  ;;  %v13682_v5 = vld [vmem:[#allocation6 + $0xe10] sm:$0xff] }
 0x5f8   : > { %8356 = vmatpush.bf16.msra.mxu0 %v13682_v5 }
 0x5f9   : > { %v7334_v32 = vpop.f32.mrf.mxu0 }
 0x5fc   : > { %8357 = vmatpush.bf16.msra.mxu0 %v13681_v36  ;;  %v7179_v36 = vadd.f32 %v15154_v35, %v15132_v40 }
 0x5fd   : > { %v7286_v34 = vpop.f32.mrf.mxu2 }
 0x5fe   : > { %v15144_v46 = vpop.f32.mrf.mxu1  ;;  %v7310_v55 = vpop.f32.mrf.mxu3  ;;  %v7287_v43 = vadd.f32 %v7286_v34, %v7263_v16  ;;  %v13673_v34 = vld [vmem:[#allocation6 + $0xdc8] sm:$0xff] }
 0x5ff   : > { %v7265_v8 = vadd.f32 %v15144_v46, %v7241_v63  ;;  %8333 = vmatpush.bf16.msrb.mxu3 %v13673_v34  ;;  %v13680_v46 = vld [vmem:[#allocation6 + $0xe00] sm:$0xff]  ;;  %v13702_v63 = vld [vmem:[#allocation6 + $0xeb0] sm:$0xff]  ;;  %v13701_v34 = vld [vmem:[#allocation6 + $0xea8] sm:$0xff] }
 0x600   : > { %v7311_v29 = vadd.f32 %v7310_v55, %v7287_v43  ;;  %8358 = vmatpush.bf16.msra.mxu0 %v13680_v46  ;;  %8400 = vmatpush.bf16.msra.mxu2 %v13702_v63 }
 0x601   : > { %v7336_v21 = vpop.f32.mrf.mxu0 }
 0x602   : > { %v7335_v28 = vadd.f32 %v7334_v32, %v7311_v29 }
 0x603   : > { %8334 = vmatpush.bf16.msrb.mxu3 %v13672_v10 }
 0x604   : > { %8401 = vmatpush.bf16.msra.mxu2 %v13701_v34 }
 0x605   : > { %v7288_v0 = vpop.f32.mrf.mxu2 }
 0x606   : > { %v15152_v26 = vpop.f32.mrf.mxu1  ;;  %v7312_v54 = vpop.f32.mrf.mxu3  ;;  %v7289_v24 = vadd.f32 %v7288_v0, %v7265_v8  ;;  %v7222_v0 = vadd.f32 %v15138_v57, %v7198_v53 }
 0x607   : > { %v7268_v17 = vadd.f32 %v15152_v26, %v7244_v41  ;;  %v7177_v26 = vadd.f32 %v15154_v35, %v15124_v39 }
 0x608   : > { %v7313_v37 = vadd.f32 %v7312_v54, %v7289_v24  ;;  %v7246_v44 = vadd.f32 %v15140_v38, %v7222_v0  ;;  %8402 = vmatpush.bf16.msra.mxu2 %v13700_v42 }
 0x609   : > { %v7339_v1 = vpop.f32.mrf.mxu0  ;;  %v7201_v25 = vadd.f32 %v15142_v52, %v7177_v26  ;;  %v13699_v26 = vld [vmem:[#allocation6 + $0xe98] sm:$0xff] }
 0x60a   : > { %v7337_v13 = vadd.f32 %v7336_v21, %v7313_v37  ;;  %v13711_v37 = vld [vmem:[#allocation6 + $0xef8] sm:$0xff] }
 0x60b   : > { %v7225_v38 = vadd.f32 %v15146_v61, %v7201_v25  ;;  %8423 = vmatpush.bf16.msra.mxu3 %v13711_v37 }
 0x60c   : > { %8403 = vmatpush.bf16.msra.mxu2 %v13699_v26  ;;  %v13697_v26 = vld [vmem:[#allocation6 + $0xe88] sm:$0xff] }
 0x60d   : > { %v7291_v58 = vpop.f32.mrf.mxu2  ;;  %v7249_v61 = vadd.f32 %v15148_v33, %v7225_v38  ;;  %v13719_v33 = vld [vmem:[#allocation6 + $0xf38] sm:$0xff] }
 0x60e   : > { %v15158_v23 = vpop.f32.mrf.mxu1  ;;  %v7315_v3 = vpop.f32.mrf.mxu3  ;;  %v7292_v16 = vadd.f32 %v7291_v58, %v7268_v17  ;;  %v13727_v17 = vld [vmem:[#allocation6 + $0xf78] sm:$0xff]  ;;  %8447 = vmatpush.bf16.msrb.mxu0 %v13719_v33 }
 0x60f   : > { %v7270_v11 = vadd.f32 %v15158_v23, %v7246_v44  ;;  %8471 = vmatpush.bf16.msrb.mxu1 %v13727_v17  ;;  %v13709_v44 = vld [vmem:[#allocation6 + $0xee8] sm:$0xff] }
 0x610   : > { %v7316_v43 = vadd.f32 %v7315_v3, %v7292_v16  ;;  %v13710_v16 = vld [vmem:[#allocation6 + $0xef0] sm:$0xff] }
 0x611   : > { %v7341_v14 = vpop.f32.mrf.mxu0  ;;  %8424 = vmatpush.bf16.msra.mxu3 %v13710_v16  ;;  %v13707_v16 = vld [vmem:[#allocation6 + $0xed8] sm:$0xff] }
 0x612   : > { %v7340_v21 = vadd.f32 %v7339_v1, %v7316_v43 }
 0x615   : > { %v7293_v22 = vpop.f32.mrf.mxu2  ;;  %8425 = vmatpush.bf16.msra.mxu3 %v13709_v44 }
 0x616   : > { %v15163_v6 = vpop.f32.mrf.mxu1  ;;  %v7317_v54 = vpop.f32.mrf.mxu3  ;;  %v7294_v8 = vadd.f32 %v7293_v22, %v7270_v11 }
 0x617   : > { %v7273_v10 = vadd.f32 %v15163_v6, %v7249_v61 }
 0x618   : > { %v7318_v15 = vadd.f32 %v7317_v54, %v7294_v8 }
 0x61a   : > { %v7342_v3 = vadd.f32 %v7341_v14, %v7318_v15  ;;  %v13708_v15 = vld [vmem:[#allocation6 + $0xee0] sm:$0xff] }
 0x61b   : > { %8426 = vmatpush.bf16.msra.mxu3 %v13708_v15 }
 0x61d   : > { %v7296_v24 = vpop.f32.mrf.mxu2 }
 0x61e   : > { %v15168_v4 = vpop.f32.mrf.mxu1  ;;  %v7320_v0 = vpop.f32.mrf.mxu3 }
 0x61f   : > { %8427 = vmatpush.bf16.msra.mxu3 %v13707_v16 }
 0x625   : > { %v7298_v11 = vpop.f32.mrf.mxu2 }
 0x626   : > { %v7358_v30 = vpop.f32.mrf.mxu1 }
 0x627   : > { %v7359_v55 = vadd.f32 %v7358_v30, %v7335_v28  ;;  %v7203_v28 = vadd.f32 %v15150_v45, %v7179_v36 }
 0x629   : > { %v7373_v12 = vmax.f32 %v7359_v55, 0.0  ;;  %v7227_v41 = vadd.f32 %v15156_v18, %v7203_v28  ;;  %v13726_v18 = vld [vmem:[#allocation6 + $0xf70] sm:$0xff] }
 0x62a   : > { %8472 = vmatpush.bf16.msrb.mxu1 %v13726_v18  ;;  %v13723_v18 = vld [vmem:[#allocation6 + $0xf58] sm:$0xff] }
 0x62b   : > { %v15183_v32 = vsel %vm14340_vm1, %v7373_v12, 0.0  ;;  %v7297_v12 = vadd.f32 %v7296_v24, %v7273_v10  ;;  %v7251_v25 = vadd.f32 %v15161_v56, %v7227_v41 }
 0x62c   : > { %7385 = vst [vmem:[#allocation4 + $0x8] sm:$0xff] %v15183_v32  ;;  %v7471_v22 = vpack.c.bf16 %v15183_v32, %v15183_v32  ;;  %v13698_v32 = vld [vmem:[#allocation6 + $0xe90] sm:$0xff] }
 0x62d   : > { %8404 = vmatpush.bf16.msra.mxu2 %v13698_v32  ;;  %v13696_v32 = vld [vmem:[#allocation6 + $0xe80] sm:$0xff] }
 0x62e   : > { %v7360_v47 = vpop.f32.mrf.mxu1  ;;  %7477 = vst [vmem:[#allocation5 + $0x10] sm:$0xf] %v7471_v22 }
 0x62f   : > { %v7361_v49 = vadd.f32 %v7360_v47, %v7337_v13  ;;  %v13718_v13 = vld [vmem:[#allocation6 + $0xf30] sm:$0xff] }
 0x630   : > { %8448 = vmatpush.bf16.msrb.mxu0 %v13718_v13  ;;  %v13715_v13 = vld [vmem:[#allocation6 + $0xf18] sm:$0xff] }
 0x631   : > { %v7374_v60 = vmax.f32 %v7361_v49, 0.0  ;;  %v7321_v49 = vadd.f32 %v7320_v0, %v7297_v12  ;;  %8405 = vmatpush.bf16.msra.mxu2 %v13697_v26 }
 0x633   : > { %v15194_v57 = vsel %vm14383_vm10, %v7374_v60, 0.0  ;;  %v7393_v20 = vld [vmem:[#allocation4 + $0x1] sm:$0xff]  ;;  %v7344_v60 = vpop.f32.mrf.mxu0 }
 0x634   : > { %v7411_v5 = vld [vmem:[#allocation4 + $0x2] sm:$0xff]  ;;  %7386 = vst [vmem:[#allocation4 + $0x10] sm:$0xff] %v15194_v57  ;;  %v7399_v39 = vpack.c.bf16 %v7393_v20, %v7393_v20  ;;  %v7472_v61 = vpack.c.bf16 %v15194_v57, %v15194_v57 }
 0x635   : > { %v7429_v9 = vld [vmem:[#allocation4 + $0x3] sm:$0xff]  ;;  %v7417_v27 = vpack.c.bf16 %v7411_v5, %v7411_v5  ;;  %8406 = vmatpush.bf16.msra.mxu2 %v13696_v32 }
 0x636   : > { %v7435_v29 = vpack.c.bf16 %v7429_v9, %v7429_v9  ;;  %v7447_v52 = vld [vmem:[#allocation4 + $0x7] sm:$0xff]  ;;  %v7363_v58 = vpop.f32.mrf.mxu1  ;;  %7405 = vst [vmem:[#allocation5] sm:$0xf] %v7399_v39  ;;  %v7275_v9 = vadd.f32 %v15168_v4, %v7251_v25  ;;  %v7345_v4 = vadd.f32 %v7344_v60, %v7321_v49 }
 0x637   : > { %v7453_v23 = vpack.c.bf16 %v7447_v52, %v7447_v52  ;;  %v7364_v48 = vadd.f32 %v7363_v58, %v7340_v21  ;;  %7423 = vst [vmem:[#allocation5 + $0x4] sm:$0xf] %v7417_v27  ;;  %v13717_v20 = vld [vmem:[#allocation6 + $0xf28] sm:$0xff]  ;;  %v13706_v25 = vld [vmem:[#allocation6 + $0xed0] sm:$0xff] }
 0x638   : > { %7441 = vst [vmem:[#allocation5 + $0x8] sm:$0xf] %v7435_v29  ;;  %v13725_v5 = vld [vmem:[#allocation6 + $0xf68] sm:$0xff]  ;;  %8449 = vmatpush.bf16.msrb.mxu0 %v13717_v20  ;;  %v13714_v60 = vld [vmem:[#allocation6 + $0xf10] sm:$0xff]  ;;  %8428 = vmatpush.bf16.msra.mxu3 %v13706_v25 }
 0x639   : > { %v7375_v30 = vmax.f32 %v7364_v48, 0.0  ;;  %7459 = vst [vmem:[#allocation5 + $0xc] sm:$0xf] %v7453_v23  ;;  %v7299_v23 = vadd.f32 %v7298_v11, %v7275_v9  ;;  %8473 = vmatpush.bf16.msrb.mxu1 %v13725_v5  ;;  %v13722_v11 = vld [vmem:[#allocation6 + $0xf50] sm:$0xff]  ;;  %v13705_v5 = vld [vmem:[#allocation6 + $0xec8] sm:$0xff] }
 0x63a   : > { %7478 = vst [vmem:[#allocation5 + $0x34] sm:$0xf] %v7472_v61  ;;  %v13713_v9 = vld [vmem:[#allocation6 + $0xf08] sm:$0xff] }
 0x63b   : > { %v15205_v51 = vsel %vm14428_vm3, %v7375_v30, 0.0  ;;  %v7394_v40 = vld [vmem:[#allocation4 + $0x9] sm:$0xff] }
 0x63c   : > { %v7412_v35 = vld [vmem:[#allocation4 + $0xa] sm:$0xff]  ;;  %7387 = vst [vmem:[#allocation4 + $0x18] sm:$0xff] %v15205_v51  ;;  %v7400_v46 = vpack.c.bf16 %v7394_v40, %v7394_v40  ;;  %8429 = vmatpush.bf16.msra.mxu3 %v13705_v5 }
 0x63d   : > { %v7430_v55 = vld [vmem:[#allocation4 + $0xb] sm:$0xff]  ;;  %v7418_v19 = vpack.c.bf16 %v7412_v35, %v7412_v35  ;;  %v12249_v29 = vld [vmem:[#allocation5] sm:$0xf]  ;;  %v13716_v35 = vld [vmem:[#allocation6 + $0xf20] sm:$0xff] }
 0x63e   : > { %v7436_v45 = vpack.c.bf16 %v7430_v55, %v7430_v55  ;;  %v7448_v53 = vld [vmem:[#allocation4 + $0xf] sm:$0xff]  ;;  %v7365_v1 = vpop.f32.mrf.mxu1  ;;  %7406 = vst [vmem:[#allocation5 + $0x24] sm:$0xf] %v7400_v46  ;;  %v13637_v52 = vld [vmem:[#allocation5 + $0x4] sm:$0xf]  ;;  %v7322_v55 = vpop.f32.mrf.mxu3  ;;  %8450 = vmatpush.bf16.msrb.mxu0 %v13716_v35 }
 0x63f   : > { %v7454_v6 = vpack.c.bf16 %v7448_v53, %v7448_v53  ;;  %v7366_v47 = vadd.f32 %v7365_v1, %v7342_v3  ;;  %7424 = vst [vmem:[#allocation5 + $0x28] sm:$0xf] %v7418_v19  ;;  %v12257_v34 = vld [vmem:[#allocation5 + $0x8] sm:$0xf]  ;;  %v7323_v53 = vadd.f32 %v7322_v55, %v7299_v23 }
 0x640   : > { %7442 = vst [vmem:[#allocation5 + $0x2c] sm:$0xf] %v7436_v45  ;;  %v13638_v28 = vld [vmem:[#allocation5 + $0xc] sm:$0xf]  ;;  %v13724_v45 = vld [vmem:[#allocation6 + $0xf60] sm:$0xff] }
 0x641   : > { %v7376_v43 = vmax.f32 %v7366_v47, 0.0  ;;  %7460 = vst [vmem:[#allocation5 + $0x30] sm:$0xf] %v7454_v6  ;;  %8474 = vmatpush.bf16.msrb.mxu1 %v13724_v45 }
 0x642   : > { %7495 = vst [vmem:[#allocation5 + $0x14] sm:$0xf] %v7400_v46  ;;  %8451 = vmatpush.bf16.msrb.mxu0 %v13715_v13  ;;  %v13735_v13 = vld [vmem:[#allocation6 + $0xfb8] sm:$0xff] }
 0x643   : > { %v15215_v54 = vsel %vm14505_vm8, %v7376_v43, 0.0  ;;  %v7395_v39 = vld [vmem:[#allocation4 + $0x11] sm:$0xff]  ;;  %7549 = vst [vmem:[#allocation5 + $0x20] sm:$0xf] %v7454_v6  ;;  %v7346_v6 = vpop.f32.mrf.mxu0  ;;  %v7473_v43 = vpack.c.bf16 %v15205_v51, %v15205_v51 }
 0x644   : > { %v7413_v27 = vld [vmem:[#allocation4 + $0x12] sm:$0xff]  ;;  %7388 = vst [vmem:[#allocation4 + $0x20] sm:$0xff] %v15215_v54  ;;  %v7401_v63 = vpack.c.bf16 %v7395_v39, %v7395_v39  ;;  %v7347_v22 = vadd.f32 %v7346_v6, %v7323_v53  ;;  %v13721_v39 = vld [vmem:[#allocation6 + $0xf48] sm:$0xff] }
 0x645   : > { %v7431_v56 = vld [vmem:[#allocation4 + $0x13] sm:$0xff]  ;;  %v7419_v38 = vpack.c.bf16 %v7413_v27, %v7413_v27  ;;  %v13641_v58 = vld [vmem:[#allocation5 + $0x20] sm:$0xf0]  ;;  %8475 = vmatpush.bf16.msrb.mxu1 %v13723_v18  ;;  %7479 = vst [vmem:[#allocation5 + $0x58] sm:$0xf] %v7473_v43 }
 0x646   : > { %v7437_v8 = vpack.c.bf16 %v7431_v56, %v7431_v56  ;;  %v7449_v21 = vld [vmem:[#allocation4 + $0x17] sm:$0xff]  ;;  %v7368_v48 = vpop.f32.mrf.mxu1  ;;  %v12250_v14 = vor.u32 %v13641_v58, %v12249_v29  ;;  %v12251_v24 = vld [vmem:[#allocation5 + $0x24] sm:$0xf0]  ;;  %7407 = vst [vmem:[#allocation5 + $0x48] sm:$0xf] %v7401_v63  ;;  %v7501_v27 = vld [vmem:[#allocation4 + $0xd] sm:$0xff]  ;;  %8452 = vmatpush.bf16.msrb.mxu0 %v13714_v60 }
 0x647   : > { %v7455_v36 = vpack.c.bf16 %v7449_v21, %v7449_v21  ;;  %v7369_v30 = vadd.f32 %v7368_v48, %v7345_v4  ;;  %v12254_v10 = vor.u32 %v13637_v52, %v12251_v24  ;;  %v13642_v40 = vld [vmem:[#allocation5 + $0x28] sm:$0xf0]  ;;  %7425 = vst [vmem:[#allocation5 + $0x4c] sm:$0xf] %v7419_v38  ;;  %v7507_v38 = vpack.c.bf16 %v7501_v27, %v7501_v27 }
 0x648   : > { %8311 = vmatmul.bf16.vlgmr.msrb.gmra.mxu2 %v12250_v14  ;;  %v12258_v46 = vor.u32 %v13642_v40, %v12257_v34  ;;  %v12259_v19 = vld [vmem:[#allocation5 + $0x2c] sm:$0xf0]  ;;  %7443 = vst [vmem:[#allocation5 + $0x50] sm:$0xf] %v7437_v8  ;;  %v7502_v34 = vld [vmem:[#allocation4 + $0x15] sm:$0xff] }
 0x649   : > { %v7377_v37 = vmax.f32 %v7369_v30, 0.0  ;;  %8335 = vmatmul.bf16.vlgmr.msrb.gmra.mxu3 %v12254_v10  ;;  %v12262_v33 = vor.u32 %v13638_v28, %v12259_v19  ;;  %7461 = vst [vmem:[#allocation5 + $0x54] sm:$0xf] %v7455_v36  ;;  %8476 = vmatpush.bf16.msrb.mxu1 %v13722_v11  ;;  %v13704_v30 = vld [vmem:[#allocation6 + $0xec0] sm:$0xff]  ;;  %v7508_v10 = vpack.c.bf16 %v7502_v34, %v7502_v34 }
 0x64a   : > { %8359 = vmatmul.bf16.vlgmr.msra.gmra.mxu0 %v12258_v46  ;;  %7496 = vst [vmem:[#allocation5 + $0x38] sm:$0xf] %v7401_v63  ;;  %v7520_v40 = vld [vmem:[#allocation4 + $0x16] sm:$0xff]  ;;  %8430 = vmatpush.bf16.msra.mxu3 %v13704_v30 }
 0x64b   : > { %v15222_v57 = vsel %vm14526_vm13, %v7377_v37, 0.0  ;;  %8383 = vmatmul.bf16.vlgmr.msra.gmra.mxu1 %v12262_v33  ;;  %v7396_v41 = vld [vmem:[#allocation4 + $0x19] sm:$0xff]  ;;  %7550 = vst [vmem:[#allocation5 + $0x44] sm:$0xf] %v7455_v36  ;;  %v7519_v36 = vld [vmem:[#allocation4 + $0xe] sm:$0xff]  ;;  %8453 = vmatpush.bf16.msrb.mxu0 %v13713_v9  ;;  %v7526_v33 = vpack.c.bf16 %v7520_v40, %v7520_v40 }
 0x64c   : > { %v7414_v12 = vld [vmem:[#allocation4 + $0x1a] sm:$0xff]  ;;  %7389 = vst [vmem:[#allocation4 + $0x28] sm:$0xff] %v15222_v57  ;;  %v7402_v17 = vpack.c.bf16 %v7396_v41, %v7396_v41  ;;  %v7525_v19 = vpack.c.bf16 %v7519_v36, %v7519_v36  ;;  %8495 = vmatpush.bf16.msrb.mxu2 %v13735_v13  ;;  %v7475_v43 = vpack.c.bf16 %v15222_v57, %v15222_v57 }
 0x64d   : > { %v7432_v3 = vld [vmem:[#allocation4 + $0x1b] sm:$0xff]  ;;  %v7420_v42 = vpack.c.bf16 %v7414_v12, %v7414_v12  ;;  %v12285_v56 = vld [vmem:[#allocation5 + $0x48] sm:$0xf]  ;;  %7513 = vst [vmem:[#allocation5 + $0x18] sm:$0xf] %v7507_v38  ;;  %8477 = vmatpush.bf16.msrb.mxu1 %v13721_v39  ;;  %v7474_v12 = vpack.c.bf16 %v15215_v54, %v15215_v54 }
 0x64e   : > { %v7438_v0 = vpack.c.bf16 %v7432_v3, %v7432_v3  ;;  %v7450_v1 = vld [vmem:[#allocation4 + $0x1f] sm:$0xff]  ;;  %v7370_v49 = vpop.f32.mrf.mxu1  ;;  %7408 = vst [vmem:[#allocation5 + $0x6c] sm:$0xf] %v7402_v17  ;;  %v13646_v8 = vld [vmem:[#allocation5 + $0x4c] sm:$0xf] }
 0x64f   : > { %v15225_v47 = vpack.c.bf16 %v7450_v1, %v7450_v1  ;;  %v7371_v44 = vadd.f32 %v7370_v49, %v7347_v22  ;;  %7426 = vst [vmem:[#allocation5 + $0x70] sm:$0xf] %v7420_v42  ;;  %v12293_v14 = vld [vmem:[#allocation5 + $0x50] sm:$0xf]  ;;  %v13712_v46 = vld [vmem:[#allocation6 + $0xf00] sm:$0xff]  ;;  %v13734_v54 = vld [vmem:[#allocation6 + $0xfb0] sm:$0xff] }
 0x650   : > { %7444 = vst [vmem:[#allocation5 + $0x74] sm:$0xf] %v7438_v0  ;;  %v13647_v61 = vld [vmem:[#allocation5 + $0x54] sm:$0xf]  ;;  %v13720_v37 = vld [vmem:[#allocation6 + $0xf40] sm:$0xff]  ;;  %8454 = vmatpush.bf16.msrb.mxu0 %v13712_v46  ;;  %8496 = vmatpush.bf16.msrb.mxu2 %v13734_v54 }
 0x651   : > { %v7378_v20 = vmax.f32 %v7371_v44, 0.0  ;;  %7462 = vst [vmem:[#allocation5 + $0x78] sm:$0xf] %v15225_v47  ;;  %8478 = vmatpush.bf16.msrb.mxu1 %v13720_v37  ;;  %v7503_v18 = vld [vmem:[#allocation4 + $0x1d] sm:$0xff]  ;;  %v12265_v46 = vld [vmem:[#allocation5 + $0x10] sm:$0xf] }
 0x652   : > { %7497 = vst [vmem:[#allocation5 + $0x5c] sm:$0xf] %v7402_v17  ;;  %v7521_v26 = vld [vmem:[#allocation4 + $0x1e] sm:$0xff]  ;;  %v7509_v49 = vpack.c.bf16 %v7503_v18, %v7503_v18 }
 0x653   : > { %v15232_v51 = vsel %vm14537_vm0, %v7378_v20, 0.0  ;;  %v7397_v29 = vld [vmem:[#allocation4 + $0x21] sm:$0xff]  ;;  %7514 = vst [vmem:[#allocation5 + $0x3c] sm:$0xf] %v7508_v10  ;;  %v7527_v25 = vpack.c.bf16 %v7521_v26, %v7521_v26 }
 0x654   : > { %v7415_v52 = vld [vmem:[#allocation4 + $0x22] sm:$0xff]  ;;  %7390 = vst [vmem:[#allocation4 + $0x30] sm:$0xff] %v15232_v51  ;;  %v15235_v21 = vpack.c.bf16 %v7397_v29, %v7397_v29  ;;  %v7476_v32 = vpack.c.bf16 %v15232_v51, %v15232_v51  ;;  %v13732_v51 = vld [vmem:[#allocation6 + $0xfa0] sm:$0xff] }
 0x655   : > { %v7433_v63 = vld [vmem:[#allocation4 + $0x23] sm:$0xff]  ;;  %v7421_v23 = vpack.c.bf16 %v7415_v52, %v7415_v52  ;;  %v13650_v48 = vld [vmem:[#allocation5 + $0x68] sm:$0xf0]  ;;  %7531 = vst [vmem:[#allocation5 + $0x1c] sm:$0xf] %v7525_v19 }
 0x656   : > { %v7439_v4 = vpack.c.bf16 %v7433_v63, %v7433_v63  ;;  %v7451_v58 = vld [vmem:[#allocation4 + $0x27] sm:$0xff]  ;;  %v12286_v28 = vor.u32 %v13650_v48, %v12285_v56  ;;  %v12287_v15 = vld [vmem:[#allocation5 + $0x6c] sm:$0xf0]  ;;  %7409 = vst [vmem:[#allocation5 + $0x90] sm:$0xf] %v15235_v21 }
 0x657   : > { %v15237_v24 = vpack.c.bf16 %v7451_v58, %v7451_v58  ;;  %v12290_v35 = vor.u32 %v13646_v8, %v12287_v15  ;;  %v13651_v55 = vld [vmem:[#allocation5 + $0x70] sm:$0xf0]  ;;  %7427 = vst [vmem:[#allocation5 + $0x94] sm:$0xf] %v7421_v23  ;;  %v13733_v44 = vld [vmem:[#allocation6 + $0xfa8] sm:$0xff] }
 0x658   : > { %8316 = vmatmul.bf16.gmra.mxu2 %v12286_v28  ;;  %v12294_v45 = vor.u32 %v13651_v55, %v12293_v14  ;;  %v12295_v53 = vld [vmem:[#allocation5 + $0x74] sm:$0xf0]  ;;  %7445 = vst [vmem:[#allocation5 + $0x98] sm:$0xf] %v7439_v4  ;;  %v7504_v60 = vld [vmem:[#allocation4 + $0x25] sm:$0xff]  ;;  %v13731_v58 = vld [vmem:[#allocation6 + $0xf98] sm:$0xff] }
 0x659   : > { %8340 = vmatmul.bf16.gmra.mxu3 %v12290_v35  ;;  %v12298_v41 = vor.u32 %v13647_v61, %v12295_v53  ;;  %7463 = vst [vmem:[#allocation5 + $0x9c] sm:$0xf] %v15237_v24  ;;  %v7522_v11 = vld [vmem:[#allocation4 + $0x26] sm:$0xff]  ;;  %v7510_v20 = vpack.c.bf16 %v7504_v60, %v7504_v60  ;;  %8497 = vmatpush.bf16.msrb.mxu2 %v13733_v44  ;;  %v12267_v55 = vld [vmem:[#allocation5 + $0x34] sm:$0xf0] }
 0x65a   : > { %8364 = vmatmul.bf16.gmra.mxu0 %v12294_v45  ;;  %7532 = vst [vmem:[#allocation5 + $0x40] sm:$0xf] %v7526_v33  ;;  %v7528_v5 = vpack.c.bf16 %v7522_v11, %v7522_v11  ;;  %v13730_v35 = vld [vmem:[#allocation6 + $0xf90] sm:$0xff]  ;;  %v13644_v19 = vld [vmem:[#allocation5 + $0x38] sm:$0xf0] }
 0x65b   : > { %8388 = vmatmul.bf16.gmra.mxu1 %v12298_v41  ;;  %v7398_v3 = vld [vmem:[#allocation4 + $0x29] sm:$0xff]  ;;  %7480 = vst [vmem:[#allocation5 + $0x7c] sm:$0xf] %v7474_v12  ;;  %v7488_v4 = vld [vmem:[#allocation4 + $0x31] sm:$0xff]  ;;  %v13648_v54 = vld [vmem:[#allocation5 + $0x5c] sm:$0xf] }
 0x65c   : > { %v7416_v6 = vld [vmem:[#allocation4 + $0x2a] sm:$0xff]  ;;  %v7404_v42 = vpack.c.bf16 %v7398_v3, %v7398_v3  ;;  %7498 = vst [vmem:[#allocation5 + $0x80] sm:$0xf] %v15235_v21  ;;  %v7494_v34 = vpack.c.bf16 %v7488_v4, %v7488_v4  ;;  %v7506_v48 = vld [vmem:[#allocation4 + $0x35] sm:$0xff] }
 0x65d   : > { %v7434_v17 = vld [vmem:[#allocation4 + $0x2b] sm:$0xff]  ;;  %v7422_v0 = vpack.c.bf16 %v7416_v6, %v7416_v6  ;;  %7515 = vst [vmem:[#allocation5 + $0x60] sm:$0xf] %v7509_v49  ;;  %8498 = vmatpush.bf16.msrb.mxu2 %v13732_v51  ;;  %v7512_v28 = vpack.c.bf16 %v7506_v48, %v7506_v48  ;;  %v7524_v61 = vld [vmem:[#allocation4 + $0x36] sm:$0xff] }
 0x65e   : > { %v7440_v1 = vpack.c.bf16 %v7434_v17, %v7434_v17  ;;  %v7452_v16 = vld [vmem:[#allocation4 + $0x2f] sm:$0xff]  ;;  %7410 = vst [vmem:[#allocation5 + $0xb4] sm:$0xf] %v7404_v42  ;;  %v7530_v10 = vpack.c.bf16 %v7524_v61, %v7524_v61  ;;  %v7542_v40 = vld [vmem:[#allocation4 + $0x37] sm:$0xff]  ;;  %v13729_v17 = vld [vmem:[#allocation6 + $0xf88] sm:$0xff] }
 0x65f   : > { %v7458_v22 = vpack.c.bf16 %v7452_v16, %v7452_v16  ;;  %7428 = vst [vmem:[#allocation5 + $0xb8] sm:$0xf] %v7422_v0  ;;  %v12321_v9 = vld [vmem:[#allocation5 + $0x90] sm:$0xf]  ;;  %v13655_v56 = vld [vmem:[#allocation5 + $0x94] sm:$0xf] }
 0x660   : > { %7446 = vst [vmem:[#allocation5 + $0xbc] sm:$0xf] %v7440_v1  ;;  %v12329_v52 = vld [vmem:[#allocation5 + $0x98] sm:$0xf]  ;;  %v13656_v8 = vld [vmem:[#allocation5 + $0x9c] sm:$0xf] }
 0x661   : > { %7464 = vst [vmem:[#allocation5 + $0xc0] sm:$0xf] %v7458_v22  ;;  %v7505_v36 = vld [vmem:[#allocation4 + $0x2d] sm:$0xff]  ;;  %8499 = vmatpush.bf16.msrb.mxu2 %v13731_v58  ;;  %v12275_v37 = vld [vmem:[#allocation5 + $0x3c] sm:$0xf0] }
 0x662   : > { %7533 = vst [vmem:[#allocation5 + $0x64] sm:$0xf] %v7527_v25  ;;  %v7511_v14 = vpack.c.bf16 %v7505_v36, %v7505_v36  ;;  %v7523_v15 = vld [vmem:[#allocation4 + $0x2e] sm:$0xff]  ;;  %v12273_v41 = vld [vmem:[#allocation5 + $0x18] sm:$0xf] }
 0x663   : > { %7481 = vst [vmem:[#allocation5 + $0xa0] sm:$0xf] %v7475_v43  ;;  %v7529_v30 = vpack.c.bf16 %v7523_v15, %v7523_v15  ;;  %v13639_v53 = vld [vmem:[#allocation5 + $0x14] sm:$0xf]  ;;  %v12274_v12 = vor.u32 %v13644_v19, %v12273_v41  ;;  %v13640_v3 = vld [vmem:[#allocation5 + $0x1c] sm:$0xf] }
 0x664   : > { %7516 = vst [vmem:[#allocation5 + $0x84] sm:$0xf] %v7510_v20  ;;  %v12270_v33 = vor.u32 %v13639_v53, %v12267_v55  ;;  %v12278_v6 = vor.u32 %v13640_v3, %v12275_v37  ;;  %v13652_v0 = vld [vmem:[#allocation5 + $0x78] sm:$0xf0]  ;;  %v12303_v1 = vld [vmem:[#allocation5 + $0x7c] sm:$0xf0] }
 0x665   : > { %v13659_v39 = vld [vmem:[#allocation5 + $0xb0] sm:$0xf0]  ;;  %7534 = vst [vmem:[#allocation5 + $0x88] sm:$0xf] %v7528_v5  ;;  %8500 = vmatpush.bf16.msrb.mxu2 %v13730_v35  ;;  %v12301_v16 = vld [vmem:[#allocation5 + $0x58] sm:$0xf]  ;;  %v12306_v26 = vor.u32 %v13648_v54, %v12303_v1 }
 0x666   : > { %v12322_v27 = vor.u32 %v13659_v39, %v12321_v9  ;;  %v12323_v29 = vld [vmem:[#allocation5 + $0xb4] sm:$0xf0]  ;;  %7482 = vst [vmem:[#allocation5 + $0xc4] sm:$0xf] %v7476_v32  ;;  %v12309_v49 = vld [vmem:[#allocation5 + $0x60] sm:$0xf] }
 0x667   : > { %v12326_v57 = vor.u32 %v13655_v56, %v12323_v29  ;;  %v13660_v63 = vld [vmem:[#allocation5 + $0xb8] sm:$0xf0]  ;;  %7499 = vst [vmem:[#allocation5 + $0xa4] sm:$0xf] %v7404_v42 }
 0x668   : > { %8321 = vmatmul.bf16.gmra.mxu2 %v12322_v27  ;;  %v12330_v38 = vor.u32 %v13660_v63, %v12329_v52  ;;  %v12331_v21 = vld [vmem:[#allocation5 + $0xbc] sm:$0xf0]  ;;  %7551 = vst [vmem:[#allocation5 + $0x68] sm:$0xf] %v15225_v47  ;;  %v7548_v47 = vpack.c.bf16 %v7542_v40, %v7542_v40  ;;  %v13728_v42 = vld [vmem:[#allocation6 + $0xf80] sm:$0xff] }
 0x669   : > { %8345 = vmatmul.bf16.gmra.mxu3 %v12326_v57  ;;  %v12334_v23 = vor.u32 %v13656_v8, %v12331_v21  ;;  %7552 = vst [vmem:[#allocation5 + $0x8c] sm:$0xf] %v15237_v24  ;;  %v13643_v24 = vld [vmem:[#allocation5 + $0x30] sm:$0xf0]  ;;  %8501 = vmatpush.bf16.msrb.mxu2 %v13729_v17  ;;  %v13649_v43 = vld [vmem:[#allocation5 + $0x64] sm:$0xf] }
 0x66a   : > { %8369 = vmatmul.bf16.gmra.mxu0 %v12330_v38  ;;  %7553 = vst [vmem:[#allocation5 + $0xb0] sm:$0xf] %v7458_v22  ;;  %v12266_v45 = vor.u32 %v13643_v24, %v12265_v46  ;;  %v12302_v22 = vor.u32 %v13652_v0, %v12301_v16  ;;  %v12337_v5 = vld [vmem:[#allocation5 + $0xa0] sm:$0xf]  ;;  %v13645_v63 = vld [vmem:[#allocation5 + $0x40] sm:$0xf0] }
 0x66b   : > { %8393 = vmatmul.bf16.gmra.mxu1 %v12334_v23  ;;  %7500 = vst [vmem:[#allocation5 + $0xc8] sm:$0xf] %v7494_v34  ;;  %v13653_v13 = vld [vmem:[#allocation5 + $0x80] sm:$0xf0]  ;;  %v12281_v38 = vld [vmem:[#allocation5 + $0x20] sm:$0xf] }
 0x66c   : > { %7517 = vst [vmem:[#allocation5 + $0xa8] sm:$0xf] %v7511_v14  ;;  %v12311_v18 = vld [vmem:[#allocation5 + $0x84] sm:$0xf0]  ;;  %v12310_v25 = vor.u32 %v13653_v13, %v12309_v49  ;;  %v12282_v8 = vor.u32 %v13645_v63, %v12281_v38  ;;  %v15272_v16 = vld [vmem:[#allocation8 + $0x6] ss:$0 sm:$0xff] }
 0x66d   : > { %7518 = vst [vmem:[#allocation5 + $0xcc] sm:$0xf] %v7512_v28  ;;  %8502 = vmatpush.bf16.msrb.mxu2 %v13728_v42  ;;  %v12314_v44 = vor.u32 %v13649_v43, %v12311_v18  ;;  %v13661_v60 = vld [vmem:[#allocation5 + $0xc0] sm:$0xf0]  ;;  %v13769_v17 = vld [vmem:[#allocation6 + $0xff0] sm:$0xff] }
 0x66e   : > { %7535 = vst [vmem:[#allocation5 + $0xac] sm:$0xf] %v7529_v30  ;;  %v13657_v11 = vld [vmem:[#allocation5 + $0xa4] sm:$0xf]  ;;  %v12338_v39 = vor.u32 %v13661_v60, %v12337_v5  ;;  %v13777_v63 = vld [vmem:[#allocation6 + $0x1030] sm:$0xff] }
 0x66f   : > { %7536 = vst [vmem:[#allocation5 + $0xd0] sm:$0xf] %v7530_v10  ;;  %v12317_v23 = vld [vmem:[#allocation5 + $0x68] sm:$0xf]  ;;  %v13768_v42 = vld [vmem:[#allocation6 + $0xfe8] sm:$0xff] }
 0x670   : > { %7554 = vst [vmem:[#allocation5 + $0xd4] sm:$0xf] %v7548_v47  ;;  %v13654_v21 = vld [vmem:[#allocation5 + $0x88] sm:$0xf0] }
 0x671   : > { %v12318_v51 = vor.u32 %v13654_v21, %v12317_v23  ;;  %v12353_v4 = vld [vmem:[#allocation5 + $0xb0] sm:$0xf]  ;;  %v13785_v38 = vld [vmem:[#allocation6 + $0x1070] sm:$0xff] }
 0x672   : > { %v12339_v20 = vld [vmem:[#allocation5 + $0xc4] sm:$0xf0] }
 0x673   : > { %v12345_v32 = vld [vmem:[#allocation5 + $0xa8] sm:$0xf]  ;;  %v12342_v29 = vor.u32 %v13657_v11, %v12339_v20 }
 0x674   : > { %v13662_v9 = vld [vmem:[#allocation5 + $0xc8] sm:$0xf0] }
 0x675   : > { %v13658_v27 = vld [vmem:[#allocation5 + $0xac] sm:$0xf]  ;;  %v12346_v57 = vor.u32 %v13662_v9, %v12345_v32  ;;  %v13778_v9 = vld [vmem:[#allocation6 + $0x1038] sm:$0xff] }
 0x676   : > { %v12347_v56 = vld [vmem:[#allocation5 + $0xcc] sm:$0xf0]  ;;  %9505 = vmatpush.bf16.msra.mxu0 %v13778_v9  ;;  %v13793_v21 = vld [vmem:[#allocation6 + $0x10b0] sm:$0xff] }
 0x677   : > { %v12350_v52 = vor.u32 %v13658_v27, %v12347_v56  ;;  %v13663_v58 = vld [vmem:[#allocation5 + $0xd0] sm:$0xf0] }
 0x678   : > { %8407 = vmatmul.bf16.vlgmr.msra.gmra.mxu2 %v12266_v45  ;;  %v12354_v34 = vor.u32 %v13663_v58, %v12353_v4  ;;  %v13794_v27 = vld [vmem:[#allocation6 + $0x10b8] sm:$0xff] }
 0x679   : > { %8431 = vmatmul.bf16.vlgmr.msra.gmra.mxu3 %v12270_v33  ;;  %v13770_v33 = vld [vmem:[#allocation6 + $0xff8] sm:$0xff]  ;;  %9553 = vmatpush.bf16.msra.mxu2 %v13794_v27 }
 0x67a   : > { %8455 = vmatmul.bf16.vlgmr.msrb.gmra.mxu0 %v12274_v12  ;;  %9481 = vmatpush.bf16.msrb.mxu3 %v13770_v33 }
 0x67b   : > { %8479 = vmatmul.bf16.vlgmr.msrb.gmra.mxu1 %v12278_v6  ;;  %9506 = vmatpush.bf16.msra.mxu0 %v13777_v63  ;;  %v13765_v63 = vld [vmem:[#allocation6 + $0xfd0] sm:$0xff] }
 0x67d   : > { %9554 = vmatpush.bf16.msra.mxu2 %v13793_v21 }
 0x67e   : > { %9482 = vmatpush.bf16.msrb.mxu3 %v13769_v17 }
 0x682   : > { %9483 = vmatpush.bf16.msrb.mxu3 %v13768_v42 }
 0x688   : > { %8412 = vmatmul.bf16.gmra.mxu2 %v12302_v22 }
 0x689   : > { %8436 = vmatmul.bf16.gmra.mxu3 %v12306_v26 }
 0x68a   : > { %8460 = vmatmul.bf16.gmra.mxu0 %v12310_v25 }
 0x68b   : > { %8484 = vmatmul.bf16.gmra.mxu1 %v12314_v44 }
 0x698   : > { %8417 = vmatmul.bf16.gmra.mxu2 %v12338_v39  ;;  %v13786_v39 = vld [vmem:[#allocation6 + $0x1078] sm:$0xff] }
 0x699   : > { %8441 = vmatmul.bf16.gmra.mxu3 %v12342_v29  ;;  %v13767_v29 = vld [vmem:[#allocation6 + $0xfe0] sm:$0xff]  ;;  %9529 = vmatpush.bf16.msra.mxu1 %v13786_v39 }
 0x69a   : > { %8465 = vmatmul.bf16.gmra.mxu0 %v12346_v57  ;;  %9484 = vmatpush.bf16.msrb.mxu3 %v13767_v29 }
 0x69b   : > { %8489 = vmatmul.bf16.gmra.mxu1 %v12350_v52 }
 0x69d   : > { %9530 = vmatpush.bf16.msra.mxu1 %v13785_v38  ;;  %v13774_v38 = vld [vmem:[#allocation6 + $0x1018] sm:$0xff] }
 0x6a8   : > { %8503 = vmatmul.bf16.vlgmr.msrb.gmra.mxu2 %v12282_v8 }
 0x6b8   : > { %8508 = vmatmul.bf16.gmra.mxu2 %v12318_v51 }
 0x6c7   : > { %v8360_v15 = vpop.f32.mrf.mxu0 }
 0x6c8   : > { %8513 = vmatmul.bf16.gmra.mxu2 %v12354_v34  ;;  %v8384_v61 = vpop.f32.mrf.mxu1 }
 0x6cb   : > { %v8312_v36 = vpop.f32.mrf.mxu2 }
 0x6cc   : > { %v8336_v14 = vpop.f32.mrf.mxu3  ;;  %v8313_v22 = vadd.f32 %v15272_v16, %v8312_v36 }
 0x6ce   : > { %v8337_v26 = vadd.f32 %v8336_v14, %v8313_v22 }
 0x6cf   : > { %v8362_v40 = vpop.f32.mrf.mxu0 }
 0x6d0   : > { %v8386_v35 = vpop.f32.mrf.mxu1  ;;  %v8361_v43 = vadd.f32 %v8360_v15, %v8337_v26  ;;  %v13783_v26 = vld [vmem:[#allocation6 + $0x1060] sm:$0xff] }
 0x6d2   : > { %v8385_v5 = vadd.f32 %v8384_v61, %v8361_v43 }
 0x6d3   : > { %v8314_v48 = vpop.f32.mrf.mxu2 }
 0x6d4   : > { %v8338_v10 = vpop.f32.mrf.mxu3  ;;  %v8315_v44 = vadd.f32 %v15272_v16, %v8314_v48 }
 0x6d6   : > { %v8339_v20 = vadd.f32 %v8338_v10, %v8315_v44  ;;  %v13766_v10 = vld [vmem:[#allocation6 + $0xfd8] sm:$0xff] }
 0x6d7   : > { %v8365_v55 = vpop.f32.mrf.mxu0  ;;  %9485 = vmatpush.bf16.msrb.mxu3 %v13766_v10 }
 0x6d8   : > { %v15256_v19 = vpop.f32.mrf.mxu1  ;;  %v8363_v57 = vadd.f32 %v8362_v40, %v8339_v20  ;;  %v13776_v40 = vld [vmem:[#allocation6 + $0x1028] sm:$0xff] }
 0x6d9   : > { %9507 = vmatpush.bf16.msra.mxu0 %v13776_v40 }
 0x6da   : > { %v8387_v58 = vadd.f32 %v8386_v35, %v8363_v57 }
 0x6db   : > { %v8317_v28 = vpop.f32.mrf.mxu2  ;;  %9486 = vmatpush.bf16.msrb.mxu3 %v13765_v63 }
 0x6dc   : > { %v8341_v24 = vpop.f32.mrf.mxu3  ;;  %v8318_v52 = vadd.f32 %v15272_v16, %v8317_v28 }
 0x6de   : > { %v8342_v4 = vadd.f32 %v8341_v24, %v8318_v52  ;;  %v13792_v24 = vld [vmem:[#allocation6 + $0x10a8] sm:$0xff] }
 0x6df   : > { %v15260_v37 = vpop.f32.mrf.mxu0  ;;  %9555 = vmatpush.bf16.msra.mxu2 %v13792_v24 }
 0x6e0   : > { %v15262_v41 = vpop.f32.mrf.mxu1  ;;  %v8366_v14 = vadd.f32 %v8365_v55, %v8342_v4  ;;  %v8519_v55 = vld [vmem:[#allocation2 + $0x8] sm:$0xff]  ;;  %v13790_v4 = vld [vmem:[#allocation6 + $0x1098] sm:$0xff] }
 0x6e2   : > { %v8390_v35 = vadd.f32 %v15256_v19, %v8366_v14 }
 0x6e3   : > { %v15250_v30 = vpop.f32.mrf.mxu2 }
 0x6e4   : > { %v15258_v45 = vpop.f32.mrf.mxu3  ;;  %v8320_v33 = vadd.f32 %v15272_v16, %v15250_v30 }
 0x6e6   : > { %v8344_v30 = vadd.f32 %v15258_v45, %v8320_v33 }
 0x6e7   : > { %v15266_v6 = vpop.f32.mrf.mxu0 }
 0x6e8   : > { %v15268_v0 = vpop.f32.mrf.mxu1 }
 0x6eb   : > { %v15252_v47 = vpop.f32.mrf.mxu2 }
 0x6ec   : > { %v15264_v12 = vpop.f32.mrf.mxu3  ;;  %v8323_v19 = vadd.f32 %v15272_v16, %v15252_v47 }
 0x6ee   : > { %v8347_v57 = vadd.f32 %v15264_v12, %v8323_v19  ;;  %v13781_v12 = vld [vmem:[#allocation6 + $0x1050] sm:$0xff] }
 0x6ef   : > { %v15277_v54 = vpop.f32.mrf.mxu0 }
 0x6f0   : > { %v15281_v49 = vpop.f32.mrf.mxu1 }
 0x6f3   : > { %v15254_v46 = vpop.f32.mrf.mxu2 }
 0x6f4   : > { %v15274_v13 = vpop.f32.mrf.mxu3 }
 0x6f7   : > { %v8456_v60 = vpop.f32.mrf.mxu0 }
 0x6f8   : > { %v8480_v56 = vpop.f32.mrf.mxu1 }
 0x6fb   : > { %v8408_v53 = vpop.f32.mrf.mxu2 }
 0x6fc   : > { %v8432_v25 = vpop.f32.mrf.mxu3  ;;  %v8409_v32 = vadd.f32 %v8408_v53, %v8385_v5  ;;  %v13784_v53 = vld [vmem:[#allocation6 + $0x1068] sm:$0xff] }
 0x6fd   : > { %9531 = vmatpush.bf16.msra.mxu1 %v13784_v53 }
 0x6fe   : > { %v8433_v23 = vadd.f32 %v8432_v25, %v8409_v32  ;;  %v13791_v25 = vld [vmem:[#allocation6 + $0x10a0] sm:$0xff]  ;;  %v15299_v32 = vld [vmem:[%s14112_s12] ss:$0 sm:$0xff] }
 0x6ff   : > { %v8458_v34 = vpop.f32.mrf.mxu0  ;;  %9556 = vmatpush.bf16.msra.mxu2 %v13791_v25 }
 0x700   : > { %v8457_v36 = vadd.f32 %v8456_v60, %v8433_v23  ;;  %v8482_v28 = vpop.f32.mrf.mxu1  ;;  %v8520_v23 = vld [vmem:[#allocation2 + $0x10] sm:$0xff] }
 0x701   : > { %9532 = vmatpush.bf16.msra.mxu1 %v13783_v26 }
 0x702   : > { %v8481_v61 = vadd.f32 %v8480_v56, %v8457_v36  ;;  %v8368_v56 = vadd.f32 %v15260_v37, %v8344_v30  ;;  %v13764_v36 = vld [vmem:[#allocation6 + $0xfc8] sm:$0xff]  ;;  %v8325_v37 = vadd.f32 %v15272_v16, %v15254_v46 }
 0x703   : > { %v8410_v3 = vpop.f32.mrf.mxu2  ;;  %9557 = vmatpush.bf16.msra.mxu2 %v13790_v4  ;;  %9487 = vmatpush.bf16.msrb.mxu3 %v13764_v36  ;;  %v13772_v36 = vld [vmem:[#allocation6 + $0x1008] sm:$0xff] }
 0x704   : > { %v8434_v8 = vpop.f32.mrf.mxu3  ;;  %v8411_v48 = vadd.f32 %v8410_v3, %v8387_v58  ;;  %v13775_v3 = vld [vmem:[#allocation6 + $0x1020] sm:$0xff]  ;;  %v8392_v14 = vadd.f32 %v15262_v41, %v8368_v56 }
 0x705   : > { %9508 = vmatpush.bf16.msra.mxu0 %v13775_v3 }
 0x706   : > { %v8435_v15 = vadd.f32 %v8434_v8, %v8411_v48  ;;  %v13782_v8 = vld [vmem:[#allocation6 + $0x1058] sm:$0xff]  ;;  %v13773_v48 = vld [vmem:[#allocation6 + $0x1010] sm:$0xff] }
 0x707   : > { %v8461_v20 = vpop.f32.mrf.mxu0  ;;  %9533 = vmatpush.bf16.msra.mxu1 %v13782_v8 }
 0x708   : > { %v8459_v43 = vadd.f32 %v8458_v34, %v8435_v15  ;;  %v8485_v47 = vpop.f32.mrf.mxu1  ;;  %v8371_v15 = vadd.f32 %v15266_v6, %v8347_v57  ;;  %v8349_v6 = vadd.f32 %v15274_v13, %v8325_v37  ;;  %v13788_v37 = vld [vmem:[#allocation6 + $0x1088] sm:$0xff] }
 0x709   : > { %9509 = vmatpush.bf16.msra.mxu0 %v13774_v38 }
 0x70a   : > { %v8483_v27 = vadd.f32 %v8482_v28, %v8459_v43  ;;  %v13789_v28 = vld [vmem:[#allocation6 + $0x1090] sm:$0xff]  ;;  %v8373_v19 = vadd.f32 %v15277_v54, %v8349_v6 }
 0x70b   : > { %v15270_v1 = vpop.f32.mrf.mxu2  ;;  %9534 = vmatpush.bf16.msra.mxu1 %v13781_v12  ;;  %9558 = vmatpush.bf16.msra.mxu2 %v13789_v28  ;;  %v13763_v28 = vld [vmem:[#allocation6 + $0xfc0] sm:$0xff] }
 0x70c   : > { %v8437_v17 = vpop.f32.mrf.mxu3  ;;  %v8414_v44 = vadd.f32 %v15270_v1, %v8390_v35  ;;  %v8397_v38 = vadd.f32 %v15281_v49, %v8373_v19  ;;  %v13779_v49 = vld [vmem:[#allocation6 + $0x1040] sm:$0xff]  ;;  %9488 = vmatpush.bf16.msrb.mxu3 %v13763_v28 }
 0x70d   : > { %9510 = vmatpush.bf16.msra.mxu0 %v13773_v48  ;;  %v13780_v48 = vld [vmem:[#allocation6 + $0x1048] sm:$0xff] }
 0x70e   : > { %v8438_v1 = vadd.f32 %v8437_v17, %v8414_v44 }
 0x70f   : > { %v8463_v17 = vpop.f32.mrf.mxu0  ;;  %9535 = vmatpush.bf16.msra.mxu1 %v13780_v48  ;;  %9559 = vmatpush.bf16.msra.mxu2 %v13788_v37 }
 0x710   : > { %v8462_v58 = vadd.f32 %v8461_v20, %v8438_v1  ;;  %v8487_v43 = vpop.f32.mrf.mxu1 }
 0x711   : > { %9511 = vmatpush.bf16.msra.mxu0 %v13772_v36  ;;  %v8524_v36 = vld [vmem:[#allocation2 + $0x30] sm:$0xff] }
 0x713   : > { %v15279_v18 = vpop.f32.mrf.mxu2  ;;  %9536 = vmatpush.bf16.msra.mxu1 %v13779_v49 }
 0x714   : > { %v8439_v21 = vpop.f32.mrf.mxu3 }
 0x717   : > { %v8466_v54 = vpop.f32.mrf.mxu0 }
 0x71b   : > { %v15284_v11 = vpop.f32.mrf.mxu2 }
 0x71c   : > { %v8442_v20 = vpop.f32.mrf.mxu3 }
 0x723   : > { %v15287_v51 = vpop.f32.mrf.mxu2 }
 0x72b   : > { %v8504_v42 = vpop.f32.mrf.mxu2 }
 0x72c   : > { %v8505_v22 = vadd.f32 %v8504_v42, %v8481_v61  ;;  %v8416_v42 = vadd.f32 %v15279_v18, %v8392_v14  ;;  %v8490_v14 = vpop.f32.mrf.mxu1 }
 0x72e   : > { %v8525_v60 = vadd.f32 %v8519_v55, %v8505_v22  ;;  %v8486_v22 = vadd.f32 %v8485_v47, %v8462_v58  ;;  %v8395_v55 = vadd.f32 %v15268_v0, %v8371_v15  ;;  %v8440_v44 = vadd.f32 %v8439_v21, %v8416_v42  ;;  %v13771_v15 = vld [vmem:[#allocation6 + $0x1000] sm:$0xff] }
 0x72f   : > { %9512 = vmatpush.bf16.msra.mxu0 %v13771_v15 }
 0x730   : > { %v8531_v5 = vsel %vm14340_vm1, %v8525_v60, 0.0  ;;  %v8543_v9 = vadd.f32 %v15299_v32, %v8525_v60  ;;  %v8521_v60 = vld [vmem:[#allocation2 + $0x18] sm:$0xff]  ;;  %v8419_v30 = vadd.f32 %v15284_v11, %v8395_v55  ;;  %v8464_v1 = vadd.f32 %v8463_v17, %v8440_v44  ;;  %v8523_v44 = vld [vmem:[#allocation2 + $0x28] sm:$0xff] }
 0x731   : > { %8537 = vst [vmem:[#allocation2 + $0x8] sm:$0xff] %v8531_v5  ;;  %v8645_v39 = vpack.c.bf16 %v8531_v5, %v8531_v5 }
 0x732   : > { %v8549_v45 = vsel %vm14340_vm1, %v8543_v9, 0.0  ;;  %v8488_v4 = vadd.f32 %v8487_v43, %v8464_v1  ;;  %v8468_v43 = vpop.f32.mrf.mxu0 }
 0x733   : > { %8555 = vst [vmem:[#allocation3 + $0x8] sm:$0xff] %v8549_v45  ;;  %v8506_v29 = vpop.f32.mrf.mxu2 }
 0x734   : > { %8651 = vst [vmem:[#allocation5 + $0x10] sm:$0xf] %v8645_v39  ;;  %v8507_v52 = vadd.f32 %v8506_v29, %v8483_v27  ;;  %v8443_v29 = vadd.f32 %v8442_v20, %v8419_v30 }
 0x736   : > { %v8526_v34 = vadd.f32 %v8520_v23, %v8507_v52  ;;  %v8467_v58 = vadd.f32 %v8466_v54, %v8443_v29 }
 0x738   : > { %v8564_v61 = vld [vmem:[#allocation2 + $0x1] sm:$0xff]  ;;  %v8532_v53 = vsel %vm14383_vm10, %v8526_v34, 0.0  ;;  %v8544_v33 = vadd.f32 %v15299_v32, %v8526_v34  ;;  %v8421_v34 = vadd.f32 %v15287_v51, %v8397_v38  ;;  %v8444_v51 = vpop.f32.mrf.mxu3 }
 0x739   : > { %v8583_v10 = vld [vmem:[#allocation2 + $0x2] sm:$0xff]  ;;  %v8570_v46 = vpack.c.bf16 %v8564_v61, %v8564_v61  ;;  %8538 = vst [vmem:[#allocation2 + $0x10] sm:$0xff] %v8532_v53  ;;  %v8646_v26 = vpack.c.bf16 %v8532_v53, %v8532_v53 }
 0x73a   : > { %v8602_v40 = vld [vmem:[#allocation2 + $0x3] sm:$0xff]  ;;  %v8589_v16 = vpack.c.bf16 %v8583_v10, %v8583_v10  ;;  %v8550_v18 = vsel %vm14383_vm10, %v8544_v33, 0.0 }
 0x73b   : > { %v8608_v41 = vpack.c.bf16 %v8602_v40, %v8602_v40  ;;  %v8621_v24 = vld [vmem:[#allocation2 + $0x7] sm:$0xff]  ;;  %8576 = vst [vmem:[#allocation5] sm:$0xf] %v8570_v46  ;;  %v8509_v3 = vpop.f32.mrf.mxu2  ;;  %v8445_v46 = vadd.f32 %v8444_v51, %v8421_v34 }
 0x73c   : > { %v8627_v35 = vpack.c.bf16 %v8621_v24, %v8621_v24  ;;  %8595 = vst [vmem:[#allocation5 + $0x4] sm:$0xf] %v8589_v16  ;;  %v8510_v25 = vadd.f32 %v8509_v3, %v8486_v22  ;;  %v13787_v24 = vld [vmem:[#allocation6 + $0x1080] sm:$0xff] }
 0x73d   : > { %8614 = vst [vmem:[#allocation5 + $0x8] sm:$0xf] %v8608_v41  ;;  %v8522_v41 = vld [vmem:[#allocation2 + $0x20] sm:$0xff]  ;;  %9560 = vmatpush.bf16.msra.mxu2 %v13787_v24 }
 0x73e   : > { %8633 = vst [vmem:[#allocation5 + $0xc] sm:$0xf] %v8627_v35  ;;  %v8527_v13 = vadd.f32 %v8521_v60, %v8510_v25  ;;  %v8491_v35 = vadd.f32 %v8490_v14, %v8467_v58  ;;  %v8469_v60 = vadd.f32 %v8468_v43, %v8445_v46  ;;  %v13817_v43 = vld [vmem:[#allocation6 + $0x1170] sm:$0xff] }
 0x73f   : > { %8556 = vst [vmem:[#allocation3 + $0x10] sm:$0xff] %v8550_v18 }
 0x740   : > { %v8565_v5 = vld [vmem:[#allocation2 + $0x9] sm:$0xff]  ;;  %8652 = vst [vmem:[#allocation5 + $0x34] sm:$0xf] %v8646_v26  ;;  %v15322_v39 = vsel %vm14428_vm3, %v8527_v13, 0.0  ;;  %v8545_v21 = vadd.f32 %v15299_v32, %v8527_v13 }
 0x741   : > { %v8584_v0 = vld [vmem:[#allocation2 + $0xa] sm:$0xff]  ;;  %v8571_v45 = vpack.c.bf16 %v8565_v5, %v8565_v5  ;;  %8539 = vst [vmem:[#allocation2 + $0x18] sm:$0xff] %v15322_v39  ;;  %v8647_v18 = vpack.c.bf16 %v15322_v39, %v15322_v39 }
 0x742   : > { %v8603_v9 = vld [vmem:[#allocation2 + $0xb] sm:$0xff]  ;;  %v8590_v27 = vpack.c.bf16 %v8584_v0, %v8584_v0  ;;  %v8551_v61 = vsel %vm14428_vm3, %v8545_v21, 0.0  ;;  %v12645_v20 = vld [vmem:[#allocation5] sm:$0xf] }
 0x743   : > { %v8609_v56 = vpack.c.bf16 %v8603_v9, %v8603_v9  ;;  %v8622_v47 = vld [vmem:[#allocation2 + $0xf] sm:$0xff]  ;;  %8577 = vst [vmem:[#allocation5 + $0x24] sm:$0xf] %v8571_v45  ;;  %v8511_v63 = vpop.f32.mrf.mxu2  ;;  %v13736_v39 = vld [vmem:[#allocation5 + $0x4] sm:$0xf] }
 0x744   : > { %v8677_v11 = vld [vmem:[#allocation2 + $0xd] sm:$0xff]  ;;  %v8628_v57 = vpack.c.bf16 %v8622_v47, %v8622_v47  ;;  %8596 = vst [vmem:[#allocation5 + $0x28] sm:$0xf] %v8590_v27  ;;  %v8512_v12 = vadd.f32 %v8511_v63, %v8488_v4  ;;  %v8492_v47 = vpop.f32.mrf.mxu1 }
 0x745   : > { %v8696_v52 = vld [vmem:[#allocation2 + $0xe] sm:$0xff]  ;;  %v8683_v8 = vpack.c.bf16 %v8677_v11, %v8677_v11  ;;  %8615 = vst [vmem:[#allocation5 + $0x2c] sm:$0xf] %v8609_v56  ;;  %v12653_v11 = vld [vmem:[#allocation5 + $0x8] sm:$0xf]  ;;  %v8493_v38 = vadd.f32 %v8492_v47, %v8469_v60  ;;  %v13808_v47 = vld [vmem:[#allocation6 + $0x1128] sm:$0xff] }
 0x746   : > { %v8702_v23 = vpack.c.bf16 %v8696_v52, %v8696_v52  ;;  %8634 = vst [vmem:[#allocation5 + $0x30] sm:$0xf] %v8628_v57  ;;  %v8528_v3 = vadd.f32 %v8522_v41, %v8512_v12  ;;  %v13802_v56 = vld [vmem:[#allocation6 + $0x10f8] sm:$0xff]  ;;  %v13737_v54 = vld [vmem:[#allocation5 + $0xc] sm:$0xf] }
 0x747   : > { %8670 = vst [vmem:[#allocation5 + $0x14] sm:$0xf] %v8571_v45  ;;  %9577 = vmatpush.bf16.msra.mxu3 %v13802_v56 }
 0x748   : > { %8689 = vst [vmem:[#allocation5 + $0x18] sm:$0xf] %v8683_v8  ;;  %v8566_v10 = vld [vmem:[#allocation2 + $0x11] sm:$0xff]  ;;  %v8546_v0 = vadd.f32 %v15299_v32, %v8528_v3  ;;  %v8534_v45 = vsel %vm14505_vm8, %v8528_v3, 0.0 }
 0x749   : > { %v8585_v40 = vld [vmem:[#allocation2 + $0x12] sm:$0xff]  ;;  %8708 = vst [vmem:[#allocation5 + $0x1c] sm:$0xf] %v8702_v23  ;;  %v8572_v33 = vpack.c.bf16 %v8566_v10, %v8566_v10  ;;  %v8648_v21 = vpack.c.bf16 %v8534_v45, %v8534_v45 }
 0x74a   : > { %v8604_v53 = vld [vmem:[#allocation2 + $0x13] sm:$0xff]  ;;  %v8591_v17 = vpack.c.bf16 %v8585_v40, %v8585_v40  ;;  %8727 = vst [vmem:[#allocation5 + $0x20] sm:$0xf] %v8628_v57  ;;  %v13740_v19 = vld [vmem:[#allocation5 + $0x20] sm:$0xf0]  ;;  %v8552_v8 = vsel %vm14505_vm8, %v8546_v0, 0.0 }
 0x74b   : > { %v8623_v42 = vld [vmem:[#allocation2 + $0x17] sm:$0xff]  ;;  %v8610_v16 = vpack.c.bf16 %v8604_v53, %v8604_v53  ;;  %8557 = vst [vmem:[#allocation3 + $0x18] sm:$0xff] %v8551_v61  ;;  %v8514_v55 = vpop.f32.mrf.mxu2  ;;  %v12646_v9 = vor.u32 %v13740_v19, %v12645_v20  ;;  %v12647_v1 = vld [vmem:[#allocation5 + $0x24] sm:$0xf0]  ;;  %v13800_v40 = vld [vmem:[#allocation6 + $0x10e8] sm:$0xff] }
 0x74c   : > { %v8629_v22 = vpack.c.bf16 %v8623_v42, %v8623_v42  ;;  %v8678_v6 = vld [vmem:[#allocation2 + $0x15] sm:$0xff]  ;;  %8578 = vst [vmem:[#allocation5 + $0x48] sm:$0xf] %v8572_v33  ;;  %v8515_v25 = vadd.f32 %v8514_v55, %v8491_v35  ;;  %v12650_v27 = vor.u32 %v13736_v39, %v12647_v1  ;;  %v13741_v29 = vld [vmem:[#allocation5 + $0x28] sm:$0xf0] }
 0x74d   : > { %v8697_v26 = vld [vmem:[#allocation2 + $0x16] sm:$0xff]  ;;  %8597 = vst [vmem:[#allocation5 + $0x4c] sm:$0xf] %v8591_v17  ;;  %v8684_v30 = vpack.c.bf16 %v8678_v6, %v8678_v6  ;;  %9489 = vmatmul.bf16.vlgmr.msrb.gmra.mxu3 %v12646_v9  ;;  %v12654_v52 = vor.u32 %v13741_v29, %v12653_v11  ;;  %v12655_v63 = vld [vmem:[#allocation5 + $0x2c] sm:$0xf0]  ;;  %v13801_v61 = vld [vmem:[#allocation6 + $0x10f0] sm:$0xff] }
 0x74e   : > { %8616 = vst [vmem:[#allocation5 + $0x50] sm:$0xf] %v8610_v16  ;;  %v8529_v13 = vadd.f32 %v8523_v44, %v8515_v25  ;;  %v8703_v5 = vpack.c.bf16 %v8697_v26, %v8697_v26  ;;  %9513 = vmatmul.bf16.vlgmr.msra.gmra.mxu0 %v12650_v27  ;;  %v12658_v4 = vor.u32 %v13737_v54, %v12655_v63  ;;  %v13810_v10 = vld [vmem:[#allocation6 + $0x1138] sm:$0xff]  ;;  %v13799_v26 = vld [vmem:[#allocation6 + $0x10e0] sm:$0xff]  ;;  %v13809_v25 = vld [vmem:[#allocation6 + $0x1130] sm:$0xff] }
 0x74f   : > { %8635 = vst [vmem:[#allocation5 + $0x54] sm:$0xf] %v8629_v22  ;;  %9537 = vmatmul.bf16.vlgmr.msra.gmra.mxu1 %v12654_v52  ;;  %v13818_v53 = vld [vmem:[#allocation6 + $0x1178] sm:$0xff]  ;;  %9578 = vmatpush.bf16.msra.mxu3 %v13801_v61  ;;  %v13825_v39 = vld [vmem:[#allocation6 + $0x11b0] sm:$0xff]  ;;  %v13816_v11 = vld [vmem:[#allocation6 + $0x1168] sm:$0xff] }
 0x750   : > { %8653 = vst [vmem:[#allocation5 + $0x58] sm:$0xf] %v8647_v18  ;;  %v8547_v57 = vadd.f32 %v15299_v32, %v8529_v13  ;;  %v8535_v23 = vsel %vm14526_vm13, %v8529_v13, 0.0  ;;  %9561 = vmatmul.bf16.vlgmr.msra.gmra.mxu2 %v12658_v4  ;;  %9601 = vmatpush.bf16.msrb.mxu0 %v13810_v10  ;;  %v13798_v1 = vld [vmem:[#allocation6 + $0x10d8] sm:$0xff]  ;;  %v13824_v63 = vld [vmem:[#allocation6 + $0x11a8] sm:$0xff]  ;;  %v13807_v4 = vld [vmem:[#allocation6 + $0x1120] sm:$0xff] }
 0x751   : > { %8671 = vst [vmem:[#allocation5 + $0x38] sm:$0xf] %v8572_v33  ;;  %v8649_v37 = vpack.c.bf16 %v8535_v23, %v8535_v23  ;;  %9625 = vmatpush.bf16.msrb.mxu1 %v13818_v53  ;;  %v13806_v10 = vld [vmem:[#allocation6 + $0x1118] sm:$0xff] }
 0x752   : > { %8690 = vst [vmem:[#allocation5 + $0x3c] sm:$0xf] %v8684_v30  ;;  %v8553_v48 = vsel %vm14526_vm13, %v8547_v57, 0.0 }
 0x753   : > { %8709 = vst [vmem:[#allocation5 + $0x40] sm:$0xf] %v8703_v5  ;;  %v8516_v58 = vpop.f32.mrf.mxu2  ;;  %9579 = vmatpush.bf16.msra.mxu3 %v13800_v40  ;;  %v12681_v19 = vld [vmem:[#allocation5 + $0x48] sm:$0xf] }
 0x754   : > { %8728 = vst [vmem:[#allocation5 + $0x44] sm:$0xf] %v8629_v22  ;;  %v8517_v34 = vadd.f32 %v8516_v58, %v8493_v38  ;;  %v13826_v22 = vld [vmem:[#allocation6 + $0x11b8] sm:$0xff]  ;;  %9602 = vmatpush.bf16.msrb.mxu0 %v13809_v25  ;;  %v13745_v9 = vld [vmem:[#allocation5 + $0x4c] sm:$0xf] }
 0x755   : > { %8540 = vst [vmem:[#allocation2 + $0x20] sm:$0xff] %v8534_v45  ;;  %9649 = vmatpush.bf16.msrb.mxu2 %v13826_v22  ;;  %9626 = vmatpush.bf16.msrb.mxu1 %v13817_v43  ;;  %v12689_v56 = vld [vmem:[#allocation5 + $0x50] sm:$0xf]  ;;  %v13821_v43 = vld [vmem:[#allocation6 + $0x1190] sm:$0xff] }
 0x756   : > { %8558 = vst [vmem:[#allocation3 + $0x20] sm:$0xff] %v8552_v8  ;;  %v8530_v14 = vadd.f32 %v8524_v36, %v8517_v34  ;;  %v13746_v54 = vld [vmem:[#allocation5 + $0x54] sm:$0xf] }
 0x757   : > { %8654 = vst [vmem:[#allocation5 + $0x7c] sm:$0xf] %v8648_v21  ;;  %9580 = vmatpush.bf16.msra.mxu3 %v13799_v26 }
 0x758   : > { %8541 = vst [vmem:[#allocation2 + $0x28] sm:$0xff] %v8535_v23  ;;  %v8536_v12 = vsel %vm14537_vm0, %v8530_v14, 0.0  ;;  %v8548_v28 = vadd.f32 %v15299_v32, %v8530_v14  ;;  %9603 = vmatpush.bf16.msrb.mxu0 %v13808_v47 }
 0x759   : > { %8559 = vst [vmem:[#allocation3 + $0x28] sm:$0xff] %v8553_v48  ;;  %v8650_v15 = vpack.c.bf16 %v8536_v12, %v8536_v12  ;;  %9650 = vmatpush.bf16.msrb.mxu2 %v13825_v39  ;;  %9627 = vmatpush.bf16.msrb.mxu1 %v13816_v11  ;;  %v13815_v48 = vld [vmem:[#allocation6 + $0x1160] sm:$0xff] }
 0x75a   : > { %8655 = vst [vmem:[#allocation5 + $0xa0] sm:$0xf] %v8649_v37  ;;  %v8554_v49 = vsel %vm14537_vm0, %v8548_v28, 0.0  ;;  %v13797_v37 = vld [vmem:[#allocation6 + $0x10d0] sm:$0xff] }
 0x75b   : > { %8542 = vst [vmem:[#allocation2 + $0x30] sm:$0xff] %v8536_v12  ;;  %9581 = vmatpush.bf16.msra.mxu3 %v13798_v1 }
 0x75c   : > { %v8567_v51 = vld [vmem:[#allocation2 + $0x19] sm:$0xff]  ;;  %8560 = vst [vmem:[#allocation3 + $0x30] sm:$0xff] %v8554_v49  ;;  %9604 = vmatpush.bf16.msrb.mxu0 %v13807_v4 }
 0x75d   : > { %v8586_v33 = vld [vmem:[#allocation2 + $0x1a] sm:$0xff]  ;;  %v8573_v42 = vpack.c.bf16 %v8567_v51, %v8567_v51  ;;  %8656 = vst [vmem:[#allocation5 + $0xc4] sm:$0xf] %v8650_v15  ;;  %9651 = vmatpush.bf16.msrb.mxu2 %v13824_v63  ;;  %9628 = vmatpush.bf16.msrb.mxu1 %v13815_v48  ;;  %v13814_v51 = vld [vmem:[#allocation6 + $0x1158] sm:$0xff] }
 0x75e   : > { %v8605_v17 = vld [vmem:[#allocation2 + $0x1b] sm:$0xff]  ;;  %v8592_v46 = vpack.c.bf16 %v8586_v33, %v8586_v33 }
 0x75f   : > { %v8611_v32 = vpack.c.bf16 %v8605_v17, %v8605_v17  ;;  %v8624_v16 = vld [vmem:[#allocation2 + $0x1f] sm:$0xff]  ;;  %8579 = vst [vmem:[#allocation5 + $0x6c] sm:$0xf] %v8573_v42  ;;  %v8625_v30 = vld [vmem:[#allocation2 + $0x27] sm:$0xff]  ;;  %9582 = vmatpush.bf16.msra.mxu3 %v13797_v37  ;;  %v12663_v4 = vld [vmem:[#allocation5 + $0x34] sm:$0xf0] }
 0x760   : > { %v8679_v41 = vld [vmem:[#allocation2 + $0x1d] sm:$0xff]  ;;  %v8630_v24 = vpack.c.bf16 %v8624_v16, %v8624_v16  ;;  %8598 = vst [vmem:[#allocation5 + $0x70] sm:$0xf] %v8592_v46  ;;  %v8680_v20 = vld [vmem:[#allocation2 + $0x25] sm:$0xff]  ;;  %v8631_v45 = vpack.c.bf16 %v8625_v30, %v8625_v30  ;;  %9605 = vmatpush.bf16.msrb.mxu0 %v13806_v10  ;;  %v13738_v37 = vld [vmem:[#allocation5 + $0x14] sm:$0xf] }
 0x761   : > { %v8698_v35 = vld [vmem:[#allocation2 + $0x1e] sm:$0xff]  ;;  %v8685_v6 = vpack.c.bf16 %v8679_v41, %v8679_v41  ;;  %8617 = vst [vmem:[#allocation5 + $0x74] sm:$0xf] %v8611_v32  ;;  %v8699_v0 = vld [vmem:[#allocation2 + $0x26] sm:$0xff]  ;;  %v8686_v38 = vpack.c.bf16 %v8680_v20, %v8680_v20  ;;  %v13822_v32 = vld [vmem:[#allocation6 + $0x1198] sm:$0xff]  ;;  %9629 = vmatpush.bf16.msrb.mxu1 %v13814_v51 }
 0x762   : > { %v8568_v3 = vld [vmem:[#allocation2 + $0x21] sm:$0xff]  ;;  %v8704_v18 = vpack.c.bf16 %v8698_v35, %v8698_v35  ;;  %8636 = vst [vmem:[#allocation5 + $0x78] sm:$0xf] %v8630_v24  ;;  %v8569_v29 = vld [vmem:[#allocation2 + $0x29] sm:$0xff]  ;;  %v8705_v58 = vpack.c.bf16 %v8699_v0, %v8699_v0  ;;  %v13823_v49 = vld [vmem:[#allocation6 + $0x11a0] sm:$0xff] }
 0x763   : > { %v8587_v55 = vld [vmem:[#allocation2 + $0x22] sm:$0xff]  ;;  %8672 = vst [vmem:[#allocation5 + $0x5c] sm:$0xf] %v8573_v42  ;;  %v8574_v60 = vpack.c.bf16 %v8568_v3, %v8568_v3  ;;  %v8588_v8 = vld [vmem:[#allocation2 + $0x2a] sm:$0xff]  ;;  %v8575_v28 = vpack.c.bf16 %v8569_v29, %v8569_v29  ;;  %v8682_v46 = vld [vmem:[#allocation2 + $0x35] sm:$0xff]  ;;  %9652 = vmatpush.bf16.msrb.mxu2 %v13823_v49 }
 0x764   : > { %v8606_v44 = vld [vmem:[#allocation2 + $0x23] sm:$0xff]  ;;  %8691 = vst [vmem:[#allocation5 + $0x60] sm:$0xf] %v8685_v6  ;;  %v8593_v13 = vpack.c.bf16 %v8587_v55, %v8587_v55  ;;  %v8607_v14 = vld [vmem:[#allocation2 + $0x2b] sm:$0xff]  ;;  %v8594_v61 = vpack.c.bf16 %v8588_v8, %v8588_v8  ;;  %v8701_v22 = vld [vmem:[#allocation2 + $0x36] sm:$0xff]  ;;  %v8688_v55 = vpack.c.bf16 %v8682_v46, %v8682_v46 }
 0x765   : > { %8710 = vst [vmem:[#allocation5 + $0x64] sm:$0xf] %v8704_v18  ;;  %v8612_v5 = vpack.c.bf16 %v8606_v44, %v8606_v44  ;;  %v8626_v15 = vld [vmem:[#allocation2 + $0x2f] sm:$0xff]  ;;  %v8613_v40 = vpack.c.bf16 %v8607_v14, %v8607_v14  ;;  %v13796_v33 = vld [vmem:[#allocation6 + $0x10c8] sm:$0xff]  ;;  %v13795_v3 = vld [vmem:[#allocation6 + $0x10c0] sm:$0xff]  ;;  %v8707_v44 = vpack.c.bf16 %v8701_v22, %v8701_v22 }
 0x766   : > { %8729 = vst [vmem:[#allocation5 + $0x68] sm:$0xf] %v8630_v24  ;;  %v13749_v27 = vld [vmem:[#allocation5 + $0x68] sm:$0xf0]  ;;  %v8663_v53 = vld [vmem:[#allocation2 + $0x31] sm:$0xff]  ;;  %v8632_v17 = vpack.c.bf16 %v8626_v15, %v8626_v15  ;;  %9583 = vmatpush.bf16.msra.mxu3 %v13796_v33  ;;  %v13820_v20 = vld [vmem:[#allocation6 + $0x1188] sm:$0xff] }
 0x767   : > { %8580 = vst [vmem:[#allocation5 + $0x90] sm:$0xf] %v8574_v60  ;;  %v12682_v57 = vor.u32 %v13749_v27, %v12681_v19  ;;  %v12683_v52 = vld [vmem:[#allocation5 + $0x6c] sm:$0xf0]  ;;  %v8669_v16 = vpack.c.bf16 %v8663_v53, %v8663_v53  ;;  %v13805_v24 = vld [vmem:[#allocation6 + $0x1110] sm:$0xff]  ;;  %v8720_v25 = vld [vmem:[#allocation2 + $0x37] sm:$0xff]  ;;  %9653 = vmatpush.bf16.msrb.mxu2 %v13822_v32 }
 0x768   : > { %8599 = vst [vmem:[#allocation5 + $0x94] sm:$0xf] %v8593_v13  ;;  %v12686_v21 = vor.u32 %v13745_v9, %v12683_v52  ;;  %v13750_v23 = vld [vmem:[#allocation5 + $0x70] sm:$0xf0]  ;;  %v13813_v6 = vld [vmem:[#allocation6 + $0x1150] sm:$0xff]  ;;  %9606 = vmatpush.bf16.msrb.mxu0 %v13805_v24  ;;  %v13812_v13 = vld [vmem:[#allocation6 + $0x1148] sm:$0xff]  ;;  %v8726_v19 = vpack.c.bf16 %v8720_v25, %v8720_v25 }
 0x769   : > { %8618 = vst [vmem:[#allocation5 + $0x98] sm:$0xf] %v8612_v5  ;;  %9494 = vmatmul.bf16.gmra.mxu3 %v12682_v57  ;;  %v12690_v34 = vor.u32 %v13750_v23, %v12689_v56  ;;  %v12691_v36 = vld [vmem:[#allocation5 + $0x74] sm:$0xf0]  ;;  %v8681_v42 = vld [vmem:[#allocation2 + $0x2d] sm:$0xff]  ;;  %9630 = vmatpush.bf16.msrb.mxu1 %v13813_v6  ;;  %v13832_v63 = vld [vmem:[#allocation6 + $0x11e8] sm:$0xff] }
 0x76a   : > { %8637 = vst [vmem:[#allocation5 + $0x9c] sm:$0xf] %v8631_v45  ;;  %9518 = vmatmul.bf16.gmra.mxu0 %v12686_v21  ;;  %v12694_v12 = vor.u32 %v13746_v54, %v12691_v36  ;;  %v8700_v41 = vld [vmem:[#allocation2 + $0x2e] sm:$0xff]  ;;  %v8687_v35 = vpack.c.bf16 %v8681_v42, %v8681_v42  ;;  %9584 = vmatpush.bf16.msra.mxu3 %v13795_v3  ;;  %v13803_v0 = vld [vmem:[#allocation6 + $0x1100] sm:$0xff]  ;;  %v12671_v14 = vld [vmem:[#allocation5 + $0x3c] sm:$0xf0] }
 0x76b   : > { %8673 = vst [vmem:[#allocation5 + $0x80] sm:$0xf] %v8574_v60  ;;  %9542 = vmatmul.bf16.gmra.mxu1 %v12690_v34  ;;  %v13834_v18 = vld [vmem:[#allocation6 + $0x11f8] sm:$0xff]  ;;  %v8706_v26 = vpack.c.bf16 %v8700_v41, %v8700_v41  ;;  %v13804_v60 = vld [vmem:[#allocation6 + $0x1108] sm:$0xff]  ;;  %v13833_v9 = vld [vmem:[#allocation6 + $0x11f0] sm:$0xff]  ;;  %9654 = vmatpush.bf16.msrb.mxu2 %v13821_v43 }
 0x76c   : > { %8692 = vst [vmem:[#allocation5 + $0x84] sm:$0xf] %v8686_v38  ;;  %9566 = vmatmul.bf16.gmra.mxu2 %v12694_v12  ;;  %v13811_v27 = vld [vmem:[#allocation6 + $0x1140] sm:$0xff]  ;;  %9607 = vmatpush.bf16.msrb.mxu0 %v13804_v60  ;;  %v13830_v21 = vld [vmem:[#allocation6 + $0x11d8] sm:$0xff]  ;;  %v13829_v36 = vld [vmem:[#allocation6 + $0x11d0] sm:$0xff]  ;;  %v12666_v12 = vor.u32 %v13738_v37, %v12663_v4 }
 0x76d   : > { %8711 = vst [vmem:[#allocation5 + $0x88] sm:$0xf] %v8705_v58  ;;  %9631 = vmatpush.bf16.msrb.mxu1 %v13812_v13  ;;  %v13819_v38 = vld [vmem:[#allocation6 + $0x1180] sm:$0xff]  ;;  %v13742_v23 = vld [vmem:[#allocation5 + $0x30] sm:$0xf0]  ;;  %v13828_v10 = vld [vmem:[#allocation6 + $0x11c8] sm:$0xff] }
 0x76e   : > { %8730 = vst [vmem:[#allocation5 + $0x8c] sm:$0xf] %v8631_v45  ;;  %v12717_v30 = vld [vmem:[#allocation5 + $0x90] sm:$0xf]  ;;  %9673 = vmatpush.bf16.msrb.mxu3 %v13834_v18  ;;  %v13831_v8 = vld [vmem:[#allocation6 + $0x11e0] sm:$0xff] }
 0x76f   : > { %8581 = vst [vmem:[#allocation5 + $0xb4] sm:$0xf] %v8575_v28  ;;  %v13754_v1 = vld [vmem:[#allocation5 + $0x94] sm:$0xf]  ;;  %9655 = vmatpush.bf16.msrb.mxu2 %v13820_v20  ;;  %v12661_v58 = vld [vmem:[#allocation5 + $0x10] sm:$0xf] }
 0x770   : > { %8600 = vst [vmem:[#allocation5 + $0xb8] sm:$0xf] %v8594_v61  ;;  %v12725_v47 = vld [vmem:[#allocation5 + $0x98] sm:$0xf]  ;;  %9608 = vmatpush.bf16.msrb.mxu0 %v13803_v0  ;;  %v13743_v34 = vld [vmem:[#allocation5 + $0x38] sm:$0xf0]  ;;  %v12662_v48 = vor.u32 %v13742_v23, %v12661_v58 }
 0x771   : > { %8619 = vst [vmem:[#allocation5 + $0xbc] sm:$0xf] %v8613_v40  ;;  %v13755_v57 = vld [vmem:[#allocation5 + $0x9c] sm:$0xf]  ;;  %9632 = vmatpush.bf16.msrb.mxu1 %v13811_v27  ;;  %v12697_v33 = vld [vmem:[#allocation5 + $0x58] sm:$0xf] }
 0x772   : > { %8638 = vst [vmem:[#allocation5 + $0xc0] sm:$0xf] %v8632_v17  ;;  %9674 = vmatpush.bf16.msrb.mxu3 %v13833_v9  ;;  %v13739_v49 = vld [vmem:[#allocation5 + $0x1c] sm:$0xf]  ;;  %v12699_v51 = vld [vmem:[#allocation5 + $0x7c] sm:$0xf0] }
 0x773   : > { %8674 = vst [vmem:[#allocation5 + $0xa4] sm:$0xf] %v8575_v28  ;;  %9656 = vmatpush.bf16.msrb.mxu2 %v13819_v38  ;;  %v12669_v28 = vld [vmem:[#allocation5 + $0x18] sm:$0xf]  ;;  %v12674_v61 = vor.u32 %v13739_v49, %v12671_v14  ;;  %v13751_v53 = vld [vmem:[#allocation5 + $0x78] sm:$0xf0] }
 0x774   : > { %8675 = vst [vmem:[#allocation5 + $0xc8] sm:$0xf] %v8669_v16  ;;  %v12670_v15 = vor.u32 %v13743_v34, %v12669_v28  ;;  %v13827_v40 = vld [vmem:[#allocation6 + $0x11c0] sm:$0xff]  ;;  %v12698_v42 = vor.u32 %v13751_v53, %v12697_v33  ;;  %v12707_v32 = vld [vmem:[#allocation5 + $0x84] sm:$0xf0] }
 0x775   : > { %8693 = vst [vmem:[#allocation5 + $0xa8] sm:$0xf] %v8687_v35  ;;  %v13747_v46 = vld [vmem:[#allocation5 + $0x5c] sm:$0xf]  ;;  %v12705_v41 = vld [vmem:[#allocation5 + $0x60] sm:$0xf] }
 0x776   : > { %8694 = vst [vmem:[#allocation5 + $0xcc] sm:$0xf] %v8688_v55  ;;  %v13758_v5 = vld [vmem:[#allocation5 + $0xb0] sm:$0xf0]  ;;  %9675 = vmatpush.bf16.msrb.mxu3 %v13832_v63  ;;  %v12702_v16 = vor.u32 %v13747_v46, %v12699_v51  ;;  %v13748_v35 = vld [vmem:[#allocation5 + $0x64] sm:$0xf] }
 0x777   : > { %8712 = vst [vmem:[#allocation5 + $0xac] sm:$0xf] %v8706_v26  ;;  %v12718_v39 = vor.u32 %v13758_v5, %v12717_v30  ;;  %v12719_v45 = vld [vmem:[#allocation5 + $0xb4] sm:$0xf0]  ;;  %v12710_v22 = vor.u32 %v13748_v35, %v12707_v32  ;;  %v13760_v6 = vld [vmem:[#allocation5 + $0xc0] sm:$0xf0] }
 0x778   : > { %8713 = vst [vmem:[#allocation5 + $0xd0] sm:$0xf] %v8707_v44  ;;  %v12722_v56 = vor.u32 %v13754_v1, %v12719_v45  ;;  %v13759_v11 = vld [vmem:[#allocation5 + $0xb8] sm:$0xf0]  ;;  %v12733_v18 = vld [vmem:[#allocation5 + $0xa0] sm:$0xf] }
 0x779   : > { %8731 = vst [vmem:[#allocation5 + $0xb0] sm:$0xf] %v8632_v17  ;;  %9499 = vmatmul.bf16.gmra.mxu3 %v12718_v39  ;;  %v12726_v29 = vor.u32 %v13759_v11, %v12725_v47  ;;  %v12727_v52 = vld [vmem:[#allocation5 + $0xbc] sm:$0xf0]  ;;  %v13752_v17 = vld [vmem:[#allocation5 + $0x80] sm:$0xf0]  ;;  %v12734_v43 = vor.u32 %v13760_v6, %v12733_v18 }
 0x77a   : > { %8732 = vst [vmem:[#allocation5 + $0xd4] sm:$0xf] %v8726_v19  ;;  %9523 = vmatmul.bf16.gmra.mxu0 %v12722_v56  ;;  %v12730_v54 = vor.u32 %v13755_v57, %v12727_v52  ;;  %9676 = vmatpush.bf16.msrb.mxu3 %v13831_v8  ;;  %v12706_v24 = vor.u32 %v13752_v17, %v12705_v41  ;;  %v13756_v3 = vld [vmem:[#allocation5 + $0xa4] sm:$0xf]  ;;  %v12677_v5 = vld [vmem:[#allocation5 + $0x20] sm:$0xf] }
 0x77b   : > { %9547 = vmatmul.bf16.gmra.mxu1 %v12726_v29  ;;  %v12735_v55 = vld [vmem:[#allocation5 + $0xc4] sm:$0xf0]  ;;  %v13744_v19 = vld [vmem:[#allocation5 + $0x40] sm:$0xf0]  ;;  %v13753_v9 = vld [vmem:[#allocation5 + $0x88] sm:$0xf0] }
 0x77c   : > { %9571 = vmatmul.bf16.gmra.mxu2 %v12730_v54  ;;  %v12741_v26 = vld [vmem:[#allocation5 + $0xa8] sm:$0xf]  ;;  %v12738_v30 = vor.u32 %v13756_v3, %v12735_v55  ;;  %v12678_v0 = vor.u32 %v13744_v19, %v12677_v5 }
 0x77d   : > { %v13761_v25 = vld [vmem:[#allocation5 + $0xc8] sm:$0xf0]  ;;  %v12713_v39 = vld [vmem:[#allocation5 + $0x68] sm:$0xf] }
 0x77e   : > { %9677 = vmatpush.bf16.msrb.mxu3 %v13830_v21  ;;  %v13757_v44 = vld [vmem:[#allocation5 + $0xac] sm:$0xf]  ;;  %v12742_v13 = vor.u32 %v13761_v25, %v12741_v26  ;;  %v12714_v1 = vor.u32 %v13753_v9, %v12713_v39 }
 0x77f   : > { %v12743_v60 = vld [vmem:[#allocation5 + $0xcc] sm:$0xf0] }
 0x780   : > { %v12746_v20 = vor.u32 %v13757_v44, %v12743_v60  ;;  %v12749_v45 = vld [vmem:[#allocation5 + $0xb0] sm:$0xf] }
 0x781   : > { %v13762_v27 = vld [vmem:[#allocation5 + $0xd0] sm:$0xf0] }
 0x782   : > { %9678 = vmatpush.bf16.msrb.mxu3 %v13829_v36  ;;  %v12750_v56 = vor.u32 %v13762_v27, %v12749_v45 }
 0x786   : > { %9679 = vmatpush.bf16.msrb.mxu3 %v13828_v10 }
 0x789   : > { %9585 = vmatmul.bf16.vlgmr.msra.gmra.mxu3 %v12662_v48 }
 0x78a   : > { %9609 = vmatmul.bf16.vlgmr.msrb.gmra.mxu0 %v12666_v12  ;;  %9680 = vmatpush.bf16.msrb.mxu3 %v13827_v40  ;;  %v13949_v40 = vld [vmem:[#allocation8 + $0x7] ss:$0 sm:$0xff] }
 0x78b   : > { %9633 = vmatmul.bf16.vlgmr.msrb.gmra.mxu1 %v12670_v15 }
 0x78c   : > { %9657 = vmatmul.bf16.vlgmr.msrb.gmra.mxu2 %v12674_v61 }
 0x799   : > { %9590 = vmatmul.bf16.gmra.mxu3 %v12698_v42 }
 0x79a   : > { %9614 = vmatmul.bf16.gmra.mxu0 %v12702_v16 }
 0x79b   : > { %9638 = vmatmul.bf16.gmra.mxu1 %v12706_v24 }
 0x79c   : > { %9662 = vmatmul.bf16.gmra.mxu2 %v12710_v22 }
 0x7a9   : > { %9595 = vmatmul.bf16.gmra.mxu3 %v12734_v43 }
 0x7aa   : > { %9619 = vmatmul.bf16.gmra.mxu0 %v12738_v30 }
 0x7ab   : > { %9643 = vmatmul.bf16.gmra.mxu1 %v12742_v13 }
 0x7ac   : > { %9667 = vmatmul.bf16.gmra.mxu2 %v12746_v20 }
 0x7b9   : > { %9681 = vmatmul.bf16.vlgmr.msrb.gmra.mxu3 %v12678_v0 }
 0x7c9   : > { %9686 = vmatmul.bf16.gmra.mxu3 %v12714_v1 }
 0x7cb   : > { %v9514_v29 = vpop.f32.mrf.mxu0 }
 0x7cc   : > { %v9538_v52 = vpop.f32.mrf.mxu1 }
 0x7d0   : > { %v9490_v47 = vpop.f32.mrf.mxu3 }
 0x7d1   : > { %v9491_v51 = vadd.f32 %v13949_v40, %v9490_v47 }
 0x7d3   : > { %v9562_v54 = vpop.f32.mrf.mxu2  ;;  %v9516_v38 = vpop.f32.mrf.mxu0  ;;  %v9515_v42 = vadd.f32 %v9514_v29, %v9491_v51 }
 0x7d4   : > { %v9540_v8 = vpop.f32.mrf.mxu1 }
 0x7d5   : > { %v9539_v16 = vadd.f32 %v9538_v52, %v9515_v42 }
 0x7d7   : > { %v9563_v22 = vadd.f32 %v9562_v54, %v9539_v16 }
 0x7d8   : > { %v9492_v11 = vpop.f32.mrf.mxu3 }
 0x7d9   : > { %9691 = vmatmul.bf16.gmra.mxu3 %v12750_v56  ;;  %v9493_v41 = vadd.f32 %v13949_v40, %v9492_v11 }
 0x7db   : > { %v9564_v23 = vpop.f32.mrf.mxu2  ;;  %v9517_v6 = vadd.f32 %v9516_v38, %v9493_v41 }
 0x7dd   : > { %v9541_v18 = vadd.f32 %v9540_v8, %v9517_v6 }
 0x7df   : > { %v9565_v60 = vadd.f32 %v9564_v23, %v9541_v18 }
 0x7e7   : > { %v9519_v4 = vpop.f32.mrf.mxu0 }
 0x7e8   : > { %v9543_v58 = vpop.f32.mrf.mxu1 }
 0x7ec   : > { %v9495_v57 = vpop.f32.mrf.mxu3 }
 0x7ed   : > { %v9496_v26 = vadd.f32 %v13949_v40, %v9495_v57 }
 0x7ef   : > { %v9567_v36 = vpop.f32.mrf.mxu2  ;;  %v9521_v48 = vpop.f32.mrf.mxu0  ;;  %v9520_v30 = vadd.f32 %v9519_v4, %v9496_v26 }
 0x7f0   : > { %v9545_v14 = vpop.f32.mrf.mxu1 }
 0x7f1   : > { %v9544_v5 = vadd.f32 %v9543_v58, %v9520_v30 }
 0x7f3   : > { %v9568_v56 = vadd.f32 %v9567_v36, %v9544_v5 }
 0x7f4   : > { %v9497_v63 = vpop.f32.mrf.mxu3 }
 0x7f5   : > { %v9498_v0 = vadd.f32 %v13949_v40, %v9497_v63  ;;  %v13953_v63 = vld [vmem:[#allocation4] sm:$0xff] }
 0x7f7   : > { %v9569_v12 = vpop.f32.mrf.mxu2  ;;  %v9524_v28 = vpop.f32.mrf.mxu0  ;;  %v9522_v47 = vadd.f32 %v9521_v48, %v9498_v0 }
 0x7f8   : > { %v9548_v49 = vpop.f32.mrf.mxu1 }
 0x7f9   : > { %v9546_v8 = vadd.f32 %v9545_v14, %v9522_v47 }
 0x7fc   : > { %v9500_v21 = vpop.f32.mrf.mxu3 }
 0x7fd   : > { %v9501_v23 = vadd.f32 %v13949_v40, %v9500_v21 }
 0x7ff   : > { %v15349_v61 = vpop.f32.mrf.mxu2  ;;  %v15351_v53 = vpop.f32.mrf.mxu0 }
 0x800   : > { %v15353_v33 = vpop.f32.mrf.mxu1 }
 0x804   : > { %v15347_v34 = vpop.f32.mrf.mxu3 }
 0x805   : > { %v9503_v41 = vadd.f32 %v13949_v40, %v15347_v34 }
 0x807   : > { %v15355_v46 = vpop.f32.mrf.mxu2  ;;  %v9610_v32 = vpop.f32.mrf.mxu0 }
 0x808   : > { %v9634_v24 = vpop.f32.mrf.mxu1 }
 0x80c   : > { %v9586_v37 = vpop.f32.mrf.mxu3 }
 0x80d   : > { %v9587_v3 = vadd.f32 %v9586_v37, %v9563_v22  ;;  %v9570_v37 = vadd.f32 %v9569_v12, %v9546_v8  ;;  %v9527_v12 = vadd.f32 %v15351_v53, %v9503_v41 }
 0x80f   : > { %v9658_v55 = vpop.f32.mrf.mxu2  ;;  %v9612_v25 = vpop.f32.mrf.mxu0  ;;  %v9611_v43 = vadd.f32 %v9610_v32, %v9587_v3  ;;  %v9551_v34 = vadd.f32 %v15353_v33, %v9527_v12 }
 0x810   : > { %v9636_v13 = vpop.f32.mrf.mxu1 }
 0x811   : > { %v9635_v20 = vadd.f32 %v9634_v24, %v9611_v43 }
 0x813   : > { %v9659_v39 = vadd.f32 %v9658_v55, %v9635_v20 }
 0x814   : > { %v9588_v15 = vpop.f32.mrf.mxu3 }
 0x815   : > { %v9589_v19 = vadd.f32 %v9588_v15, %v9565_v60  ;;  %v9525_v15 = vadd.f32 %v9524_v28, %v9501_v23 }
 0x817   : > { %v9660_v9 = vpop.f32.mrf.mxu2  ;;  %v9613_v1 = vadd.f32 %v9612_v25, %v9589_v19  ;;  %v9615_v45 = vpop.f32.mrf.mxu0  ;;  %v9549_v16 = vadd.f32 %v9548_v49, %v9525_v15 }
 0x818   : > { %v9639_v54 = vpop.f32.mrf.mxu1 }
 0x819   : > { %v9637_v29 = vadd.f32 %v9636_v13, %v9613_v1  ;;  %v9573_v6 = vadd.f32 %v15349_v61, %v9549_v16  ;;  %v9575_v61 = vadd.f32 %v15355_v46, %v9551_v34 }
 0x81b   : > { %v9661_v4 = vadd.f32 %v9660_v9, %v9637_v29 }
 0x81c   : > { %v9591_v10 = vpop.f32.mrf.mxu3 }
 0x81d   : > { %v9592_v57 = vadd.f32 %v9591_v10, %v9568_v56  ;;  %v13954_v56 = vld [vmem:[#allocation4 + $0x38] sm:$0xff] }
 0x81f   : > { %v9616_v58 = vadd.f32 %v9615_v45, %v9592_v57  ;;  %v9663_v36 = vpop.f32.mrf.mxu2  ;;  %v9617_v42 = vpop.f32.mrf.mxu0 }
 0x820   : > { %v9641_v21 = vpop.f32.mrf.mxu1 }
 0x821   : > { %v9640_v32 = vadd.f32 %v9639_v54, %v9616_v58 }
 0x823   : > { %v9664_v14 = vadd.f32 %v9663_v36, %v9640_v32 }
 0x824   : > { %v9593_v17 = vpop.f32.mrf.mxu3 }
 0x825   : > { %v9594_v10 = vadd.f32 %v9593_v17, %v9570_v37 }
 0x827   : > { %v9618_v24 = vadd.f32 %v9617_v42, %v9594_v10  ;;  %v9665_v3 = vpop.f32.mrf.mxu2  ;;  %v9620_v18 = vpop.f32.mrf.mxu0 }
 0x828   : > { %v9644_v25 = vpop.f32.mrf.mxu1 }
 0x829   : > { %v9642_v55 = vadd.f32 %v9641_v21, %v9618_v24 }
 0x82b   : > { %v9666_v40 = vadd.f32 %v9665_v3, %v9642_v55 }
 0x82c   : > { %v9596_v35 = vpop.f32.mrf.mxu3 }
 0x82d   : > { %v9597_v17 = vadd.f32 %v9596_v35, %v9573_v6 }
 0x82f   : > { %v9621_v26 = vadd.f32 %v9620_v18, %v9597_v17  ;;  %v9668_v30 = vpop.f32.mrf.mxu2  ;;  %v9622_v13 = vpop.f32.mrf.mxu0 }
 0x830   : > { %v9646_v0 = vpop.f32.mrf.mxu1 }
 0x831   : > { %v9645_v60 = vadd.f32 %v9644_v25, %v9621_v26 }
 0x833   : > { %v9669_v20 = vadd.f32 %v9668_v30, %v9645_v60 }
 0x834   : > { %v15357_v44 = vpop.f32.mrf.mxu3 }
 0x835   : > { %v9599_v35 = vadd.f32 %v15357_v44, %v9575_v61 }
 0x837   : > { %v9623_v33 = vadd.f32 %v9622_v13, %v9599_v35  ;;  %v9670_v1 = vpop.f32.mrf.mxu2 }
 0x839   : > { %v9647_v9 = vadd.f32 %v9646_v0, %v9623_v33 }
 0x83b   : > { %v9671_v44 = vadd.f32 %v9670_v1, %v9647_v9 }
 0x83c   : > { %v9682_v27 = vpop.f32.mrf.mxu3 }
 0x83d   : > { %v9683_v11 = vadd.f32 %v9682_v27, %v9659_v39 }
 0x83f   : > { %v9697_v52 = vsel %vm14340_vm1, %v9683_v11, 0.0 }
 0x840   : > { %9703 = vst [vmem:[#allocation4 + $0x8] sm:$0xff] %v9697_v52  ;;  %v13854_v38 = vpack.c.bf16 %v9697_v52, %v13953_v63 }
 0x842   : > { %13855 = vst [vmem:[%s15364_s16] sm:$0xff] %v13854_v38  }
 0x844   : > { %v9684_v48 = vpop.f32.mrf.mxu3 }
 0x845   : > { %v9685_v51 = vadd.f32 %v9684_v48, %v9661_v4 }
 0x847   : > { %v9698_v59 = vsel %vm14383_vm10, %v9685_v51, 0.0 }
 0x848   : > { %9704 = vst [vmem:[#allocation4 + $0x10] sm:$0xff] %v9698_v59 }
 0x84c   : > { %v9687_v22 = vpop.f32.mrf.mxu3 }
 0x84d   : > { %v9688_v28 = vadd.f32 %v9687_v22, %v9664_v14 }
 0x84f   : > { %v9699_v31 = vsel %vm14428_vm3, %v9688_v28, 0.0 }
 0x850   : > { %9705 = vst [vmem:[#allocation4 + $0x18] sm:$0xff] %v9699_v31  ;;  %v13859_v49 = vpack.c.bf16 %v9699_v31, %v9698_v59 }
 0x852   : > { %13874 = vst [vmem:[%s15364_s16 + $0x8] sm:$0xff] %v13859_v49  }
 0x854   : > { %v9689_v43 = vpop.f32.mrf.mxu3 }
 0x855   : > { %v9690_v53 = vadd.f32 %v9689_v43, %v9666_v40 }
 0x857   : > { %v9700_v2 = vsel %vm14505_vm8, %v9690_v53, 0.0 }
 0x858   : > { %9706 = vst [vmem:[#allocation4 + $0x20] sm:$0xff] %v9700_v2 }
 0x85c   : > { %v9692_v19 = vpop.f32.mrf.mxu3 }
 0x85d   : > { %v9693_v5 = vadd.f32 %v9692_v19, %v9669_v20 }
 0x85f   : > { %v9701_v46 = vsel %vm14526_vm13, %v9693_v5, 0.0 }
 0x860   : > { %9707 = vst [vmem:[#allocation4 + $0x28] sm:$0xff] %v9701_v46  ;;  %v13864_v39 = vpack.c.bf16 %v9701_v46, %v9700_v2 }
 0x862   : > { %13875 = vst [vmem:[%s15364_s16 + $0x10] sm:$0xff] %v13864_v39  }
 0x864   : > { %v9694_v62 = vpop.f32.mrf.mxu3 }
 0x865   : > { %v9695_v45 = vadd.f32 %v9694_v62, %v9671_v44 }
 0x867   : > { %v9702_v27 = vsel %vm14537_vm0, %v9695_v45, 0.0 }
 0x868   : > { %9708 = vst [vmem:[#allocation4 + $0x30] sm:$0xff] %v9702_v27  ;;  %v13869_v47 = vpack.c.bf16 %v13954_v56, %v9702_v27 }
 0x86a   : > { %13876 = vst [vmem:[%s15364_s16 + $0x18] sm:$0xff] %v13869_v47  }
 0x86b PF: > { %s16_s15 = sadd.s32 1, %s14029_s15  }
 0x86c   : > { %p13_p7 = scmp.ge.s32.totalorder %s16_s15, 4  }
 0x86e   :  { %15 = sbr.rel (!%p13_p7) target bundleno = 2 (0x2), region = 119 }
 0x873   :  { %9754 = vsyncpa [#allocation7], 1 }
 0x874   :  { %9756 = vsyncpa [#allocation7 + $0x1], 1 }
 0x875   :  { %9757 = vsyncpa [#allocation9], 1 }

</bundles_post_ra>
